<compile_context>
chip_gen: v7x
topology: tpu7x:2x2x1
jax: 0.10.0
libtpu: 0.0.40
codegen_flags: <defaults>
</compile_context>

<pallas_src>
import functools

import jax
import jax.numpy as jnp
from jax.experimental import pallas as pl
from jax.experimental.pallas import tpu as pltpu


def _round_up(n, m):
    return (n + m - 1) // m * m


def _flow_head_kernel(H, W, S0, xf_ref, w1_ref, b1_ref, w2_ref, b2_ref, mask_ref,
                      o_ref, hpad_ref):
    """One batch element per grid step.

    xf_ref:   (1, NP, Cin) f32    zero-padded input, flattened (H+2, W+2) grid (+ tail rows)
    w1_ref:   (9, Cin, 2*Ch) bf16 conv1d|conv1n fused along Cout, one (Cin, 2Ch) tap each
    b1_ref:   (1, 2*Ch) f32
    w2_ref:   (9, 2*Ch, Cout) bf16 conv2d|conv2n fused block-diagonally
    b2_ref:   (1, Cout) f32
    mask_ref: (M, 1) f32          1.0 on valid columns (x < W) of the Wp-wide grid, else 0.0
    o_ref:    (1, M, Cout) f32    output on the (H, Wp) padded grid; junk cols sliced in wrapper
    hpad_ref: (SCR, 2*Ch) f32     scratch: zero-padded conv2 input grid, flattened, offset S0
    """
    Wp = W + 2
    M = H * Wp
    C2 = w1_ref.shape[2]

    # ---- conv1 (both branches fused along Cout): 9 per-tap accumulating MXU matmuls. ----
    # Each tap is a direct shifted row-slice of the padded input (no im2col slab); operands
    # are cast to bf16 just before the dot, accumulation is f32.
    acc1 = None
    for dy in range(3):
        for dx in range(3):
            off = dy * Wp + dx
            xs = xf_ref[0, off:off + M, :].astype(jnp.bfloat16)          # (M, Cin)
            p = jnp.dot(xs, w1_ref[3 * dy + dx], preferred_element_type=jnp.float32)
            acc1 = p if acc1 is None else acc1 + p
    # bias + relu in f32; the mask zeroes the junk columns (x >= W on the Wp-wide grid) so
    # that, stored contiguously below, they become exactly the left/right zero padding of
    # the conv2 input grid.
    h = jnp.maximum(acc1 + b1_ref[...], 0.0) * mask_ref[...]             # (M, C2) f32

    # ---- zero-padded conv2 input grid in VMEM scratch, flattened (H+2)*Wp rows. ----
    # Interior store starts at row S0 + Wp + 1 (S0 chosen so this is 8-aligned => unmasked).
    # Only the thin top/bottom border is re-zeroed each step (interior is fully overwritten),
    # which stays correct when a megacore-parallel batch axis gives each core its own scratch.
    top = S0 + Wp + 1
    hpad_ref[0:top, :] = jnp.zeros((top, C2), hpad_ref.dtype)
    hpad_ref[top + M:, :] = jnp.zeros((hpad_ref.shape[0] - top - M, C2), hpad_ref.dtype)
    hpad_ref[top:top + M, :] = h

    # ---- conv2 (both branches fused block-diagonally): 9 per-tap matmuls, K = 2*Ch. ----
    acc2 = None
    for dy in range(3):
        for dx in range(3):
            off = S0 + dy * Wp + dx
            hs = hpad_ref[off:off + M, :].astype(jnp.bfloat16)           # (M, C2)
            p = jnp.dot(hs, w2_ref[3 * dy + dx], preferred_element_type=jnp.float32)
            acc2 = p if acc2 is None else acc2 + p
    o_ref[0] = (acc2 + b2_ref[...]).astype(o_ref.dtype)


def flow_head_pallas(x_nchw, w1d, b1d, w2d, b2d, w1n, b1n, w2n, b2n):
    """x_nchw: (B, Cin, H, W); conv weights in PyTorch OIHW. Returns (B, 6, H, W)."""
    B, Cin, H, W = x_nchw.shape
    Ch = int(w1d.shape[0])                 # hidden_dim // 2
    C2 = 2 * Ch
    n_depth, n_norm = int(w2d.shape[0]), int(w2n.shape[0])
    Cout = n_depth + n_norm
    Wp = W + 2
    M = H * Wp                             # rows of padded output grid (junk cols at x >= W)
    NPAD = (H + 2) * Wp                    # rows of flattened zero-padded input grid
    S0 = (-(Wp + 1)) % 8                   # scratch front pad -> interior store row 8-aligned
    NP = _round_up(NPAD + 2, 8)            # tap (2,2) on junk cols over-reads 2 rows past grid
    SCR = _round_up(S0 + NPAD + 2, 8)

    # ---- one-time layout plumbing: NCHW -> flattened padded NHWC grid (f32). ----
    x_pad = jnp.pad(jnp.transpose(x_nchw, (0, 2, 3, 1)),
                    ((0, 0), (1, 1), (1, 1), (0, 0)))                    # (B, H+2, Wp, Cin)
    xf = x_pad.reshape(B, NPAD, Cin)
    xf = jnp.pad(xf, ((0, 0), (0, NP - NPAD), (0, 0)))                   # zero tail rows

    def to_taps(w):                        # OIHW -> (3, 3, Cin, Cout)
        return jnp.transpose(w, (2, 3, 1, 0))

    # conv1d | conv1n fused along output channels -> (9, Cin, 2*Ch), bf16 MXU operands.
    w1 = jnp.concatenate([to_taps(w1d), to_taps(w1n)], axis=-1)
    w1 = w1.reshape(9, Cin, C2).astype(jnp.bfloat16)
    b1 = jnp.concatenate([b1d, b1n]).reshape(1, C2).astype(jnp.float32)

    # conv2d | conv2n fused block-diagonally -> (9, 2*Ch, Cout); output columns already in
    # torch.cat((depth, normal), dim=1) order.
    w2_full = jnp.zeros((3, 3, C2, Cout), jnp.float32)
    w2_full = w2_full.at[:, :, :Ch, :n_depth].set(to_taps(w2d))
    w2_full = w2_full.at[:, :, Ch:, n_depth:].set(to_taps(w2n))
    w2 = w2_full.reshape(9, C2, Cout).astype(jnp.bfloat16)
    b2 = jnp.concatenate([b2d, b2n]).reshape(1, Cout).astype(jnp.float32)

    # 1.0 on columns x < W of the Wp-wide padded grid (0.0 on the two junk columns per row).
    mask = (jnp.arange(M) % Wp < W).astype(jnp.float32).reshape(M, 1)

    flops = int(B * (2 * M * (9 * Cin) * C2 + 2 * M * (9 * C2) * Cout))
    bytes_accessed = int(4 * (xf.size + B * M * Cout + b1.size + b2.size + mask.size)
                         + 2 * (w1.size + w2.size))

    kernel = functools.partial(_flow_head_kernel, H, W, S0)

    out = pl.pallas_call(
        kernel,
        out_shape=jax.ShapeDtypeStruct((B, M, Cout), jnp.float32),
        grid_spec=pltpu.PrefetchScalarGridSpec(
            num_scalar_prefetch=0,
            grid=(B,),
            in_specs=[
                pl.BlockSpec((1, NP, Cin), lambda b: (b, 0, 0)),
                pl.BlockSpec((9, Cin, C2), lambda b: (0, 0, 0)),
                pl.BlockSpec((1, C2), lambda b: (0, 0)),
                pl.BlockSpec((9, C2, Cout), lambda b: (0, 0, 0)),
                pl.BlockSpec((1, Cout), lambda b: (0, 0)),
                pl.BlockSpec((M, 1), lambda b: (0, 0)),
            ],
            out_specs=pl.BlockSpec((1, M, Cout), lambda b: (b, 0, 0)),
            scratch_shapes=[pltpu.VMEM((SCR, C2), jnp.float32)],
        ),
        compiler_params=pltpu.CompilerParams(
            dimension_semantics=("parallel",),
            vmem_limit_bytes=32 * 1024 * 1024),
        cost_estimate=pl.CostEstimate(flops=flops, transcendentals=0,
                                      bytes_accessed=bytes_accessed),
    )(xf, w1, b1, w2, b2, mask)

    # Drop the 2 junk columns of the Wp-wide grid and return NCHW (tiny: B*6*H*W f32 copy).
    out = out.reshape(B, H, Wp, Cout)[:, :, :W, :]
    return jnp.transpose(out, (0, 3, 1, 2))


def flow_head_reference(x, w1d, b1d, w2d, b2d, w1n, b1n, w2n, b2n):
    """Pure-JAX replica of the PyTorch forward (NCHW, SAME padding, tuning_mode=None)."""
    dn = ('NCHW', 'OIHW', 'NCHW')

    def conv(inp, w, b):
        y = jax.lax.conv_general_dilated(inp, w, (1, 1), 'SAME', dimension_numbers=dn)
        return y + b[None, :, None, None]

    depth = conv(jnp.maximum(conv(x, w1d, b1d), 0.0), w2d, b2d)
    normal = conv(jnp.maximum(conv(x, w1n, b1n), 0.0), w2n, b2n)
    return jnp.concatenate([depth, normal], axis=1)


if __name__ == "__main__":
    # FlowHead defaults: input_dim=128, hidden_dim=256 -> hidden//2=128,
    # output_dim_depth=2, output_dim_norm=4, tuning_mode=None.
    B, Cin, H, W = 2, 128, 16, 16
    Ch, n_depth, n_norm = 128, 2, 4

    key = jax.random.PRNGKey(0)
    ks = jax.random.split(key, 9)

    x = jax.random.normal(ks[0], (B, Cin, H, W), dtype=jnp.float32)

    def conv_params(kw, kb, cout, cin):
        fan_in = cin * 9
        bound = 1.0 / (fan_in ** 0.5)
        w = jax.random.uniform(kw, (cout, cin, 3, 3), jnp.float32, -bound, bound)
        b = jax.random.uniform(kb, (cout,), jnp.float32, -bound, bound)
        return w, b

    w1d, b1d = conv_params(ks[1], ks[2], Ch, Cin)        # conv1d
    w2d, b2d = conv_params(ks[3], ks[4], n_depth, Ch)    # conv2d
    w1n, b1n = conv_params(ks[5], ks[6], Ch, Cin)        # conv1n
    w2n, b2n = conv_params(ks[7], ks[8], n_norm, Ch)     # conv2n

    out = flow_head_pallas(x, w1d, b1d, w2d, b2d, w1n, b1n, w2n, b2n)
    out = jax.block_until_ready(out)

    ref = flow_head_reference(x, w1d, b1d, w2d, b2d, w1n, b1n, w2n, b2n)
    assert out.shape == (B, n_depth + n_norm, H, W)
    err = jnp.max(jnp.abs(out - ref))
    # bf16 MXU operands with f32 accumulation (plus differing f32 summation order) ->
    # slightly looser tolerance than a pure-f32 path.
    assert jnp.allclose(out, ref, atol=2e-2, rtol=2e-2), f"max abs err = {err}"

    print("KERNEL_OK")
</pallas_src>

<mosaic_0001>
module attributes {stable_mosaic.version = 11 : i64} {
  func.func @_flow_head_kernel(%arg0: i32, %arg1: memref<1x328x128xf32, #tpu.memory_space<vmem>>, %arg2: memref<9x128x256xbf16, #tpu.memory_space<vmem>>, %arg3: memref<1x256xf32, #tpu.memory_space<vmem>>, %arg4: memref<9x256x6xbf16, #tpu.memory_space<vmem>>, %arg5: memref<1x6xf32, #tpu.memory_space<vmem>>, %arg6: memref<288x1xf32, #tpu.memory_space<vmem>>, %arg7: memref<1x288x6xf32, #tpu.memory_space<vmem>>, %arg8: memref<336x256xf32, #tpu.memory_space<vmem>>) attributes {dimension_semantics = [#tpu.dimension_semantics<parallel>], iteration_bounds = array<i64: 2>, scalar_prefetch = 0 : i64, scratch_operands = 1 : i64, tpu.core_type = #tpu.core_type<tc>, window_params = [{transform_indices = @transform_0, window_bounds = array<i64: 1, 328, 128>}, {pipeline_mode = #tpu.pipeline_mode<synchronous>, transform_indices = @transform_1, window_bounds = array<i64: 9, 128, 256>}, {pipeline_mode = #tpu.pipeline_mode<synchronous>, transform_indices = @transform_2, window_bounds = array<i64: 1, 256>}, {pipeline_mode = #tpu.pipeline_mode<synchronous>, transform_indices = @transform_3, window_bounds = array<i64: 9, 256, 6>}, {pipeline_mode = #tpu.pipeline_mode<synchronous>, transform_indices = @transform_4, window_bounds = array<i64: 1, 6>}, {pipeline_mode = #tpu.pipeline_mode<synchronous>, transform_indices = @transform_5, window_bounds = array<i64: 288, 1>}, {transform_indices = @transform_6, window_bounds = array<i64: 1, 288, 6>}]} {
    %c0 = arith.constant 0 : index
    %c0_0 = arith.constant 0 : index
    %c0_1 = arith.constant 0 : index
    %0 = vector.load %arg1[%c0, %c0_0, %c0_1] : memref<1x328x128xf32, #tpu.memory_space<vmem>>, vector<1x288x128xf32>
    %1 = vector.shape_cast %0 : vector<1x288x128xf32> to vector<288x128xf32>
    %2 = arith.truncf %1 : vector<288x128xf32> to vector<288x128xbf16>
    %c0_2 = arith.constant 0 : index
    %c0_3 = arith.constant 0 : index
    %c0_4 = arith.constant 0 : index
    %3 = vector.load %arg2[%c0_2, %c0_3, %c0_4] : memref<9x128x256xbf16, #tpu.memory_space<vmem>>, vector<1x128x256xbf16>
    %4 = vector.shape_cast %3 : vector<1x128x256xbf16> to vector<128x256xbf16>
    %cst = arith.constant dense<0.000000e+00> : vector<288x256xf32>
    %5 = tpu.matmul %2, %4, %cst {dimension_numbers = #tpu.dot_dimension_numbers<[1], [0], [0], [1], [0, 0, 1, 1], [], []>} : vector<288x128xbf16>, vector<128x256xbf16>, vector<288x256xf32> -> vector<288x256xf32>
    %c0_5 = arith.constant 0 : index
    %c1 = arith.constant 1 : index
    %c0_6 = arith.constant 0 : index
    %6 = vector.load %arg1[%c0_5, %c1, %c0_6] : memref<1x328x128xf32, #tpu.memory_space<vmem>>, vector<1x288x128xf32>
    %7 = vector.shape_cast %6 : vector<1x288x128xf32> to vector<288x128xf32>
    %8 = arith.truncf %7 : vector<288x128xf32> to vector<288x128xbf16>
    %c1_7 = arith.constant 1 : index
    %c0_8 = arith.constant 0 : index
    %c0_9 = arith.constant 0 : index
    %9 = vector.load %arg2[%c1_7, %c0_8, %c0_9] : memref<9x128x256xbf16, #tpu.memory_space<vmem>>, vector<1x128x256xbf16>
    %10 = vector.shape_cast %9 : vector<1x128x256xbf16> to vector<128x256xbf16>
    %cst_10 = arith.constant dense<0.000000e+00> : vector<288x256xf32>
    %11 = tpu.matmul %8, %10, %cst_10 {dimension_numbers = #tpu.dot_dimension_numbers<[1], [0], [0], [1], [0, 0, 1, 1], [], []>} : vector<288x128xbf16>, vector<128x256xbf16>, vector<288x256xf32> -> vector<288x256xf32>
    %12 = arith.addf %5, %11 : vector<288x256xf32>
    %c0_11 = arith.constant 0 : index
    %c2 = arith.constant 2 : index
    %c0_12 = arith.constant 0 : index
    %13 = vector.load %arg1[%c0_11, %c2, %c0_12] : memref<1x328x128xf32, #tpu.memory_space<vmem>>, vector<1x288x128xf32>
    %14 = vector.shape_cast %13 : vector<1x288x128xf32> to vector<288x128xf32>
    %15 = arith.truncf %14 : vector<288x128xf32> to vector<288x128xbf16>
    %c2_13 = arith.constant 2 : index
    %c0_14 = arith.constant 0 : index
    %c0_15 = arith.constant 0 : index
    %16 = vector.load %arg2[%c2_13, %c0_14, %c0_15] : memref<9x128x256xbf16, #tpu.memory_space<vmem>>, vector<1x128x256xbf16>
    %17 = vector.shape_cast %16 : vector<1x128x256xbf16> to vector<128x256xbf16>
    %cst_16 = arith.constant dense<0.000000e+00> : vector<288x256xf32>
    %18 = tpu.matmul %15, %17, %cst_16 {dimension_numbers = #tpu.dot_dimension_numbers<[1], [0], [0], [1], [0, 0, 1, 1], [], []>} : vector<288x128xbf16>, vector<128x256xbf16>, vector<288x256xf32> -> vector<288x256xf32>
    %19 = arith.addf %12, %18 : vector<288x256xf32>
    %c0_17 = arith.constant 0 : index
    %c18 = arith.constant 18 : index
    %c0_18 = arith.constant 0 : index
    %20 = vector.load %arg1[%c0_17, %c18, %c0_18] : memref<1x328x128xf32, #tpu.memory_space<vmem>>, vector<1x288x128xf32>
    %21 = vector.shape_cast %20 : vector<1x288x128xf32> to vector<288x128xf32>
    %22 = arith.truncf %21 : vector<288x128xf32> to vector<288x128xbf16>
    %c3 = arith.constant 3 : index
    %c0_19 = arith.constant 0 : index
    %c0_20 = arith.constant 0 : index
    %23 = vector.load %arg2[%c3, %c0_19, %c0_20] : memref<9x128x256xbf16, #tpu.memory_space<vmem>>, vector<1x128x256xbf16>
    %24 = vector.shape_cast %23 : vector<1x128x256xbf16> to vector<128x256xbf16>
    %cst_21 = arith.constant dense<0.000000e+00> : vector<288x256xf32>
    %25 = tpu.matmul %22, %24, %cst_21 {dimension_numbers = #tpu.dot_dimension_numbers<[1], [0], [0], [1], [0, 0, 1, 1], [], []>} : vector<288x128xbf16>, vector<128x256xbf16>, vector<288x256xf32> -> vector<288x256xf32>
    %26 = arith.addf %19, %25 : vector<288x256xf32>
    %c0_22 = arith.constant 0 : index
    %c19 = arith.constant 19 : index
    %c0_23 = arith.constant 0 : index
    %27 = vector.load %arg1[%c0_22, %c19, %c0_23] : memref<1x328x128xf32, #tpu.memory_space<vmem>>, vector<1x288x128xf32>
    %28 = vector.shape_cast %27 : vector<1x288x128xf32> to vector<288x128xf32>
    %29 = arith.truncf %28 : vector<288x128xf32> to vector<288x128xbf16>
    %c4 = arith.constant 4 : index
    %c0_24 = arith.constant 0 : index
    %c0_25 = arith.constant 0 : index
    %30 = vector.load %arg2[%c4, %c0_24, %c0_25] : memref<9x128x256xbf16, #tpu.memory_space<vmem>>, vector<1x128x256xbf16>
    %31 = vector.shape_cast %30 : vector<1x128x256xbf16> to vector<128x256xbf16>
    %cst_26 = arith.constant dense<0.000000e+00> : vector<288x256xf32>
    %32 = tpu.matmul %29, %31, %cst_26 {dimension_numbers = #tpu.dot_dimension_numbers<[1], [0], [0], [1], [0, 0, 1, 1], [], []>} : vector<288x128xbf16>, vector<128x256xbf16>, vector<288x256xf32> -> vector<288x256xf32>
    %33 = arith.addf %26, %32 : vector<288x256xf32>
    %c0_27 = arith.constant 0 : index
    %c20 = arith.constant 20 : index
    %c0_28 = arith.constant 0 : index
    %34 = vector.load %arg1[%c0_27, %c20, %c0_28] : memref<1x328x128xf32, #tpu.memory_space<vmem>>, vector<1x288x128xf32>
    %35 = vector.shape_cast %34 : vector<1x288x128xf32> to vector<288x128xf32>
    %36 = arith.truncf %35 : vector<288x128xf32> to vector<288x128xbf16>
    %c5 = arith.constant 5 : index
    %c0_29 = arith.constant 0 : index
    %c0_30 = arith.constant 0 : index
    %37 = vector.load %arg2[%c5, %c0_29, %c0_30] : memref<9x128x256xbf16, #tpu.memory_space<vmem>>, vector<1x128x256xbf16>
    %38 = vector.shape_cast %37 : vector<1x128x256xbf16> to vector<128x256xbf16>
    %cst_31 = arith.constant dense<0.000000e+00> : vector<288x256xf32>
    %39 = tpu.matmul %36, %38, %cst_31 {dimension_numbers = #tpu.dot_dimension_numbers<[1], [0], [0], [1], [0, 0, 1, 1], [], []>} : vector<288x128xbf16>, vector<128x256xbf16>, vector<288x256xf32> -> vector<288x256xf32>
    %40 = arith.addf %33, %39 : vector<288x256xf32>
    %c0_32 = arith.constant 0 : index
    %c36 = arith.constant 36 : index
    %c0_33 = arith.constant 0 : index
    %41 = vector.load %arg1[%c0_32, %c36, %c0_33] : memref<1x328x128xf32, #tpu.memory_space<vmem>>, vector<1x288x128xf32>
    %42 = vector.shape_cast %41 : vector<1x288x128xf32> to vector<288x128xf32>
    %43 = arith.truncf %42 : vector<288x128xf32> to vector<288x128xbf16>
    %c6 = arith.constant 6 : index
    %c0_34 = arith.constant 0 : index
    %c0_35 = arith.constant 0 : index
    %44 = vector.load %arg2[%c6, %c0_34, %c0_35] : memref<9x128x256xbf16, #tpu.memory_space<vmem>>, vector<1x128x256xbf16>
    %45 = vector.shape_cast %44 : vector<1x128x256xbf16> to vector<128x256xbf16>
    %cst_36 = arith.constant dense<0.000000e+00> : vector<288x256xf32>
    %46 = tpu.matmul %43, %45, %cst_36 {dimension_numbers = #tpu.dot_dimension_numbers<[1], [0], [0], [1], [0, 0, 1, 1], [], []>} : vector<288x128xbf16>, vector<128x256xbf16>, vector<288x256xf32> -> vector<288x256xf32>
    %47 = arith.addf %40, %46 : vector<288x256xf32>
    %c0_37 = arith.constant 0 : index
    %c37 = arith.constant 37 : index
    %c0_38 = arith.constant 0 : index
    %48 = vector.load %arg1[%c0_37, %c37, %c0_38] : memref<1x328x128xf32, #tpu.memory_space<vmem>>, vector<1x288x128xf32>
    %49 = vector.shape_cast %48 : vector<1x288x128xf32> to vector<288x128xf32>
    %50 = arith.truncf %49 : vector<288x128xf32> to vector<288x128xbf16>
    %c7 = arith.constant 7 : index
    %c0_39 = arith.constant 0 : index
    %c0_40 = arith.constant 0 : index
    %51 = vector.load %arg2[%c7, %c0_39, %c0_40] : memref<9x128x256xbf16, #tpu.memory_space<vmem>>, vector<1x128x256xbf16>
    %52 = vector.shape_cast %51 : vector<1x128x256xbf16> to vector<128x256xbf16>
    %cst_41 = arith.constant dense<0.000000e+00> : vector<288x256xf32>
    %53 = tpu.matmul %50, %52, %cst_41 {dimension_numbers = #tpu.dot_dimension_numbers<[1], [0], [0], [1], [0, 0, 1, 1], [], []>} : vector<288x128xbf16>, vector<128x256xbf16>, vector<288x256xf32> -> vector<288x256xf32>
    %54 = arith.addf %47, %53 : vector<288x256xf32>
    %c0_42 = arith.constant 0 : index
    %c38 = arith.constant 38 : index
    %c0_43 = arith.constant 0 : index
    %55 = vector.load %arg1[%c0_42, %c38, %c0_43] : memref<1x328x128xf32, #tpu.memory_space<vmem>>, vector<1x288x128xf32>
    %56 = vector.shape_cast %55 : vector<1x288x128xf32> to vector<288x128xf32>
    %57 = arith.truncf %56 : vector<288x128xf32> to vector<288x128xbf16>
    %c8 = arith.constant 8 : index
    %c0_44 = arith.constant 0 : index
    %c0_45 = arith.constant 0 : index
    %58 = vector.load %arg2[%c8, %c0_44, %c0_45] : memref<9x128x256xbf16, #tpu.memory_space<vmem>>, vector<1x128x256xbf16>
    %59 = vector.shape_cast %58 : vector<1x128x256xbf16> to vector<128x256xbf16>
    %cst_46 = arith.constant dense<0.000000e+00> : vector<288x256xf32>
    %60 = tpu.matmul %57, %59, %cst_46 {dimension_numbers = #tpu.dot_dimension_numbers<[1], [0], [0], [1], [0, 0, 1, 1], [], []>} : vector<288x128xbf16>, vector<128x256xbf16>, vector<288x256xf32> -> vector<288x256xf32>
    %61 = arith.addf %54, %60 : vector<288x256xf32>
    %c0_47 = arith.constant 0 : index
    %c0_48 = arith.constant 0 : index
    %62 = vector.load %arg3[%c0_47, %c0_48] : memref<1x256xf32, #tpu.memory_space<vmem>>, vector<1x256xf32>
    %63 = vector.broadcast %62 : vector<1x256xf32> to vector<288x256xf32>
    %64 = arith.addf %61, %63 : vector<288x256xf32>
    %cst_49 = arith.constant 0.000000e+00 : f32
    %65 = vector.broadcast %cst_49 : f32 to vector<288x256xf32>
    %66 = arith.maximumf %64, %65 : vector<288x256xf32>
    %c0_50 = arith.constant 0 : index
    %c0_51 = arith.constant 0 : index
    %67 = vector.load %arg6[%c0_50, %c0_51] : memref<288x1xf32, #tpu.memory_space<vmem>>, vector<288x1xf32>
    %68 = vector.broadcast %67 : vector<288x1xf32> to vector<288x256xf32>
    %69 = arith.mulf %66, %68 : vector<288x256xf32>
    %cst_52 = arith.constant 0.000000e+00 : f32
    %70 = vector.broadcast %cst_52 : f32 to vector<24x256xf32>
    %c0_53 = arith.constant 0 : index
    %c0_54 = arith.constant 0 : index
    %71 = vector.load %arg8[%c0_53, %c0_54] : memref<336x256xf32, #tpu.memory_space<vmem>>, vector<24x256xf32>
    tpu.vector_store %arg8[%c0_53, %c0_54], %70 {strides = array<i32>} : memref<336x256xf32, #tpu.memory_space<vmem>>, vector<24x256xf32>,
    %cst_55 = arith.constant 0.000000e+00 : f32
    %72 = vector.broadcast %cst_55 : f32 to vector<24x256xf32>
    %c312 = arith.constant 312 : index
    %c0_56 = arith.constant 0 : index
    %73 = vector.load %arg8[%c312, %c0_56] : memref<336x256xf32, #tpu.memory_space<vmem>>, vector<24x256xf32>
    tpu.vector_store %arg8[%c312, %c0_56], %72 {strides = array<i32>} : memref<336x256xf32, #tpu.memory_space<vmem>>, vector<24x256xf32>,
    %c24 = arith.constant 24 : index
    %c0_57 = arith.constant 0 : index
    %74 = vector.load %arg8[%c24, %c0_57] : memref<336x256xf32, #tpu.memory_space<vmem>>, vector<288x256xf32>
    tpu.vector_store %arg8[%c24, %c0_57], %69 {strides = array<i32>} : memref<336x256xf32, #tpu.memory_space<vmem>>, vector<288x256xf32>,
    %c5_58 = arith.constant 5 : index
    %c0_59 = arith.constant 0 : index
    %75 = vector.load %arg8[%c5_58, %c0_59] : memref<336x256xf32, #tpu.memory_space<vmem>>, vector<288x256xf32>
    %76 = arith.truncf %75 : vector<288x256xf32> to vector<288x256xbf16>
    %c0_60 = arith.constant 0 : index
    %c0_61 = arith.constant 0 : index
    %c0_62 = arith.constant 0 : index
    %77 = vector.load %arg4[%c0_60, %c0_61, %c0_62] : memref<9x256x6xbf16, #tpu.memory_space<vmem>>, vector<1x256x6xbf16>
    %78 = vector.shape_cast %77 : vector<1x256x6xbf16> to vector<256x6xbf16>
    %cst_63 = arith.constant dense<0.000000e+00> : vector<288x6xf32>
    %79 = tpu.matmul %76, %78, %cst_63 {dimension_numbers = #tpu.dot_dimension_numbers<[1], [0], [0], [1], [0, 0, 1, 1], [], []>} : vector<288x256xbf16>, vector<256x6xbf16>, vector<288x6xf32> -> vector<288x6xf32>
    %c6_64 = arith.constant 6 : index
    %c0_65 = arith.constant 0 : index
    %80 = vector.load %arg8[%c6_64, %c0_65] : memref<336x256xf32, #tpu.memory_space<vmem>>, vector<288x256xf32>
    %81 = arith.truncf %80 : vector<288x256xf32> to vector<288x256xbf16>
    %c1_66 = arith.constant 1 : index
    %c0_67 = arith.constant 0 : index
    %c0_68 = arith.constant 0 : index
    %82 = vector.load %arg4[%c1_66, %c0_67, %c0_68] : memref<9x256x6xbf16, #tpu.memory_space<vmem>>, vector<1x256x6xbf16>
    %83 = vector.shape_cast %82 : vector<1x256x6xbf16> to vector<256x6xbf16>
    %cst_69 = arith.constant dense<0.000000e+00> : vector<288x6xf32>
    %84 = tpu.matmul %81, %83, %cst_69 {dimension_numbers = #tpu.dot_dimension_numbers<[1], [0], [0], [1], [0, 0, 1, 1], [], []>} : vector<288x256xbf16>, vector<256x6xbf16>, vector<288x6xf32> -> vector<288x6xf32>
    %85 = arith.addf %79, %84 : vector<288x6xf32>
    %c7_70 = arith.constant 7 : index
    %c0_71 = arith.constant 0 : index
    %86 = vector.load %arg8[%c7_70, %c0_71] : memref<336x256xf32, #tpu.memory_space<vmem>>, vector<288x256xf32>
    %87 = arith.truncf %86 : vector<288x256xf32> to vector<288x256xbf16>
    %c2_72 = arith.constant 2 : index
    %c0_73 = arith.constant 0 : index
    %c0_74 = arith.constant 0 : index
    %88 = vector.load %arg4[%c2_72, %c0_73, %c0_74] : memref<9x256x6xbf16, #tpu.memory_space<vmem>>, vector<1x256x6xbf16>
    %89 = vector.shape_cast %88 : vector<1x256x6xbf16> to vector<256x6xbf16>
    %cst_75 = arith.constant dense<0.000000e+00> : vector<288x6xf32>
    %90 = tpu.matmul %87, %89, %cst_75 {dimension_numbers = #tpu.dot_dimension_numbers<[1], [0], [0], [1], [0, 0, 1, 1], [], []>} : vector<288x256xbf16>, vector<256x6xbf16>, vector<288x6xf32> -> vector<288x6xf32>
    %91 = arith.addf %85, %90 : vector<288x6xf32>
    %c23 = arith.constant 23 : index
    %c0_76 = arith.constant 0 : index
    %92 = vector.load %arg8[%c23, %c0_76] : memref<336x256xf32, #tpu.memory_space<vmem>>, vector<288x256xf32>
    %93 = arith.truncf %92 : vector<288x256xf32> to vector<288x256xbf16>
    %c3_77 = arith.constant 3 : index
    %c0_78 = arith.constant 0 : index
    %c0_79 = arith.constant 0 : index
    %94 = vector.load %arg4[%c3_77, %c0_78, %c0_79] : memref<9x256x6xbf16, #tpu.memory_space<vmem>>, vector<1x256x6xbf16>
    %95 = vector.shape_cast %94 : vector<1x256x6xbf16> to vector<256x6xbf16>
    %cst_80 = arith.constant dense<0.000000e+00> : vector<288x6xf32>
    %96 = tpu.matmul %93, %95, %cst_80 {dimension_numbers = #tpu.dot_dimension_numbers<[1], [0], [0], [1], [0, 0, 1, 1], [], []>} : vector<288x256xbf16>, vector<256x6xbf16>, vector<288x6xf32> -> vector<288x6xf32>
    %97 = arith.addf %91, %96 : vector<288x6xf32>
    %c24_81 = arith.constant 24 : index
    %c0_82 = arith.constant 0 : index
    %98 = vector.load %arg8[%c24_81, %c0_82] : memref<336x256xf32, #tpu.memory_space<vmem>>, vector<288x256xf32>
    %99 = arith.truncf %98 : vector<288x256xf32> to vector<288x256xbf16>
    %c4_83 = arith.constant 4 : index
    %c0_84 = arith.constant 0 : index
    %c0_85 = arith.constant 0 : index
    %100 = vector.load %arg4[%c4_83, %c0_84, %c0_85] : memref<9x256x6xbf16, #tpu.memory_space<vmem>>, vector<1x256x6xbf16>
    %101 = vector.shape_cast %100 : vector<1x256x6xbf16> to vector<256x6xbf16>
    %cst_86 = arith.constant dense<0.000000e+00> : vector<288x6xf32>
    %102 = tpu.matmul %99, %101, %cst_86 {dimension_numbers = #tpu.dot_dimension_numbers<[1], [0], [0], [1], [0, 0, 1, 1], [], []>} : vector<288x256xbf16>, vector<256x6xbf16>, vector<288x6xf32> -> vector<288x6xf32>
    %103 = arith.addf %97, %102 : vector<288x6xf32>
    %c25 = arith.constant 25 : index
    %c0_87 = arith.constant 0 : index
    %104 = vector.load %arg8[%c25, %c0_87] : memref<336x256xf32, #tpu.memory_space<vmem>>, vector<288x256xf32>
    %105 = arith.truncf %104 : vector<288x256xf32> to vector<288x256xbf16>
    %c5_88 = arith.constant 5 : index
    %c0_89 = arith.constant 0 : index
    %c0_90 = arith.constant 0 : index
    %106 = vector.load %arg4[%c5_88, %c0_89, %c0_90] : memref<9x256x6xbf16, #tpu.memory_space<vmem>>, vector<1x256x6xbf16>
    %107 = vector.shape_cast %106 : vector<1x256x6xbf16> to vector<256x6xbf16>
    %cst_91 = arith.constant dense<0.000000e+00> : vector<288x6xf32>
    %108 = tpu.matmul %105, %107, %cst_91 {dimension_numbers = #tpu.dot_dimension_numbers<[1], [0], [0], [1], [0, 0, 1, 1], [], []>} : vector<288x256xbf16>, vector<256x6xbf16>, vector<288x6xf32> -> vector<288x6xf32>
    %109 = arith.addf %103, %108 : vector<288x6xf32>
    %c41 = arith.constant 41 : index
    %c0_92 = arith.constant 0 : index
    %110 = vector.load %arg8[%c41, %c0_92] : memref<336x256xf32, #tpu.memory_space<vmem>>, vector<288x256xf32>
    %111 = arith.truncf %110 : vector<288x256xf32> to vector<288x256xbf16>
    %c6_93 = arith.constant 6 : index
    %c0_94 = arith.constant 0 : index
    %c0_95 = arith.constant 0 : index
    %112 = vector.load %arg4[%c6_93, %c0_94, %c0_95] : memref<9x256x6xbf16, #tpu.memory_space<vmem>>, vector<1x256x6xbf16>
    %113 = vector.shape_cast %112 : vector<1x256x6xbf16> to vector<256x6xbf16>
    %cst_96 = arith.constant dense<0.000000e+00> : vector<288x6xf32>
    %114 = tpu.matmul %111, %113, %cst_96 {dimension_numbers = #tpu.dot_dimension_numbers<[1], [0], [0], [1], [0, 0, 1, 1], [], []>} : vector<288x256xbf16>, vector<256x6xbf16>, vector<288x6xf32> -> vector<288x6xf32>
    %115 = arith.addf %109, %114 : vector<288x6xf32>
    %c42 = arith.constant 42 : index
    %c0_97 = arith.constant 0 : index
    %116 = vector.load %arg8[%c42, %c0_97] : memref<336x256xf32, #tpu.memory_space<vmem>>, vector<288x256xf32>
    %117 = arith.truncf %116 : vector<288x256xf32> to vector<288x256xbf16>
    %c7_98 = arith.constant 7 : index
    %c0_99 = arith.constant 0 : index
    %c0_100 = arith.constant 0 : index
    %118 = vector.load %arg4[%c7_98, %c0_99, %c0_100] : memref<9x256x6xbf16, #tpu.memory_space<vmem>>, vector<1x256x6xbf16>
    %119 = vector.shape_cast %118 : vector<1x256x6xbf16> to vector<256x6xbf16>
    %cst_101 = arith.constant dense<0.000000e+00> : vector<288x6xf32>
    %120 = tpu.matmul %117, %119, %cst_101 {dimension_numbers = #tpu.dot_dimension_numbers<[1], [0], [0], [1], [0, 0, 1, 1], [], []>} : vector<288x256xbf16>, vector<256x6xbf16>, vector<288x6xf32> -> vector<288x6xf32>
    %121 = arith.addf %115, %120 : vector<288x6xf32>
    %c43 = arith.constant 43 : index
    %c0_102 = arith.constant 0 : index
    %122 = vector.load %arg8[%c43, %c0_102] : memref<336x256xf32, #tpu.memory_space<vmem>>, vector<288x256xf32>
    %123 = arith.truncf %122 : vector<288x256xf32> to vector<288x256xbf16>
    %c8_103 = arith.constant 8 : index
    %c0_104 = arith.constant 0 : index
    %c0_105 = arith.constant 0 : index
    %124 = vector.load %arg4[%c8_103, %c0_104, %c0_105] : memref<9x256x6xbf16, #tpu.memory_space<vmem>>, vector<1x256x6xbf16>
    %125 = vector.shape_cast %124 : vector<1x256x6xbf16> to vector<256x6xbf16>
    %cst_106 = arith.constant dense<0.000000e+00> : vector<288x6xf32>
    %126 = tpu.matmul %123, %125, %cst_106 {dimension_numbers = #tpu.dot_dimension_numbers<[1], [0], [0], [1], [0, 0, 1, 1], [], []>} : vector<288x256xbf16>, vector<256x6xbf16>, vector<288x6xf32> -> vector<288x6xf32>
    %127 = arith.addf %121, %126 : vector<288x6xf32>
    %c0_107 = arith.constant 0 : index
    %c0_108 = arith.constant 0 : index
    %128 = vector.load %arg5[%c0_107, %c0_108] : memref<1x6xf32, #tpu.memory_space<vmem>>, vector<1x6xf32>
    %129 = vector.broadcast %128 : vector<1x6xf32> to vector<288x6xf32>
    %130 = arith.addf %127, %129 : vector<288x6xf32>
    %c0_109 = arith.constant 0 : index
    %c0_110 = arith.constant 0 : index
    %c0_111 = arith.constant 0 : index
    %131 = vector.load %arg7[%c0_109, %c0_110, %c0_111] : memref<1x288x6xf32, #tpu.memory_space<vmem>>, vector<1x288x6xf32>
    %132 = vector.shape_cast %131 : vector<1x288x6xf32> to vector<288x6xf32>
    %133 = vector.shape_cast %130 : vector<288x6xf32> to vector<1x288x6xf32>
    tpu.vector_store %arg7[%c0_109, %c0_110, %c0_111], %133 {strides = array<i32>} : memref<1x288x6xf32, #tpu.memory_space<vmem>>, vector<1x288x6xf32>,
    return
  }
  func.func @transform_0(%arg0: i32) -> (i32, i32, i32) {
    %c0_i32 = arith.constant 0 : i32
    %c0_i32_0 = arith.constant 0 : i32
    %c0_i32_1 = arith.constant 0 : i32
    return %arg0, %c0_i32, %c0_i32_0 : i32, i32, i32
  }
  func.func @transform_1(%arg0: i32) -> (i32, i32, i32) {
    %c0_i32 = arith.constant 0 : i32
    %c0_i32_0 = arith.constant 0 : i32
    %c0_i32_1 = arith.constant 0 : i32
    %c0_i32_2 = arith.constant 0 : i32
    return %c0_i32, %c0_i32_0, %c0_i32_1 : i32, i32, i32
  }
  func.func @transform_2(%arg0: i32) -> (i32, i32) {
    %c0_i32 = arith.constant 0 : i32
    %c0_i32_0 = arith.constant 0 : i32
    %c0_i32_1 = arith.constant 0 : i32
    return %c0_i32, %c0_i32_0 : i32, i32
  }
  func.func @transform_3(%arg0: i32) -> (i32, i32, i32) {
    %c0_i32 = arith.constant 0 : i32
    %c0_i32_0 = arith.constant 0 : i32
    %c0_i32_1 = arith.constant 0 : i32
    %c0_i32_2 = arith.constant 0 : i32
    return %c0_i32, %c0_i32_0, %c0_i32_1 : i32, i32, i32
  }
  func.func @transform_4(%arg0: i32) -> (i32, i32) {
    %c0_i32 = arith.constant 0 : i32
    %c0_i32_0 = arith.constant 0 : i32
    %c0_i32_1 = arith.constant 0 : i32
    return %c0_i32, %c0_i32_0 : i32, i32
  }
  func.func @transform_5(%arg0: i32) -> (i32, i32) {
    %c0_i32 = arith.constant 0 : i32
    %c0_i32_0 = arith.constant 0 : i32
    %c0_i32_1 = arith.constant 0 : i32
    return %c0_i32, %c0_i32_0 : i32, i32
  }
  func.func @transform_6(%arg0: i32) -> (i32, i32, i32) {
    %c0_i32 = arith.constant 0 : i32
    %c0_i32_0 = arith.constant 0 : i32
    %c0_i32_1 = arith.constant 0 : i32
    return %arg0, %c0_i32, %c0_i32_0 : i32, i32, i32
  }
}

</mosaic_0001>

<bundles_post_ra>
// kernel: tpu_custom_call.1
= control target key start
LH: loop header
LB: loop body
LE: loop exit
PB: predicated region body
PF: predicated region fallthrough
CT: control target
= control target key end

     0   :  { %11 = vsyncpa [#allocation4], 0  ;;  %s17175_s0 = inlined_call_operand.hbm [shape: f32[2,328,128], index: 0, kind: input, shape index: {}]   ;;  %s17176_s1 = inlined_call_operand.vmem [shape: bf16[9,128,256], index: 1, kind: input, shape index: {}]   ;;  %s17177_s2 = inlined_call_operand.vmem [shape: f32[1,256], index: 2, kind: input, shape index: {}]   ;;  %s17178_s3 = inlined_call_operand.vmem [shape: bf16[9,256,6], index: 3, kind: input, shape index: {}]   ;;  %s17179_s4 = inlined_call_operand.vmem [shape: f32[1,6], index: 4, kind: input, shape index: {}]   ;;  %s17180_s5 = inlined_call_operand.vmem [shape: f32[288,1], index: 5, kind: input, shape index: {}]   ;;  %s17181_s6 = inlined_call_operand.vmem [shape: f32[2,288,6], index: 6, kind: output, shape index: {}]  }
   0x1   :  { %13 = vsyncpa [#allocation4 + $0x1], 0  ;;  %s12253_s21 = smov 0   ;;  %s12255_s22 = smov 0  }
   0x2   :  { %s12257_s23 = smov 0   ;;  %s12259_s24 = smov 0  }
   0x3 LB: > { %s12272_s25 = sadd.s32 4294967295, %s12211_s24   ;;  %s12275_s26 = sadd.s32 1, %s12211_s24   ;;  %s12211_s24 = sphi %s12259_s24, %s18159_s24   ;;  %s12207_s23 = sphi %s12257_s23, %s18158_s23   ;;  %s12203_s22 = sphi %s12255_s22, %s18157_s22   ;;  %s12199_s21 = sphi %s12253_s21, %s18156_s21  }
   0x4   : > { %s23_s27 = ssub.s32 %s12211_s24, %s12275_s26  ;;  %s26_s28 = sadd.s32 1, %s12207_s23 }
   0x5   : > { %p24_p0 = scmp.eq.s32.totalorder %s23_s27, 0  ;;  %p33_p1 = scmp.ne.s32.totalorder %s12207_s23, %s12203_s22 }
   0x6   : > { %p34_p2 = scmp.eq.s32.totalorder %s12211_s24, 0  ;;  %p39_p3 = scmp.ne.s32.totalorder %s12203_s22, %s12199_s21 }
   0x7   : > { %s12285_s29 = scalar_select %p24_p0, %s12207_s23, %s26_s28  }
   0x8   : > { %p35_p4 = por %p34_p2, %p33_p1  ;;  %p40_p5 = scmp.eq.s32.totalorder %s12272_s25, 0 }
   0x9   : > { %p11679_p6 = scmp.lt.s32.totalorder %s12211_s24, 2  ;;  %s209_s7 = sand.u32 1, %s12207_s23  }
   0xa   : > { %p12289_p7 = por %p40_p5, %p39_p3  ;;  %s11669_s8 = smul.u32 328, %s209_s7 }
   0xb   : > { %s11670_s9 = smul.u32 5248, %s12211_s24  ;;  %p12295_p8 = pnand %p11679_p6, %p35_p4 }
   0xc   : > { %s213_s14 = scalar_lea.vmem [#allocation3], %s11669_s8  ;;  %s12307_s16 = scalar_lea.sflag [#allocation4], %s209_s7 }
   0xd   : > { %s12302_s13 = scalar_lea.hbm %s17175_s0, %s11670_s9  ;;  %s220_s15 = sshll.u32 %s213_s14, 4  ;;  %s12304_s15 = int_to_ptr.vmem [resolvable:$true] %s220_s15 }
   0xe   : > { %s12147_s17 = scalar_lea.hbm %s12302_s13, 5248  ;;  %p12149_p11 = pneg %p12295_p8 }
   0xf   : > { %p12148_p10 = scmp.ne.s32.totalorder %s12302_s13, %s12147_s17  ;;  %s12152_s20 = scalar_lea.hbm %s17175_s0, 10496 }
  0x10   : > { %p12153_p0 = scmp.lt.u32.totalorder %s12302_s13, %s17175_s0  ;;  %p12154_p1 = scmp.lt.u32.totalorder %s12152_s20, %s12147_s17 }
  0x11   : > { %p12150_p12 = pnand %p12149_p11, %p12148_p10  ;;  %p12156_p3 = scmp.lt.u32.totalorder %s12147_s17, %s12302_s13 }
  0x12   : > { %p12155_p2 = por %p12154_p1, %p12153_p0 }
  0x13   : > { %p12151_p13 = pneg %p12150_p12 }
  0x14   : > { %p12157_p4 = por %p12156_p3, %p12155_p2 }
  0x16   : > { %p12158_p5 = pnand %p12157_p4, %p12151_p13 }
  0x18   : > { %12161 = shalt.err (!%p12158_p5)
}
  0x19   : > { %s12162_s28 = scalar_lea.vmem %s12304_s15, 5248  ;;  %s12213_s7 = smov [#allocation3]  }
  0x1a   : > { %p12163_p6 = scmp.ne.s32.totalorder %s12304_s15, %s12162_s28  ;;  %s12167_s8 = sshll.u32 %s12213_s7, 4  ;;  %s12168_s8 = int_to_ptr.vmem [resolvable:$false] %s12167_s8 }
  0x1b   : > { %s12169_s9 = scalar_lea.vmem %s12168_s8, 10496  ;;  %p12170_p9 = scmp.lt.s32.totalorder %s12304_s15, %s12168_s8 }
  0x1c   : > { %p12165_p10 = pnand %p12163_p6, %p12149_p11  ;;  %p12171_p0 = scmp.lt.s32.totalorder %s12169_s9, %s12162_s28 }
  0x1e   : > { %p12166_p12 = pneg %p12165_p10  ;;  %p12172_p1 = por %p12171_p0, %p12170_p9 }
  0x20   : > { %p12173_p2 = pnand %p12172_p1, %p12166_p12 }
  0x22   : > { %12176 = shalt.err (!%p12173_p2)
}
  0x23   : > { %s12214_s11 = smov 128   ;;  %s12215_s12 = smov 8  }
  0x24   : > { %11678 = dma.hbm_to_vmem [thread:$0]  (!%p12295_p8), %s12302_s13, 5248, %s12304_s15, %s12307_s16, %s12214_s11, %s12214_s11, %s12215_s12  }
  0x25   : > { %p228_p11 = scmp.lt.s32.totalorder %s12211_s24, 3  ;;  %p17451_p13 = scmp.ge.s32.totalorder %s12211_s24, 1 }
  0x27   : > { %p229_p3 = pnand %p17451_p13, %p228_p11 }
  0x29   : > { %232 = sbr.rel (%p229_p3) target bundleno = 2977 (0xba1), region = 44 }
  0x30   : > { %s234_s14 = sand.u32 1, %s12203_s22  }
  0x31   : > { %s11671_s17 = smul.u32 328, %s234_s14  ;;  %s235_s18 = scalar_lea.sflag [#allocation4], %s234_s14 }
  0x33   : > { %s12339_s19 = scalar_lea.vmem [#allocation3], %s11671_s17 }
  0x34   : > { %12194 = dma.done.wait (%p12289_p7), %s235_s18, 5248  }
  0x35   : > { %12196 = vsyncadd (%p12289_p7), %s235_s18, 4294962048  ;;  %v17184_v0 = vmov 0   ;;  %v11718_v1 = vld [vmem:[%s17176_s1 + $0x84] ss:$8 sps:$4 sm:$0xff]   ;;  %v11720_v2 = vld [vmem:[%s17176_s1 + $0x80] ss:$8 sps:$4 sm:$0xff]  }
  0x36   : > { %526 = vmatprep.mubr.bf16.mxu0 %v17184_v0  ;;  %11717 = vset.pattern.permute.xlu1 %v17184_v0  ;;  %v11721_v3 = vld [vmem:[%s17176_s1 + $0x94] ss:$8 sps:$4 sm:$0xff]   ;;  %v11723_v4 = vld [vmem:[%s17176_s1 + $0x90] ss:$8 sps:$4 sm:$0xff]   ;;  %v11724_v5 = vld [vmem:[%s17176_s1 + $0xa4] ss:$8 sps:$4 sm:$0xff]  }
  0x37   : > { %11716 = vset.pattern.permute.xlu0 %v17184_v0  ;;  %11061 = vmatprep.subr.bf16.mxu1 %v17184_v0  ;;  %v11726_v6 = vld [vmem:[%s17176_s1 + $0xa0] ss:$8 sps:$4 sm:$0xff]   ;;  %v11727_v7 = vld [vmem:[%s17176_s1 + $0xb4] ss:$8 sps:$4 sm:$0xff]   ;;  %v11729_v8 = vld [vmem:[%s17176_s1 + $0xb0] ss:$8 sps:$4 sm:$0xff]  }
  0x38   : > { %494 = vmatprep.subr.bf16.mxu0 %v11718_v1  ;;  %v11730_v9 = vld [vmem:[%s17176_s1 + $0xc4] ss:$8 sps:$4 sm:$0xff]   ;;  %v11732_v10 = vld [vmem:[%s17176_s1 + $0xc0] ss:$8 sps:$4 sm:$0xff]   ;;  %v11733_v11 = vld [vmem:[%s17176_s1 + $0xd4] ss:$8 sps:$4 sm:$0xff]  }
  0x39   : > { %495 = vmatpush1.bf16.msra.mxu0 %v11720_v2  ;;  %v11735_v12 = vld [vmem:[%s17176_s1 + $0xd0] ss:$8 sps:$4 sm:$0xff]   ;;  %v11736_v13 = vld [vmem:[%s17176_s1 + $0xe4] ss:$8 sps:$4 sm:$0xff]   ;;  %v11738_v14 = vld [vmem:[%s17176_s1 + $0xe0] ss:$8 sps:$4 sm:$0xff]  }
  0x3a   : > { %496 = vmatprep.subr.bf16.mxu0 %v11721_v3  ;;  %v11739_v15 = vld [vmem:[%s17176_s1 + $0xf4] ss:$8 sps:$4 sm:$0xff]   ;;  %v11741_v16 = vld [vmem:[%s17176_s1 + $0xf0] ss:$8 sps:$4 sm:$0xff]   ;;  %v11744_v19 = vld [vmem:[%s17176_s1 + $0x4] ss:$8 sps:$4 sm:$0xff]  }
  0x3b   : > { %v343_v17 = vld [vmem:[%s12339_s19 + $0x1] sm:$0xff]  ;;  %v344_v18 = vld [vmem:[%s12339_s19 + $0x9] sm:$0xff]  ;;  %v345_v23 = vld [vmem:[%s12339_s19 + $0x11] sm:$0xff]  ;;  %vm4803_vm0 = vcmask 1044480   ;;  %vm5187_vm1 = vsmask.f32 5376 }
  0x3c   : > { %v379_v20 = vpack.c.bf16 %v344_v18, %v343_v17  ;;  %v11742_v21 = vld [vmem:[%s17176_s1] ss:$8 sps:$4 sm:$0xff]   ;;  %v11747_v22 = vld [vmem:[%s17176_s1 + $0x14] ss:$8 sps:$4 sm:$0xff]   ;;  %v11745_v25 = vld [vmem:[%s17176_s1 + $0x10] ss:$8 sps:$4 sm:$0xff]  }
  0x3d   : > { %497 = vmatpush1.bf16.msra.mxu0 %v11723_v4  ;;  %v346_v24 = vld [vmem:[%s12339_s19 + $0x19] sm:$0xff]  ;;  %v347_v30 = vld [vmem:[%s12339_s19 + $0x21] sm:$0xff]  ;;  %v348_v31 = vld [vmem:[%s12339_s19 + $0x29] sm:$0xff]  ;;  %vm5878_vm2 = vsmask.f32 4352  ;;  %vm9256_vm4 = vcmask 1046528  }
  0x3e   : > { %498 = vmatprep.subr.bf16.mxu0 %v11724_v5  ;;  %v11750_v26 = vld [vmem:[%s17176_s1 + $0x24] ss:$8 sps:$4 sm:$0xff]   ;;  %v11748_v27 = vld [vmem:[%s17176_s1 + $0x20] ss:$8 sps:$4 sm:$0xff]   ;;  %v380_v28 = vpack.c.bf16 %v346_v24, %v345_v23  ;;  %v11753_v29 = vld [vmem:[%s17176_s1 + $0x34] ss:$8 sps:$4 sm:$0xff]   ;;  %v381_v35 = vpack.c.bf16 %v348_v31, %v347_v30 }
  0x3f   : > { %v11751_v32 = vld [vmem:[%s17176_s1 + $0x30] ss:$8 sps:$4 sm:$0xff]   ;;  %v11756_v33 = vld [vmem:[%s17176_s1 + $0x44] ss:$8 sps:$4 sm:$0xff]   ;;  %v11754_v34 = vld [vmem:[%s17176_s1 + $0x40] ss:$8 sps:$4 sm:$0xff]  }
  0x40   : > { %v11759_v36 = vld [vmem:[%s17176_s1 + $0x54] ss:$8 sps:$4 sm:$0xff]   ;;  %v11757_v39 = vld [vmem:[%s17176_s1 + $0x50] ss:$8 sps:$4 sm:$0xff]   ;;  %v11762_v40 = vld [vmem:[%s17176_s1 + $0x64] ss:$8 sps:$4 sm:$0xff]  }
  0x41   : > { %499 = vmatpush1.bf16.msra.mxu0 %v11726_v6  ;;  %v349_v37 = vld [vmem:[%s12339_s19 + $0x31] sm:$0xff]  ;;  %v350_v38 = vld [vmem:[%s12339_s19 + $0x39] sm:$0xff]  ;;  %v351_v44 = vld [vmem:[%s12339_s19 + $0x41] sm:$0xff]  ;;  %vm7749_vm3 = vsmask.f32 7424  ;;  %p267_p7 = scmp.lt.s32.totalorder %s12272_s25, 1 }
  0x42   : > { %500 = vmatprep.subr.bf16.mxu0 %v11727_v7  ;;  %v11760_v41 = vld [vmem:[%s17176_s1 + $0x60] ss:$8 sps:$4 sm:$0xff]   ;;  %v382_v42 = vpack.c.bf16 %v350_v38, %v349_v37  ;;  %v11765_v43 = vld [vmem:[%s17176_s1 + $0x74] ss:$8 sps:$4 sm:$0xff]   ;;  %v11763_v46 = vld [vmem:[%s17176_s1 + $0x70] ss:$8 sps:$4 sm:$0xff]  }
  0x43   : > { %v352_v45 = vld [vmem:[%s12339_s19 + $0x49] sm:$0xff]  ;;  %v353_v49 = vld [vmem:[%s12339_s19 + $0x51] sm:$0xff]  ;;  %v354_v50 = vld [vmem:[%s12339_s19 + $0x59] sm:$0xff]  ;;  %vm9717_vm5 = vsmask.f32 6400  ;;  %s18161_s25 = smov (!%p267_p7, %s12272_s25), 1 }
  0x44   : > { %v11768_v47 = vld [vmem:[%s17176_s1 + $0x104] ss:$8 sps:$4 sm:$0xff]   ;;  %v383_v48 = vpack.c.bf16 %v352_v45, %v351_v44  ;;  %v384_v51 = vpack.c.bf16 %v354_v50, %v353_v49  ;;  %v357_v55 = vld [vmem:[%s12339_s19 + $0x71] sm:$0xff]  ;;  %s11672_s20 = smul.u32 288, %s18161_s25  ;;  %vm10276_vm6 = vcmask 48128  }
  0x45   : > { %501 = vmatpush1.bf16.msra.mxu0 %v11729_v8  ;;  %v355_v52 = vld [vmem:[%s12339_s19 + $0x61] sm:$0xff]  ;;  %v356_v53 = vld [vmem:[%s12339_s19 + $0x69] sm:$0xff]  ;;  %v358_v56 = vld [vmem:[%s12339_s19 + $0x79] sm:$0xff] }
  0x46   : > { %502 = vmatprep.subr.bf16.mxu0 %v11730_v9  ;;  %v385_v54 = vpack.c.bf16 %v356_v53, %v355_v52  ;;  %v386_v57 = vpack.c.bf16 %v358_v56, %v357_v55  ;;  %v359_v58 = vld [vmem:[%s12339_s19 + $0x81] sm:$0xff]  ;;  %v360_v59 = vld [vmem:[%s12339_s19 + $0x89] sm:$0xff]  ;;  %v361_v61 = vld [vmem:[%s12339_s19 + $0x91] sm:$0xff]  ;;  %s17017_s8 = scalar_lea.vmem %s17181_s6, %s11672_s20 }
  0x47   : > { %v387_v60 = vpack.c.bf16 %v360_v59, %v359_v58  ;;  %v362_v62 = vld [vmem:[%s12339_s19 + $0x99] sm:$0xff]  ;;  %v363_v1 = vld [vmem:[%s12339_s19 + $0xa1] sm:$0xff]  ;;  %v364_v2 = vld [vmem:[%s12339_s19 + $0xa9] sm:$0xff] }
  0x48   : > { %v388_v63 = vpack.c.bf16 %v362_v62, %v361_v61  ;;  %v389_v3 = vpack.c.bf16 %v364_v2, %v363_v1  ;;  %v365_v4 = vld [vmem:[%s12339_s19 + $0xb1] sm:$0xff]  ;;  %v366_v5 = vld [vmem:[%s12339_s19 + $0xb9] sm:$0xff]  ;;  %v367_v7 = vld [vmem:[%s12339_s19 + $0xc1] sm:$0xff] }
  0x49   : > { %503 = vmatpush1.bf16.msra.mxu0 %v11732_v10  ;;  %v390_v6 = vpack.c.bf16 %v366_v5, %v365_v4  ;;  %v368_v8 = vld [vmem:[%s12339_s19 + $0xc9] sm:$0xff]  ;;  %v369_v10 = vld [vmem:[%s12339_s19 + $0xd1] sm:$0xff]  ;;  %v374_v17 = vld [vmem:[%s12339_s19 + $0xf9] sm:$0xff] }
  0x4a   : > { %504 = vmatprep.subr.bf16.mxu0 %v11733_v11  ;;  %v391_v9 = vpack.c.bf16 %v368_v8, %v367_v7  ;;  %v370_v11 = vld [vmem:[%s12339_s19 + $0xd9] sm:$0xff]  ;;  %v275_v30 = vld [vmem:[%s12339_s19 + $0x10] sm:$0xff]  ;;  %v278_v38 = vld [vmem:[%s12339_s19 + $0x28] sm:$0xff] }
  0x4b   : > { %v378_v23 = vld [vmem:[%s12339_s19 + $0x119] sm:$0xff]  ;;  %v279_v44 = vld [vmem:[%s12339_s19 + $0x30] sm:$0xff]  ;;  %v282_v52 = vld [vmem:[%s12339_s19 + $0x48] sm:$0xff] }
  0x4c   : > { %v276_v31 = vld [vmem:[%s12339_s19 + $0x18] sm:$0xff]  ;;  %v277_v37 = vld [vmem:[%s12339_s19 + $0x20] sm:$0xff]  ;;  %v283_v56 = vld [vmem:[%s12339_s19 + $0x50] sm:$0xff] }
  0x4d   : > { %505 = vmatpush1.bf16.msra.mxu0 %v11735_v12  ;;  %v392_v12 = vpack.c.bf16 %v370_v11, %v369_v10  ;;  %v280_v45 = vld [vmem:[%s12339_s19 + $0x38] sm:$0xff]  ;;  %v285_v59 = vld [vmem:[%s12339_s19 + $0x60] sm:$0xff]  ;;  %v287_v62 = vld [vmem:[%s12339_s19 + $0x70] sm:$0xff] }
  0x4e   : > { %506 = vmatprep.subr.bf16.mxu0 %v11736_v13  ;;  %v371_v13 = vld [vmem:[%s12339_s19 + $0xe1] sm:$0xff]  ;;  %v11789_v50 = vld [vmem:[%s17176_s1 + $0x174] ss:$8 sps:$4 sm:$0xff]  }
  0x4f   : > { %v11784_v49 = vld [vmem:[%s17176_s1 + $0x160] ss:$8 sps:$4 sm:$0xff]   ;;  %v11787_v53 = vld [vmem:[%s17176_s1 + $0x170] ss:$8 sps:$4 sm:$0xff]  }
  0x50   : > { %v289_v2 = vld [vmem:[%s12339_s19 + $0x80] sm:$0xff]  ;;  %v291_v5 = vld [vmem:[%s12339_s19 + $0x90] sm:$0xff] }
  0x51   : > { %507 = vmatpush1.bf16.msra.mxu0 %v11738_v14  ;;  %v372_v14 = vld [vmem:[%s12339_s19 + $0xe9] sm:$0xff]  ;;  %v293_v8 = vld [vmem:[%s12339_s19 + $0xa0] sm:$0xff] }
  0x52   : > { %508 = vmatprep.subr.bf16.mxu0 %v11739_v15  ;;  %v393_v15 = vpack.c.bf16 %v372_v14, %v371_v13  ;;  %v295_v11 = vld [vmem:[%s12339_s19 + $0xb0] sm:$0xff]  ;;  %v297_v14 = vld [vmem:[%s12339_s19 + $0xc0] sm:$0xff] }
  0x55   : > { %509 = vmatpush1.bf16.msra.mxu0 %v11741_v16  ;;  %v373_v16 = vld [vmem:[%s12339_s19 + $0xf1] sm:$0xff] }
  0x56   : > { %787 = vmatprep.subr.bf16.mxu0 %v11744_v19  ;;  %v394_v18 = vpack.c.bf16 %v374_v17, %v373_v16  ;;  %v375_v19 = vld [vmem:[%s12339_s19 + $0x101] sm:$0xff]  ;;  %v299_v17 = vld [vmem:[%s12339_s19 + $0xd0] sm:$0xff] }
  0x58   : > { %527 = vmatmul.mubr.bf16.vlgmr.msra.gmra.mrb[0].mxu0 %v379_v20  ;;  %v376_v20 = vld [vmem:[%s12339_s19 + $0x109] sm:$0xff] }
  0x59   : > { %788 = vmatpush1.bf16.msra.mxu0 %v11742_v21  ;;  %536 = vmatprep.mubr.bf16.mxu0 %v17184_v0  ;;  %v395_v21 = vpack.c.bf16 %v376_v20, %v375_v19  ;;  %v301_v20 = vld [vmem:[%s12339_s19 + $0xe0] sm:$0xff] }
  0x5a   : > { %789 = vmatprep.subr.bf16.mxu0 %v11747_v22  ;;  %v377_v22 = vld [vmem:[%s12339_s19 + $0x111] sm:$0xff] }
  0x5b   : > { %v396_v24 = vpack.c.bf16 %v378_v23, %v377_v22  ;;  %v303_v23 = vld [vmem:[%s12339_s19 + $0xf0] sm:$0xff] }
  0x5d   : > { %790 = vmatpush1.bf16.msra.mxu0 %v11745_v25  ;;  %v273_v25 = vld [vmem:[%s12339_s19] sm:$0xff] }
  0x5e   : > { %791 = vmatprep.subr.bf16.mxu0 %v11750_v26  ;;  %v274_v26 = vld [vmem:[%s12339_s19 + $0x8] sm:$0xff] }
  0x60   : > { %537 = vmatmul.mubr.bf16.gmra.mrb[4].mxu0 %v380_v28  ;;  %v309_v28 = vpack.c.bf16 %v274_v26, %v273_v25  ;;  %v305_v26 = vld [vmem:[%s12339_s19 + $0x100] sm:$0xff] }
  0x61   : > { %546 = vmatprep.mubr.bf16.mxu0 %v17184_v0  ;;  %792 = vmatpush1.bf16.msra.mxu0 %v11748_v27  ;;  %v11766_v27 = vld [vmem:[%s17176_s1 + $0x100] ss:$8 sps:$4 sm:$0xff]  }
  0x62   : > { %793 = vmatprep.subr.bf16.mxu0 %v11753_v29  ;;  %v11771_v29 = vld [vmem:[%s17176_s1 + $0x114] ss:$8 sps:$4 sm:$0xff]  }
  0x65   : > { %794 = vmatpush1.bf16.msra.mxu0 %v11751_v32  ;;  %v11769_v32 = vld [vmem:[%s17176_s1 + $0x110] ss:$8 sps:$4 sm:$0xff]  }
  0x66   : > { %795 = vmatprep.subr.bf16.mxu0 %v11756_v33  ;;  %v11774_v33 = vld [vmem:[%s17176_s1 + $0x124] ss:$8 sps:$4 sm:$0xff]  }
  0x68   : > { %547 = vmatmul.mubr.bf16.gmra.mrb[8].mxu0 %v381_v35  ;;  %v310_v35 = vpack.c.bf16 %v276_v31, %v275_v30  ;;  %v308_v30 = vld [vmem:[%s12339_s19 + $0x118] sm:$0xff] }
  0x69   : > { %556 = vmatprep.mubr.bf16.mxu0 %v17184_v0  ;;  %796 = vmatpush1.bf16.msra.mxu0 %v11754_v34  ;;  %v11772_v34 = vld [vmem:[%s17176_s1 + $0x120] ss:$8 sps:$4 sm:$0xff]  }
  0x6a   : > { %797 = vmatprep.subr.bf16.mxu0 %v11759_v36  ;;  %v11777_v36 = vld [vmem:[%s17176_s1 + $0x134] ss:$8 sps:$4 sm:$0xff]  }
  0x6d   : > { %798 = vmatpush1.bf16.msra.mxu0 %v11757_v39  ;;  %v11775_v39 = vld [vmem:[%s17176_s1 + $0x130] ss:$8 sps:$4 sm:$0xff]  }
  0x6e   : > { %799 = vmatprep.subr.bf16.mxu0 %v11762_v40  ;;  %v11780_v40 = vld [vmem:[%s17176_s1 + $0x144] ss:$8 sps:$4 sm:$0xff]  }
  0x70   : > { %557 = vmatmul.mubr.bf16.gmra.mrb[12].mxu0 %v382_v42  ;;  %v11778_v42 = vld [vmem:[%s17176_s1 + $0x140] ss:$8 sps:$4 sm:$0xff]  }
  0x71   : > { %566 = vmatprep.mubr.bf16.mxu0 %v17184_v0  ;;  %800 = vmatpush1.bf16.msra.mxu0 %v11760_v41  ;;  %v311_v41 = vpack.c.bf16 %v278_v38, %v277_v37  ;;  %v1002_v37 = vld [vmem:[%s12339_s19 + $0x12] sm:$0xff]  ;;  %v1003_v38 = vld [vmem:[%s12339_s19 + $0x1a] sm:$0xff] }
  0x72   : > { %801 = vmatprep.subr.bf16.mxu0 %v11765_v43  ;;  %v11783_v43 = vld [vmem:[%s17176_s1 + $0x154] ss:$8 sps:$4 sm:$0xff]  }
  0x75   : > { %802 = vmatpush1.bf16.msra.mxu0 %v11763_v46  ;;  %v11781_v46 = vld [vmem:[%s17176_s1 + $0x150] ss:$8 sps:$4 sm:$0xff]  }
  0x76   : > { %1151 = vmatprep.subr.bf16.mxu0 %v11768_v47  ;;  %v11786_v47 = vld [vmem:[%s17176_s1 + $0x164] ss:$8 sps:$4 sm:$0xff]  }
  0x78   : > { %567 = vmatmul.mubr.bf16.gmra.mrb[16].mxu0 %v383_v48  ;;  %v312_v48 = vpack.c.bf16 %v280_v45, %v279_v44  ;;  %v1004_v44 = vld [vmem:[%s12339_s19 + $0x22] sm:$0xff]  ;;  %v1005_v45 = vld [vmem:[%s12339_s19 + $0x2a] sm:$0xff] }
  0x79   : > { %576 = vmatprep.mubr.bf16.mxu0 %v17184_v0 }
  0x80   : > { %577 = vmatmul.mubr.bf16.gmra.mrb[20].mxu0 %v384_v51  ;;  %v281_v51 = vld [vmem:[%s12339_s19 + $0x40] sm:$0xff] }
  0x81   : > { %586 = vmatprep.mubr.bf16.mxu0 %v17184_v0  ;;  %v313_v55 = vpack.c.bf16 %v282_v52, %v281_v51  ;;  %v1006_v51 = vld [vmem:[%s12339_s19 + $0x32] sm:$0xff]  ;;  %v1007_v52 = vld [vmem:[%s12339_s19 + $0x3a] sm:$0xff] }
  0x88   : > { %587 = vmatmul.mubr.bf16.gmra.mrb[24].mxu0 %v385_v54  ;;  %v11792_v54 = vld [vmem:[%s17176_s1 + $0x184] ss:$8 sps:$4 sm:$0xff]  }
  0x89   : > { %596 = vmatprep.mubr.bf16.mxu0 %v17184_v0 }
  0x90   : > { %597 = vmatmul.mubr.bf16.gmra.mrb[28].mxu0 %v386_v57  ;;  %v284_v57 = vld [vmem:[%s12339_s19 + $0x58] sm:$0xff] }
  0x91   : > { %606 = vmatprep.mubr.bf16.mxu0 %v17184_v0  ;;  %v314_v58 = vpack.c.bf16 %v284_v57, %v283_v56  ;;  %v11808_v56 = vld [vmem:[%s17176_s1 + $0x1e0] ss:$8 sps:$4 sm:$0xff]   ;;  %v11813_v57 = vld [vmem:[%s17176_s1 + $0x1f4] ss:$8 sps:$4 sm:$0xff]  }
  0x98   : > { %607 = vmatmul.mubr.bf16.gmra.mrb[32].mxu0 %v387_v60  ;;  %v286_v60 = vld [vmem:[%s12339_s19 + $0x68] sm:$0xff] }
  0x99   : > { %616 = vmatprep.mubr.bf16.mxu0 %v17184_v0  ;;  %v315_v61 = vpack.c.bf16 %v286_v60, %v285_v59  ;;  %v1009_v59 = vld [vmem:[%s12339_s19 + $0x4a] sm:$0xff] }
  0x9a   : > { %v11811_v60 = vld [vmem:[%s17176_s1 + $0x1f0] ss:$8 sps:$4 sm:$0xff]  }
  0xa0   : > { %617 = vmatmul.mubr.bf16.gmra.mrb[36].mxu0 %v388_v63  ;;  %v288_v63 = vld [vmem:[%s12339_s19 + $0x78] sm:$0xff] }
  0xa1   : > { %626 = vmatprep.mubr.bf16.mxu0 %v17184_v0  ;;  %v316_v1 = vpack.c.bf16 %v288_v63, %v287_v62  ;;  %v1010_v63 = vld [vmem:[%s12339_s19 + $0x52] sm:$0xff] }
  0xa8   : > { %627 = vmatmul.mubr.bf16.gmra.mrb[40].mxu0 %v389_v3  ;;  %v290_v3 = vld [vmem:[%s12339_s19 + $0x88] sm:$0xff] }
  0xa9   : > { %636 = vmatprep.mubr.bf16.mxu0 %v17184_v0  ;;  %v317_v4 = vpack.c.bf16 %v290_v3, %v289_v2  ;;  %v1012_v3 = vld [vmem:[%s12339_s19 + $0x62] sm:$0xff] }
  0xb0   : > { %637 = vmatmul.mubr.bf16.gmra.mrb[44].mxu0 %v390_v6  ;;  %v292_v6 = vld [vmem:[%s12339_s19 + $0x98] sm:$0xff] }
  0xb1   : > { %646 = vmatprep.mubr.bf16.mxu0 %v17184_v0  ;;  %v318_v7 = vpack.c.bf16 %v292_v6, %v291_v5  ;;  %v1014_v6 = vld [vmem:[%s12339_s19 + $0x72] sm:$0xff] }
  0xb8   : > { %647 = vmatmul.mubr.bf16.gmra.mrb[48].mxu0 %v391_v9  ;;  %v294_v9 = vld [vmem:[%s12339_s19 + $0xa8] sm:$0xff] }
  0xb9   : > { %656 = vmatprep.mubr.bf16.mxu0 %v17184_v0  ;;  %v319_v10 = vpack.c.bf16 %v294_v9, %v293_v8  ;;  %v1016_v9 = vld [vmem:[%s12339_s19 + $0x82] sm:$0xff] }
  0xc0   : > { %657 = vmatmul.mubr.bf16.gmra.mrb[52].mxu0 %v392_v12  ;;  %v296_v12 = vld [vmem:[%s12339_s19 + $0xb8] sm:$0xff] }
  0xc1   : > { %666 = vmatprep.mubr.bf16.mxu0 %v17184_v0  ;;  %v320_v13 = vpack.c.bf16 %v296_v12, %v295_v11  ;;  %v1018_v12 = vld [vmem:[%s12339_s19 + $0x92] sm:$0xff] }
  0xc8   : > { %667 = vmatmul.mubr.bf16.gmra.mrb[56].mxu0 %v393_v15  ;;  %v298_v15 = vld [vmem:[%s12339_s19 + $0xc8] sm:$0xff] }
  0xc9   : > { %676 = vmatprep.mubr.bf16.mxu0 %v17184_v0  ;;  %v321_v16 = vpack.c.bf16 %v298_v15, %v297_v14  ;;  %v1020_v15 = vld [vmem:[%s12339_s19 + $0xa2] sm:$0xff] }
  0xd0   : > { %677 = vmatmul.mubr.bf16.gmra.mrb[60].mxu0 %v394_v18  ;;  %v300_v18 = vld [vmem:[%s12339_s19 + $0xd8] sm:$0xff] }
  0xd1   : > { %686 = vmatprep.mubr.bf16.mxu0 %v17184_v0  ;;  %v322_v19 = vpack.c.bf16 %v300_v18, %v299_v17  ;;  %v1022_v18 = vld [vmem:[%s12339_s19 + $0xb2] sm:$0xff] }
  0xd8   : > { %687 = vmatmul.mubr.bf16.gmra.mrb[64].mxu0 %v395_v21  ;;  %v302_v21 = vld [vmem:[%s12339_s19 + $0xe8] sm:$0xff] }
  0xd9   : > { %696 = vmatprep.mubr.bf16.mxu0 %v17184_v0  ;;  %v323_v22 = vpack.c.bf16 %v302_v21, %v301_v20  ;;  %v1024_v21 = vld [vmem:[%s12339_s19 + $0xc2] sm:$0xff] }
  0xe0   : > { %697 = vmatmul.mubr.bf16.gmra.mrb[68].mxu0 %v396_v24  ;;  %v304_v24 = vld [vmem:[%s12339_s19 + $0xf8] sm:$0xff] }
  0xe1   : > { %819 = vmatprep.mubr.bf16.mxu0 %v17184_v0  ;;  %v324_v25 = vpack.c.bf16 %v304_v24, %v303_v23  ;;  %v1026_v24 = vld [vmem:[%s12339_s19 + $0xd2] sm:$0xff] }
  0xe8   : > { %820 = vmatmul.mubr.bf16.vlgmr.msra.gmra.mrb[0].mxu0 %v309_v28 }
  0xe9   : > { %1152 = vmatpush1.bf16.msra.mxu0 %v11766_v27  ;;  %829 = vmatprep.mubr.bf16.mxu0 %v17184_v0  ;;  %v306_v27 = vld [vmem:[%s12339_s19 + $0x108] sm:$0xff] }
  0xea   : > { %1153 = vmatprep.subr.bf16.mxu0 %v11771_v29  ;;  %v325_v28 = vpack.c.bf16 %v306_v27, %v305_v26  ;;  %v307_v29 = vld [vmem:[%s12339_s19 + $0x110] sm:$0xff]  ;;  %v1028_v27 = vld [vmem:[%s12339_s19 + $0xe2] sm:$0xff] }
  0xeb   : > { %v326_v31 = vpack.c.bf16 %v308_v30, %v307_v29  ;;  %v1030_v30 = vld [vmem:[%s12339_s19 + $0xf2] sm:$0xff] }
  0xed   : > { %1154 = vmatpush1.bf16.msra.mxu0 %v11769_v32  ;;  %v1000_v32 = vld [vmem:[%s12339_s19 + $0x2] sm:$0xff] }
  0xee   : > { %1155 = vmatprep.subr.bf16.mxu0 %v11774_v33  ;;  %v1001_v33 = vld [vmem:[%s12339_s19 + $0xa] sm:$0xff] }
  0xf0   : > { %830 = vmatmul.mubr.bf16.gmra.mrb[4].mxu0 %v310_v35  ;;  %v11790_v35 = vld [vmem:[%s17176_s1 + $0x180] ss:$8 sps:$4 sm:$0xff]  }
  0xf1   : > { %839 = vmatprep.mubr.bf16.mxu0 %v17184_v0  ;;  %1156 = vmatpush1.bf16.msra.mxu0 %v11772_v34  ;;  %v1036_v34 = vpack.c.bf16 %v1001_v33, %v1000_v32  ;;  %v1032_v33 = vld [vmem:[%s12339_s19 + $0x102] sm:$0xff] }
  0xf2   : > { %1157 = vmatprep.subr.bf16.mxu0 %v11777_v36  ;;  %v11795_v36 = vld [vmem:[%s17176_s1 + $0x194] ss:$8 sps:$4 sm:$0xff]  }
  0xf5   : > { %1158 = vmatpush1.bf16.msra.mxu0 %v11775_v39  ;;  %v11793_v39 = vld [vmem:[%s17176_s1 + $0x190] ss:$8 sps:$4 sm:$0xff]  }
  0xf6   : > { %1159 = vmatprep.subr.bf16.mxu0 %v11780_v40  ;;  %v11798_v40 = vld [vmem:[%s17176_s1 + $0x1a4] ss:$8 sps:$4 sm:$0xff]  }
  0xf8   : > { %840 = vmatmul.mubr.bf16.gmra.mrb[8].mxu0 %v311_v41  ;;  %v12621_v41 = vpack.c.bf16 %v1003_v38, %v1002_v37  ;;  %v1035_v37 = vld [vmem:[%s12339_s19 + $0x11a] sm:$0xff] }
  0xf9   : > { %849 = vmatprep.mubr.bf16.mxu0 %v17184_v0  ;;  %1160 = vmatpush1.bf16.msra.mxu0 %v11778_v42  ;;  %v11796_v42 = vld [vmem:[%s17176_s1 + $0x1a0] ss:$8 sps:$4 sm:$0xff]  }
  0xfa   : > { %1161 = vmatprep.subr.bf16.mxu0 %v11783_v43  ;;  %v11801_v43 = vld [vmem:[%s17176_s1 + $0x1b4] ss:$8 sps:$4 sm:$0xff]  }
  0xfd   : > { %1162 = vmatpush1.bf16.msra.mxu0 %v11781_v46  ;;  %v11799_v46 = vld [vmem:[%s17176_s1 + $0x1b0] ss:$8 sps:$4 sm:$0xff]  }
  0xfe   : > { %1163 = vmatprep.subr.bf16.mxu0 %v11786_v47  ;;  %v11804_v47 = vld [vmem:[%s17176_s1 + $0x1c4] ss:$8 sps:$4 sm:$0xff]  }
 0x100   : > { %850 = vmatmul.mubr.bf16.gmra.mrb[12].mxu0 %v312_v48  ;;  %v12639_v48 = vpack.c.bf16 %v1005_v45, %v1004_v44  ;;  %v11820_v44 = vld [vmem:[%s17176_s1 + $0x220] ss:$8 sps:$4 sm:$0xff]   ;;  %v11823_v45 = vld [vmem:[%s17176_s1 + $0x230] ss:$8 sps:$4 sm:$0xff]  }
 0x101   : > { %859 = vmatprep.mubr.bf16.mxu0 %v17184_v0  ;;  %1164 = vmatpush1.bf16.msra.mxu0 %v11784_v49  ;;  %v11802_v49 = vld [vmem:[%s17176_s1 + $0x1c0] ss:$8 sps:$4 sm:$0xff]  }
 0x102   : > { %1165 = vmatprep.subr.bf16.mxu0 %v11789_v50  ;;  %v11807_v50 = vld [vmem:[%s17176_s1 + $0x1d4] ss:$8 sps:$4 sm:$0xff]  }
 0x105   : > { %1166 = vmatpush1.bf16.msra.mxu0 %v11787_v53  ;;  %v11805_v53 = vld [vmem:[%s17176_s1 + $0x1d0] ss:$8 sps:$4 sm:$0xff]  }
 0x106   : > { %1587 = vmatprep.subr.bf16.mxu0 %v11792_v54  ;;  %v11810_v54 = vld [vmem:[%s17176_s1 + $0x1e4] ss:$8 sps:$4 sm:$0xff]  }
 0x108   : > { %860 = vmatmul.mubr.bf16.gmra.mrb[16].mxu0 %v313_v55  ;;  %v12657_v55 = vpack.c.bf16 %v1007_v52, %v1006_v51  ;;  %v11832_v51 = vld [vmem:[%s17176_s1 + $0x260] ss:$8 sps:$4 sm:$0xff]   ;;  %v11837_v52 = vld [vmem:[%s17176_s1 + $0x274] ss:$8 sps:$4 sm:$0xff]  }
 0x109   : > { %869 = vmatprep.mubr.bf16.mxu0 %v17184_v0 }
 0x110   : > { %870 = vmatmul.mubr.bf16.gmra.mrb[20].mxu0 %v314_v58  ;;  %v1008_v58 = vld [vmem:[%s12339_s19 + $0x42] sm:$0xff] }
 0x111   : > { %879 = vmatprep.mubr.bf16.mxu0 %v17184_v0  ;;  %v12675_v62 = vpack.c.bf16 %v1009_v59, %v1008_v58  ;;  %v1872_v58 = vld [vmem:[%s12339_s19 + $0x13] sm:$0xff]  ;;  %v1873_v59 = vld [vmem:[%s12339_s19 + $0x1b] sm:$0xff] }
 0x118   : > { %880 = vmatmul.mubr.bf16.gmra.mrb[24].mxu0 %v315_v61  ;;  %v11816_v61 = vld [vmem:[%s17176_s1 + $0x204] ss:$8 sps:$4 sm:$0xff]  }
 0x119   : > { %889 = vmatprep.mubr.bf16.mxu0 %v17184_v0 }
 0x120   : > { %890 = vmatmul.mubr.bf16.gmra.mrb[28].mxu0 %v316_v1  ;;  %v1011_v1 = vld [vmem:[%s12339_s19 + $0x5a] sm:$0xff] }
 0x121   : > { %899 = vmatprep.mubr.bf16.mxu0 %v17184_v0  ;;  %v12681_v2 = vpack.c.bf16 %v1011_v1, %v1010_v63  ;;  %v1874_v63 = vld [vmem:[%s12339_s19 + $0x23] sm:$0xff]  ;;  %v1875_v1 = vld [vmem:[%s12339_s19 + $0x2b] sm:$0xff] }
 0x128   : > { %900 = vmatmul.mubr.bf16.gmra.mrb[32].mxu0 %v317_v4  ;;  %v1013_v4 = vld [vmem:[%s12339_s19 + $0x6a] sm:$0xff] }
 0x129   : > { %909 = vmatprep.mubr.bf16.mxu0 %v17184_v0  ;;  %v12687_v5 = vpack.c.bf16 %v1013_v4, %v1012_v3  ;;  %v11846_v3 = vld [vmem:[%s17176_s1 + $0x2a4] ss:$8 sps:$4 sm:$0xff]   ;;  %v1909_v4 = vpack.c.bf16 %v1875_v1, %v1874_v63 }
 0x12a   : > { %v1907_v63 = vld [vmem:[%s12339_s19 + $0x12b] sm:$0xff] }
 0x130   : > { %910 = vmatmul.mubr.bf16.gmra.mrb[36].mxu0 %v318_v7  ;;  %v1015_v7 = vld [vmem:[%s12339_s19 + $0x7a] sm:$0xff] }
 0x131   : > { %919 = vmatprep.mubr.bf16.mxu0 %v17184_v0  ;;  %v12693_v8 = vpack.c.bf16 %v1015_v7, %v1014_v6  ;;  %v11849_v6 = vld [vmem:[%s17176_s1 + $0x2b4] ss:$8 sps:$4 sm:$0xff]  }
 0x132   : > { %v1876_v7 = vld [vmem:[%s12339_s19 + $0x33] sm:$0xff] }
 0x138   : > { %920 = vmatmul.mubr.bf16.gmra.mrb[40].mxu0 %v319_v10  ;;  %v1017_v10 = vld [vmem:[%s12339_s19 + $0x8a] sm:$0xff] }
 0x139   : > { %929 = vmatprep.mubr.bf16.mxu0 %v17184_v0  ;;  %v12699_v11 = vpack.c.bf16 %v1017_v10, %v1016_v9  ;;  %v11847_v9 = vld [vmem:[%s17176_s1 + $0x2b0] ss:$8 sps:$4 sm:$0xff]   ;;  %v11852_v10 = vld [vmem:[%s17176_s1 + $0x2c4] ss:$8 sps:$4 sm:$0xff]  }
 0x140   : > { %930 = vmatmul.mubr.bf16.gmra.mrb[44].mxu0 %v320_v13  ;;  %v1019_v13 = vld [vmem:[%s12339_s19 + $0x9a] sm:$0xff] }
 0x141   : > { %939 = vmatprep.mubr.bf16.mxu0 %v17184_v0  ;;  %v12705_v14 = vpack.c.bf16 %v1019_v13, %v1018_v12  ;;  %v11850_v12 = vld [vmem:[%s17176_s1 + $0x2c0] ss:$8 sps:$4 sm:$0xff]   ;;  %v11855_v13 = vld [vmem:[%s17176_s1 + $0x2d4] ss:$8 sps:$4 sm:$0xff]  }
 0x148   : > { %940 = vmatmul.mubr.bf16.gmra.mrb[48].mxu0 %v321_v16  ;;  %v1021_v16 = vld [vmem:[%s12339_s19 + $0xaa] sm:$0xff] }
 0x149   : > { %949 = vmatprep.mubr.bf16.mxu0 %v17184_v0  ;;  %v12711_v17 = vpack.c.bf16 %v1021_v16, %v1020_v15  ;;  %v1879_v15 = vld [vmem:[%s12339_s19 + $0x4b] sm:$0xff] }
 0x14a   : > { %v11853_v16 = vld [vmem:[%s17176_s1 + $0x2d0] ss:$8 sps:$4 sm:$0xff]  }
 0x150   : > { %950 = vmatmul.mubr.bf16.gmra.mrb[52].mxu0 %v322_v19  ;;  %v1023_v19 = vld [vmem:[%s12339_s19 + $0xba] sm:$0xff] }
 0x151   : > { %959 = vmatprep.mubr.bf16.mxu0 %v17184_v0  ;;  %v12717_v20 = vpack.c.bf16 %v1023_v19, %v1022_v18  ;;  %v11856_v19 = vld [vmem:[%s17176_s1 + $0x2e0] ss:$8 sps:$4 sm:$0xff]  }
 0x158   : > { %960 = vmatmul.mubr.bf16.gmra.mrb[56].mxu0 %v323_v22  ;;  %v1025_v22 = vld [vmem:[%s12339_s19 + $0xca] sm:$0xff] }
 0x159   : > { %969 = vmatprep.mubr.bf16.mxu0 %v17184_v0  ;;  %v12723_v23 = vpack.c.bf16 %v1025_v22, %v1024_v21  ;;  %v1880_v21 = vld [vmem:[%s12339_s19 + $0x53] sm:$0xff]  ;;  %v1881_v22 = vld [vmem:[%s12339_s19 + $0x5b] sm:$0xff] }
 0x160   : > { %970 = vmatmul.mubr.bf16.gmra.mrb[60].mxu0 %v324_v25  ;;  %v1027_v25 = vld [vmem:[%s12339_s19 + $0xda] sm:$0xff] }
 0x161   : > { %979 = vmatprep.mubr.bf16.mxu0 %v17184_v0  ;;  %v12729_v26 = vpack.c.bf16 %v1027_v25, %v1026_v24  ;;  %v11864_v24 = vld [vmem:[%s17176_s1 + $0x304] ss:$8 sps:$4 sm:$0xff]   ;;  %v1912_v25 = vpack.c.bf16 %v1881_v22, %v1880_v21 }
 0x162   : > { %v2314_v21 = vld [vmem:[%s12339_s19 + $0x44] sm:$0xff]  ;;  %v2315_v22 = vld [vmem:[%s12339_s19 + $0x4c] sm:$0xff] }
 0x168   : > { %980 = vmatmul.mubr.bf16.gmra.mrb[64].mxu0 %v325_v28  ;;  %v1029_v28 = vld [vmem:[%s12339_s19 + $0xea] sm:$0xff] }
 0x169   : > { %989 = vmatprep.mubr.bf16.mxu0 %v17184_v0  ;;  %v12735_v29 = vpack.c.bf16 %v1029_v28, %v1028_v27  ;;  %v1883_v27 = vld [vmem:[%s12339_s19 + $0x6b] sm:$0xff] }
 0x170   : > { %990 = vmatmul.mubr.bf16.gmra.mrb[68].mxu0 %v326_v31  ;;  %v1031_v31 = vld [vmem:[%s12339_s19 + $0xfa] sm:$0xff] }
 0x171   : > { %1183 = vmatprep.mubr.bf16.mxu0 %v17184_v0  ;;  %v12741_v32 = vpack.c.bf16 %v1031_v31, %v1030_v30  ;;  %v1885_v30 = vld [vmem:[%s12339_s19 + $0x7b] sm:$0xff] }
 0x178   : > { %1184 = vmatmul.mubr.bf16.vlgmr.msra.gmra.mrb[0].mxu0 %v1036_v34  ;;  %v1033_v34 = vld [vmem:[%s12339_s19 + $0x10a] sm:$0xff] }
 0x179   : > { %1588 = vmatpush1.bf16.msra.mxu0 %v11790_v35  ;;  %1193 = vmatprep.mubr.bf16.mxu0 %v17184_v0  ;;  %v12747_v35 = vpack.c.bf16 %v1033_v34, %v1032_v33  ;;  %v1887_v33 = vld [vmem:[%s12339_s19 + $0x8b] sm:$0xff] }
 0x17a   : > { %1589 = vmatprep.subr.bf16.mxu0 %v11795_v36  ;;  %v1034_v36 = vld [vmem:[%s12339_s19 + $0x112] sm:$0xff] }
 0x17b   : > { %v12753_v38 = vpack.c.bf16 %v1035_v37, %v1034_v36  ;;  %v1889_v36 = vld [vmem:[%s12339_s19 + $0x9b] sm:$0xff] }
 0x17d   : > { %1590 = vmatpush1.bf16.msra.mxu0 %v11793_v39  ;;  %v11814_v39 = vld [vmem:[%s17176_s1 + $0x200] ss:$8 sps:$4 sm:$0xff]  }
 0x17e   : > { %1591 = vmatprep.subr.bf16.mxu0 %v11798_v40  ;;  %v11819_v40 = vld [vmem:[%s17176_s1 + $0x214] ss:$8 sps:$4 sm:$0xff]  }
 0x180   : > { %1194 = vmatmul.mubr.bf16.gmra.mrb[4].mxu0 %v12621_v41 }
 0x181   : > { %1203 = vmatprep.mubr.bf16.mxu0 %v17184_v0  ;;  %1592 = vmatpush1.bf16.msra.mxu0 %v11796_v42  ;;  %v11817_v42 = vld [vmem:[%s17176_s1 + $0x210] ss:$8 sps:$4 sm:$0xff]  }
 0x182   : > { %1593 = vmatprep.subr.bf16.mxu0 %v11801_v43  ;;  %v11822_v43 = vld [vmem:[%s17176_s1 + $0x224] ss:$8 sps:$4 sm:$0xff]  }
 0x185   : > { %1594 = vmatpush1.bf16.msra.mxu0 %v11799_v46  ;;  %v11828_v46 = vld [vmem:[%s17176_s1 + $0x244] ss:$8 sps:$4 sm:$0xff]  }
 0x186   : > { %1595 = vmatprep.subr.bf16.mxu0 %v11804_v47  ;;  %v11826_v47 = vld [vmem:[%s17176_s1 + $0x240] ss:$8 sps:$4 sm:$0xff]  }
 0x188   : > { %1204 = vmatmul.mubr.bf16.gmra.mrb[8].mxu0 %v12639_v48 }
 0x189   : > { %1213 = vmatprep.mubr.bf16.mxu0 %v17184_v0  ;;  %1596 = vmatpush1.bf16.msra.mxu0 %v11802_v49  ;;  %v11829_v49 = vld [vmem:[%s17176_s1 + $0x250] ss:$8 sps:$4 sm:$0xff]  }
 0x18a   : > { %1597 = vmatprep.subr.bf16.mxu0 %v11807_v50  ;;  %v11834_v50 = vld [vmem:[%s17176_s1 + $0x264] ss:$8 sps:$4 sm:$0xff]  }
 0x18d   : > { %1598 = vmatpush1.bf16.msra.mxu0 %v11805_v53  ;;  %v11835_v53 = vld [vmem:[%s17176_s1 + $0x270] ss:$8 sps:$4 sm:$0xff]  }
 0x18e   : > { %1599 = vmatprep.subr.bf16.mxu0 %v11810_v54  ;;  %v11840_v54 = vld [vmem:[%s17176_s1 + $0x284] ss:$8 sps:$4 sm:$0xff]  }
 0x190   : > { %1214 = vmatmul.mubr.bf16.gmra.mrb[12].mxu0 %v12657_v55 }
 0x191   : > { %1223 = vmatprep.mubr.bf16.mxu0 %v17184_v0  ;;  %1600 = vmatpush1.bf16.msra.mxu0 %v11808_v56  ;;  %v1471_v56 = vld [vmem:[%s12339_s19 + $0x12a] sm:$0xff] }
 0x192   : > { %1601 = vmatprep.subr.bf16.mxu0 %v11813_v57 }
 0x195   : > { %1602 = vmatpush1.bf16.msra.mxu0 %v11811_v60  ;;  %v1908_v60 = vpack.c.bf16 %v1873_v59, %v1872_v58  ;;  %v1904_v59 = vld [vmem:[%s12339_s19 + $0x113] sm:$0xff] }
 0x196   : > { %2023 = vmatprep.subr.bf16.mxu0 %v11816_v61  ;;  %v11838_v61 = vld [vmem:[%s17176_s1 + $0x280] ss:$8 sps:$4 sm:$0xff]  }
 0x198   : > { %1224 = vmatmul.mubr.bf16.gmra.mrb[16].mxu0 %v12675_v62 }
 0x199   : > { %1233 = vmatprep.mubr.bf16.mxu0 %v17184_v0 }
 0x1a0   : > { %1234 = vmatmul.mubr.bf16.gmra.mrb[20].mxu0 %v12681_v2 }
 0x1a1   : > { %1243 = vmatprep.mubr.bf16.mxu0 %v17184_v0 }
 0x1a8   : > { %1244 = vmatmul.mubr.bf16.gmra.mrb[24].mxu0 %v12687_v5 }
 0x1a9   : > { %1253 = vmatprep.mubr.bf16.mxu0 %v17184_v0 }
 0x1b0   : > { %1254 = vmatmul.mubr.bf16.gmra.mrb[28].mxu0 %v12693_v8 }
 0x1b1   : > { %1263 = vmatprep.mubr.bf16.mxu0 %v17184_v0 }
 0x1b8   : > { %1264 = vmatmul.mubr.bf16.gmra.mrb[32].mxu0 %v12699_v11 }
 0x1b9   : > { %1273 = vmatprep.mubr.bf16.mxu0 %v17184_v0 }
 0x1c0   : > { %1274 = vmatmul.mubr.bf16.gmra.mrb[36].mxu0 %v12705_v14 }
 0x1c1   : > { %1283 = vmatprep.mubr.bf16.mxu0 %v17184_v0 }
 0x1c8   : > { %1284 = vmatmul.mubr.bf16.gmra.mrb[40].mxu0 %v12711_v17 }
 0x1c9   : > { %1293 = vmatprep.mubr.bf16.mxu0 %v17184_v0 }
 0x1d0   : > { %1294 = vmatmul.mubr.bf16.gmra.mrb[44].mxu0 %v12717_v20 }
 0x1d1   : > { %1303 = vmatprep.mubr.bf16.mxu0 %v17184_v0 }
 0x1d8   : > { %1304 = vmatmul.mubr.bf16.gmra.mrb[48].mxu0 %v12723_v23 }
 0x1d9   : > { %1313 = vmatprep.mubr.bf16.mxu0 %v17184_v0 }
 0x1e0   : > { %1314 = vmatmul.mubr.bf16.gmra.mrb[52].mxu0 %v12729_v26 }
 0x1e1   : > { %1323 = vmatprep.mubr.bf16.mxu0 %v17184_v0 }
 0x1e8   : > { %1324 = vmatmul.mubr.bf16.gmra.mrb[56].mxu0 %v12735_v29 }
 0x1e9   : > { %1333 = vmatprep.mubr.bf16.mxu0 %v17184_v0 }
 0x1f0   : > { %1334 = vmatmul.mubr.bf16.gmra.mrb[60].mxu0 %v12741_v32 }
 0x1f1   : > { %1343 = vmatprep.mubr.bf16.mxu0 %v17184_v0 }
 0x1f8   : > { %1344 = vmatmul.mubr.bf16.gmra.mrb[64].mxu0 %v12747_v35 }
 0x1f9   : > { %1353 = vmatprep.mubr.bf16.mxu0 %v17184_v0 }
 0x200   : > { %1354 = vmatmul.mubr.bf16.gmra.mrb[68].mxu0 %v12753_v38 }
 0x201   : > { %1619 = vmatprep.mubr.bf16.mxu0 %v17184_v0 }
 0x208   : > { %1620 = vmatmul.mubr.bf16.vlgmr.msra.gmra.mrb[0].mxu0 %v12621_v41  ;;  %v11825_v41 = vld [vmem:[%s17176_s1 + $0x234] ss:$8 sps:$4 sm:$0xff]  }
 0x209   : > { %2024 = vmatpush1.bf16.msra.mxu0 %v11814_v39  ;;  %1629 = vmatprep.mubr.bf16.mxu0 %v17184_v0  ;;  %v1891_v39 = vld [vmem:[%s12339_s19 + $0xab] sm:$0xff] }
 0x20a   : > { %2025 = vmatprep.subr.bf16.mxu0 %v11819_v40 }
 0x20d   : > { %2026 = vmatpush1.bf16.msra.mxu0 %v11817_v42  ;;  %v1892_v42 = vld [vmem:[%s12339_s19 + $0xb3] sm:$0xff] }
 0x20e   : > { %2027 = vmatprep.subr.bf16.mxu0 %v11822_v43  ;;  %v1893_v43 = vld [vmem:[%s12339_s19 + $0xbb] sm:$0xff] }
 0x210   : > { %1630 = vmatmul.mubr.bf16.gmra.mrb[4].mxu0 %v12639_v48  ;;  %v11831_v48 = vld [vmem:[%s17176_s1 + $0x254] ss:$8 sps:$4 sm:$0xff]  }
 0x211   : > { %1639 = vmatprep.mubr.bf16.mxu0 %v17184_v0  ;;  %2028 = vmatpush1.bf16.msra.mxu0 %v11820_v44  ;;  %v1918_v44 = vpack.c.bf16 %v1893_v43, %v1892_v42  ;;  %v2324_v43 = vld [vmem:[%s12339_s19 + $0x94] sm:$0xff] }
 0x212   : > { %2029 = vmatprep.subr.bf16.mxu0 %v11825_v41  ;;  %v1894_v41 = vld [vmem:[%s12339_s19 + $0xc3] sm:$0xff] }
 0x215   : > { %2030 = vmatpush1.bf16.msra.mxu0 %v11823_v45  ;;  %v1895_v45 = vld [vmem:[%s12339_s19 + $0xcb] sm:$0xff] }
 0x216   : > { %2031 = vmatprep.subr.bf16.mxu0 %v11828_v46  ;;  %v1919_v46 = vpack.c.bf16 %v1895_v45, %v1894_v41  ;;  %v2326_v45 = vld [vmem:[%s12339_s19 + $0xa4] sm:$0xff] }
 0x218   : > { %1640 = vmatmul.mubr.bf16.gmra.mrb[8].mxu0 %v12657_v55  ;;  %v1470_v55 = vld [vmem:[%s12339_s19 + $0x122] sm:$0xff] }
 0x219   : > { %1649 = vmatprep.mubr.bf16.mxu0 %v17184_v0  ;;  %2032 = vmatpush1.bf16.msra.mxu0 %v11826_v47  ;;  %v1489_v57 = vpack.c.bf16 %v1471_v56, %v1470_v55  ;;  %v1896_v47 = vld [vmem:[%s12339_s19 + $0xd3] sm:$0xff]  ;;  %v1902_v56 = vld [vmem:[%s12339_s19 + $0x103] sm:$0xff] }
 0x21a   : > { %2033 = vmatprep.subr.bf16.mxu0 %v11831_v48  ;;  %v1897_v48 = vld [vmem:[%s12339_s19 + $0xdb] sm:$0xff] }
 0x21d   : > { %2034 = vmatpush1.bf16.msra.mxu0 %v11829_v49  ;;  %v1920_v49 = vpack.c.bf16 %v1897_v48, %v1896_v47  ;;  %v2328_v48 = vld [vmem:[%s12339_s19 + $0xb4] sm:$0xff] }
 0x21e   : > { %2035 = vmatprep.subr.bf16.mxu0 %v11834_v50  ;;  %v1898_v50 = vld [vmem:[%s12339_s19 + $0xe3] sm:$0xff] }
 0x220   : > { %1650 = vmatmul.mubr.bf16.gmra.mrb[12].mxu0 %v12675_v62  ;;  %v11843_v62 = vld [vmem:[%s17176_s1 + $0x294] ss:$8 sps:$4 sm:$0xff]  }
 0x221   : > { %1659 = vmatprep.mubr.bf16.mxu0 %v17184_v0  ;;  %2036 = vmatpush1.bf16.msra.mxu0 %v11832_v51  ;;  %v1899_v51 = vld [vmem:[%s12339_s19 + $0xeb] sm:$0xff] }
 0x222   : > { %2037 = vmatprep.subr.bf16.mxu0 %v11837_v52  ;;  %v1921_v52 = vpack.c.bf16 %v1899_v51, %v1898_v50  ;;  %v2330_v51 = vld [vmem:[%s12339_s19 + $0xc4] sm:$0xff] }
 0x225   : > { %2038 = vmatpush1.bf16.msra.mxu0 %v11835_v53  ;;  %v1900_v53 = vld [vmem:[%s12339_s19 + $0xf3] sm:$0xff] }
 0x226   : > { %2459 = vmatprep.subr.bf16.mxu0 %v11840_v54  ;;  %v1901_v54 = vld [vmem:[%s12339_s19 + $0xfb] sm:$0xff] }
 0x227   : > { %v1922_v55 = vpack.c.bf16 %v1901_v54, %v1900_v53  ;;  %v2332_v54 = vld [vmem:[%s12339_s19 + $0xd4] sm:$0xff] }
 0x228   : > { %1660 = vmatmul.mubr.bf16.gmra.mrb[16].mxu0 %v12681_v2  ;;  %v11841_v2 = vld [vmem:[%s17176_s1 + $0x290] ss:$8 sps:$4 sm:$0xff]  }
 0x229   : > { %1669 = vmatprep.mubr.bf16.mxu0 %v17184_v0 }
 0x230   : > { %1670 = vmatmul.mubr.bf16.gmra.mrb[20].mxu0 %v12687_v5  ;;  %v11844_v5 = vld [vmem:[%s17176_s1 + $0x2a0] ss:$8 sps:$4 sm:$0xff]  }
 0x231   : > { %1679 = vmatprep.mubr.bf16.mxu0 %v17184_v0 }
 0x238   : > { %1680 = vmatmul.mubr.bf16.gmra.mrb[24].mxu0 %v12693_v8  ;;  %v1877_v8 = vld [vmem:[%s12339_s19 + $0x3b] sm:$0xff] }
 0x239   : > { %1689 = vmatprep.mubr.bf16.mxu0 %v17184_v0 }
 0x240   : > { %1690 = vmatmul.mubr.bf16.gmra.mrb[28].mxu0 %v12699_v11  ;;  %v1910_v11 = vpack.c.bf16 %v1877_v8, %v1876_v7  ;;  %v2310_v7 = vld [vmem:[%s12339_s19 + $0x24] sm:$0xff]  ;;  %v2311_v8 = vld [vmem:[%s12339_s19 + $0x2c] sm:$0xff] }
 0x241   : > { %1699 = vmatprep.mubr.bf16.mxu0 %v17184_v0 }
 0x248   : > { %1700 = vmatmul.mubr.bf16.gmra.mrb[32].mxu0 %v12705_v14  ;;  %v1878_v14 = vld [vmem:[%s12339_s19 + $0x43] sm:$0xff] }
 0x249   : > { %1709 = vmatprep.mubr.bf16.mxu0 %v17184_v0  ;;  %v1911_v18 = vpack.c.bf16 %v1879_v15, %v1878_v14  ;;  %v2312_v14 = vld [vmem:[%s12339_s19 + $0x34] sm:$0xff]  ;;  %v2313_v15 = vld [vmem:[%s12339_s19 + $0x3c] sm:$0xff] }
 0x250   : > { %1710 = vmatmul.mubr.bf16.gmra.mrb[36].mxu0 %v12711_v17  ;;  %v11858_v17 = vld [vmem:[%s17176_s1 + $0x2e4] ss:$8 sps:$4 sm:$0xff]  }
 0x251   : > { %1719 = vmatprep.mubr.bf16.mxu0 %v17184_v0 }
 0x258   : > { %1720 = vmatmul.mubr.bf16.gmra.mrb[40].mxu0 %v12717_v20  ;;  %v11861_v20 = vld [vmem:[%s17176_s1 + $0x2f4] ss:$8 sps:$4 sm:$0xff]  }
 0x259   : > { %1729 = vmatprep.mubr.bf16.mxu0 %v17184_v0 }
 0x260   : > { %1730 = vmatmul.mubr.bf16.gmra.mrb[44].mxu0 %v12723_v23  ;;  %v11859_v23 = vld [vmem:[%s17176_s1 + $0x2f0] ss:$8 sps:$4 sm:$0xff]  }
 0x261   : > { %1739 = vmatprep.mubr.bf16.mxu0 %v17184_v0 }
 0x268   : > { %1740 = vmatmul.mubr.bf16.gmra.mrb[48].mxu0 %v12729_v26  ;;  %v1882_v26 = vld [vmem:[%s12339_s19 + $0x63] sm:$0xff] }
 0x269   : > { %1749 = vmatprep.mubr.bf16.mxu0 %v17184_v0  ;;  %v1913_v28 = vpack.c.bf16 %v1883_v27, %v1882_v26  ;;  %v11880_v26 = vld [vmem:[%s17176_s1 + $0x360] ss:$8 sps:$4 sm:$0xff]   ;;  %v11885_v27 = vld [vmem:[%s17176_s1 + $0x374] ss:$8 sps:$4 sm:$0xff]  }
 0x270   : > { %1750 = vmatmul.mubr.bf16.gmra.mrb[52].mxu0 %v12735_v29  ;;  %v1884_v29 = vld [vmem:[%s12339_s19 + $0x73] sm:$0xff] }
 0x271   : > { %1759 = vmatprep.mubr.bf16.mxu0 %v17184_v0  ;;  %v1914_v31 = vpack.c.bf16 %v1885_v30, %v1884_v29  ;;  %v2317_v29 = vld [vmem:[%s12339_s19 + $0x5c] sm:$0xff]  ;;  %v11883_v30 = vld [vmem:[%s17176_s1 + $0x370] ss:$8 sps:$4 sm:$0xff]  }
 0x278   : > { %1760 = vmatmul.mubr.bf16.gmra.mrb[56].mxu0 %v12741_v32  ;;  %v1886_v32 = vld [vmem:[%s12339_s19 + $0x83] sm:$0xff] }
 0x279   : > { %1769 = vmatprep.mubr.bf16.mxu0 %v17184_v0  ;;  %v1915_v34 = vpack.c.bf16 %v1887_v33, %v1886_v32  ;;  %v2318_v33 = vld [vmem:[%s12339_s19 + $0x64] sm:$0xff] }
 0x280   : > { %1770 = vmatmul.mubr.bf16.gmra.mrb[60].mxu0 %v12747_v35  ;;  %v1888_v35 = vld [vmem:[%s12339_s19 + $0x93] sm:$0xff] }
 0x281   : > { %1779 = vmatprep.mubr.bf16.mxu0 %v17184_v0  ;;  %v1916_v37 = vpack.c.bf16 %v1889_v36, %v1888_v35  ;;  %v2320_v36 = vld [vmem:[%s12339_s19 + $0x74] sm:$0xff] }
 0x288   : > { %1780 = vmatmul.mubr.bf16.gmra.mrb[64].mxu0 %v12753_v38  ;;  %v1890_v38 = vld [vmem:[%s12339_s19 + $0xa3] sm:$0xff] }
 0x289   : > { %1789 = vmatprep.mubr.bf16.mxu0 %v17184_v0  ;;  %v1917_v40 = vpack.c.bf16 %v1891_v39, %v1890_v38  ;;  %v2322_v39 = vld [vmem:[%s12339_s19 + $0x84] sm:$0xff] }
 0x290   : > { %1790 = vmatmul.mubr.bf16.gmra.mrb[68].mxu0 %v1489_v57  ;;  %v1903_v57 = vld [vmem:[%s12339_s19 + $0x10b] sm:$0xff] }
 0x291   : > { %2055 = vmatprep.mubr.bf16.mxu0 %v17184_v0  ;;  %v1923_v58 = vpack.c.bf16 %v1903_v57, %v1902_v56  ;;  %v2334_v57 = vld [vmem:[%s12339_s19 + $0xe4] sm:$0xff] }
 0x298   : > { %2056 = vmatmul.mubr.bf16.vlgmr.msra.gmra.mrb[0].mxu0 %v1908_v60  ;;  %v1905_v60 = vld [vmem:[%s12339_s19 + $0x11b] sm:$0xff] }
 0x299   : > { %2460 = vmatpush1.bf16.msra.mxu0 %v11838_v61  ;;  %2065 = vmatprep.mubr.bf16.mxu0 %v17184_v0  ;;  %v1924_v61 = vpack.c.bf16 %v1905_v60, %v1904_v59  ;;  %v2336_v60 = vld [vmem:[%s12339_s19 + $0xf4] sm:$0xff] }
 0x29a   : > { %2461 = vmatprep.subr.bf16.mxu0 %v11843_v62  ;;  %v1906_v62 = vld [vmem:[%s12339_s19 + $0x123] sm:$0xff] }
 0x29b   : > { %v1925_v1 = vpack.c.bf16 %v1907_v63, %v1906_v62  ;;  %v2338_v63 = vld [vmem:[%s12339_s19 + $0x104] sm:$0xff] }
 0x29d   : > { %2462 = vmatpush1.bf16.msra.mxu0 %v11841_v2  ;;  %v2308_v2 = vld [vmem:[%s12339_s19 + $0x14] sm:$0xff] }
 0x29e   : > { %2463 = vmatprep.subr.bf16.mxu0 %v11846_v3  ;;  %v2309_v3 = vld [vmem:[%s12339_s19 + $0x1c] sm:$0xff] }
 0x2a0   : > { %2066 = vmatmul.mubr.bf16.gmra.mrb[4].mxu0 %v1909_v4  ;;  %v2344_v4 = vpack.c.bf16 %v2309_v3, %v2308_v2  ;;  %v2340_v3 = vld [vmem:[%s12339_s19 + $0x114] sm:$0xff] }
 0x2a1   : > { %2075 = vmatprep.mubr.bf16.mxu0 %v17184_v0  ;;  %2464 = vmatpush1.bf16.msra.mxu0 %v11844_v5  ;;  %v11862_v5 = vld [vmem:[%s17176_s1 + $0x300] ss:$8 sps:$4 sm:$0xff]  }
 0x2a2   : > { %2465 = vmatprep.subr.bf16.mxu0 %v11849_v6  ;;  %v11867_v6 = vld [vmem:[%s17176_s1 + $0x314] ss:$8 sps:$4 sm:$0xff]  }
 0x2a5   : > { %2466 = vmatpush1.bf16.msra.mxu0 %v11847_v9  ;;  %v11865_v9 = vld [vmem:[%s17176_s1 + $0x310] ss:$8 sps:$4 sm:$0xff]  }
 0x2a6   : > { %2467 = vmatprep.subr.bf16.mxu0 %v11852_v10  ;;  %v11870_v10 = vld [vmem:[%s17176_s1 + $0x324] ss:$8 sps:$4 sm:$0xff]  }
 0x2a8   : > { %2076 = vmatmul.mubr.bf16.gmra.mrb[8].mxu0 %v1910_v11  ;;  %v12961_v11 = vpack.c.bf16 %v2311_v8, %v2310_v7  ;;  %v2343_v7 = vld [vmem:[%s12339_s19 + $0x12c] sm:$0xff] }
 0x2a9   : > { %2085 = vmatprep.mubr.bf16.mxu0 %v17184_v0  ;;  %2468 = vmatpush1.bf16.msra.mxu0 %v11850_v12  ;;  %v11868_v12 = vld [vmem:[%s17176_s1 + $0x320] ss:$8 sps:$4 sm:$0xff]  }
 0x2aa   : > { %2469 = vmatprep.subr.bf16.mxu0 %v11855_v13  ;;  %v11873_v13 = vld [vmem:[%s17176_s1 + $0x334] ss:$8 sps:$4 sm:$0xff]  }
 0x2ad   : > { %2470 = vmatpush1.bf16.msra.mxu0 %v11853_v16  ;;  %v11871_v16 = vld [vmem:[%s17176_s1 + $0x330] ss:$8 sps:$4 sm:$0xff]  }
 0x2ae   : > { %2471 = vmatprep.subr.bf16.mxu0 %v11858_v17  ;;  %v11876_v17 = vld [vmem:[%s17176_s1 + $0x344] ss:$8 sps:$4 sm:$0xff]  }
 0x2b0   : > { %2086 = vmatmul.mubr.bf16.gmra.mrb[12].mxu0 %v1911_v18  ;;  %v12979_v18 = vpack.c.bf16 %v2313_v15, %v2312_v14  ;;  %v11892_v14 = vld [vmem:[%s17176_s1 + $0x3a0] ss:$8 sps:$4 sm:$0xff]   ;;  %v11895_v15 = vld [vmem:[%s17176_s1 + $0x3b0] ss:$8 sps:$4 sm:$0xff]  }
 0x2b1   : > { %2095 = vmatprep.mubr.bf16.mxu0 %v17184_v0  ;;  %2472 = vmatpush1.bf16.msra.mxu0 %v11856_v19  ;;  %v11874_v19 = vld [vmem:[%s17176_s1 + $0x340] ss:$8 sps:$4 sm:$0xff]  }
 0x2b2   : > { %2473 = vmatprep.subr.bf16.mxu0 %v11861_v20  ;;  %v11879_v20 = vld [vmem:[%s17176_s1 + $0x354] ss:$8 sps:$4 sm:$0xff]  }
 0x2b5   : > { %2474 = vmatpush1.bf16.msra.mxu0 %v11859_v23  ;;  %v11877_v23 = vld [vmem:[%s17176_s1 + $0x350] ss:$8 sps:$4 sm:$0xff]  }
 0x2b6   : > { %2895 = vmatprep.subr.bf16.mxu0 %v11864_v24  ;;  %v11882_v24 = vld [vmem:[%s17176_s1 + $0x364] ss:$8 sps:$4 sm:$0xff]  }
 0x2b8   : > { %2096 = vmatmul.mubr.bf16.gmra.mrb[16].mxu0 %v1912_v25  ;;  %v12997_v25 = vpack.c.bf16 %v2315_v22, %v2314_v21  ;;  %v11904_v21 = vld [vmem:[%s17176_s1 + $0x3e0] ss:$8 sps:$4 sm:$0xff]   ;;  %v11909_v22 = vld [vmem:[%s17176_s1 + $0x3f4] ss:$8 sps:$4 sm:$0xff]  }
 0x2b9   : > { %2105 = vmatprep.mubr.bf16.mxu0 %v17184_v0 }
 0x2c0   : > { %2106 = vmatmul.mubr.bf16.gmra.mrb[20].mxu0 %v1913_v28  ;;  %v2316_v28 = vld [vmem:[%s12339_s19 + $0x54] sm:$0xff] }
 0x2c1   : > { %2115 = vmatprep.mubr.bf16.mxu0 %v17184_v0  ;;  %v13015_v32 = vpack.c.bf16 %v2317_v29, %v2316_v28  ;;  %v3180_v28 = vld [vmem:[%s12339_s19 + $0x25] sm:$0xff]  ;;  %v3181_v29 = vld [vmem:[%s12339_s19 + $0x2d] sm:$0xff] }
 0x2c8   : > { %2116 = vmatmul.mubr.bf16.gmra.mrb[24].mxu0 %v1914_v31  ;;  %v11888_v31 = vld [vmem:[%s17176_s1 + $0x384] ss:$8 sps:$4 sm:$0xff]  }
 0x2c9   : > { %2125 = vmatprep.mubr.bf16.mxu0 %v17184_v0 }
 0x2d0   : > { %2126 = vmatmul.mubr.bf16.gmra.mrb[28].mxu0 %v1915_v34  ;;  %v2319_v34 = vld [vmem:[%s12339_s19 + $0x6c] sm:$0xff] }
 0x2d1   : > { %2135 = vmatprep.mubr.bf16.mxu0 %v17184_v0  ;;  %v13021_v35 = vpack.c.bf16 %v2319_v34, %v2318_v33  ;;  %v3182_v33 = vld [vmem:[%s12339_s19 + $0x35] sm:$0xff]  ;;  %v3183_v34 = vld [vmem:[%s12339_s19 + $0x3d] sm:$0xff] }
 0x2d8   : > { %2136 = vmatmul.mubr.bf16.gmra.mrb[32].mxu0 %v1916_v37  ;;  %v2321_v37 = vld [vmem:[%s12339_s19 + $0x7c] sm:$0xff] }
 0x2d9   : > { %2145 = vmatprep.mubr.bf16.mxu0 %v17184_v0  ;;  %v13027_v38 = vpack.c.bf16 %v2321_v37, %v2320_v36  ;;  %v11918_v36 = vld [vmem:[%s17176_s1 + $0x424] ss:$8 sps:$4 sm:$0xff]   ;;  %v3217_v37 = vpack.c.bf16 %v3183_v34, %v3182_v33 }
 0x2da   : > { %v4232_v33 = vld [vmem:[%s17180_s5 + $0xc0] sm:$0xff] }
 0x2db   : > { %v3202_v34 = vld [vmem:[%s12339_s19 + $0xd5] sm:$0xff] }
 0x2e0   : > { %2146 = vmatmul.mubr.bf16.gmra.mrb[36].mxu0 %v1917_v40  ;;  %v2323_v40 = vld [vmem:[%s12339_s19 + $0x8c] sm:$0xff] }
 0x2e1   : > { %2155 = vmatprep.mubr.bf16.mxu0 %v17184_v0  ;;  %v13033_v42 = vpack.c.bf16 %v2323_v40, %v2322_v39  ;;  %v11921_v39 = vld [vmem:[%s17176_s1 + $0x434] ss:$8 sps:$4 sm:$0xff]  }
 0x2e2   : > { %v3184_v40 = vld [vmem:[%s12339_s19 + $0x45] sm:$0xff] }
 0x2e8   : > { %2156 = vmatmul.mubr.bf16.gmra.mrb[40].mxu0 %v1918_v44  ;;  %v2325_v44 = vld [vmem:[%s12339_s19 + $0x9c] sm:$0xff] }
 0x2e9   : > { %2165 = vmatprep.mubr.bf16.mxu0 %v17184_v0  ;;  %v13039_v41 = vpack.c.bf16 %v2325_v44, %v2324_v43  ;;  %v11919_v43 = vld [vmem:[%s17176_s1 + $0x430] ss:$8 sps:$4 sm:$0xff]   ;;  %v11924_v44 = vld [vmem:[%s17176_s1 + $0x444] ss:$8 sps:$4 sm:$0xff]  }
 0x2f0   : > { %2166 = vmatmul.mubr.bf16.gmra.mrb[44].mxu0 %v1919_v46  ;;  %v2327_v46 = vld [vmem:[%s12339_s19 + $0xac] sm:$0xff] }
 0x2f1   : > { %2175 = vmatprep.mubr.bf16.mxu0 %v17184_v0  ;;  %v13045_v47 = vpack.c.bf16 %v2327_v46, %v2326_v45  ;;  %v11922_v45 = vld [vmem:[%s17176_s1 + $0x440] ss:$8 sps:$4 sm:$0xff]   ;;  %v11927_v46 = vld [vmem:[%s17176_s1 + $0x454] ss:$8 sps:$4 sm:$0xff]  }
 0x2f8   : > { %2176 = vmatmul.mubr.bf16.gmra.mrb[48].mxu0 %v1920_v49  ;;  %v2329_v49 = vld [vmem:[%s12339_s19 + $0xbc] sm:$0xff] }
 0x2f9   : > { %2185 = vmatprep.mubr.bf16.mxu0 %v17184_v0  ;;  %v13051_v50 = vpack.c.bf16 %v2329_v49, %v2328_v48  ;;  %v3187_v48 = vld [vmem:[%s12339_s19 + $0x5d] sm:$0xff]  ;;  %v11925_v49 = vld [vmem:[%s17176_s1 + $0x450] ss:$8 sps:$4 sm:$0xff]  }
 0x300   : > { %2186 = vmatmul.mubr.bf16.gmra.mrb[52].mxu0 %v1921_v52  ;;  %v2331_v52 = vld [vmem:[%s12339_s19 + $0xcc] sm:$0xff] }
 0x301   : > { %2195 = vmatprep.mubr.bf16.mxu0 %v17184_v0  ;;  %v13057_v53 = vpack.c.bf16 %v2331_v52, %v2330_v51  ;;  %v11928_v52 = vld [vmem:[%s17176_s1 + $0x460] ss:$8 sps:$4 sm:$0xff]  }
 0x308   : > { %2196 = vmatmul.mubr.bf16.gmra.mrb[56].mxu0 %v1922_v55  ;;  %v2333_v55 = vld [vmem:[%s12339_s19 + $0xdc] sm:$0xff] }
 0x309   : > { %2205 = vmatprep.mubr.bf16.mxu0 %v17184_v0  ;;  %v13063_v56 = vpack.c.bf16 %v2333_v55, %v2332_v54  ;;  %v3188_v54 = vld [vmem:[%s12339_s19 + $0x65] sm:$0xff]  ;;  %v3189_v55 = vld [vmem:[%s12339_s19 + $0x6d] sm:$0xff] }
 0x310   : > { %2206 = vmatmul.mubr.bf16.gmra.mrb[60].mxu0 %v1923_v58  ;;  %v2335_v58 = vld [vmem:[%s12339_s19 + $0xec] sm:$0xff] }
 0x311   : > { %2215 = vmatprep.mubr.bf16.mxu0 %v17184_v0  ;;  %v13069_v59 = vpack.c.bf16 %v2335_v58, %v2334_v57  ;;  %v3220_v57 = vpack.c.bf16 %v3189_v55, %v3188_v54  ;;  %v3190_v58 = vld [vmem:[%s12339_s19 + $0x75] sm:$0xff]  ;;  %v3208_v54 = vld [vmem:[%s12339_s19 + $0x105] sm:$0xff]  ;;  %v3209_v55 = vld [vmem:[%s12339_s19 + $0x10d] sm:$0xff] }
 0x318   : > { %2216 = vmatmul.mubr.bf16.gmra.mrb[64].mxu0 %v1924_v61  ;;  %v2337_v61 = vld [vmem:[%s12339_s19 + $0xfc] sm:$0xff] }
 0x319   : > { %2225 = vmatprep.mubr.bf16.mxu0 %v17184_v0  ;;  %v13075_v62 = vpack.c.bf16 %v2337_v61, %v2336_v60  ;;  %v4211_v60 = vld [vmem:[%s17180_s5 + $0x18] sm:$0xff] }
 0x31a   : > { %4261 = vperm.xlu1 %11717, %v4211_v60   ;;  %v3210_v60 = vld [vmem:[%s12339_s19 + $0x115] sm:$0xff] }
 0x320   : > { %2226 = vmatmul.mubr.bf16.gmra.mrb[68].mxu0 %v1925_v1  ;;  %v2339_v1 = vld [vmem:[%s12339_s19 + $0x10c] sm:$0xff] }
 0x321   : > { %2491 = vmatprep.mubr.bf16.mxu0 %v17184_v0  ;;  %v13081_v2 = vpack.c.bf16 %v2339_v1, %v2338_v63  ;;  %v3192_v63 = vld [vmem:[%s12339_s19 + $0x85] sm:$0xff]  ;;  %v3193_v1 = vld [vmem:[%s12339_s19 + $0x8d] sm:$0xff] }
 0x328   : > { %2492 = vmatmul.mubr.bf16.vlgmr.msra.gmra.mrb[0].mxu0 %v2344_v4  ;;  %v2341_v4 = vld [vmem:[%s12339_s19 + $0x11c] sm:$0xff] }
 0x329   : > { %2896 = vmatpush1.bf16.msra.mxu0 %v11862_v5  ;;  %2501 = vmatprep.mubr.bf16.mxu0 %v17184_v0  ;;  %v13087_v5 = vpack.c.bf16 %v2341_v4, %v2340_v3  ;;  %v3222_v3 = vpack.c.bf16 %v3193_v1, %v3192_v63  ;;  %v4209_v4 = vld [vmem:[%s17180_s5 + $0x8] sm:$0xff] }
 0x32a   : > { %2897 = vmatprep.subr.bf16.mxu0 %v11867_v6  ;;  %v2342_v6 = vld [vmem:[%s12339_s19 + $0x124] sm:$0xff]  ;;  %4251 = vperm.xlu0 %11716, %v4209_v4   ;;  %v3214_v4 = vld [vmem:[%s12339_s19 + $0x135] sm:$0xff] }
 0x32b   : > { %v13093_v8 = vpack.c.bf16 %v2343_v7, %v2342_v6  ;;  %v3194_v6 = vld [vmem:[%s12339_s19 + $0x95] sm:$0xff]  ;;  %v3195_v7 = vld [vmem:[%s12339_s19 + $0x9d] sm:$0xff]  ;;  %v3212_v1 = vld [vmem:[%s12339_s19 + $0x125] sm:$0xff] }
 0x32d   : > { %2898 = vmatpush1.bf16.msra.mxu0 %v11865_v9  ;;  %v11886_v9 = vld [vmem:[%s17176_s1 + $0x380] ss:$8 sps:$4 sm:$0xff]  }
 0x32e   : > { %2899 = vmatprep.subr.bf16.mxu0 %v11870_v10  ;;  %v11891_v10 = vld [vmem:[%s17176_s1 + $0x394] ss:$8 sps:$4 sm:$0xff]  }
 0x330   : > { %2502 = vmatmul.mubr.bf16.gmra.mrb[4].mxu0 %v12961_v11 }
 0x331   : > { %2511 = vmatprep.mubr.bf16.mxu0 %v17184_v0  ;;  %2900 = vmatpush1.bf16.msra.mxu0 %v11868_v12  ;;  %v11889_v12 = vld [vmem:[%s17176_s1 + $0x390] ss:$8 sps:$4 sm:$0xff]  }
 0x332   : > { %2901 = vmatprep.subr.bf16.mxu0 %v11873_v13  ;;  %v11894_v13 = vld [vmem:[%s17176_s1 + $0x3a4] ss:$8 sps:$4 sm:$0xff]  }
 0x335   : > { %2902 = vmatpush1.bf16.msra.mxu0 %v11871_v16  ;;  %v11900_v16 = vld [vmem:[%s17176_s1 + $0x3c4] ss:$8 sps:$4 sm:$0xff]  }
 0x336   : > { %2903 = vmatprep.subr.bf16.mxu0 %v11876_v17  ;;  %v11898_v17 = vld [vmem:[%s17176_s1 + $0x3c0] ss:$8 sps:$4 sm:$0xff]  }
 0x338   : > { %2512 = vmatmul.mubr.bf16.gmra.mrb[8].mxu0 %v12979_v18 }
 0x339   : > { %2521 = vmatprep.mubr.bf16.mxu0 %v17184_v0  ;;  %2904 = vmatpush1.bf16.msra.mxu0 %v11874_v19  ;;  %v11901_v19 = vld [vmem:[%s17176_s1 + $0x3d0] ss:$8 sps:$4 sm:$0xff]  }
 0x33a   : > { %2905 = vmatprep.subr.bf16.mxu0 %v11879_v20  ;;  %v11906_v20 = vld [vmem:[%s17176_s1 + $0x3e4] ss:$8 sps:$4 sm:$0xff]  }
 0x33d   : > { %2906 = vmatpush1.bf16.msra.mxu0 %v11877_v23  ;;  %v11907_v23 = vld [vmem:[%s17176_s1 + $0x3f0] ss:$8 sps:$4 sm:$0xff]  }
 0x33e   : > { %2907 = vmatprep.subr.bf16.mxu0 %v11882_v24  ;;  %v11912_v24 = vld [vmem:[%s17176_s1 + $0x404] ss:$8 sps:$4 sm:$0xff]  }
 0x340   : > { %2522 = vmatmul.mubr.bf16.gmra.mrb[12].mxu0 %v12997_v25 }
 0x341   : > { %2531 = vmatprep.mubr.bf16.mxu0 %v17184_v0  ;;  %2908 = vmatpush1.bf16.msra.mxu0 %v11880_v26  ;;  %v2779_v26 = vld [vmem:[%s12339_s19 + $0x13c] sm:$0xff] }
 0x342   : > { %2909 = vmatprep.subr.bf16.mxu0 %v11885_v27 }
 0x345   : > { %2910 = vmatpush1.bf16.msra.mxu0 %v11883_v30  ;;  %v3216_v30 = vpack.c.bf16 %v3181_v29, %v3180_v28  ;;  %v3201_v28 = vld [vmem:[%s12339_s19 + $0xcd] sm:$0xff] }
 0x346   : > { %3331 = vmatprep.subr.bf16.mxu0 %v11888_v31  ;;  %v11910_v31 = vld [vmem:[%s17176_s1 + $0x400] ss:$8 sps:$4 sm:$0xff]   ;;  %v4223_v29 = vld [vmem:[%s17180_s5 + $0x78] sm:$0xff] }
 0x348   : > { %2532 = vmatmul.mubr.bf16.gmra.mrb[16].mxu0 %v13015_v32 }
 0x349   : > { %2541 = vmatprep.mubr.bf16.mxu0 %v17184_v0 }
 0x350   : > { %2542 = vmatmul.mubr.bf16.gmra.mrb[20].mxu0 %v13021_v35 }
 0x351   : > { %2551 = vmatprep.mubr.bf16.mxu0 %v17184_v0 }
 0x358   : > { %2552 = vmatmul.mubr.bf16.gmra.mrb[24].mxu0 %v13027_v38 }
 0x359   : > { %2561 = vmatprep.mubr.bf16.mxu0 %v17184_v0 }
 0x360   : > { %2562 = vmatmul.mubr.bf16.gmra.mrb[28].mxu0 %v13033_v42 }
 0x361   : > { %2571 = vmatprep.mubr.bf16.mxu0 %v17184_v0 }
 0x368   : > { %2572 = vmatmul.mubr.bf16.gmra.mrb[32].mxu0 %v13039_v41 }
 0x369   : > { %2581 = vmatprep.mubr.bf16.mxu0 %v17184_v0 }
 0x370   : > { %2582 = vmatmul.mubr.bf16.gmra.mrb[36].mxu0 %v13045_v47 }
 0x371   : > { %2591 = vmatprep.mubr.bf16.mxu0 %v17184_v0 }
 0x378   : > { %2592 = vmatmul.mubr.bf16.gmra.mrb[40].mxu0 %v13051_v50 }
 0x379   : > { %2601 = vmatprep.mubr.bf16.mxu0 %v17184_v0 }
 0x380   : > { %2602 = vmatmul.mubr.bf16.gmra.mrb[44].mxu0 %v13057_v53 }
 0x381   : > { %2611 = vmatprep.mubr.bf16.mxu0 %v17184_v0 }
 0x388   : > { %2612 = vmatmul.mubr.bf16.gmra.mrb[48].mxu0 %v13063_v56 }
 0x389   : > { %2621 = vmatprep.mubr.bf16.mxu0 %v17184_v0 }
 0x390   : > { %2622 = vmatmul.mubr.bf16.gmra.mrb[52].mxu0 %v13069_v59 }
 0x391   : > { %2631 = vmatprep.mubr.bf16.mxu0 %v17184_v0 }
 0x398   : > { %2632 = vmatmul.mubr.bf16.gmra.mrb[56].mxu0 %v13075_v62 }
 0x399   : > { %2641 = vmatprep.mubr.bf16.mxu0 %v17184_v0 }
 0x3a0   : > { %2642 = vmatmul.mubr.bf16.gmra.mrb[60].mxu0 %v13081_v2 }
 0x3a1   : > { %2651 = vmatprep.mubr.bf16.mxu0 %v17184_v0 }
 0x3a8   : > { %2652 = vmatmul.mubr.bf16.gmra.mrb[64].mxu0 %v13087_v5 }
 0x3a9   : > { %2661 = vmatprep.mubr.bf16.mxu0 %v17184_v0 }
 0x3b0   : > { %2662 = vmatmul.mubr.bf16.gmra.mrb[68].mxu0 %v13093_v8 }
 0x3b1   : > { %2927 = vmatprep.mubr.bf16.mxu0 %v17184_v0 }
 0x3b8   : > { %2928 = vmatmul.mubr.bf16.vlgmr.msra.gmra.mrb[0].mxu0 %v12961_v11  ;;  %v11897_v11 = vld [vmem:[%s17176_s1 + $0x3b4] ss:$8 sps:$4 sm:$0xff]  }
 0x3b9   : > { %3332 = vmatpush1.bf16.msra.mxu0 %v11886_v9  ;;  %2937 = vmatprep.mubr.bf16.mxu0 %v17184_v0  ;;  %v4218_v9 = vld [vmem:[%s17180_s5 + $0x50] sm:$0xff] }
 0x3ba   : > { %3333 = vmatprep.subr.bf16.mxu0 %v11891_v10  ;;  %v3223_v10 = vpack.c.bf16 %v3195_v7, %v3194_v6  ;;  %v3616_v7 = vld [vmem:[%s12339_s19 + $0x26] sm:$0xff] }
 0x3bd   : > { %3334 = vmatpush1.bf16.msra.mxu0 %v11889_v12  ;;  %v4213_v12 = vld [vmem:[%s17180_s5 + $0x28] sm:$0xff] }
 0x3be   : > { %3335 = vmatprep.subr.bf16.mxu0 %v11894_v13  ;;  %v4220_v13 = vld [vmem:[%s17180_s5 + $0x60] sm:$0xff] }
 0x3c0   : > { %2938 = vmatmul.mubr.bf16.gmra.mrb[4].mxu0 %v12979_v18  ;;  %v11903_v18 = vld [vmem:[%s17176_s1 + $0x3d4] ss:$8 sps:$4 sm:$0xff]  }
 0x3c1   : > { %2947 = vmatprep.mubr.bf16.mxu0 %v17184_v0  ;;  %3336 = vmatpush1.bf16.msra.mxu0 %v11892_v14  ;;  %v3196_v14 = vld [vmem:[%s12339_s19 + $0xa5] sm:$0xff] }
 0x3c2   : > { %3337 = vmatprep.subr.bf16.mxu0 %v11897_v11  ;;  %v3197_v11 = vld [vmem:[%s12339_s19 + $0xad] sm:$0xff] }
 0x3c5   : > { %3338 = vmatpush1.bf16.msra.mxu0 %v11895_v15  ;;  %v4215_v15 = vld [vmem:[%s17180_s5 + $0x38] sm:$0xff] }
 0x3c6   : > { %3339 = vmatprep.subr.bf16.mxu0 %v11900_v16  ;;  %v4222_v16 = vld [vmem:[%s17180_s5 + $0x70] sm:$0xff] }
 0x3c8   : > { %2948 = vmatmul.mubr.bf16.gmra.mrb[8].mxu0 %v12997_v25  ;;  %v2778_v25 = vld [vmem:[%s12339_s19 + $0x134] sm:$0xff] }
 0x3c9   : > { %2957 = vmatprep.mubr.bf16.mxu0 %v17184_v0  ;;  %3340 = vmatpush1.bf16.msra.mxu0 %v11898_v17  ;;  %v2797_v27 = vpack.c.bf16 %v2779_v26, %v2778_v25  ;;  %v3224_v17 = vpack.c.bf16 %v3197_v11, %v3196_v14  ;;  %v4221_v25 = vld [vmem:[%s17180_s5 + $0x68] sm:$0xff]  ;;  %v4228_v26 = vld [vmem:[%s17180_s5 + $0xa0] sm:$0xff] }
 0x3ca   : > { %3341 = vmatprep.subr.bf16.mxu0 %v11903_v18  ;;  %v4217_v18 = vld [vmem:[%s17180_s5 + $0x48] sm:$0xff]  ;;  %v11934_v14 = vld [vmem:[%s17178_s3 + $0x80] sm:$0xff]  }
 0x3cb   : > { %v3620_v11 = vld [vmem:[%s12339_s19 + $0x46] sm:$0xff]  ;;  %11077 = vmatpush1.bf16.msra.mxu1 %v11934_v14 }
 0x3cc   : > { %11062 = vmatprep.subr.bf16.mxu1 %v17184_v0 }
 0x3cd   : > { %3342 = vmatpush1.bf16.msra.mxu0 %v11901_v19  ;;  %v4224_v19 = vld [vmem:[%s17180_s5 + $0x80] sm:$0xff] }
 0x3ce   : > { %3343 = vmatprep.subr.bf16.mxu0 %v11906_v20  ;;  %v3198_v20 = vld [vmem:[%s12339_s19 + $0xb5] sm:$0xff] }
 0x3d0   : > { %2958 = vmatmul.mubr.bf16.gmra.mrb[12].mxu0 %v13015_v32  ;;  %v11915_v32 = vld [vmem:[%s17176_s1 + $0x414] ss:$8 sps:$4 sm:$0xff]  }
 0x3d1   : > { %2967 = vmatprep.mubr.bf16.mxu0 %v17184_v0  ;;  %3344 = vmatpush1.bf16.msra.mxu0 %v11904_v21  ;;  %v3199_v21 = vld [vmem:[%s12339_s19 + $0xbd] sm:$0xff] }
 0x3d2   : > { %3345 = vmatprep.subr.bf16.mxu0 %v11909_v22  ;;  %v4219_v22 = vld [vmem:[%s17180_s5 + $0x58] sm:$0xff] }
 0x3d5   : > { %3346 = vmatpush1.bf16.msra.mxu0 %v11907_v23  ;;  %v4226_v23 = vld [vmem:[%s17180_s5 + $0x90] sm:$0xff] }
 0x3d6   : > { %3767 = vmatprep.subr.bf16.mxu0 %v11912_v24  ;;  %v3225_v24 = vpack.c.bf16 %v3199_v21, %v3198_v20  ;;  %v3623_v20 = vld [vmem:[%s12339_s19 + $0x5e] sm:$0xff] }
 0x3d7   : > { %v11937_v21 = vld [vmem:[%s17178_s3 + $0x98] sm:$0xff]  }
 0x3d8   : > { %2968 = vmatmul.mubr.bf16.gmra.mrb[16].mxu0 %v13021_v35  ;;  %v11913_v35 = vld [vmem:[%s17176_s1 + $0x410] ss:$8 sps:$4 sm:$0xff]  }
 0x3d9   : > { %2977 = vmatprep.mubr.bf16.mxu0 %v17184_v0 }
 0x3e0   : > { %2978 = vmatmul.mubr.bf16.gmra.mrb[20].mxu0 %v13027_v38  ;;  %v11916_v38 = vld [vmem:[%s17176_s1 + $0x420] ss:$8 sps:$4 sm:$0xff]  }
 0x3e1   : > { %2987 = vmatprep.mubr.bf16.mxu0 %v17184_v0 }
 0x3e8   : > { %2988 = vmatmul.mubr.bf16.gmra.mrb[24].mxu0 %v13033_v42  ;;  %v3185_v42 = vld [vmem:[%s12339_s19 + $0x4d] sm:$0xff] }
 0x3e9   : > { %2997 = vmatprep.mubr.bf16.mxu0 %v17184_v0 }
 0x3f0   : > { %2998 = vmatmul.mubr.bf16.gmra.mrb[28].mxu0 %v13039_v41  ;;  %v3218_v41 = vpack.c.bf16 %v3185_v42, %v3184_v40  ;;  %v4236_v40 = vld [vmem:[%s17180_s5 + $0xe0] sm:$0xff] }
 0x3f1   : > { %3007 = vmatprep.mubr.bf16.mxu0 %v17184_v0  ;;  %v3204_v42 = vld [vmem:[%s12339_s19 + $0xe5] sm:$0xff] }
 0x3f8   : > { %3008 = vmatmul.mubr.bf16.gmra.mrb[32].mxu0 %v13045_v47  ;;  %v3186_v47 = vld [vmem:[%s12339_s19 + $0x55] sm:$0xff] }
 0x3f9   : > { %3017 = vmatprep.mubr.bf16.mxu0 %v17184_v0  ;;  %v3219_v51 = vpack.c.bf16 %v3187_v48, %v3186_v47  ;;  %v4240_v47 = vld [vmem:[%s17180_s5 + $0x100] sm:$0xff] }
 0x3fa   : > { %v3206_v48 = vld [vmem:[%s12339_s19 + $0xf5] sm:$0xff] }
 0x400   : > { %3018 = vmatmul.mubr.bf16.gmra.mrb[36].mxu0 %v13051_v50  ;;  %v11930_v50 = vld [vmem:[%s17176_s1 + $0x464] ss:$8 sps:$4 sm:$0xff]  }
 0x401   : > { %3027 = vmatprep.mubr.bf16.mxu0 %v17184_v0 }
 0x408   : > { %3028 = vmatmul.mubr.bf16.gmra.mrb[40].mxu0 %v13057_v53  ;;  %v11933_v53 = vld [vmem:[%s17176_s1 + $0x474] ss:$8 sps:$4 sm:$0xff]  }
 0x409   : > { %3037 = vmatprep.mubr.bf16.mxu0 %v17184_v0 }
 0x410   : > { %3038 = vmatmul.mubr.bf16.gmra.mrb[44].mxu0 %v13063_v56  ;;  %v11931_v56 = vld [vmem:[%s17176_s1 + $0x470] ss:$8 sps:$4 sm:$0xff]  }
 0x411   : > { %3047 = vmatprep.mubr.bf16.mxu0 %v17184_v0 }
 0x418   : > { %3048 = vmatmul.mubr.bf16.gmra.mrb[48].mxu0 %v13069_v59  ;;  %v3191_v59 = vld [vmem:[%s12339_s19 + $0x7d] sm:$0xff] }
 0x419   : > { %3057 = vmatprep.mubr.bf16.mxu0 %v17184_v0  ;;  %v3221_v61 = vpack.c.bf16 %v3191_v59, %v3190_v58  ;;  %v4241_v58 = vld [vmem:[%s17180_s5 + $0x108] sm:$0xff]  ;;  %v4243_v59 = vld [vmem:[%s17180_s5 + $0x118] sm:$0xff] }
 0x420   : > { %3058 = vmatmul.mubr.bf16.gmra.mrb[52].mxu0 %v13075_v62  ;;  %v4212_v62 = vld [vmem:[%s17180_s5 + $0x20] sm:$0xff] }
 0x421   : > { %3067 = vmatprep.mubr.bf16.mxu0 %v17184_v0  ;;  %4266 = vperm.xlu1 %11717, %v4212_v62   ;;  %v4242_v62 = vld [vmem:[%s17180_s5 + $0x110] sm:$0xff] }
 0x428   : > { %3068 = vmatmul.mubr.bf16.gmra.mrb[56].mxu0 %v13081_v2  ;;  %v4214_v2 = vld [vmem:[%s17180_s5 + $0x30] sm:$0xff] }
 0x429   : > { %3077 = vmatprep.mubr.bf16.mxu0 %v17184_v0  ;;  %4276 = vperm.xlu1 %11717, %v4214_v2   ;;  %v3213_v2 = vld [vmem:[%s12339_s19 + $0x12d] sm:$0xff] }
 0x430   : > { %3078 = vmatmul.mubr.bf16.gmra.mrb[60].mxu0 %v13087_v5  ;;  %v4216_v5 = vld [vmem:[%s17180_s5 + $0x40] sm:$0xff] }
 0x431   : > { %3087 = vmatprep.mubr.bf16.mxu0 %v17184_v0  ;;  %4286 = vperm.xlu1 %11717, %v4216_v5   ;;  %v3215_v5 = vld [vmem:[%s12339_s19 + $0x13d] sm:$0xff] }
 0x432   : > { %v3233_v6 = vpack.c.bf16 %v3215_v5, %v3214_v4  ;;  %v3645_v4 = vld [vmem:[%s12339_s19 + $0x10e] sm:$0xff] }
 0x435   : > { %4296 = vperm.xlu1 %11717, %v4218_v9  }
 0x438   : > { %3088 = vmatmul.mubr.bf16.gmra.mrb[64].mxu0 %v13093_v8  ;;  %v4210_v8 = vld [vmem:[%s17180_s5 + $0x10] sm:$0xff] }
 0x439   : > { %3097 = vmatprep.mubr.bf16.mxu0 %v17184_v0  ;;  %4256 = vperm.xlu0 %11716, %v4210_v8   ;;  %v3617_v8 = vld [vmem:[%s12339_s19 + $0x2e] sm:$0xff] }
 0x43a   : > { %4306 = vperm.xlu1 %11717, %v4220_v13   ;;  %v3652_v9 = vpack.c.bf16 %v3617_v8, %v3616_v7  ;;  %v3647_v7 = vld [vmem:[%s12339_s19 + $0x11e] sm:$0xff] }
 0x43d   : > { %4271 = vperm.xlu0 %11716, %v4213_v12   ;;  %v3619_v12 = vld [vmem:[%s12339_s19 + $0x3e] sm:$0xff] }
 0x43e   : > { %4316 = vperm.xlu1 %11717, %v4222_v16   ;;  %v11935_v16 = vld [vmem:[%s17178_s3 + $0x88] sm:$0xff]  }
 0x43f   : > { %11078 = vmatpush1.bf16.msra.mxu1 %v11935_v16 }
 0x440   : > { %3098 = vmatmul.mubr.bf16.gmra.mrb[68].mxu0 %v2797_v27  ;;  %v3200_v27 = vld [vmem:[%s12339_s19 + $0xc5] sm:$0xff]  ;;  %11063 = vmatprep.subr.bf16.mxu1 %v17184_v0 }
 0x441   : > { %3363 = vmatprep.mubr.bf16.mxu0 %v17184_v0  ;;  %4281 = vperm.xlu0 %11716, %v4215_v15   ;;  %v3621_v15 = vld [vmem:[%s12339_s19 + $0x4e] sm:$0xff] }
 0x442   : > { %4326 = vperm.xlu1 %11717, %v4224_v19   ;;  %v3622_v19 = vld [vmem:[%s12339_s19 + $0x56] sm:$0xff] }
 0x445   : > { %4291 = vperm.xlu0 %11716, %v4217_v18   ;;  %v11936_v18 = vld [vmem:[%s17178_s3 + $0x90] sm:$0xff]  }
 0x446   : > { %4336 = vperm.xlu1 %11717, %v4226_v23   ;;  %11079 = vmatpush1.bf16.msra.mxu1 %v11936_v18  ;;  %v11938_v23 = vld [vmem:[%s17178_s3 + $0xa0] sm:$0xff]  }
 0x447   : > { %11064 = vmatprep.subr.bf16.mxu1 %v17184_v0 }
 0x448   : > { %3364 = vmatmul.mubr.bf16.vlgmr.msra.gmra.mrb[0].mxu0 %v3216_v30  ;;  %v4230_v30 = vld [vmem:[%s17180_s5 + $0xb0] sm:$0xff] }
 0x449   : > { %3768 = vmatpush1.bf16.msra.mxu0 %v11910_v31  ;;  %3373 = vmatprep.mubr.bf16.mxu0 %v17184_v0  ;;  %v3226_v31 = vpack.c.bf16 %v3201_v28, %v3200_v27  ;;  %v11940_v28 = vld [vmem:[%s17178_s3 + $0xb0] sm:$0xff]  }
 0x44a   : > { %3769 = vmatprep.subr.bf16.mxu0 %v11915_v32  ;;  %4301 = vperm.xlu0 %11716, %v4219_v22   ;;  %v4225_v32 = vld [vmem:[%s17180_s5 + $0x88] sm:$0xff]  ;;  %v3655_v22 = vpack.c.bf16 %v3623_v20, %v3622_v19 }
 0x44b   : > { %4346 = vperm.xlu1 %11717, %v4228_v26   ;;  %11080 = vmatpush1.bf16.msra.mxu1 %v11937_v21  ;;  %v11939_v26 = vld [vmem:[%s17178_s3 + $0xa8] sm:$0xff]  }
 0x44c   : > { %11065 = vmatprep.subr.bf16.mxu1 %v17184_v0 }
 0x44d   : > { %3770 = vmatpush1.bf16.msra.mxu0 %v11913_v35  ;;  %v3203_v35 = vld [vmem:[%s12339_s19 + $0xdd] sm:$0xff] }
 0x44e   : > { %3771 = vmatprep.subr.bf16.mxu0 %v11918_v36  ;;  %4311 = vperm.xlu0 %11716, %v4221_v25   ;;  %v4227_v36 = vld [vmem:[%s17180_s5 + $0x98] sm:$0xff] }
 0x44f   : > { %4356 = vperm.xlu1 %11717, %v4230_v30   ;;  %v3625_v25 = vld [vmem:[%s12339_s19 + $0x6e] sm:$0xff]  ;;  %11081 = vmatpush1.bf16.msra.mxu1 %v11938_v23  ;;  %v3627_v30 = vld [vmem:[%s12339_s19 + $0x7e] sm:$0xff] }
 0x450   : > { %3374 = vmatmul.mubr.bf16.gmra.mrb[4].mxu0 %v3217_v37  ;;  %v4234_v37 = vld [vmem:[%s17180_s5 + $0xd0] sm:$0xff]  ;;  %11066 = vmatprep.subr.bf16.mxu1 %v17184_v0 }
 0x451   : > { %3383 = vmatprep.mubr.bf16.mxu0 %v17184_v0  ;;  %3772 = vmatpush1.bf16.msra.mxu0 %v11916_v38  ;;  %v3227_v38 = vpack.c.bf16 %v3203_v35, %v3202_v34  ;;  %v3628_v34 = vld [vmem:[%s12339_s19 + $0x86] sm:$0xff]  ;;  %v3629_v35 = vld [vmem:[%s12339_s19 + $0x8e] sm:$0xff] }
 0x452   : > { %3773 = vmatprep.subr.bf16.mxu0 %v11921_v39  ;;  %4321 = vperm.xlu0 %11716, %v4223_v29   ;;  %v4229_v39 = vld [vmem:[%s17180_s5 + $0xa8] sm:$0xff]  ;;  %v3626_v29 = vld [vmem:[%s12339_s19 + $0x76] sm:$0xff] }
 0x453   : > { %4366 = vperm.xlu1 %11717, %v4232_v33   ;;  %11082 = vmatpush1.bf16.msra.mxu1 %v11939_v26  ;;  %v11942_v33 = vld [vmem:[%s17178_s3 + $0xc0] sm:$0xff]  }
 0x454   : > { %11067 = vmatprep.subr.bf16.mxu1 %v17184_v0 }
 0x455   : > { %3774 = vmatpush1.bf16.msra.mxu0 %v11919_v43  ;;  %v3205_v43 = vld [vmem:[%s12339_s19 + $0xed] sm:$0xff] }
 0x456   : > { %3775 = vmatprep.subr.bf16.mxu0 %v11924_v44  ;;  %4331 = vperm.xlu0 %11716, %v4225_v32   ;;  %v4231_v44 = vld [vmem:[%s17180_s5 + $0xb8] sm:$0xff]  ;;  %v3657_v32 = vpack.c.bf16 %v3627_v30, %v3626_v29  ;;  %v4054_v29 = vlaneseq }
 0x457   : > { %4376 = vperm.xlu1 %11717, %v4234_v37   ;;  %11083 = vmatpush1.bf16.msra.mxu1 %v11940_v28  ;;  %v3658_v37 = vpack.c.bf16 %v3629_v35, %v3628_v34 }
 0x458   : > { %3384 = vmatmul.mubr.bf16.gmra.mrb[8].mxu0 %v3218_v41  ;;  %v4238_v41 = vld [vmem:[%s17180_s5 + $0xf0] sm:$0xff]  ;;  %11068 = vmatprep.subr.bf16.mxu1 %v17184_v0  ;;  %v4055_v30 = vshrl.u32 %v4054_v29, 7 }
 0x459   : > { %3393 = vmatprep.mubr.bf16.mxu0 %v17184_v0  ;;  %3776 = vmatpush1.bf16.msra.mxu0 %v11922_v45  ;;  %v3228_v45 = vpack.c.bf16 %v3205_v43, %v3204_v42  ;;  %v3632_v43 = vld [vmem:[%s12339_s19 + $0xa6] sm:$0xff] }
 0x45a   : > { %3777 = vmatprep.subr.bf16.mxu0 %v11927_v46  ;;  %4341 = vperm.xlu0 %11716, %v4227_v36   ;;  %v4233_v46 = vld [vmem:[%s17180_s5 + $0xc8] sm:$0xff]  ;;  %v4060_v34 = vsub.s32 1, %v4055_v30 }
 0x45b   : > { %4386 = vperm.xlu1 %11717, %v4236_v40   ;;  %v11943_v36 = vld [vmem:[%s17178_s3 + $0xc8] sm:$0xff]  }
 0x45c   : > { %v3631_v40 = vld [vmem:[%s12339_s19 + $0x9e] sm:$0xff] }
 0x45d   : > { %3778 = vmatpush1.bf16.msra.mxu0 %v11925_v49  ;;  %v3207_v49 = vld [vmem:[%s12339_s19 + $0xfd] sm:$0xff] }
 0x45e   : > { %3779 = vmatprep.subr.bf16.mxu0 %v11930_v50  ;;  %4351 = vperm.xlu0 %11716, %v4229_v39   ;;  %v4235_v50 = vld [vmem:[%s17180_s5 + $0xd8] sm:$0xff] }
 0x45f   : > { %4396 = vperm.xlu1 %11717, %v4238_v41   ;;  %v3630_v39 = vld [vmem:[%s12339_s19 + $0x96] sm:$0xff] }
 0x460   : > { %3394 = vmatmul.mubr.bf16.gmra.mrb[12].mxu0 %v3219_v51  ;;  %v4208_v51 = vld [vmem:[%s17180_s5] sm:$0xff]  ;;  %v3659_v42 = vpack.c.bf16 %v3631_v40, %v3630_v39 }
 0x461   : > { %3403 = vmatprep.mubr.bf16.mxu0 %v17184_v0  ;;  %3780 = vmatpush1.bf16.msra.mxu0 %v11928_v52  ;;  %v3229_v52 = vpack.c.bf16 %v3207_v49, %v3206_v48  ;;  %v3636_v48 = vld [vmem:[%s12339_s19 + $0xc6] sm:$0xff]  ;;  %v3637_v49 = vld [vmem:[%s12339_s19 + $0xce] sm:$0xff] }
 0x462   : > { %3781 = vmatprep.subr.bf16.mxu0 %v11933_v53  ;;  %4361 = vperm.xlu0 %11716, %v4231_v44   ;;  %v4237_v53 = vld [vmem:[%s17180_s5 + $0xe8] sm:$0xff] }
 0x463   : > { %4406 = vperm.xlu1 %11717, %v4240_v47   ;;  %v3633_v44 = vld [vmem:[%s12339_s19 + $0xae] sm:$0xff] }
 0x464   : > { %v3660_v41 = vpack.c.bf16 %v3633_v44, %v3632_v43 }
 0x465   : > { %3782 = vmatpush1.bf16.msra.mxu0 %v11931_v56  ;;  %v4239_v56 = vld [vmem:[%s17180_s5 + $0xf8] sm:$0xff] }
 0x466   : > { %5010 = vmatprep.subr.bf16.mxu0 %v17184_v0  ;;  %4371 = vperm.xlu0 %11716, %v4233_v46   ;;  %v3635_v46 = vld [vmem:[%s12339_s19 + $0xbe] sm:$0xff] }
 0x467   : > { %4246 = vperm.xlu1 %11717, %v4208_v51   ;;  %v11945_v51 = vld [vmem:[%s17178_s3 + $0xd8] sm:$0xff]  }
 0x468   : > { %3404 = vmatmul.mubr.bf16.gmra.mrb[16].mxu0 %v3220_v57  ;;  %v3230_v57 = vpack.c.bf16 %v3209_v55, %v3208_v54  ;;  %v3639_v54 = vld [vmem:[%s12339_s19 + $0xde] sm:$0xff]  ;;  %v12217_v55 = vmov 0.0  }
 0x469   : > { %3413 = vmatprep.mubr.bf16.mxu0 %v17184_v0  ;;  %4497 = vst [vmem:[#allocation2 + $0x8] sm:$0xff] %v12217_v55  ;;  %4501 = vst [vmem:[#allocation2 + $0x28] sm:$0xff] %v12217_v55 }
 0x46a   : > { %4381 = vperm.xlu0 %11716, %v4235_v50   ;;  %v3662_v50 = vpack.c.bf16 %v3637_v49, %v3636_v48  ;;  %4496 = vst [vmem:[#allocation2] sm:$0xff] %v12217_v55  ;;  %4500 = vst [vmem:[#allocation2 + $0x20] sm:$0xff] %v12217_v55 }
 0x46b   : > { %4421 = vperm.xlu1 %11717, %v4243_v59   ;;  %4502 = vst [vmem:[#allocation2 + $0x270] sm:$0xff] %v12217_v55  ;;  %4503 = vst [vmem:[#allocation2 + $0x278] sm:$0xff] %v12217_v55  ;;  %v3640_v59 = vld [vmem:[%s12339_s19 + $0xe6] sm:$0xff] }
 0x46c   : > { %4506 = vst [vmem:[#allocation2 + $0x290] sm:$0xff] %v12217_v55  ;;  %4507 = vst [vmem:[#allocation2 + $0x298] sm:$0xff] %v12217_v55 }
 0x46e   : > { %4391 = vperm.xlu0 %11716, %v4237_v53   ;;  %v3638_v53 = vld [vmem:[%s12339_s19 + $0xd6] sm:$0xff] }
 0x470   : > { %3414 = vmatmul.mubr.bf16.gmra.mrb[20].mxu0 %v3221_v61  ;;  %v3211_v61 = vld [vmem:[%s12339_s19 + $0x11d] sm:$0xff] }
 0x471   : > { %3423 = vmatprep.mubr.bf16.mxu0 %v17184_v0  ;;  %v3231_v63 = vpack.c.bf16 %v3211_v61, %v3210_v60  ;;  %v3641_v60 = vld [vmem:[%s12339_s19 + $0xee] sm:$0xff]  ;;  %v4724_v43 = vld [vmem:[#allocation2] sm:$0xc0] }
 0x472   : > { %4401 = vperm.xlu0 %11716, %v4239_v56   ;;  %v3663_v56 = vpack.c.bf16 %v3639_v54, %v3638_v53  ;;  %v3664_v61 = vpack.c.bf16 %v3641_v60, %v3640_v59 }
 0x476   : > { %4411 = vperm.xlu0 %11716, %v4241_v58   ;;  %v11948_v58 = vld [vmem:[%s17178_s3 + $0xf0] sm:$0xff]  }
 0x478   : > { %3424 = vmatmul.mubr.bf16.gmra.mrb[24].mxu0 %v3222_v3  ;;  %v3232_v3 = vpack.c.bf16 %v3213_v2, %v3212_v1  ;;  %v3643_v1 = vld [vmem:[%s12339_s19 + $0xfe] sm:$0xff] }
 0x479   : > { %3433 = vmatprep.mubr.bf16.mxu0 %v17184_v0 }
 0x47a   : > { %4416 = vperm.xlu0 %11716, %v4242_v62   ;;  %v11949_v62 = vld [vmem:[%s17178_s3 + $0xf8] sm:$0xff]  }
 0x480   : > { %3434 = vmatmul.mubr.bf16.gmra.mrb[28].mxu0 %v3223_v10  ;;  %v3618_v10 = vld [vmem:[%s12339_s19 + $0x36] sm:$0xff] }
 0x481   : > { %3443 = vmatprep.mubr.bf16.mxu0 %v17184_v0  ;;  %v3653_v13 = vpack.c.bf16 %v3619_v12, %v3618_v10  ;;  %v3648_v10 = vld [vmem:[%s12339_s19 + $0x126] sm:$0xff]  ;;  %v3649_v12 = vld [vmem:[%s12339_s19 + $0x12e] sm:$0xff] }
 0x488   : > { %3444 = vmatmul.mubr.bf16.gmra.mrb[32].mxu0 %v3224_v17  ;;  %v3654_v17 = vpack.c.bf16 %v3621_v15, %v3620_v11  ;;  %v3650_v11 = vld [vmem:[%s12339_s19 + $0x136] sm:$0xff]  ;;  %v3651_v15 = vld [vmem:[%s12339_s19 + $0x13e] sm:$0xff] }
 0x489   : > { %3453 = vmatprep.mubr.bf16.mxu0 %v17184_v0 }
 0x490   : > { %3454 = vmatmul.mubr.bf16.gmra.mrb[36].mxu0 %v3225_v24  ;;  %v3624_v24 = vld [vmem:[%s12339_s19 + $0x66] sm:$0xff] }
 0x491   : > { %3463 = vmatprep.mubr.bf16.mxu0 %v17184_v0  ;;  %v3656_v27 = vpack.c.bf16 %v3625_v25, %v3624_v24 }
 0x498   : > { %3464 = vmatmul.mubr.bf16.gmra.mrb[40].mxu0 %v3226_v31  ;;  %v11941_v31 = vld [vmem:[%s17178_s3 + $0xb8] sm:$0xff]  }
 0x499   : > { %3473 = vmatprep.mubr.bf16.mxu0 %v17184_v0  ;;  %11084 = vmatpush1.bf16.msra.mxu1 %v11941_v31 }
 0x49a   : > { %11069 = vmatprep.subr.bf16.mxu1 %v17184_v0 }
 0x49d   : > { %11085 = vmatpush1.bf16.msra.mxu1 %v11942_v33 }
 0x49e   : > { %11070 = vmatprep.subr.bf16.mxu1 %v17184_v0 }
 0x4a0   : > { %3474 = vmatmul.mubr.bf16.gmra.mrb[44].mxu0 %v3227_v38  ;;  %v11944_v38 = vld [vmem:[%s17178_s3 + $0xd0] sm:$0xff]  }
 0x4a1   : > { %3483 = vmatprep.mubr.bf16.mxu0 %v17184_v0  ;;  %11086 = vmatpush1.bf16.msra.mxu1 %v11943_v36 }
 0x4a2   : > { %11071 = vmatprep.subr.bf16.mxu1 %v17184_v0 }
 0x4a5   : > { %11087 = vmatpush1.bf16.msra.mxu1 %v11944_v38 }
 0x4a6   : > { %11072 = vmatprep.subr.bf16.mxu1 %v17184_v0 }
 0x4a8   : > { %3484 = vmatmul.mubr.bf16.gmra.mrb[48].mxu0 %v3228_v45  ;;  %v3634_v45 = vld [vmem:[%s12339_s19 + $0xb6] sm:$0xff] }
 0x4a9   : > { %3493 = vmatprep.mubr.bf16.mxu0 %v17184_v0  ;;  %v3661_v47 = vpack.c.bf16 %v3635_v46, %v3634_v45  ;;  %11088 = vmatpush1.bf16.msra.mxu1 %v11945_v51 }
 0x4aa   : > { %11073 = vmatprep.subr.bf16.mxu1 %v17184_v0 }
 0x4b0   : > { %3494 = vmatmul.mubr.bf16.gmra.mrb[52].mxu0 %v3229_v52  ;;  %v11946_v52 = vld [vmem:[%s17178_s3 + $0xe0] sm:$0xff]  }
 0x4b1   : > { %3503 = vmatprep.mubr.bf16.mxu0 %v17184_v0  ;;  %11089 = vmatpush1.bf16.msra.mxu1 %v11946_v52 }
 0x4b2   : > { %11074 = vmatprep.subr.bf16.mxu1 %v17184_v0 }
 0x4b8   : > { %3504 = vmatmul.mubr.bf16.gmra.mrb[56].mxu0 %v3230_v57  ;;  %v11947_v57 = vld [vmem:[%s17178_s3 + $0xe8] sm:$0xff]  }
 0x4b9   : > { %3513 = vmatprep.mubr.bf16.mxu0 %v17184_v0  ;;  %11090 = vmatpush1.bf16.msra.mxu1 %v11947_v57 }
 0x4ba   : > { %11075 = vmatprep.subr.bf16.mxu1 %v17184_v0 }
 0x4bd   : > { %11091 = vmatpush1.bf16.msra.mxu1 %v11948_v58 }
 0x4be   : > { %11076 = vmatprep.subr.bf16.mxu1 %v17184_v0 }
 0x4c0   : > { %3514 = vmatmul.mubr.bf16.gmra.mrb[60].mxu0 %v3231_v63  ;;  %v3642_v63 = vld [vmem:[%s12339_s19 + $0xf6] sm:$0xff] }
 0x4c1   : > { %3523 = vmatprep.mubr.bf16.mxu0 %v17184_v0  ;;  %11092 = vmatpush1.bf16.msra.mxu1 %v11949_v62  ;;  %v3665_v2 = vpack.c.bf16 %v3643_v1, %v3642_v63 }
 0x4c2   : > { %5660 = vmatprep.subr.bf16.mxu1 %v17184_v0 }
 0x4c8   : > { %3524 = vmatmul.mubr.bf16.gmra.mrb[64].mxu0 %v3232_v3  ;;  %v3644_v3 = vld [vmem:[%s12339_s19 + $0x106] sm:$0xff] }
 0x4c9   : > { %3533 = vmatprep.mubr.bf16.mxu0 %v17184_v0  ;;  %v3666_v5 = vpack.c.bf16 %v3645_v4, %v3644_v3 }
 0x4d0   : > { %3534 = vmatmul.mubr.bf16.gmra.mrb[68].mxu0 %v3233_v6  ;;  %v3646_v6 = vld [vmem:[%s12339_s19 + $0x116] sm:$0xff] }
 0x4d1   : > { %3799 = vmatprep.mubr.bf16.mxu0 %v17184_v0  ;;  %v3667_v8 = vpack.c.bf16 %v3647_v7, %v3646_v6 }
 0x4d8   : > { %3800 = vmatmul.mubr.bf16.vlgmr.msra.gmra.mrb[0].mxu0 %v3652_v9  ;;  %v13524_v9 = vpop.permute.xlu1 %4261 }
 0x4d9   : > { %3809 = vmatprep.mubr.bf16.mxu0 %v17184_v0  ;;  %5011 = vmatpush1.bf16.msra.mxu0 %v11934_v14  ;;  %v3668_v14 = vpack.c.bf16 %v3649_v12, %v3648_v10 }
 0x4da   : > { %5012 = vmatprep.subr.bf16.mxu0 %v17184_v0 }
 0x4dd   : > { %5013 = vmatpush1.bf16.msra.mxu0 %v11935_v16 }
 0x4de   : > { %5014 = vmatprep.subr.bf16.mxu0 %v17184_v0 }
 0x4e0   : > { %3810 = vmatmul.mubr.bf16.gmra.mrb[4].mxu0 %v3653_v13  ;;  %v13529_v13 = vpop.permute.xlu1 %4266 }
 0x4e1   : > { %3819 = vmatprep.mubr.bf16.mxu0 %v17184_v0  ;;  %5015 = vmatpush1.bf16.msra.mxu0 %v11936_v18 }
 0x4e2   : > { %5016 = vmatprep.subr.bf16.mxu0 %v17184_v0 }
 0x4e4   : > { %v13534_v16 = vpop.permute.xlu1 %4276 }
 0x4e5   : > { %5017 = vmatpush1.bf16.msra.mxu0 %v11937_v21 }
 0x4e6   : > { %5018 = vmatprep.subr.bf16.mxu0 %v17184_v0 }
 0x4e8   : > { %3820 = vmatmul.mubr.bf16.gmra.mrb[8].mxu0 %v3654_v17  ;;  %v3669_v17 = vpack.c.bf16 %v3651_v15, %v3650_v11  ;;  %v13536_v18 = vpop.permute.xlu1 %4286 }
 0x4e9   : > { %3829 = vmatprep.mubr.bf16.mxu0 %v17184_v0  ;;  %5019 = vmatpush1.bf16.msra.mxu0 %v11938_v23 }
 0x4ea   : > { %5020 = vmatprep.subr.bf16.mxu0 %v17184_v0 }
 0x4ec   : > { %v13538_v19 = vpop.permute.xlu1 %4296 }
 0x4ed   : > { %5021 = vmatpush1.bf16.msra.mxu0 %v11939_v26 }
 0x4ee   : > { %5022 = vmatprep.subr.bf16.mxu0 %v17184_v0 }
 0x4f0   : > { %3830 = vmatmul.mubr.bf16.gmra.mrb[12].mxu0 %v3655_v22  ;;  %v13540_v20 = vpop.permute.xlu1 %4306 }
 0x4f1   : > { %3839 = vmatprep.mubr.bf16.mxu0 %v17184_v0  ;;  %5023 = vmatpush1.bf16.msra.mxu0 %v11940_v28 }
 0x4f2   : > { %5024 = vmatprep.subr.bf16.mxu0 %v17184_v0 }
 0x4f4   : > { %v13542_v21 = vpop.permute.xlu1 %4316 }
 0x4f5   : > { %5025 = vmatpush1.bf16.msra.mxu0 %v11941_v31 }
 0x4f6   : > { %5026 = vmatprep.subr.bf16.mxu0 %v17184_v0 }
 0x4f8   : > { %3840 = vmatmul.mubr.bf16.gmra.mrb[16].mxu0 %v3656_v27  ;;  %v13544_v22 = vpop.permute.xlu1 %4326 }
 0x4f9   : > { %3849 = vmatprep.mubr.bf16.mxu0 %v17184_v0  ;;  %5027 = vmatpush1.bf16.msra.mxu0 %v11942_v33  ;;  %v4052_v33 = vld [vmem:[%s17177_s2] sm:$0x3] }
 0x4fa   : > { %5028 = vmatprep.subr.bf16.mxu0 %v17184_v0 }
 0x4fc   : > { %v13546_v23 = vpop.permute.xlu1 %4336 }
 0x4fd   : > { %5029 = vmatpush1.bf16.msra.mxu0 %v11943_v36 }
 0x4fe   : > { %5030 = vmatprep.subr.bf16.mxu0 %v17184_v0 }
 0x500   : > { %3850 = vmatmul.mubr.bf16.gmra.mrb[20].mxu0 %v3657_v32  ;;  %v13548_v24 = vpop.permute.xlu1 %4346  ;;  %v4056_v32 = vsub.s32 0, %v4055_v30 }
 0x501   : > { %3859 = vmatprep.mubr.bf16.mxu0 %v17184_v0  ;;  %5031 = vmatpush1.bf16.msra.mxu0 %v11944_v38 }
 0x502   : > { %5032 = vmatprep.subr.bf16.mxu0 %v17184_v0  ;;  %v13565_v36 = vrot.slane %v4052_v33, %v4056_v32 }
 0x504   : > { %v13550_v25 = vpop.permute.xlu1 %4356 }
 0x505   : > { %5033 = vmatpush1.bf16.msra.mxu0 %v11945_v51 }
 0x506   : > { %5034 = vmatprep.subr.bf16.mxu0 %v17184_v0 }
 0x508   : > { %3860 = vmatmul.mubr.bf16.gmra.mrb[24].mxu0 %v3658_v37  ;;  %v13552_v26 = vpop.permute.xlu1 %4366  ;;  %v13567_v37 = vrot.slane %v4052_v33, %v4060_v34 }
 0x509   : > { %3869 = vmatprep.mubr.bf16.mxu0 %v17184_v0  ;;  %5035 = vmatpush1.bf16.msra.mxu0 %v11946_v52  ;;  %v4728_v52 = vpack.c.bf16 %v12217_v55, %v4724_v43 }
 0x50a   : > { %5036 = vmatprep.subr.bf16.mxu0 %v17184_v0 }
 0x50c   : > { %v13554_v27 = vpop.permute.xlu1 %4376 }
 0x50d   : > { %5037 = vmatpush1.bf16.msra.mxu0 %v11947_v57 }
 0x50e   : > { %5038 = vmatprep.subr.bf16.mxu0 %v17184_v0 }
 0x510   : > { %3870 = vmatmul.mubr.bf16.gmra.mrb[28].mxu0 %v3659_v42  ;;  %v13556_v28 = vpop.permute.xlu1 %4386  ;;  %v4725_v42 = vld [vmem:[#allocation2 + $0x8] sm:$0xc0] }
 0x511   : > { %3879 = vmatprep.mubr.bf16.mxu0 %v17184_v0  ;;  %5039 = vmatpush1.bf16.msra.mxu0 %v11948_v58  ;;  %v4729_v51 = vpack.c.bf16 %v12217_v55, %v4725_v42 }
 0x512   : > { %5040 = vmatprep.subr.bf16.mxu0 %v17184_v0 }
 0x513   : > { %v4807_v1 = vrot.slane %v4729_v51, 3 }
 0x514   : > { %v13558_v31 = vpop.permute.xlu1 %4396 }
 0x515   : > { %5041 = vmatpush1.bf16.msra.mxu0 %v11949_v62 }
 0x518   : > { %3880 = vmatmul.mubr.bf16.gmra.mrb[32].mxu0 %v3660_v41  ;;  %v13563_v35 = vpop.permute.xlu1 %4406 }
 0x519   : > { %3889 = vmatprep.mubr.bf16.mxu0 %v17184_v0 }
 0x51c   : > { %v4247_v45 = vpop.permute.xlu1 %4246 }
 0x520   : > { %3890 = vmatmul.mubr.bf16.gmra.mrb[36].mxu0 %v3661_v47 }
 0x521   : > { %3899 = vmatprep.mubr.bf16.mxu0 %v17184_v0 }
 0x528   : > { %3900 = vmatmul.mubr.bf16.gmra.mrb[40].mxu0 %v3662_v50 }
 0x529   : > { %3909 = vmatprep.mubr.bf16.mxu0 %v17184_v0 }
 0x530   : > { %3910 = vmatmul.mubr.bf16.gmra.mrb[44].mxu0 %v3663_v56  ;;  %v4252_v56 = vpop.permute.xlu0 %4251 }
 0x531   : > { %3919 = vmatprep.mubr.bf16.mxu0 %v17184_v0 }
 0x534   : > { %v4257_v29 = vpop.permute.xlu0 %4256 }
 0x538   : > { %3920 = vmatmul.mubr.bf16.gmra.mrb[48].mxu0 %v3664_v61 }
 0x539   : > { %3929 = vmatprep.mubr.bf16.mxu0 %v17184_v0 }
 0x540   : > { %3930 = vmatmul.mubr.bf16.gmra.mrb[52].mxu0 %v3665_v2  ;;  %v4804_v2 = vrot.slane %v4728_v52, 3 }
 0x541   : > { %3939 = vmatprep.mubr.bf16.mxu0 %v17184_v0 }
 0x548   : > { %3940 = vmatmul.mubr.bf16.gmra.mrb[56].mxu0 %v3666_v5 }
 0x549   : > { %3949 = vmatprep.mubr.bf16.mxu0 %v17184_v0 }
 0x550   : > { %3950 = vmatmul.mubr.bf16.gmra.mrb[60].mxu0 %v3667_v8 }
 0x551   : > { %3959 = vmatprep.mubr.bf16.mxu0 %v17184_v0 }
 0x558   : > { %3960 = vmatmul.mubr.bf16.gmra.mrb[64].mxu0 %v3668_v14 }
 0x559   : > { %3969 = vmatprep.mubr.bf16.mxu0 %v17184_v0 }
 0x560   : > { %3970 = vmatmul.mubr.bf16.gmra.mrb[68].mxu0 %v3669_v17 }
 0x5ab   : > { %v3801_v38 = vpop.f32.mrb[0].mxu0 }
 0x5ac   : > { %v4064_v39 = vadd.f32 %v13565_v36, %v3801_v38  ;;  %v3803_v40 = vpop.f32.mrb[1].mxu0 }
 0x5ad   : > { %v4065_v44 = vadd.f32 %v13567_v37, %v3803_v40  ;;  %v3805_v41 = vpop.f32.mrb[2].mxu0 }
 0x5ae   : > { %v4136_v46 = vmax.f32 %v4064_v39, 0.0  ;;  %v4066_v47 = vadd.f32 %v13565_v36, %v3805_v41  ;;  %v3807_v48 = vpop.f32.mrb[3].mxu0 }
 0x5af   : > { %v4137_v49 = vmax.f32 %v4065_v44, 0.0  ;;  %v4067_v50 = vadd.f32 %v13567_v37, %v3807_v48 }
 0x5b0   : > { %v4138_v53 = vmax.f32 %v4066_v47, 0.0  ;;  %v4424_v54 = vmul.f32 %v4247_v45, %v4136_v46 }
 0x5b1   : > { %v4139_v57 = vmax.f32 %v4067_v50, 0.0  ;;  %v4425_v58 = vmul.f32 %v4247_v45, %v4137_v49 }
 0x5b2   : > { %v4426_v59 = vmul.f32 %v4252_v56, %v4138_v53  ;;  %4508 = vst [vmem:[#allocation2 + $0x30] sm:$0xff] %v4424_v54  ;;  %v13576_v60 = vpack.c.bf16 %v4424_v54, %v12217_v55 }
 0x5b3   : > { %v4427_v61 = vmul.f32 %v4252_v56, %v4139_v57  ;;  %4509 = vst [vmem:[#allocation2 + $0x38] sm:$0xff] %v4425_v58  ;;  %v3811_v62 = vpop.f32.mrb[4].mxu0  ;;  %v13579_v63 = vpack.c.bf16 %v4425_v58, %v12217_v55 }
 0x5b4   : > { %4510 = vst [vmem:[#allocation2 + $0x40] sm:$0xff] %v4426_v59  ;;  %v4068_v3 = vadd.f32 %v13565_v36, %v3811_v62  ;;  %v3813_v4 = vpop.f32.mrb[5].mxu0  ;;  %v4805_v5 = vrot.slane %v13576_v60, 3  ;;  %v5197_v15 = vshrl.u32 %v13576_v60, 16  ;;  %v5200_v17 = vshll.u32 %v13576_v60, 16 }
 0x5b5   : > { %4511 = vst [vmem:[#allocation2 + $0x48] sm:$0xff] %v4427_v61  ;;  %v4069_v6 = vadd.f32 %v13567_v37, %v3813_v4  ;;  %v3815_v7 = vpop.f32.mrb[6].mxu0  ;;  %v4808_v8 = vrot.slane %v13579_v63, 3  ;;  %v5214_v10 = vshrl.u32 %v13579_v63, 16  ;;  %v5217_v55 = vshll.u32 %v13579_v63, 16 }
 0x5b6   : > { %v4140_v12 = vmax.f32 %v4068_v3, 0.0  ;;  %v4070_v14 = vadd.f32 %v13565_v36, %v3815_v7  ;;  %v3817_v11 = vpop.f32.mrb[7].mxu0  ;;  %v4806_v34 = vsel %vm4803_vm0, %v4804_v2, %v4805_v5  ;;  %v5199_v51 = vrot.slane %v5197_v15, 2 }
 0x5b7   : > { %v4141_v30 = vmax.f32 %v4069_v6, 0.0  ;;  %v4071_v32 = vadd.f32 %v13567_v37, %v3817_v11  ;;  %v4809_v33 = vsel %vm4803_vm0, %v4807_v1, %v4808_v8  ;;  %v5216_v40 = vrot.slane %v5214_v10, 2 }
 0x5b8   : > { %v4428_v38 = vmul.f32 %v4257_v29, %v4140_v12  ;;  %v4142_v39 = vmax.f32 %v4070_v14, 0.0  ;;  %5042 = vmatprep.mubr.bf16.mxu0 %v4809_v33  ;;  %v5219_v42 = vrot.slane %v5217_v55, 3  ;;  %v5899_v41 = vrot.slane %v5214_v10, 3 }
 0x5b9   : > { %v4429_v43 = vmul.f32 %v4257_v29, %v4141_v30  ;;  %v4143_v44 = vmax.f32 %v4071_v32, 0.0  ;;  %5043 = vmatmul.mubr.bf16.vlgmr.msra.gmra.mrb[72].mxu0 %v4806_v34  ;;  %v5900_v45 = vrot.slane %v5217_v55, 4 }
 0x5ba   : > { %4512 = vst [vmem:[#allocation2 + $0x50] sm:$0xff] %v4428_v38  ;;  %v4430_v46 = vmul.f32 %v13524_v9, %v4142_v39  ;;  %v13594_v47 = vpack.c.bf16 %v4428_v38, %v4426_v59  ;;  %v13605_v57 = vor.u32 %v5219_v42, %v5216_v40  ;;  %v5887_v42 = vrot.slane %v5197_v15, 3 }
 0x5bb   : > { %4513 = vst [vmem:[#allocation2 + $0x58] sm:$0xff] %v4429_v43  ;;  %v4431_v48 = vmul.f32 %v13524_v9, %v4143_v44  ;;  %v3821_v49 = vpop.f32.mrb[8].mxu0  ;;  %v13597_v50 = vpack.c.bf16 %v4429_v43, %v4427_v61  ;;  %v13601_v52 = vor.u32 %v5900_v45, %v5899_v41  ;;  %v5202_v9 = vrot.slane %v5200_v17, 3 }
 0x5bc   : > { %4514 = vst [vmem:[#allocation2 + $0x60] sm:$0xff] %v4430_v46  ;;  %v4072_v53 = vadd.f32 %v13565_v36, %v3821_v49  ;;  %v3823_v54 = vpop.f32.mrb[9].mxu0  ;;  %v4810_v56 = vrot.slane %v13594_v47, 3  ;;  %v5223_v6 = vshrl.u32 %v13594_v47, 16  ;;  %v5226_v34 = vshll.u32 %v13594_v47, 16 }
 0x5bd   : > { %17452 = vst [vmem:[#allocation6_spill] sm:$0xff] %v13601_v52  ;;  %4515 = vst [vmem:[#allocation2 + $0x68] sm:$0xff] %v4431_v48  ;;  %v4073_v58 = vadd.f32 %v13567_v37, %v3823_v54  ;;  %v3825_v59 = vpop.f32.mrb[10].mxu0  ;;  %v4812_v61 = vrot.slane %v13597_v50, 3  ;;  %v5232_v62 = vshrl.u32 %v13597_v50, 16  ;;  %v5235_v63 = vshll.u32 %v13597_v50, 16 }
 0x5be   : > { %v4144_v1 = vmax.f32 %v4072_v53, 0.0  ;;  %v4074_v2 = vadd.f32 %v13565_v36, %v3825_v59  ;;  %v3827_v3 = vpop.f32.mrb[11].mxu0  ;;  %v4811_v4 = vsel %vm4803_vm0, %v4805_v5, %v4810_v56  ;;  %v13621_v29 = vor.u32 %v5202_v9, %v5199_v51  ;;  %v4272_v5 = vpop.permute.xlu0 %4271  ;;  %v11952_v50 = vld [vmem:[%s17178_s3 + $0x10] sm:$0xff]  }
 0x5bf   : > { %v4145_v7 = vmax.f32 %v4073_v58, 0.0  ;;  %v4075_v10 = vadd.f32 %v13567_v37, %v3827_v3  ;;  %v4813_v55 = vsel %vm4803_vm0, %v4808_v8, %v4812_v61  ;;  %v5234_v12 = vrot.slane %v5232_v62, 2  ;;  %v11950_v3 = vld [vmem:[%s17178_s3] sm:$0xff]  }
 0x5c0   : > { %v4432_v14 = vmul.f32 %v13529_v13, %v4144_v1  ;;  %v4146_v11 = vmax.f32 %v4074_v2, 0.0  ;;  %5050 = vmatprep.mubr.bf16.mxu0 %v4813_v55  ;;  %v5237_v30 = vrot.slane %v5235_v63, 3  ;;  %v5225_v8 = vrot.slane %v5223_v6, 2 }
 0x5c1   : > { %v4433_v32 = vmul.f32 %v13529_v13, %v4145_v7  ;;  %v4147_v33 = vmax.f32 %v4075_v10, 0.0  ;;  %5051 = vmatmul.mubr.bf16.gmra.mrb[76].mxu0 %v4811_v4  ;;  %v5228_v13 = vrot.slane %v5226_v34, 3  ;;  %v5888_v45 = vrot.slane %v5200_v17, 4 }
 0x5c2   : > { %4516 = vst [vmem:[#allocation2 + $0x70] sm:$0xff] %v4432_v14  ;;  %v4434_v38 = vmul.f32 %v4272_v5, %v4146_v11  ;;  %v13629_v39 = vpack.c.bf16 %v4432_v14, %v4430_v46  ;;  %v5238_v40 = vor.u32 %v5237_v30, %v5234_v12 }
 0x5c3   : > { %4517 = vst [vmem:[#allocation2 + $0x78] sm:$0xff] %v4433_v32  ;;  %v4435_v43 = vmul.f32 %v4272_v5, %v4147_v33  ;;  %v3831_v44 = vpop.f32.mrb[12].mxu0  ;;  %v13633_v41 = vpack.c.bf16 %v4433_v32, %v4431_v48  ;;  %v5229_v60 = vor.u32 %v5228_v13, %v5225_v8  ;;  %v4282_v5 = vpop.permute.xlu0 %4281 }
 0x5c4   : > { %4518 = vst [vmem:[#allocation2 + $0x80] sm:$0xff] %v4434_v38  ;;  %v4076_v49 = vadd.f32 %v13565_v36, %v3831_v44  ;;  %v3833_v46 = vpop.f32.mrb[13].mxu0  ;;  %v4814_v51 = vrot.slane %v13629_v39, 3  ;;  %v13643_v15 = vsel %vm5187_vm1, %v13605_v57, %v5238_v40  ;;  %v5241_v53 = vshrl.u32 %v13629_v39, 16 }
 0x5c5   : > { %4519 = vst [vmem:[#allocation2 + $0x88] sm:$0xff] %v4435_v43  ;;  %v4077_v48 = vadd.f32 %v13567_v37, %v3833_v46  ;;  %v3835_v54 = vpop.f32.mrb[14].mxu0  ;;  %v4816_v9 = vrot.slane %v13633_v41, 3  ;;  %v5250_v17 = vshrl.u32 %v13633_v41, 16  ;;  %v5253_v4 = vshll.u32 %v13633_v41, 16 }
 0x5c6   : > { %v4148_v58 = vmax.f32 %v4076_v49, 0.0  ;;  %v4078_v59 = vadd.f32 %v13565_v36, %v3835_v54  ;;  %v3837_v1 = vpop.f32.mrb[15].mxu0  ;;  %v4815_v2 = vsel %vm4803_vm0, %v4810_v56, %v4814_v51  ;;  %v13659_v12 = vsel %vm5187_vm1, %v13621_v29, %v5229_v60  ;;  %v11951_v49 = vld [vmem:[%s17178_s3 + $0x8] sm:$0xff]  }
 0x5c7   : > { %v4149_v7 = vmax.f32 %v4077_v48, 0.0  ;;  %v4079_v10 = vadd.f32 %v13567_v37, %v3837_v1  ;;  %v4817_v55 = vsel %vm4803_vm0, %v4812_v61, %v4816_v9  ;;  %v5252_v56 = vrot.slane %v5250_v17, 2 }
 0x5c8   : > { %v4436_v14 = vmul.f32 %v13534_v16, %v4148_v58  ;;  %v4150_v11 = vmax.f32 %v4078_v59, 0.0  ;;  %5058 = vmatprep.mubr.bf16.mxu1 %v4817_v55  ;;  %v5255_v30 = vrot.slane %v5253_v4, 3  ;;  %v5243_v61 = vrot.slane %v5241_v53, 2 }
 0x5c9   : > { %v4437_v32 = vmul.f32 %v13534_v16, %v4149_v7  ;;  %v4151_v33 = vmax.f32 %v4079_v10, 0.0  ;;  %5059 = vmatmul.mubr.bf16.vlgmr.msra.gmra.mrb[0].mxu1 %v4815_v2  ;;  %v5244_v8 = vshll.u32 %v13629_v39, 16  ;;  %v13675_v48 = vor.u32 %v5888_v45, %v5887_v42 }
 0x5ca   : > { %4520 = vst [vmem:[#allocation2 + $0x90] sm:$0xff] %v4436_v14  ;;  %v4438_v44 = vmul.f32 %v4282_v5, %v4150_v11  ;;  %5661 = vmatpush1.bf16.msra.mxu1 %v11950_v3  ;;  %v13670_v13 = vpack.c.bf16 %v4436_v14, %v4434_v38  ;;  %v5256_v46 = vor.u32 %v5255_v30, %v5252_v56  ;;  %v5907_v38 = vrot.slane %v5232_v62, 3 }
 0x5cb   : > { %17453 = vst [vmem:[#allocation7_spill] sm:$0xff] %v13675_v48  ;;  %4521 = vst [vmem:[#allocation2 + $0x98] sm:$0xff] %v4437_v32  ;;  %v4439_v16 = vmul.f32 %v4282_v5, %v4151_v33  ;;  %v3841_v54 = vpop.f32.mrb[16].mxu0  ;;  %v13677_v58 = vpack.c.bf16 %v4437_v32, %v4435_v43  ;;  %5662 = vmatprep.subr.bf16.mxu1 %v17184_v0  ;;  %v5246_v59 = vrot.slane %v5244_v8, 3  ;;  %v5908_v43 = vrot.slane %v5235_v63, 4 }
 0x5cc   : > { %4522 = vst [vmem:[#allocation2 + $0xa0] sm:$0xff] %v4438_v44  ;;  %v4080_v1 = vadd.f32 %v13565_v36, %v3841_v54  ;;  %v3843_v2 = vpop.f32.mrb[17].mxu0  ;;  %v4818_v42 = vrot.slane %v13670_v13, 3  ;;  %v13687_v45 = vsel %vm5187_vm1, %v5238_v40, %v5256_v46 }
 0x5cd   : > { %4523 = vst [vmem:[#allocation2 + $0xa8] sm:$0xff] %v4439_v16  ;;  %v4081_v3 = vadd.f32 %v13567_v37, %v3843_v2  ;;  %v3845_v7 = vpop.f32.mrb[18].mxu0  ;;  %v4820_v10 = vrot.slane %v13677_v58, 3  ;;  %v13693_v55 = vor.u32 %v5246_v59, %v5243_v61  ;;  %v17183_v62 = vshrl.u32 %v13677_v58, 16  ;;  %v4292_v59 = vpop.permute.xlu0 %4291 }
 0x5ce   : > { %v4152_v14 = vmax.f32 %v4080_v1, 0.0  ;;  %v4082_v11 = vadd.f32 %v13565_v36, %v3845_v7  ;;  %v3847_v56 = vpop.f32.mrb[19].mxu0  ;;  %v4819_v40 = vsel %vm4803_vm0, %v4814_v51, %v4818_v42  ;;  %5663 = vmatpush1.bf16.msra.mxu1 %v11951_v49  ;;  %v17182_v63 = vshll.u32 %v13677_v58, 16 }
 0x5cf   : > { %v4153_v30 = vmax.f32 %v4081_v3, 0.0  ;;  %v4083_v5 = vadd.f32 %v13567_v37, %v3847_v56  ;;  %v4821_v32 = vsel %vm4803_vm0, %v4816_v9, %v4820_v10  ;;  %5664 = vmatprep.subr.bf16.mxu1 %v17184_v0  ;;  %v13707_v33 = vsel %vm5187_vm1, %v5229_v60, %v13693_v55  ;;  %v11953_v60 = vld [vmem:[%s17178_s3 + $0x18] sm:$0xff]  }
 0x5d0   : > { %v4440_v51 = vmul.f32 %v13536_v18, %v4152_v14  ;;  %v4154_v61 = vmax.f32 %v4082_v11, 0.0  ;;  %5066 = vmatprep.mubr.bf16.mxu1 %v4821_v32  ;;  %v5270_v49 = vrot.slane %v17183_v62, 2  ;;  %v5273_v54 = vrot.slane %v17182_v63, 3 }
 0x5d1   : > { %v4441_v1 = vmul.f32 %v13536_v18, %v4153_v30  ;;  %v4155_v9 = vmax.f32 %v4083_v5, 0.0  ;;  %5067 = vmatmul.mubr.bf16.gmra.mrb[4].mxu1 %v4819_v40  ;;  %v13725_v18 = vor.u32 %v5908_v43, %v5907_v38 }
 0x5d2   : > { %4524 = vst [vmem:[#allocation2 + $0xb0] sm:$0xff] %v4440_v51  ;;  %v4442_v2 = vmul.f32 %v4292_v59, %v4154_v61  ;;  %v13715_v3 = vpack.c.bf16 %v4440_v51, %v4438_v44  ;;  %5665 = vmatpush1.bf16.msra.mxu1 %v11952_v50  ;;  %v13720_v7 = vor.u32 %v5273_v54, %v5270_v49  ;;  %v11954_v49 = vld [vmem:[%s17178_s3 + $0x20] sm:$0xff]  }
 0x5d3   : > { %4525 = vst [vmem:[#allocation2 + $0xb8] sm:$0xff] %v4441_v1  ;;  %v4443_v14 = vmul.f32 %v4292_v59, %v4155_v9  ;;  %v3851_v11 = vpop.f32.mrb[20].mxu0  ;;  %v13722_v56 = vpack.c.bf16 %v4441_v1, %v4439_v16  ;;  %5666 = vmatprep.subr.bf16.mxu1 %v17184_v0 }
 0x5d4   : > { %4526 = vst [vmem:[#allocation2 + $0xc0] sm:$0xff] %v4442_v2  ;;  %v4084_v44 = vadd.f32 %v13565_v36, %v3851_v11  ;;  %v3853_v40 = vpop.f32.mrb[21].mxu0  ;;  %v4822_v50 = vrot.slane %v13715_v3, 3  ;;  %v13731_v30 = vsel %vm5187_vm1, %v5256_v46, %v13720_v7  ;;  %v4302_v11 = vpop.permute.xlu0 %4301 }
 0x5d5   : > { %4527 = vst [vmem:[#allocation2 + $0xc8] sm:$0xff] %v4443_v14  ;;  %v4085_v5 = vadd.f32 %v13567_v37, %v3853_v40  ;;  %v3855_v32 = vpop.f32.mrb[22].mxu0  ;;  %v4824_v16 = vrot.slane %v13722_v56, 3 }
 0x5d6   : > { %v4156_v51 = vmax.f32 %v4084_v44, 0.0  ;;  %v4086_v38 = vadd.f32 %v13565_v36, %v3855_v32  ;;  %v3857_v43 = vpop.f32.mrb[23].mxu0  ;;  %v4823_v61 = vsel %vm4803_vm0, %v4818_v42, %v4822_v50  ;;  %5667 = vmatpush1.bf16.msra.mxu1 %v11953_v60 }
 0x5d7   : > { %v4157_v54 = vmax.f32 %v4085_v5, 0.0  ;;  %v4087_v46 = vadd.f32 %v13567_v37, %v3857_v43  ;;  %v4825_v59 = vsel %vm4803_vm0, %v4820_v10, %v4824_v16  ;;  %5668 = vmatprep.subr.bf16.mxu1 %v17184_v0  ;;  %v11955_v10 = vld [vmem:[%s17178_s3 + $0x28] sm:$0xff]   ;;  %v13753_v5 = vsel %vm5878_vm2, %v13601_v52, %v13725_v18 }
 0x5d8   : > { %v4444_v1 = vmul.f32 %v13538_v19, %v4156_v51  ;;  %v4158_v9 = vmax.f32 %v4086_v38, 0.0  ;;  %5074 = vmatprep.mubr.bf16.mxu1 %v4825_v59  ;;  %17454 = vst [vmem:[#allocation8_spill] sm:$0xff] %v13753_v5 }
 0x5d9   : > { %v4445_v44 = vmul.f32 %v13538_v19, %v4157_v54  ;;  %v4159_v42 = vmax.f32 %v4087_v46, 0.0  ;;  %5075 = vmatmul.mubr.bf16.gmra.mrb[8].mxu1 %v4823_v61 }
 0x5da   : > { %4528 = vst [vmem:[#allocation2 + $0xd0] sm:$0xff] %v4444_v1  ;;  %v4446_v60 = vmul.f32 %v4302_v11, %v4158_v9  ;;  %v13745_v40 = vpack.c.bf16 %v4444_v1, %v4442_v2  ;;  %5669 = vmatpush1.bf16.msra.mxu1 %v11954_v49  ;;  %v11956_v9 = vld [vmem:[%s17178_s3 + $0x30] sm:$0xff]  }
 0x5db   : > { %4529 = vst [vmem:[#allocation2 + $0xd8] sm:$0xff] %v4445_v44  ;;  %v4447_v32 = vmul.f32 %v4302_v11, %v4159_v42  ;;  %v3861_v19 = vpop.f32.mrb[24].mxu0  ;;  %v13755_v51 = vpack.c.bf16 %v4445_v44, %v4443_v14  ;;  %5670 = vmatprep.subr.bf16.mxu1 %v17184_v0 }
 0x5dc   : > { %4530 = vst [vmem:[#allocation2 + $0xe0] sm:$0xff] %v4446_v60  ;;  %v4088_v2 = vadd.f32 %v13565_v36, %v3861_v19  ;;  %v3863_v38 = vpop.f32.mrb[25].mxu0  ;;  %v4826_v43 = vrot.slane %v13745_v40, 3 }
 0x5dd   : > { %4531 = vst [vmem:[#allocation2 + $0xe8] sm:$0xff] %v4447_v32  ;;  %v4089_v61 = vadd.f32 %v13567_v37, %v3863_v38  ;;  %v3865_v49 = vpop.f32.mrb[26].mxu0  ;;  %v4828_v54 = vrot.slane %v13755_v51, 3  ;;  %v4312_v38 = vpop.permute.xlu0 %4311 }
 0x5de   : > { %v4160_v46 = vmax.f32 %v4088_v2, 0.0  ;;  %v4090_v59 = vadd.f32 %v13565_v36, %v3865_v49  ;;  %v3867_v1 = vpop.f32.mrb[27].mxu0  ;;  %v4827_v14 = vsel %vm4803_vm0, %v4822_v50, %v4826_v43  ;;  %5671 = vmatpush1.bf16.msra.mxu1 %v11955_v10 }
 0x5df   : > { %v4161_v11 = vmax.f32 %v4089_v61, 0.0  ;;  %v4091_v44 = vadd.f32 %v13567_v37, %v3867_v1  ;;  %v4829_v42 = vsel %vm4803_vm0, %v4824_v16, %v4828_v54  ;;  %5672 = vmatprep.subr.bf16.mxu1 %v17184_v0  ;;  %v11957_v16 = vld [vmem:[%s17178_s3 + $0x38] sm:$0xff]  }
 0x5e0   : > { %v4448_v19 = vmul.f32 %v13540_v20, %v4160_v46  ;;  %v4162_v2 = vmax.f32 %v4090_v59, 0.0  ;;  %5082 = vmatprep.mubr.bf16.mxu1 %v4829_v42 }
 0x5e1   : > { %v4449_v49 = vmul.f32 %v13540_v20, %v4161_v11  ;;  %v4163_v50 = vmax.f32 %v4091_v44, 0.0  ;;  %5083 = vmatmul.mubr.bf16.gmra.mrb[12].mxu1 %v4827_v14  ;;  %v5903_v44 = vrot.slane %v5223_v6, 3 }
 0x5e2   : > { %4532 = vst [vmem:[#allocation2 + $0xf0] sm:$0xff] %v4448_v19  ;;  %v4450_v10 = vmul.f32 %v4312_v38, %v4162_v2  ;;  %v13772_v63 = vpack.c.bf16 %v4448_v19, %v4446_v60  ;;  %5673 = vmatpush1.bf16.msra.mxu1 %v11956_v9 }
 0x5e3   : > { %4533 = vst [vmem:[#allocation2 + $0xf8] sm:$0xff] %v4449_v49  ;;  %v4451_v61 = vmul.f32 %v4312_v38, %v4163_v50  ;;  %v3871_v1 = vpop.f32.mrb[28].mxu0  ;;  %v13777_v46 = vpack.c.bf16 %v4449_v49, %v4447_v32  ;;  %5674 = vmatprep.subr.bf16.mxu1 %v17184_v0  ;;  %v11958_v38 = vld [vmem:[%s17178_s3 + $0x40] sm:$0xff]   ;;  %v5904_v49 = vrot.slane %v5226_v34, 4  ;;  %v11959_v34 = vld [vmem:[%s17178_s3 + $0x48] sm:$0xff]  }
 0x5e4   : > { %4534 = vst [vmem:[#allocation2 + $0x100] sm:$0xff] %v4450_v10  ;;  %v4092_v20 = vadd.f32 %v13565_v36, %v3871_v1  ;;  %v3873_v59 = vpop.f32.mrb[29].mxu0  ;;  %v4830_v14 = vrot.slane %v13772_v63, 3 }
 0x5e5   : > { %4535 = vst [vmem:[#allocation2 + $0x108] sm:$0xff] %v4451_v61  ;;  %v4093_v60 = vadd.f32 %v13567_v37, %v3873_v59  ;;  %v3875_v9 = vpop.f32.mrb[30].mxu0  ;;  %v4832_v11 = vrot.slane %v13777_v46, 3 }
 0x5e6   : > { %v4164_v42 = vmax.f32 %v4092_v20, 0.0  ;;  %v4094_v32 = vadd.f32 %v13565_v36, %v3875_v9  ;;  %v3877_v19 = vpop.f32.mrb[31].mxu0  ;;  %v4831_v2 = vsel %vm4803_vm0, %v4826_v43, %v4830_v14  ;;  %5675 = vmatpush1.bf16.msra.mxu1 %v11957_v16  ;;  %v4322_v43 = vpop.permute.xlu0 %4321 }
 0x5e7   : > { %v4165_v50 = vmax.f32 %v4093_v60, 0.0  ;;  %v4095_v1 = vadd.f32 %v13567_v37, %v3877_v19  ;;  %v4833_v59 = vsel %vm4803_vm0, %v4828_v54, %v4832_v11  ;;  %5676 = vmatprep.subr.bf16.mxu1 %v17184_v0  ;;  %v13803_v54 = vor.u32 %v5904_v49, %v5903_v44 }
 0x5e8   : > { %v4452_v6 = vmul.f32 %v13542_v21, %v4164_v42  ;;  %v4166_v20 = vmax.f32 %v4094_v32, 0.0  ;;  %5090 = vmatprep.mubr.bf16.mxu1 %v4833_v59  ;;  %v11960_v59 = vld [vmem:[%s17178_s3 + $0x50] sm:$0xff]  }
 0x5e9   : > { %v4453_v16 = vmul.f32 %v13542_v21, %v4165_v50  ;;  %v4167_v9 = vmax.f32 %v4095_v1, 0.0  ;;  %5091 = vmatmul.mubr.bf16.gmra.mrb[16].mxu1 %v4831_v2  ;;  %v13834_v41 = vsel %vm5878_vm2, %v13675_v48, %v13803_v54 }
 0x5ea   : > { %4536 = vst [vmem:[#allocation2 + $0x110] sm:$0xff] %v4452_v6  ;;  %v4454_v62 = vmul.f32 %v4322_v43, %v4166_v20  ;;  %v13798_v47 = vpack.c.bf16 %v4452_v6, %v4450_v10  ;;  %5677 = vmatpush1.bf16.msra.mxu1 %v11958_v38  ;;  %v5915_v6 = vrot.slane %v5250_v17, 3  ;;  %17456 = vst [vmem:[#allocation10_spill] sm:$0xff] %v13834_v41 }
 0x5eb   : > { %4537 = vst [vmem:[#allocation2 + $0x118] sm:$0xff] %v4453_v16  ;;  %v4455_v60 = vmul.f32 %v4322_v43, %v4167_v9  ;;  %v3881_v42 = vpop.f32.mrb[32].mxu0  ;;  %v13805_v32 = vpack.c.bf16 %v4453_v16, %v4451_v61  ;;  %5678 = vmatprep.subr.bf16.mxu1 %v17184_v0  ;;  %v5916_v9 = vrot.slane %v5253_v4, 4 }
 0x5ec   : > { %4538 = vst [vmem:[#allocation2 + $0x120] sm:$0xff] %v4454_v62  ;;  %v4096_v21 = vadd.f32 %v13565_v36, %v3881_v42  ;;  %v3883_v19 = vpop.f32.mrb[33].mxu0  ;;  %v4834_v10 = vrot.slane %v13798_v47, 3  ;;  %v4332_v42 = vpop.permute.xlu0 %4331 }
 0x5ed   : > { %4539 = vst [vmem:[#allocation2 + $0x128] sm:$0xff] %v4455_v60  ;;  %v4097_v2 = vadd.f32 %v13567_v37, %v3883_v19  ;;  %v3885_v38 = vpop.f32.mrb[34].mxu0  ;;  %v4836_v44 = vrot.slane %v13805_v32, 3 }
 0x5ee   : > { %v4168_v49 = vmax.f32 %v4096_v21, 0.0  ;;  %v4098_v50 = vadd.f32 %v13565_v36, %v3885_v38  ;;  %v3887_v1 = vpop.f32.mrb[35].mxu0  ;;  %v4835_v61 = vsel %vm4803_vm0, %v4830_v14, %v4834_v10  ;;  %5679 = vmatpush1.bf16.msra.mxu1 %v11959_v34 }
 0x5ef   : > { %v4169_v20 = vmax.f32 %v4097_v2, 0.0  ;;  %v4099_v43 = vadd.f32 %v13567_v37, %v3887_v1  ;;  %v4837_v16 = vsel %vm4803_vm0, %v4832_v11, %v4836_v44  ;;  %5680 = vmatprep.subr.bf16.mxu1 %v17184_v0  ;;  %v11961_v11 = vld [vmem:[%s17178_s3 + $0x58] sm:$0xff]  }
 0x5f0   : > { %v4456_v14 = vmul.f32 %v13544_v22, %v4168_v49  ;;  %v4170_v34 = vmax.f32 %v4098_v50, 0.0  ;;  %5098 = vmatprep.mubr.bf16.mxu1 %v4837_v16  ;;  %v13839_v49 = vor.u32 %v5916_v9, %v5915_v6  ;;  %v11962_v6 = vld [vmem:[%s17178_s3 + $0x60] sm:$0xff]  }
 0x5f1   : > { %v4457_v21 = vmul.f32 %v13544_v22, %v4169_v20  ;;  %v4171_v19 = vmax.f32 %v4099_v43, 0.0  ;;  %5099 = vmatmul.mubr.bf16.gmra.mrb[20].mxu1 %v4835_v61 }
 0x5f2   : > { %4540 = vst [vmem:[#allocation2 + $0x130] sm:$0xff] %v4456_v14  ;;  %v4458_v17 = vmul.f32 %v4332_v42, %v4170_v34  ;;  %v13826_v2 = vpack.c.bf16 %v4456_v14, %v4454_v62  ;;  %5681 = vmatpush1.bf16.msra.mxu1 %v11960_v59 }
 0x5f3   : > { %4541 = vst [vmem:[#allocation2 + $0x138] sm:$0xff] %v4457_v21  ;;  %v4459_v4 = vmul.f32 %v4332_v42, %v4171_v19  ;;  %v3891_v38 = vpop.f32.mrb[36].mxu0  ;;  %v13836_v22 = vpack.c.bf16 %v4457_v21, %v4455_v60  ;;  %5682 = vmatprep.subr.bf16.mxu1 %v17184_v0 }
 0x5f4   : > { %17455 = vst [vmem:[#allocation9_spill] sm:$0xff] %v13826_v2  ;;  %4542 = vst [vmem:[#allocation2 + $0x140] sm:$0xff] %v4458_v17  ;;  %v4100_v62 = vadd.f32 %v13565_v36, %v3891_v38  ;;  %v3893_v50 = vpop.f32.mrb[37].mxu0  ;;  %v4838_v1 = vrot.slane %v13826_v2, 3  ;;  %v4342_v38 = vpop.permute.xlu0 %4341 }
 0x5f5   : > { %17457 = vst [vmem:[#allocation11_spill] sm:$0xff] %v13836_v22  ;;  %4543 = vst [vmem:[#allocation2 + $0x148] sm:$0xff] %v4459_v4  ;;  %v4101_v61 = vadd.f32 %v13567_v37, %v3893_v50  ;;  %v3895_v59 = vpop.f32.mrb[38].mxu0  ;;  %v4840_v20 = vrot.slane %v13836_v22, 3 }
 0x5f6   : > { %v4172_v43 = vmax.f32 %v4100_v62, 0.0  ;;  %v4102_v60 = vadd.f32 %v13565_v36, %v3895_v59  ;;  %v3897_v16 = vpop.f32.mrb[39].mxu0  ;;  %v4839_v14 = vsel %vm4803_vm0, %v4834_v10, %v4838_v1  ;;  %5683 = vmatpush1.bf16.msra.mxu1 %v11961_v11 }
 0x5f7   : > { %v4173_v9 = vmax.f32 %v4101_v61, 0.0  ;;  %v4103_v34 = vadd.f32 %v13567_v37, %v3897_v16  ;;  %v4841_v42 = vsel %vm4803_vm0, %v4836_v44, %v4840_v20  ;;  %5684 = vmatprep.subr.bf16.mxu1 %v17184_v0  ;;  %v11963_v44 = vld [vmem:[%s17178_s3 + $0x68] sm:$0xff]   ;;  %v13863_v61 = vsel %vm5878_vm2, %v13725_v18, %v13839_v49 }
 0x5f8   : > { %v4460_v21 = vmul.f32 %v13546_v23, %v4172_v43  ;;  %v4174_v19 = vmax.f32 %v4102_v60, 0.0  ;;  %5106 = vmatprep.mubr.bf16.mxu1 %v4841_v42  ;;  %17459 = vst [vmem:[#allocation13_spill] sm:$0xff] %v13863_v61 }
 0x5f9   : > { %v4461_v62 = vmul.f32 %v13546_v23, %v4173_v9  ;;  %v4175_v10 = vmax.f32 %v4103_v34, 0.0  ;;  %5107 = vmatmul.mubr.bf16.gmra.mrb[24].mxu1 %v4839_v14 }
 0x5fa   : > { %4544 = vst [vmem:[#allocation2 + $0x150] sm:$0xff] %v4460_v21  ;;  %v4462_v11 = vmul.f32 %v4342_v38, %v4174_v19  ;;  %v13855_v50 = vpack.c.bf16 %v4460_v21, %v4458_v17  ;;  %5685 = vmatpush1.bf16.msra.mxu1 %v11962_v6  ;;  %v11964_v21 = vld [vmem:[%s17178_s3 + $0x70] sm:$0xff]  }
 0x5fb   : > { %4545 = vst [vmem:[#allocation2 + $0x158] sm:$0xff] %v4461_v62  ;;  %v4463_v59 = vmul.f32 %v4342_v38, %v4175_v10  ;;  %v3901_v43 = vpop.f32.mrb[40].mxu0  ;;  %v13865_v23 = vpack.c.bf16 %v4461_v62, %v4459_v4  ;;  %5686 = vmatprep.subr.bf16.mxu1 %v17184_v0 }
 0x5fc   : > { %17458 = vst [vmem:[#allocation12_spill] sm:$0xff] %v13855_v50  ;;  %4546 = vst [vmem:[#allocation2 + $0x160] sm:$0xff] %v4462_v11  ;;  %v4104_v17 = vadd.f32 %v13565_v36, %v3901_v43  ;;  %v3903_v60 = vpop.f32.mrb[41].mxu0  ;;  %v4842_v16 = vrot.slane %v13855_v50, 3 }
 0x5fd   : > { %17460 = vst [vmem:[#allocation14_spill] sm:$0xff] %v13865_v23  ;;  %4547 = vst [vmem:[#allocation2 + $0x168] sm:$0xff] %v4463_v59  ;;  %v4105_v14 = vadd.f32 %v13567_v37, %v3903_v60  ;;  %v3905_v6 = vpop.f32.mrb[42].mxu0  ;;  %v4844_v18 = vrot.slane %v13865_v23, 3 }
 0x5fe   : > { %v4176_v9 = vmax.f32 %v4104_v17, 0.0  ;;  %v4106_v34 = vadd.f32 %v13565_v36, %v3905_v6  ;;  %v3907_v42 = vpop.f32.mrb[43].mxu0  ;;  %v4843_v4 = vsel %vm4803_vm0, %v4838_v1, %v4842_v16  ;;  %5687 = vmatpush1.bf16.msra.mxu1 %v11963_v44  ;;  %v4352_v17 = vpop.permute.xlu0 %4351 }
 0x5ff   : > { %v4177_v19 = vmax.f32 %v4105_v14, 0.0  ;;  %v4107_v38 = vadd.f32 %v13567_v37, %v3907_v42  ;;  %v4845_v62 = vsel %vm4803_vm0, %v4840_v20, %v4844_v18  ;;  %5688 = vmatprep.subr.bf16.mxu1 %v17184_v0  ;;  %v11965_v20 = vld [vmem:[%s17178_s3 + $0x78] sm:$0xff]  }
 0x600   : > { %v4464_v10 = vmul.f32 %v13548_v24, %v4176_v9  ;;  %v4178_v43 = vmax.f32 %v4106_v34, 0.0  ;;  %5114 = vmatprep.mubr.bf16.mxu1 %v4845_v62 }
 0x601   : > { %v4465_v60 = vmul.f32 %v13548_v24, %v4177_v19  ;;  %v4179_v1 = vmax.f32 %v4107_v38, 0.0  ;;  %5115 = vmatmul.mubr.bf16.gmra.mrb[28].mxu1 %v4843_v4  ;;  %v5911_v38 = vrot.slane %v5241_v53, 3 }
 0x602   : > { %4548 = vst [vmem:[#allocation2 + $0x170] sm:$0xff] %v4464_v10  ;;  %v4466_v44 = vmul.f32 %v4352_v17, %v4178_v43  ;;  %v13882_v6 = vpack.c.bf16 %v4464_v10, %v4462_v11  ;;  %5689 = vmatpush1.bf16.msra.mxu1 %v11964_v21 }
 0x603   : > { %4549 = vst [vmem:[#allocation2 + $0x178] sm:$0xff] %v4465_v60  ;;  %v4467_v14 = vmul.f32 %v4352_v17, %v4179_v1  ;;  %v3911_v42 = vpop.f32.mrb[44].mxu0  ;;  %v13887_v9 = vpack.c.bf16 %v4465_v60, %v4463_v59  ;;  %5690 = vmatprep.subr.bf16.mxu1 %v17184_v0  ;;  %v5912_v17 = vrot.slane %v5244_v8, 4 }
 0x604   : > { %17461 = vst [vmem:[#allocation15_spill] sm:$0xff] %v13882_v6  ;;  %4550 = vst [vmem:[#allocation2 + $0x180] sm:$0xff] %v4466_v44  ;;  %v4108_v24 = vadd.f32 %v13565_v36, %v3911_v42  ;;  %v3913_v34 = vpop.f32.mrb[45].mxu0  ;;  %v4846_v4 = vrot.slane %v13882_v6, 3 }
 0x605   : > { %17462 = vst [vmem:[#allocation16_spill] sm:$0xff] %v13887_v9  ;;  %4551 = vst [vmem:[#allocation2 + $0x188] sm:$0xff] %v4467_v14  ;;  %v4109_v11 = vadd.f32 %v13567_v37, %v3913_v34  ;;  %v3915_v21 = vpop.f32.mrb[46].mxu0  ;;  %v4848_v19 = vrot.slane %v13887_v9, 3  ;;  %v13907_v8 = vor.u32 %v5912_v17, %v5911_v38 }
 0x606   : > { %v4180_v62 = vmax.f32 %v4108_v24, 0.0  ;;  %v4110_v59 = vadd.f32 %v13565_v36, %v3915_v21  ;;  %v3917_v10 = vpop.f32.mrb[47].mxu0  ;;  %v4847_v43 = vsel %vm4803_vm0, %v4842_v16, %v4846_v4  ;;  %5691 = vmatpush1.bf16.msra.mxu1 %v11965_v20  ;;  %v4362_v24 = vpop.permute.xlu0 %4361 }
 0x607   : > { %v4181_v60 = vmax.f32 %v4109_v11, 0.0  ;;  %v4111_v1 = vadd.f32 %v13567_v37, %v3917_v10  ;;  %v4849_v42 = vsel %vm4803_vm0, %v4844_v18, %v4848_v19  ;;  %6181 = vmatprep.subr.bf16.mxu1 %v17184_v0  ;;  %17463 = vst [vmem:[#allocation17_spill] sm:$0xff] %v13907_v8 }
 0x608   : > { %v4468_v34 = vmul.f32 %v13550_v25, %v4180_v62  ;;  %v4182_v53 = vmax.f32 %v4110_v59, 0.0  ;;  %5122 = vmatprep.mubr.bf16.mxu1 %v4849_v42 }
 0x609   : > { %v4469_v21 = vmul.f32 %v13550_v25, %v4181_v60  ;;  %v4183_v61 = vmax.f32 %v4111_v1, 0.0  ;;  %5123 = vmatmul.mubr.bf16.gmra.mrb[32].mxu1 %v4847_v43  ;;  %v17464_v25 = vshrl.u32 %v13677_v58, 16 }
 0x60a   : > { %4552 = vst [vmem:[#allocation2 + $0x190] sm:$0xff] %v4468_v34  ;;  %v4470_v16 = vmul.f32 %v4362_v24, %v4182_v53  ;;  %v13905_v39 = vpack.c.bf16 %v4468_v34, %v4466_v44 }
 0x60b   : > { %4553 = vst [vmem:[#allocation2 + $0x198] sm:$0xff] %v4469_v21  ;;  %v4471_v20 = vmul.f32 %v4362_v24, %v4183_v61  ;;  %v3921_v18 = vpop.f32.mrb[48].mxu0  ;;  %v13909_v11 = vpack.c.bf16 %v4469_v21, %v4467_v14  ;;  %v5923_v43 = vrot.slane %v17464_v25, 3  ;;  %v17465_v14 = vshll.u32 %v13677_v58, 16 }
 0x60c   : > { %4554 = vst [vmem:[#allocation2 + $0x1a0] sm:$0xff] %v4470_v16  ;;  %v4112_v62 = vadd.f32 %v13565_v36, %v3921_v18  ;;  %v3923_v59 = vpop.f32.mrb[49].mxu0  ;;  %v4850_v10 = vrot.slane %v13905_v39, 3 }
 0x60d   : > { %4555 = vst [vmem:[#allocation2 + $0x1a8] sm:$0xff] %v4471_v20  ;;  %v4113_v44 = vadd.f32 %v13567_v37, %v3923_v59  ;;  %v3925_v60 = vpop.f32.mrb[50].mxu0  ;;  %v4852_v38 = vrot.slane %v13909_v11, 3  ;;  %v5924_v17 = vrot.slane %v17465_v14, 4  ;;  %v17186_v24 = vshll.u32 %v13909_v11, 16 }
 0x60e   : > { %v4184_v1 = vmax.f32 %v4112_v62, 0.0  ;;  %v4114_v42 = vadd.f32 %v13565_v36, %v3925_v60  ;;  %v3927_v34 = vpop.f32.mrb[51].mxu0  ;;  %v4851_v53 = vsel %vm4803_vm0, %v4846_v4, %v4850_v10  ;;  %v17466_v58 = vshrl.u32 %v13909_v11, 16  ;;  %v4372_v4 = vpop.permute.xlu0 %4371 }
 0x60f   : > { %v4185_v21 = vmax.f32 %v4113_v44, 0.0  ;;  %v4115_v18 = vadd.f32 %v13567_v37, %v3927_v34  ;;  %v4853_v59 = vsel %vm4803_vm0, %v4848_v19, %v4852_v38  ;;  %v5417_v60 = vrot.slane %v17186_v24, 3 }
 0x610   : > { %v4472_v0 = vmul.f32 %v13552_v26, %v4184_v1  ;;  %v4186_v61 = vmax.f32 %v4114_v42, 0.0  ;;  %5130 = vmatprep.mubr.bf16.mxu1 %v4853_v59  ;;  %v5414_v62 = vrot.slane %v17466_v58, 2  ;;  %v13937_v1 = vsel %vm5878_vm2, %v13803_v54, %v13907_v8 }
 0x611   : > { %v4473_v14 = vmul.f32 %v13552_v26, %v4185_v21  ;;  %v4187_v44 = vmax.f32 %v4115_v18, 0.0  ;;  %5131 = vmatmul.mubr.bf16.gmra.mrb[36].mxu1 %v4851_v53  ;;  %17467 = vst [vmem:[#allocation18_spill] sm:$0xff] %v13937_v1  ;;  %v17187_v24 = vshll.u32 %v13905_v39, 16  ;;  %v13942_v25 = vor.u32 %v5924_v17, %v5923_v43 }
 0x612   : > { %4556 = vst [vmem:[#allocation2 + $0x1b0] sm:$0xff] %v4472_v0  ;;  %v4474_v34 = vmul.f32 %v4372_v4, %v4186_v61  ;;  %v13932_v19 = vpack.c.bf16 %v4472_v0, %v4470_v16  ;;  %v13946_v16 = vor.u32 %v5417_v60, %v5414_v62  ;;  %v17470_v54 = vshrl.u32 %v13905_v39, 16  ;;  %v4382_v17 = vpop.permute.xlu0 %4381 }
 0x613   : > { %4557 = vst [vmem:[#allocation2 + $0x1b8] sm:$0xff] %v4473_v14  ;;  %v4475_v42 = vmul.f32 %v4372_v4, %v4187_v44  ;;  %v3931_v59 = vpop.f32.mrb[52].mxu0  ;;  %v13939_v58 = vpack.c.bf16 %v4473_v14, %v4471_v20  ;;  %17468 = vst [vmem:[#allocation19_spill] sm:$0xff] %v13942_v25  ;;  %v5408_v1 = vrot.slane %v17187_v24, 3 }
 0x614   : > { %4558 = vst [vmem:[#allocation2 + $0x1c0] sm:$0xff] %v4474_v34  ;;  %v4116_v26 = vadd.f32 %v13565_v36, %v3931_v59  ;;  %v3933_v61 = vpop.f32.mrb[53].mxu0  ;;  %v4854_v0 = vrot.slane %v13932_v19, 3  ;;  %17469 = vst [vmem:[#allocation20_spill] sm:$0xff] %v13946_v16  ;;  %v5405_v53 = vrot.slane %v17470_v54, 2  ;;  %v17189_v24 = vshll.u32 %v13932_v19, 16 }
 0x615   : > { %4559 = vst [vmem:[#allocation2 + $0x1c8] sm:$0xff] %v4475_v42  ;;  %v4117_v21 = vadd.f32 %v13567_v37, %v3933_v61  ;;  %v3935_v20 = vpop.f32.mrb[54].mxu0  ;;  %v4856_v18 = vrot.slane %v13939_v58, 3  ;;  %v17188_v60 = vshll.u32 %v13939_v58, 16 }
 0x616   : > { %v4188_v4 = vmax.f32 %v4116_v26, 0.0  ;;  %v4118_v14 = vadd.f32 %v13565_v36, %v3935_v20  ;;  %v3937_v44 = vpop.f32.mrb[55].mxu0  ;;  %v4855_v62 = vsel %vm4803_vm0, %v4850_v10, %v4854_v0  ;;  %v17471_v26 = vshrl.u32 %v13939_v58, 16 }
 0x617   : > { %v4189_v59 = vmax.f32 %v4117_v21, 0.0  ;;  %v4119_v54 = vadd.f32 %v13567_v37, %v3937_v44  ;;  %v4857_v61 = vsel %vm4803_vm0, %v4852_v38, %v4856_v18  ;;  %v5435_v10 = vrot.slane %v17188_v60, 3 }
 0x618   : > { %v4476_v43 = vmul.f32 %v13554_v27, %v4188_v4  ;;  %v4190_v41 = vmax.f32 %v4118_v14, 0.0  ;;  %5138 = vmatprep.mubr.bf16.mxu1 %v4857_v61  ;;  %v5432_v20 = vrot.slane %v17471_v26, 2  ;;  %v17472_v38 = vshrl.u32 %v13932_v19, 16 }
 0x619   : > { %v4477_v21 = vmul.f32 %v13554_v27, %v4189_v59  ;;  %v4191_v5 = vmax.f32 %v4119_v54, 0.0  ;;  %5139 = vmatmul.mubr.bf16.gmra.mrb[40].mxu1 %v4855_v62  ;;  %v13975_v26 = vsel %vm5878_vm2, %v13839_v49, %v13942_v25  ;;  %v13979_v62 = vor.u32 %v5408_v1, %v5405_v53 }
 0x61a   : > { %v5423_v44 = vrot.slane %v17472_v38, 2  ;;  %4560 = vst [vmem:[#allocation2 + $0x1d0] sm:$0xff] %v4476_v43  ;;  %v4478_v4 = vmul.f32 %v4382_v17, %v4190_v41  ;;  %v13970_v14 = vpack.c.bf16 %v4476_v43, %v4474_v34  ;;  %v5436_v61 = vor.u32 %v5435_v10, %v5432_v20  ;;  %17473 = vst [vmem:[#allocation21_spill] sm:$0xff] %v13975_v26 }
 0x61b   : > { %4561 = vst [vmem:[#allocation2 + $0x1d8] sm:$0xff] %v4477_v21  ;;  %v4479_v60 = vmul.f32 %v4382_v17, %v4191_v5  ;;  %v3941_v27 = vpop.f32.mrb[56].mxu0  ;;  %v13977_v59 = vpack.c.bf16 %v4477_v21, %v4475_v42  ;;  %17474 = vst [vmem:[#allocation22_spill] sm:$0xff] %v13979_v62  ;;  %v5426_v54 = vrot.slane %v17189_v24, 3 }
 0x61c   : > { %4562 = vst [vmem:[#allocation2 + $0x1e0] sm:$0xff] %v4478_v4  ;;  %v4120_v41 = vadd.f32 %v13565_v36, %v3941_v27  ;;  %v3943_v34 = vpop.f32.mrb[57].mxu0  ;;  %v4858_v43 = vrot.slane %v13970_v14, 3  ;;  %v13987_v49 = vsel %vm5187_vm1, %v13946_v16, %v5436_v61  ;;  %v17195_v48 = vshll.u32 %v13970_v14, 16 }
 0x61d   : > { %17475 = vst [vmem:[#allocation23_spill] sm:$0xff] %v13987_v49  ;;  %4563 = vst [vmem:[#allocation2 + $0x1e8] sm:$0xff] %v4479_v60  ;;  %v4121_v42 = vadd.f32 %v13567_v37, %v3943_v34  ;;  %v3945_v1 = vpop.f32.mrb[58].mxu0  ;;  %v4860_v53 = vrot.slane %v13977_v59, 3  ;;  %v5427_v17 = vor.u32 %v5426_v54, %v5423_v44  ;;  %v17193_v20 = vshrl.u32 %v13977_v59, 16 }
 0x61e   : > { %v4192_v10 = vmax.f32 %v4120_v41, 0.0  ;;  %v4122_v21 = vadd.f32 %v13565_v36, %v3945_v1  ;;  %v3947_v38 = vpop.f32.mrb[59].mxu0  ;;  %v4859_v27 = vsel %vm4803_vm0, %v4854_v0, %v4858_v43  ;;  %v17196_v24 = vshll.u32 %v13977_v59, 16  ;;  %v4392_v1 = vpop.permute.xlu0 %4391 }
 0x61f   : > { %v4193_v26 = vmax.f32 %v4121_v42, 0.0  ;;  %v4123_v5 = vadd.f32 %v13567_v37, %v3947_v38  ;;  %v4861_v25 = vsel %vm4803_vm0, %v4856_v18, %v4860_v53  ;;  %v14000_v34 = vsel %vm5187_vm1, %v13979_v62, %v5427_v17 }
 0x620   : > { %17476 = vst [vmem:[#allocation24_spill] sm:$0xff] %v14000_v34  ;;  %v4480_v44 = vmul.f32 %v13556_v28, %v4192_v10  ;;  %v4194_v54 = vmax.f32 %v4122_v21, 0.0  ;;  %5146 = vmatprep.mubr.bf16.mxu1 %v4861_v25  ;;  %v5450_v41 = vrot.slane %v17193_v20, 2  ;;  %v5453_v0 = vrot.slane %v17196_v24, 3 }
 0x621   : > { %v4481_v42 = vmul.f32 %v13556_v28, %v4193_v26  ;;  %v4195_v38 = vmax.f32 %v4123_v5, 0.0  ;;  %5147 = vmatmul.mubr.bf16.gmra.mrb[44].mxu1 %v4859_v27  ;;  %v17477_v18 = vshrl.u32 %v13970_v14, 16  ;;  %v5444_v28 = vrot.slane %v17195_v48, 3 }
 0x622   : > { %4564 = vst [vmem:[#allocation2 + $0x1f0] sm:$0xff] %v4480_v44  ;;  %v4482_v10 = vmul.f32 %v4392_v1, %v4194_v54  ;;  %v14011_v21 = vpack.c.bf16 %v4480_v44, %v4478_v4  ;;  %v5454_v25 = vor.u32 %v5453_v0, %v5450_v41 }
 0x623   : > { %v5441_v8 = vrot.slane %v17477_v18, 2  ;;  %4565 = vst [vmem:[#allocation2 + $0x1f8] sm:$0xff] %v4481_v42  ;;  %v4483_v20 = vmul.f32 %v4392_v1, %v4195_v38  ;;  %v3951_v52 = vpop.f32.mrb[60].mxu0  ;;  %v14013_v34 = vpack.c.bf16 %v4481_v42, %v4479_v60 }
 0x624   : > { %4566 = vst [vmem:[#allocation2 + $0x200] sm:$0xff] %v4482_v10  ;;  %v4124_v26 = vadd.f32 %v13565_v36, %v3951_v52  ;;  %v3953_v5 = vpop.f32.mrb[61].mxu0  ;;  %v4862_v27 = vrot.slane %v14011_v21, 3  ;;  %v14020_v18 = vsel %vm5187_vm1, %v5436_v61, %v5454_v25 }
 0x625   : > { %17478 = vst [vmem:[#allocation25_spill] sm:$0xff] %v14020_v18  ;;  %4567 = vst [vmem:[#allocation2 + $0x208] sm:$0xff] %v4483_v20  ;;  %v4125_v44 = vadd.f32 %v13567_v37, %v3953_v5  ;;  %v3955_v54 = vpop.f32.mrb[62].mxu0  ;;  %v4864_v60 = vrot.slane %v14013_v34, 3  ;;  %v5445_v41 = vor.u32 %v5444_v28, %v5441_v8  ;;  %v17197_v0 = vshrl.u32 %v14013_v34, 16  ;;  %v4402_v18 = vpop.permute.xlu0 %4401 }
 0x626   : > { %v4196_v1 = vmax.f32 %v4124_v26, 0.0  ;;  %v4126_v52 = vadd.f32 %v13565_v36, %v3955_v54  ;;  %v3957_v42 = vpop.f32.mrb[63].mxu0  ;;  %v4863_v38 = vsel %vm4803_vm0, %v4858_v43, %v4862_v27  ;;  %v17199_v61 = vshll.u32 %v14013_v34, 16  ;;  %v4581_v26 = vld [vmem:[#allocation2 + $0x8] sm:$0xe0] }
 0x627   : > { %v4197_v48 = vmax.f32 %v4125_v44, 0.0  ;;  %v4127_v24 = vadd.f32 %v13567_v37, %v3957_v42  ;;  %v4865_v4 = vsel %vm4803_vm0, %v4860_v53, %v4864_v60  ;;  %v14032_v5 = vsel %vm5187_vm1, %v5427_v17, %v5445_v41 }
 0x628   : > { %17479 = vst [vmem:[#allocation26_spill] sm:$0xff] %v14032_v5  ;;  %v4484_v8 = vmul.f32 %v13558_v31, %v4196_v1  ;;  %v4198_v28 = vmax.f32 %v4126_v52, 0.0  ;;  %5154 = vmatprep.mubr.bf16.mxu1 %v4865_v4  ;;  %v5468_v54 = vrot.slane %v17197_v0, 2  ;;  %v5471_v43 = vrot.slane %v17199_v61, 3  ;;  %v14047_v61 = vld [vmem:[#allocation2 + $0x8] sm:$0xff] }
 0x629   : > { %v4485_v44 = vmul.f32 %v13558_v31, %v4197_v48  ;;  %v4199_v42 = vmax.f32 %v4127_v24, 0.0  ;;  %5155 = vmatmul.mubr.bf16.gmra.mrb[48].mxu1 %v4863_v38  ;;  %v17480_v53 = vshrl.u32 %v14011_v21, 16  ;;  %v17200_v5 = vshll.u32 %v14011_v21, 16 }
 0x62a   : > { %4568 = vst [vmem:[#allocation2 + $0x210] sm:$0xff] %v4484_v8  ;;  %v4486_v1 = vmul.f32 %v4402_v18, %v4198_v28  ;;  %v14043_v4 = vpack.c.bf16 %v4484_v8, %v4482_v10  ;;  %v5472_v52 = vor.u32 %v5471_v43, %v5468_v54  ;;  %v14050_v31 = vpack.c.bf16 %v14047_v61, %v4581_v26 }
 0x62b   : > { %v5459_v17 = vrot.slane %v17480_v53, 2  ;;  %4569 = vst [vmem:[#allocation2 + $0x218] sm:$0xff] %v4485_v44  ;;  %v4487_v0 = vmul.f32 %v4402_v18, %v4199_v42  ;;  %v3961_v49 = vpop.f32.mrb[64].mxu0  ;;  %v14045_v62 = vpack.c.bf16 %v4485_v44, %v4483_v20  ;;  %v5462_v48 = vrot.slane %v17200_v5, 3 }
 0x62c   : > { %4570 = vst [vmem:[#allocation2 + $0x220] sm:$0xff] %v4486_v1  ;;  %v4128_v24 = vadd.f32 %v13565_v36, %v3961_v49  ;;  %v3963_v38 = vpop.f32.mrb[65].mxu0  ;;  %v4866_v10 = vrot.slane %v14043_v4, 3  ;;  %v14057_v8 = vsel %vm5187_vm1, %v5454_v25, %v5472_v52 }
 0x62d   : > { %17481 = vst [vmem:[#allocation27_spill] sm:$0xff] %v14057_v8  ;;  %4571 = vst [vmem:[#allocation2 + $0x228] sm:$0xff] %v4487_v0  ;;  %v4129_v18 = vadd.f32 %v13567_v37, %v3963_v38  ;;  %v3965_v28 = vpop.f32.mrb[66].mxu0  ;;  %v4868_v26 = vrot.slane %v14045_v62, 3  ;;  %v5463_v54 = vor.u32 %v5462_v48, %v5459_v17  ;;  %v17202_v43 = vshrl.u32 %v14045_v62, 16 }
 0x62e   : > { %v4200_v44 = vmax.f32 %v4128_v24, 0.0  ;;  %v4130_v49 = vadd.f32 %v13565_v36, %v3965_v28  ;;  %v3967_v42 = vpop.f32.mrb[67].mxu0  ;;  %v4867_v53 = vsel %vm4803_vm0, %v4862_v27, %v4866_v10  ;;  %v17203_v25 = vshll.u32 %v14045_v62, 16  ;;  %v4412_v28 = vpop.permute.xlu0 %4411 }
 0x62f   : > { %v4201_v5 = vmax.f32 %v4129_v18, 0.0  ;;  %v4131_v20 = vadd.f32 %v13567_v37, %v3967_v42  ;;  %v4869_v8 = vsel %vm4803_vm0, %v4864_v60, %v4868_v26  ;;  %v14069_v38 = vsel %vm5187_vm1, %v5445_v41, %v5463_v54 }
 0x630   : > { %17482 = vst [vmem:[#allocation28_spill] sm:$0xff] %v14069_v38  ;;  %v4488_v17 = vmul.f32 %v13563_v35, %v4200_v44  ;;  %v4202_v48 = vmax.f32 %v4130_v49, 0.0  ;;  %5162 = vmatprep.mubr.bf16.mxu1 %v4869_v8  ;;  %v5486_v24 = vrot.slane %v17202_v43, 2  ;;  %v5489_v27 = vrot.slane %v17203_v25, 3 }
 0x631   : > { %v4489_v18 = vmul.f32 %v13563_v35, %v4201_v5  ;;  %v4203_v16 = vmax.f32 %v4131_v20, 0.0  ;;  %5163 = vmatmul.mubr.bf16.gmra.mrb[52].mxu1 %v4867_v53  ;;  %v17483_v60 = vshrl.u32 %v14043_v4, 16  ;;  %v17206_v41 = vshll.u32 %v14043_v4, 16 }
 0x632   : > { %4572 = vst [vmem:[#allocation2 + $0x230] sm:$0xff] %v4488_v17  ;;  %v4490_v44 = vmul.f32 %v4412_v28, %v4202_v48  ;;  %v14080_v49 = vpack.c.bf16 %v4488_v17, %v4486_v1  ;;  %v5206_v8 = vshrl.u32 %v14050_v31, 16  ;;  %v5490_v43 = vor.u32 %v5489_v27, %v5486_v24  ;;  %v4580_v48 = vld [vmem:[#allocation2] sm:$0xe0] }
 0x633   : > { %v5477_v42 = vrot.slane %v17483_v60, 2  ;;  %4573 = vst [vmem:[#allocation2 + $0x238] sm:$0xff] %v4489_v18  ;;  %v4491_v38 = vmul.f32 %v4412_v28, %v4203_v16  ;;  %v3971_v25 = vpop.f32.mrb[68].mxu0  ;;  %v14083_v6 = vpack.c.bf16 %v4489_v18, %v4487_v0  ;;  %v5209_v35 = vshll.u32 %v14050_v31, 16 }
 0x634   : > { %v5480_v5 = vrot.slane %v17206_v41, 3  ;;  %4574 = vst [vmem:[#allocation2 + $0x240] sm:$0xff] %v4490_v44  ;;  %v4132_v20 = vadd.f32 %v13565_v36, %v3971_v25  ;;  %v3973_v53 = vpop.f32.mrb[69].mxu0  ;;  %v4870_v1 = vrot.slane %v14080_v49, 3  ;;  %v14091_v17 = vsel %vm5187_vm1, %v5472_v52, %v5490_v43  ;;  %v4417_v44 = vpop.permute.xlu0 %4416 }
 0x635   : > { %17484 = vst [vmem:[#allocation29_spill] sm:$0xff] %v14091_v17  ;;  %4575 = vst [vmem:[#allocation2 + $0x248] sm:$0xff] %v4491_v38  ;;  %v4133_v16 = vadd.f32 %v13567_v37, %v3973_v53  ;;  %v3975_v0 = vpop.f32.mrb[70].mxu0  ;;  %v4872_v31 = vrot.slane %v14083_v6, 3  ;;  %v17207_v27 = vshrl.u32 %v14083_v6, 16  ;;  %v17208_v52 = vshll.u32 %v14083_v6, 16 }
 0x636   : > { %v5481_v24 = vor.u32 %v5480_v5, %v5477_v42  ;;  %v4204_v28 = vmax.f32 %v4132_v20, 0.0  ;;  %v4134_v25 = vadd.f32 %v13565_v36, %v3975_v0  ;;  %v3977_v18 = vpop.f32.mrb[71].mxu0  ;;  %v4871_v60 = vsel %vm4803_vm0, %v4866_v10, %v4870_v1  ;;  %v4422_v20 = vpop.permute.xlu1 %4421 }
 0x637   : > { %v4205_v41 = vmax.f32 %v4133_v16, 0.0  ;;  %v4135_v38 = vadd.f32 %v13567_v37, %v3977_v18  ;;  %v4873_v53 = vsel %vm4803_vm0, %v4868_v26, %v4872_v31  ;;  %v5504_v36 = vrot.slane %v17207_v27, 2 }
 0x638   : > { %v14103_v17 = vsel %vm5187_vm1, %v5463_v54, %v5481_v24  ;;  %v4492_v42 = vmul.f32 %v4417_v44, %v4204_v28  ;;  %v4206_v5 = vmax.f32 %v4134_v25, 0.0  ;;  %5170 = vmatprep.mubr.bf16.mxu1 %v4873_v53  ;;  %v5507_v10 = vrot.slane %v17208_v52, 3 }
 0x639   : > { %17485 = vst [vmem:[#allocation30_spill] sm:$0xff] %v14103_v17  ;;  %v4493_v0 = vmul.f32 %v4417_v44, %v4205_v41  ;;  %v4207_v16 = vmax.f32 %v4135_v38, 0.0  ;;  %5171 = vmatmul.mubr.bf16.gmra.mrb[56].mxu1 %v4871_v60  ;;  %v17486_v37 = vshrl.u32 %v14080_v49, 16  ;;  %v5496_v18 = vshll.u32 %v14080_v49, 16 }
 0x63a   : > { %4576 = vst [vmem:[#allocation2 + $0x250] sm:$0xff] %v4492_v42  ;;  %v4494_v54 = vmul.f32 %v4422_v20, %v4206_v5  ;;  %v4654_v28 = vpack.c.bf16 %v14047_v61, %v4580_v48  ;;  %v14113_v25 = vor.u32 %v5507_v10, %v5504_v36  ;;  %v5208_v17 = vrot.slane %v5206_v8, 2 }
 0x63b   : > { %v5495_v26 = vrot.slane %v17486_v37, 2  ;;  %4577 = vst [vmem:[#allocation2 + $0x258] sm:$0xff] %v4493_v0  ;;  %v4495_v53 = vmul.f32 %v4422_v20, %v4207_v16  ;;  %v4726_v27 = vld [vmem:[#allocation2 + $0x240] sm:$0x3f]  ;;  %v5211_v52 = vrot.slane %v5209_v35, 3  ;;  %v5498_v41 = vrot.slane %v5496_v18, 3 }
 0x63c   : > { %4578 = vst [vmem:[#allocation2 + $0x260] sm:$0xff] %v4494_v54  ;;  %v4727_v60 = vld [vmem:[#allocation2 + $0x248] sm:$0x3f]  ;;  %v4730_v44 = vpack.c.bf16 %v4726_v27, %v4726_v27  ;;  %v14119_v38 = vsel %vm5187_vm1, %v5490_v43, %v14113_v25  ;;  %v5189_v36 = vshrl.u32 %v4654_v28, 16  ;;  %v5192_v10 = vshll.u32 %v4654_v28, 16 }
 0x63d   : > { %4579 = vst [vmem:[#allocation2 + $0x268] sm:$0xff] %v4495_v53  ;;  %v4731_v42 = vpack.c.bf16 %v4727_v60, %v4727_v60  ;;  %v14121_v48 = vor.u32 %v5498_v41, %v5495_v26  ;;  %v5212_v8 = vor.u32 %v5211_v52, %v5208_v17  ;;  %v11966_v17 = vld [vmem:[%s17178_s3 + $0x100] sm:$0xff]   ;;  %v17488_v52 = vmov 0  }
 0x63e   : > { %v4874_v5 = vrot.slane %v4730_v44, 3  ;;  %v5191_v43 = vrot.slane %v5189_v36, 2  ;;  %v5194_v16 = vrot.slane %v5192_v10, 3  ;;  %v17489_v54 = vshll.u32 %v13909_v11, 16 }
 0x63f   : > { %v4876_v20 = vrot.slane %v4731_v42, 3  ;;  %v14125_v35 = vsel %vm5187_vm1, %v5481_v24, %v14121_v48  ;;  %v5221_v37 = vsel %vm5187_vm1, %v5212_v8, %v13605_v57  ;;  %v17490_v53 = vshrl.u32 %v13905_v39, 16  ;;  %v11968_v8 = vld [vmem:[%s17178_s3 + $0x110] sm:$0xff]  }
 0x640   : > { %v4875_v27 = vsel %vm4803_vm0, %v4870_v1, %v4874_v5  ;;  %v5195_v26 = vor.u32 %v5194_v16, %v5191_v43  ;;  %v11967_v1 = vld [vmem:[%s17178_s3 + $0x108] sm:$0xff]   ;;  %v5988_v28 = vrot.slane %v17489_v54, 4  ;;  %v17224_v42 = vshrl.u32 %v13670_v13, 16 }
 0x641   : > { %v4877_v0 = vsel %vm4803_vm0, %v4872_v31, %v4876_v20  ;;  %v17487_v31 = vshrl.u32 %v13909_v11, 16  ;;  %v5983_v41 = vrot.slane %v17490_v53, 3  ;;  %v17494_v36 = vshll.u32 %v13939_v58, 16 }
 0x642   : > { %5178 = vmatprep.mubr.bf16.mxu1 %v4877_v0  ;;  %v5204_v24 = vsel %vm5187_vm1, %v5195_v26, %v13621_v29  ;;  %v17491_v29 = vshll.u32 %v13905_v39, 16  ;;  %v17495_v20 = vshrl.u32 %v13932_v19, 16  ;;  %v17223_v39 = vshll.u32 %v13670_v13, 16 }
 0x643   : > { %5179 = vmatmul.mubr.bf16.gmra.mrb[60].mxu1 %v4875_v27  ;;  %v5987_v57 = vrot.slane %v17487_v31, 3  ;;  %v5996_v10 = vrot.slane %v17494_v36, 4  ;;  %v17497_v27 = vshll.u32 %v13932_v19, 16  ;;  %v17498_v16 = vshrl.u32 %v13977_v59, 16 }
 0x644   : > { %5692 = vmatprep.mubr.bf16.mxu1 %v5221_v37  ;;  %v5984_v60 = vrot.slane %v17491_v29, 4  ;;  %v5991_v11 = vrot.slane %v17495_v20, 3  ;;  %v17501_v19 = vshll.u32 %v13970_v14, 16  ;;  %v17502_v53 = vshrl.u32 %v14013_v34, 16 }
 0x645   : > { %v14152_v5 = vor.u32 %v5988_v28, %v5987_v57  ;;  %v5992_v43 = vrot.slane %v17497_v27, 4  ;;  %v6003_v37 = vrot.slane %v17498_v16, 3  ;;  %v17217_v57 = vshll.u32 %v13722_v56, 16 }
 0x646   : > { %v14162_v0 = vor.u32 %v5984_v60, %v5983_v41  ;;  %v6000_v28 = vrot.slane %v17501_v19, 4  ;;  %v6011_v41 = vrot.slane %v17502_v53, 3  ;;  %v17504_v60 = vshll.u32 %v14013_v34, 16 }
 0x647   : > { %17493 = vst [vmem:[#allocation31_spill] sm:$0xff] %v14152_v5  ;;  %v5993_v54 = vor.u32 %v5992_v43, %v5991_v11  ;;  %v17507_v20 = vshll.u32 %v14011_v21, 16  ;;  %v17508_v34 = vshrl.u32 %v14045_v62, 16  ;;  %v17510_v43 = vshll.u32 %v14045_v62, 16 }
 0x648   : > { %17496 = vst [vmem:[#allocation32_spill] sm:$0xff] %v14162_v0  ;;  %v17514_v19 = vshrl.u32 %v14083_v6, 16  ;;  %v17516_v62 = vshll.u32 %v14083_v6, 16 }
 0x649   : > { %v6008_v11 = vrot.slane %v17507_v20, 4  ;;  %v6019_v27 = vrot.slane %v17508_v34, 3  ;;  %v6020_v16 = vrot.slane %v17510_v43, 4  ;;  %v5264_v20 = vrot.slane %v17223_v39, 3 }
 0x64b   : > { %5693 = vmatmul.mubr.bf16.vlgmr.msra.gmra.mrb[64].mxu1 %v5204_v24  ;;  %v6021_v53 = vor.u32 %v6020_v16, %v6019_v27  ;;  %v11971_v27 = vld [vmem:[%s17178_s3 + $0x128] sm:$0xff]   ;;  %v17216_v16 = vshrl.u32 %v13715_v3, 16 }
 0x64c   : > { %5700 = vmatprep.mubr.bf16.mxu1 %v13643_v15  ;;  %6182 = vmatpush1.bf16.msra.mxu1 %v11966_v17  ;;  %v17492_v15 = vshrl.u32 %v13939_v58, 16  ;;  %v17222_v58 = vshrl.u32 %v13722_v56, 16  ;;  %v17499_v17 = vshll.u32 %v13977_v59, 16 }
 0x64d   : > { %6183 = vmatprep.subr.bf16.mxu1 %v17488_v52 }
 0x64e   : > { %v5995_v44 = vrot.slane %v17492_v15, 3  ;;  %v6004_v24 = vrot.slane %v17499_v17, 4  ;;  %v6012_v15 = vrot.slane %v17504_v60, 4  ;;  %v17517_v60 = vshrl.u32 %v14080_v49, 16 }
 0x64f   : > { %v5288_v49 = vrot.slane %v17222_v58, 2  ;;  %v17229_v58 = vshll.u32 %v13836_v22, 16 }
 0x650   : > { %6184 = vmatpush1.bf16.msra.mxu1 %v11967_v1  ;;  %v5997_v26 = vor.u32 %v5996_v10, %v5995_v44  ;;  %v17500_v1 = vshrl.u32 %v13970_v14, 16  ;;  %v6005_v59 = vor.u32 %v6004_v24, %v6003_v37  ;;  %v17505_v44 = vshrl.u32 %v14011_v21, 16  ;;  %v11969_v14 = vld [vmem:[%s17178_s3 + $0x118] sm:$0xff]  }
 0x651   : > { %6185 = vmatprep.subr.bf16.mxu1 %v17488_v52  ;;  %v17511_v37 = vshrl.u32 %v14043_v4, 16 }
 0x652   : > { %v5999_v31 = vrot.slane %v17500_v1, 3  ;;  %v14182_v29 = vsel %vm5878_vm2, %v14152_v5, %v5997_v26  ;;  %v6007_v36 = vrot.slane %v17505_v44, 3  ;;  %v17513_v1 = vshll.u32 %v14043_v4, 16 }
 0x653   : > { %5701 = vmatmul.mubr.bf16.gmra.mrb[68].mxu1 %v13659_v12  ;;  %17503 = vst [vmem:[#allocation33_spill] sm:$0xff] %v14182_v29  ;;  %v14194_v12 = vsel %vm5878_vm2, %v14162_v0, %v5993_v54  ;;  %v6015_v17 = vrot.slane %v17511_v37, 3  ;;  %v17215_v37 = vshll.u32 %v13715_v3, 16 }
 0x654   : > { %5708 = vmatprep.mubr.bf16.mxu1 %v13687_v45  ;;  %6186 = vmatpush1.bf16.msra.mxu1 %v11968_v8  ;;  %17506 = vst [vmem:[#allocation34_spill] sm:$0xff] %v14194_v12  ;;  %v6001_v10 = vor.u32 %v6000_v28, %v5999_v31  ;;  %v14202_v45 = vsel %vm5878_vm2, %v5997_v26, %v6005_v59  ;;  %v6016_v31 = vrot.slane %v17513_v1, 4  ;;  %v6027_v28 = vrot.slane %v17514_v19, 3  ;;  %v11972_v19 = vld [vmem:[%s17178_s3 + $0x130] sm:$0xff]   ;;  %v7639_v12 = vld [vmem:[#allocation2 + $0x148] sm:$0xff] }
 0x655   : > { %6187 = vmatprep.subr.bf16.mxu1 %v17488_v52  ;;  %17509 = vst [vmem:[#allocation35_spill] sm:$0xff] %v14202_v45  ;;  %v6013_v8 = vor.u32 %v6012_v15, %v6011_v41  ;;  %v6009_v21 = vor.u32 %v6008_v11, %v6007_v36  ;;  %v6028_v41 = vrot.slane %v17516_v62, 4  ;;  %v6023_v15 = vrot.slane %v17517_v60, 3  ;;  %v14285_v60 = vld [vmem:[#allocation2 + $0x50] sm:$0xff]  ;;  %v7637_v45 = vld [vmem:[#allocation2 + $0x138] sm:$0xff] }
 0x656   : > { %v14209_v24 = vsel %vm5878_vm2, %v5993_v54, %v6001_v10  ;;  %v11970_v54 = vld [vmem:[%s17178_s3 + $0x120] sm:$0xff]   ;;  %v6017_v44 = vor.u32 %v6016_v31, %v6015_v17  ;;  %v14267_v17 = vld [vmem:[#allocation2 + $0x30] sm:$0xff]  ;;  %v17209_v1 = vshll.u32 %v13755_v51, 16  ;;  %v5279_v62 = vrot.slane %v17216_v16, 2  ;;  %17528 = vst [vmem:[#allocation48_spill] sm:$0xff] %v14285_v60  ;;  %v14549_v60 = vld [vmem:[#allocation2 + $0x168] sm:$0xff] }
 0x657   : > { %17512 = vst [vmem:[#allocation36_spill] sm:$0xff] %v14209_v24  ;;  %v14216_v26 = vsel %vm5878_vm2, %v6005_v59, %v6013_v8  ;;  %v14226_v4 = vsel %vm5878_vm2, %v6001_v10, %v6009_v21  ;;  %v6024_v59 = vrot.slane %v5496_v18, 4  ;;  %v14232_v6 = vsel %vm5878_vm2, %v6013_v8, %v6021_v53  ;;  %v14262_v8 = vld [vmem:[#allocation2 + $0x40] sm:$0xff]  ;;  %17526 = vst [vmem:[#allocation46_spill] sm:$0xff] %v14267_v17  ;;  %v14553_v17 = vld [vmem:[#allocation2 + $0x188] sm:$0xff] }
 0x658   : > { %17515 = vst [vmem:[#allocation37_spill] sm:$0xff] %v14216_v26  ;;  %6188 = vmatpush1.bf16.msra.mxu1 %v11969_v14  ;;  %17518 = vst [vmem:[#allocation38_spill] sm:$0xff] %v14226_v4  ;;  %v14234_v36 = vor.u32 %v6028_v41, %v6027_v28  ;;  %v5261_v14 = vrot.slane %v17224_v42, 2  ;;  %v14241_v10 = vsel %vm5878_vm2, %v6009_v21, %v6017_v44  ;;  %v5291_v18 = vrot.slane %v17217_v57, 3  ;;  %v14276_v28 = vld [vmem:[#allocation2 + $0x60] sm:$0xff]  ;;  %v14359_v57 = vld [vmem:[#allocation2 + $0xd0] sm:$0xff] }
 0x659   : > { %6189 = vmatprep.subr.bf16.mxu1 %v17488_v52  ;;  %17519 = vst [vmem:[#allocation39_spill] sm:$0xff] %v14232_v6  ;;  %17521 = vst [vmem:[#allocation41_spill] sm:$0xff] %v14241_v10  ;;  %v14243_v11 = vor.u32 %v6024_v59, %v6023_v15  ;;  %v17214_v21 = vshrl.u32 %v13755_v51, 16  ;;  %v5282_v41 = vrot.slane %v17215_v37, 3  ;;  %v11973_v59 = vld [vmem:[%s17178_s3 + $0x138] sm:$0xff]   ;;  %v14388_v42 = vld [vmem:[#allocation2 + $0x110] sm:$0xff] }
 0x65a   : > { %17520 = vst [vmem:[#allocation40_spill] sm:$0xff] %v14234_v36  ;;  %v14252_v34 = vsel %vm5878_vm2, %v6021_v53, %v14234_v36  ;;  %17525 = vst [vmem:[#allocation45_spill] sm:$0xff] %v14262_v8  ;;  %v5265_v43 = vor.u32 %v5264_v20, %v5261_v14  ;;  %v14299_v14 = vld [vmem:[#allocation2 + $0x80] sm:$0xff]  ;;  %v17213_v20 = vshrl.u32 %v13745_v40, 16  ;;  %v14555_v8 = vld [vmem:[#allocation2 + $0x1a8] sm:$0xff] }
 0x65b   : > { %17522 = vst [vmem:[#allocation42_spill] sm:$0xff] %v14243_v11  ;;  %5709 = vmatmul.mubr.bf16.gmra.mrb[72].mxu1 %v13707_v33  ;;  %17523 = vst [vmem:[#allocation43_spill] sm:$0xff] %v14252_v34  ;;  %v14260_v33 = vsel %vm5878_vm2, %v6017_v44, %v14243_v11  ;;  %v5309_v44 = vrot.slane %v17209_v1, 3  ;;  %v14325_v1 = vld [vmem:[#allocation2 + $0x90] sm:$0xff]  ;;  %v14566_v11 = vld [vmem:[#allocation2 + $0x1e8] sm:$0xff] }
 0x65c   : > { %5716 = vmatprep.mubr.bf16.mxu1 %v13731_v30  ;;  %6190 = vmatpush1.bf16.msra.mxu1 %v11970_v54  ;;  %17524 = vst [vmem:[#allocation44_spill] sm:$0xff] %v14260_v33  ;;  %v5292_v30 = vor.u32 %v5291_v18, %v5288_v49  ;;  %17527 = vst [vmem:[#allocation47_spill] sm:$0xff] %v14276_v28  ;;  %v5266_v53 = vsel %vm5187_vm1, %v13693_v55, %v5265_v43  ;;  %v5306_v54 = vrot.slane %v17214_v21, 2  ;;  %v14551_v28 = vld [vmem:[#allocation2 + $0x178] sm:$0xff]  ;;  %v14570_v36 = vld [vmem:[#allocation2 + $0x228] sm:$0xff] }
 0x65d   : > { %6191 = vmatprep.subr.bf16.mxu1 %v17488_v52  ;;  %17529 = vst [vmem:[#allocation49_spill] sm:$0xff] %v14299_v14  ;;  %v17210_v49 = vshll.u32 %v13745_v40, 16  ;;  %17532 = vst [vmem:[#allocation52_spill] sm:$0xff] %v14325_v1  ;;  %v17220_v21 = vshll.u32 %v13805_v32, 16  ;;  %v14547_v14 = vld [vmem:[#allocation2 + $0x158] sm:$0xff]  ;;  %v7631_v10 = vld [vmem:[#allocation2 + $0x108] sm:$0xff] }
 0x65e   : > { %v5293_v15 = vsel %vm5187_vm1, %v13720_v7, %v5292_v30  ;;  %v5283_v7 = vor.u32 %v5282_v41, %v5279_v62  ;;  %v5310_v18 = vor.u32 %v5309_v44, %v5306_v54  ;;  %v14313_v62 = vld [vmem:[#allocation2 + $0xa0] sm:$0xff]  ;;  %v5297_v54 = vrot.slane %v17213_v20, 2  ;;  %v14337_v20 = vld [vmem:[#allocation2 + $0xb0] sm:$0xff]  ;;  %17536 = vst [vmem:[#allocation56_spill] sm:$0xff] %v14359_v57  ;;  %17540 = vst [vmem:[#allocation60_spill] sm:$0xff] %v14388_v42 }
 0x65f   : > { %17531 = vst [vmem:[#allocation51_spill] sm:$0xff] %v14313_v62  ;;  %v5300_v44 = vrot.slane %v17210_v49, 3  ;;  %17534 = vst [vmem:[#allocation54_spill] sm:$0xff] %v14337_v20  ;;  %v11976_v49 = vld [vmem:[%s17178_s3 + $0x150] sm:$0xff]   ;;  %v5345_v16 = vrot.slane %v17220_v21, 3  ;;  %v17227_v21 = vshll.u32 %v13798_v47, 16 }
 0x660   : > { %6192 = vmatpush1.bf16.msra.mxu1 %v11971_v27  ;;  %v17211_v27 = vshrl.u32 %v13777_v46, 16  ;;  %v5284_v41 = vsel %vm5187_vm1, %v5265_v43, %v5283_v7  ;;  %v11975_v43 = vld [vmem:[%s17178_s3 + $0x148] sm:$0xff]   ;;  %v14431_v57 = vld [vmem:[#allocation2 + $0x180] sm:$0xff]  ;;  %17584 = vst [vmem:[#allocation97_spill] sm:$0xff] %v14547_v14  ;;  %17585 = vst [vmem:[#allocation98_spill] sm:$0xff] %v14549_v60 }
 0x661   : > { %6193 = vmatprep.subr.bf16.mxu1 %v17488_v52  ;;  %17546 = vst [vmem:[#allocation65_spill] sm:$0xff] %v14431_v57  ;;  %v17555_v57 = vld [vmem:[#allocation15_spill] sm:$0xff]  ;;  %17586 = vst [vmem:[#allocation99_spill] sm:$0xff] %v14551_v28  ;;  %v17603_v28 = vld [vmem:[#allocation24_spill] sm:$0xff] }
 0x662   : > { %v5324_v31 = vrot.slane %v17211_v27, 2  ;;  %v17221_v27 = vshrl.u32 %v13772_v63, 16  ;;  %v17256_v1 = vshll.u32 %v17555_v57, 16  ;;  %17587 = vst [vmem:[#allocation100_spill] sm:$0xff] %v14553_v17  ;;  %17588 = vst [vmem:[#allocation101_spill] sm:$0xff] %v14555_v8  ;;  %v14594_v34 = vld [vmem:[#allocation2 + $0x218] sm:$0xff] }
 0x663   : > { %5717 = vmatmul.mubr.bf16.gmra.mrb[76].mxu1 %v5266_v53  ;;  %v17212_v53 = vshll.u32 %v13777_v46, 16  ;;  %17592 = vst [vmem:[#allocation103_spill] sm:$0xff] %v14566_v11  ;;  %17594 = vst [vmem:[#allocation105_spill] sm:$0xff] %v14570_v36  ;;  %v5838_v11 = vld [vmem:[#allocation2 + $0x8] sm:$0x80]  ;;  %v7625_v6 = vld [vmem:[#allocation2 + $0xd8] sm:$0xff] }
 0x664   : > { %5724 = vmatprep.mubr.bf16.mxu1 %v5293_v15  ;;  %6194 = vmatpush1.bf16.msra.mxu1 %v11972_v19  ;;  %v14305_v15 = vld [vmem:[#allocation2 + $0x70] sm:$0xff]  ;;  %v11974_v19 = vld [vmem:[%s17178_s3 + $0x140] sm:$0xff]   ;;  %v5390_v20 = vrot.slane %v17256_v1, 3  ;;  %17601 = vst [vmem:[#allocation112_spill] sm:$0xff] %v14594_v34  ;;  %v7629_v4 = vld [vmem:[#allocation2 + $0xf8] sm:$0xff] }
 0x665   : > { %6195 = vmatprep.subr.bf16.mxu1 %v17488_v52  ;;  %17530 = vst [vmem:[#allocation50_spill] sm:$0xff] %v14305_v15  ;;  %v5327_v55 = vrot.slane %v17212_v53, 3  ;;  %v17218_v53 = vshll.u32 %v13772_v63, 16  ;;  %v7634_v26 = vld [vmem:[#allocation2 + $0x120] sm:$0xff] }
 0x666   : > { %v17635_v24 = vld [vmem:[#allocation8_spill] sm:$0xff] }
 0x668   : > { %6196 = vmatpush1.bf16.msra.mxu1 %v11973_v59  ;;  %v5311_v59 = vsel %vm5187_vm1, %v5292_v30, %v5310_v18  ;;  %v5301_v30 = vor.u32 %v5300_v44, %v5297_v54  ;;  %v14347_v54 = vld [vmem:[#allocation2 + $0xe0] sm:$0xff] }
 0x669   : > { %6197 = vmatprep.subr.bf16.mxu1 %v17488_v52  ;;  %17535 = vst [vmem:[#allocation55_spill] sm:$0xff] %v14347_v54  ;;  %v14473_v54 = vld [vmem:[#allocation2 + $0x1d0] sm:$0xff] }
 0x66a   : > { %v5302_v44 = vsel %vm5187_vm1, %v5283_v7, %v5301_v30  ;;  %v11977_v7 = vld [vmem:[%s17178_s3 + $0x158] sm:$0xff]   ;;  %17556 = vst [vmem:[#allocation74_spill] sm:$0xff] %v14473_v54 }
 0x66b   : > { %5725 = vmatmul.mubr.bf16.gmra.mrb[80].mxu1 %v5284_v41  ;;  %v14332_v41 = vld [vmem:[#allocation2 + $0xc0] sm:$0xff] }
 0x66c   : > { %5732 = vmatprep.mubr.bf16.mxu1 %v5311_v59  ;;  %6198 = vmatpush1.bf16.msra.mxu1 %v11974_v19  ;;  %17533 = vst [vmem:[#allocation53_spill] sm:$0xff] %v14332_v41  ;;  %v5328_v59 = vor.u32 %v5327_v55, %v5324_v31  ;;  %v17219_v19 = vshrl.u32 %v13805_v32, 16  ;;  %v5315_v31 = vrot.slane %v17221_v27, 2  ;;  %v5318_v55 = vrot.slane %v17218_v53, 3  ;;  %v14371_v27 = vld [vmem:[#allocation2 + $0xf0] sm:$0xff]  ;;  %v11978_v53 = vld [vmem:[%s17178_s3 + $0x160] sm:$0xff]  }
 0x66d   : > { %6199 = vmatprep.subr.bf16.mxu1 %v17488_v52  ;;  %17538 = vst [vmem:[#allocation58_spill] sm:$0xff] %v14371_v27  ;;  %v5363_v27 = vrot.slane %v17229_v58, 3  ;;  %v17237_v58 = vshll.u32 %v13826_v2, 16 }
 0x66e   : > { %v5329_v37 = vsel %vm5187_vm1, %v5310_v18, %v5328_v59  ;;  %v5319_v18 = vor.u32 %v5318_v55, %v5315_v31  ;;  %v14380_v31 = vld [vmem:[#allocation2 + $0x120] sm:$0xff] }
 0x66f   : > { %17539 = vst [vmem:[#allocation59_spill] sm:$0xff] %v14380_v31  ;;  %v11980_v31 = vld [vmem:[%s17178_s3 + $0x170] sm:$0xff]  }
 0x670   : > { %6200 = vmatpush1.bf16.msra.mxu1 %v11975_v43  ;;  %v5342_v43 = vrot.slane %v17219_v19, 2  ;;  %v17230_v19 = vshrl.u32 %v13798_v47, 16  ;;  %v5320_v55 = vsel %vm5187_vm1, %v5301_v30, %v5319_v18 }
 0x671   : > { %6201 = vmatprep.subr.bf16.mxu1 %v17488_v52 }
 0x673   : > { %5733 = vmatmul.mubr.bf16.gmra.mrb[84].mxu1 %v5302_v44  ;;  %v14366_v44 = vld [vmem:[#allocation2 + $0x100] sm:$0xff] }
 0x674   : > { %5740 = vmatprep.mubr.bf16.mxu1 %v5329_v37  ;;  %6202 = vmatpush1.bf16.msra.mxu1 %v11976_v49  ;;  %17537 = vst [vmem:[#allocation57_spill] sm:$0xff] %v14366_v44  ;;  %v5346_v37 = vor.u32 %v5345_v16, %v5342_v43  ;;  %v17228_v49 = vshrl.u32 %v13836_v22, 16  ;;  %v5333_v16 = vrot.slane %v17230_v19, 2  ;;  %v5336_v43 = vrot.slane %v17227_v21, 3  ;;  %v14397_v44 = vld [vmem:[#allocation2 + $0x140] sm:$0xff]  ;;  %v11979_v21 = vld [vmem:[%s17178_s3 + $0x168] sm:$0xff]  }
 0x675   : > { %6203 = vmatprep.subr.bf16.mxu1 %v17488_v52  ;;  %17541 = vst [vmem:[#allocation61_spill] sm:$0xff] %v14397_v44  ;;  %v14409_v19 = vld [vmem:[#allocation2 + $0x160] sm:$0xff] }
 0x676   : > { %v5360_v39 = vrot.slane %v17228_v49, 2  ;;  %v17238_v49 = vshrl.u32 %v13826_v2, 16  ;;  %17543 = vst [vmem:[#allocation63_spill] sm:$0xff] %v14409_v19  ;;  %v14453_v19 = vld [vmem:[#allocation2 + $0x1c0] sm:$0xff] }
 0x677   : > { %17549 = vst [vmem:[#allocation68_spill] sm:$0xff] %v14453_v19  ;;  %v14545_v19 = vld [vmem:[#allocation2 + $0x148] sm:$0xff] }
 0x678   : > { %6204 = vmatpush1.bf16.msra.mxu1 %v11977_v7  ;;  %v5347_v7 = vsel %vm5187_vm1, %v5328_v59, %v5346_v37  ;;  %v14403_v59 = vld [vmem:[#allocation2 + $0x130] sm:$0xff]  ;;  %17583 = vst [vmem:[#allocation96_spill] sm:$0xff] %v14545_v19  ;;  %v14602_v19 = vld [vmem:[#allocation2 + $0x238] sm:$0xff] }
 0x679   : > { %6205 = vmatprep.subr.bf16.mxu1 %v17488_v52  ;;  %17542 = vst [vmem:[#allocation62_spill] sm:$0xff] %v14403_v59  ;;  %v17545_v59 = vshll.u32 %v13865_v23, 16  ;;  %17602 = vst [vmem:[#allocation113_spill] sm:$0xff] %v14602_v19  ;;  %v4653_v19 = vld [vmem:[#allocation2 + $0x248] sm:$0x1f] }
 0x67b   : > { %5741 = vmatmul.mubr.bf16.gmra.mrb[88].mxu1 %v5320_v55  ;;  %v5337_v55 = vor.u32 %v5336_v43, %v5333_v16  ;;  %v14416_v16 = vld [vmem:[#allocation2 + $0x150] sm:$0xff]  ;;  %v5381_v44 = vrot.slane %v17545_v59, 3 }
 0x67c   : > { %5748 = vmatprep.mubr.bf16.mxu1 %v5347_v7  ;;  %6206 = vmatpush1.bf16.msra.mxu1 %v11978_v53  ;;  %v5364_v7 = vor.u32 %v5363_v27, %v5360_v39  ;;  %v17236_v53 = vshrl.u32 %v13865_v23, 16  ;;  %17544 = vst [vmem:[#allocation64_spill] sm:$0xff] %v14416_v16  ;;  %v5351_v39 = vrot.slane %v17238_v49, 2  ;;  %v5354_v27 = vrot.slane %v17237_v58, 3  ;;  %v14437_v43 = vld [vmem:[#allocation2 + $0x170] sm:$0xff]  ;;  %v14446_v49 = vld [vmem:[#allocation2 + $0x1a0] sm:$0xff] }
 0x67d   : > { %6207 = vmatprep.subr.bf16.mxu1 %v17488_v52  ;;  %v5338_v30 = vsel %vm5187_vm1, %v5319_v18, %v5337_v55  ;;  %v11981_v18 = vld [vmem:[%s17178_s3 + $0x178] sm:$0xff]   ;;  %17547 = vst [vmem:[#allocation66_spill] sm:$0xff] %v14437_v43  ;;  %17548 = vst [vmem:[#allocation67_spill] sm:$0xff] %v14446_v49  ;;  %v14460_v59 = vld [vmem:[#allocation2 + $0x190] sm:$0xff]  ;;  %v17559_v49 = vshrl.u32 %v17555_v57, 16 }
 0x67e   : > { %v5378_v42 = vrot.slane %v17236_v53, 2  ;;  %v17243_v53 = vshll.u32 %v13855_v50, 16  ;;  %17550 = vst [vmem:[#allocation69_spill] sm:$0xff] %v14460_v59  ;;  %v14464_v43 = vld [vmem:[#allocation2 + $0x200] sm:$0xff]  ;;  %v7667_v23 = vld [vmem:[#allocation2 + $0x228] sm:$0xff] }
 0x67f   : > { %17552 = vst [vmem:[#allocation71_spill] sm:$0xff] %v14464_v43  ;;  %v5387_v15 = vrot.slane %v17559_v49, 2  ;;  %v14517_v43 = vld [vmem:[#allocation2 + $0x78] sm:$0xff] }
 0x680   : > { %6208 = vmatpush1.bf16.msra.mxu1 %v11979_v21  ;;  %v5365_v21 = vsel %vm5187_vm1, %v5346_v37, %v5364_v7  ;;  %v17242_v37 = vshrl.u32 %v13855_v50, 16  ;;  %v5382_v58 = vor.u32 %v5381_v44, %v5378_v42  ;;  %17570 = vst [vmem:[#allocation85_spill] sm:$0xff] %v14517_v43  ;;  %v17590_v43 = vld [vmem:[#allocation23_spill] sm:$0xff]  ;;  %v17664_v50 = vld [vmem:[#allocation10_spill] sm:$0xff] }
 0x681   : > { %6209 = vmatprep.subr.bf16.mxu1 %v17488_v52 }
 0x682   : > { %v5383_v42 = vsel %vm5187_vm1, %v5364_v7, %v5382_v58 }
 0x683   : > { %5749 = vmatmul.mubr.bf16.gmra.mrb[92].mxu1 %v5338_v30  ;;  %v5355_v30 = vor.u32 %v5354_v27, %v5351_v39  ;;  %v5369_v39 = vrot.slane %v17242_v37, 2  ;;  %v5372_v27 = vrot.slane %v17243_v53, 3  ;;  %v14468_v53 = vld [vmem:[#allocation2 + $0x1b0] sm:$0xff] }
 0x684   : > { %5756 = vmatprep.mubr.bf16.mxu1 %v5365_v21  ;;  %6210 = vmatpush1.bf16.msra.mxu1 %v11980_v31  ;;  %v17245_v21 = vshrl.u32 %v13887_v9, 16  ;;  %v17247_v31 = vshll.u32 %v13887_v9, 16  ;;  %17554 = vst [vmem:[#allocation73_spill] sm:$0xff] %v14468_v53  ;;  %v14543_v53 = vld [vmem:[#allocation2 + $0x138] sm:$0xff]  ;;  %v7656_v9 = vld [vmem:[#allocation2 + $0x1d0] sm:$0xff] }
 0x685   : > { %6211 = vmatprep.subr.bf16.mxu1 %v17488_v52  ;;  %v5356_v16 = vsel %vm5187_vm1, %v5337_v55, %v5355_v30  ;;  %v14462_v55 = vld [vmem:[#allocation2 + $0x1e0] sm:$0xff]  ;;  %17582 = vst [vmem:[#allocation95_spill] sm:$0xff] %v14543_v53 }
 0x686   : > { %v5396_v44 = vrot.slane %v17245_v21, 2  ;;  %17551 = vst [vmem:[#allocation70_spill] sm:$0xff] %v14462_v55  ;;  %v14541_v55 = vld [vmem:[#allocation2 + $0x118] sm:$0xff] }
 0x688   : > { %6212 = vmatpush1.bf16.msra.mxu1 %v11981_v18  ;;  %v5399_v18 = vrot.slane %v17247_v31, 3  ;;  %v14475_v31 = vld [vmem:[#allocation2 + $0x1f0] sm:$0xff] }
 0x689   : > { %7011 = vmatprep.subr.bf16.mxu1 %v17488_v52  ;;  %17557 = vst [vmem:[#allocation75_spill] sm:$0xff] %v14475_v31  ;;  %v14515_v31 = vld [vmem:[#allocation2 + $0x88] sm:$0xff] }
 0x68a   : > { %v5400_v21 = vor.u32 %v5399_v18, %v5396_v44  ;;  %v14496_v44 = vld [vmem:[#allocation2 + $0x220] sm:$0xff]  ;;  %17569 = vst [vmem:[#allocation84_spill] sm:$0xff] %v14515_v31 }
 0x68b   : > { %5757 = vmatmul.mubr.bf16.gmra.mrb[96].mxu1 %v5356_v16  ;;  %17562 = vst [vmem:[#allocation79_spill] sm:$0xff] %v14496_v44  ;;  %v14500_v18 = vld [vmem:[#allocation2 + $0x240] sm:$0xff] }
 0x68c   : > { %5764 = vmatprep.mubr.bf16.mxu1 %v5383_v42  ;;  %v14466_v37 = vpop.f32.mrb[72].mxu0  ;;  %v5373_v42 = vor.u32 %v5372_v27, %v5369_v39  ;;  %v5401_v39 = vsel %vm5187_vm1, %v5382_v58, %v5400_v21  ;;  %17564 = vst [vmem:[#allocation81_spill] sm:$0xff] %v14500_v18  ;;  %v17565_v58 = vld [vmem:[#allocation20_spill] sm:$0xff]  ;;  %v17580_v18 = vld [vmem:[#allocation22_spill] sm:$0xff] }
 0x68d   : > { %17553 = vst [vmem:[#allocation72_spill] sm:$0xff] %v14466_v37  ;;  %v5046_v16 = vpop.f32.mrb[73].mxu0  ;;  %17581 = vst [vmem:[#allocation22_spill] sm:$0xff] %v14541_v55  ;;  %v5837_v55 = vld [vmem:[#allocation2] sm:$0x80]  ;;  %v7657_v37 = vld [vmem:[#allocation2 + $0x1d8] sm:$0xff] }
 0x68e   : > { %v14479_v41 = vpop.f32.mrb[74].mxu0  ;;  %v5374_v59 = vsel %vm5187_vm1, %v5355_v30, %v5373_v42  ;;  %v5391_v16 = vor.u32 %v5390_v20, %v5387_v15  ;;  %v14498_v30 = vld [vmem:[#allocation2 + $0x210] sm:$0xff]  ;;  %v14533_v15 = vld [vmem:[#allocation2 + $0x108] sm:$0xff] }
 0x68f   : > { %17558 = vst [vmem:[#allocation76_spill] sm:$0xff] %v14479_v41  ;;  %v5049_v7 = vpop.f32.mrb[75].mxu0  ;;  %17563 = vst [vmem:[#allocation80_spill] sm:$0xff] %v14498_v30  ;;  %v14529_v30 = vld [vmem:[#allocation2 + $0xd8] sm:$0xff]  ;;  %v7658_v41 = vld [vmem:[#allocation2 + $0x1e0] sm:$0xff] }
 0x690   : > { %v5392_v49 = vsel %vm5187_vm1, %v5373_v42, %v5391_v16  ;;  %17576 = vst [vmem:[#allocation91_spill] sm:$0xff] %v14529_v30  ;;  %17578 = vst [vmem:[#allocation93_spill] sm:$0xff] %v14533_v15  ;;  %v5410_v44 = vsel %vm5187_vm1, %v5391_v16, %v17580_v18  ;;  %v14578_v18 = vld [vmem:[#allocation2 + $0x1b8] sm:$0xff] }
 0x691   : > { %17596 = vst [vmem:[#allocation107_spill] sm:$0xff] %v14578_v18  ;;  %v14590_v30 = vld [vmem:[#allocation2 + $0x1d8] sm:$0xff] }
 0x692   : > { %17599 = vst [vmem:[#allocation110_spill] sm:$0xff] %v14590_v30  ;;  %v17608_v30 = vld [vmem:[#allocation27_spill] sm:$0xff] }
 0x693   : > { %5765 = vmatmul.mubr.bf16.gmra.mrb[100].mxu1 %v5374_v59  ;;  %v14521_v59 = vld [vmem:[#allocation2 + $0x98] sm:$0xff] }
 0x694   : > { %5772 = vmatprep.mubr.bf16.mxu1 %v5401_v39  ;;  %v14492_v27 = vpop.f32.mrb[76].mxu0  ;;  %v5419_v39 = vsel %vm5187_vm1, %v5400_v21, %v17565_v58  ;;  %17572 = vst [vmem:[#allocation87_spill] sm:$0xff] %v14521_v59  ;;  %v14523_v21 = vld [vmem:[#allocation2 + $0xb8] sm:$0xff]  ;;  %v14525_v58 = vld [vmem:[#allocation2 + $0xc8] sm:$0xff] }
 0x695   : > { %17560 = vst [vmem:[#allocation77_spill] sm:$0xff] %v14492_v27  ;;  %v5054_v62 = vpop.f32.mrb[77].mxu0  ;;  %17573 = vst [vmem:[#allocation88_spill] sm:$0xff] %v14523_v21  ;;  %v14576_v59 = vld [vmem:[#allocation2 + $0x198] sm:$0xff]  ;;  %v17604_v21 = vld [vmem:[#allocation25_spill] sm:$0xff] }
 0x696   : > { %v14494_v54 = vpop.f32.mrb[78].mxu0  ;;  %v14507_v62 = vld [vmem:[#allocation2 + $0x230] sm:$0xff]  ;;  %17574 = vst [vmem:[#allocation89_spill] sm:$0xff] %v14525_v58  ;;  %17595 = vst [vmem:[#allocation106_spill] sm:$0xff] %v14576_v59  ;;  %v7649_v27 = vld [vmem:[#allocation2 + $0x198] sm:$0xff] }
 0x697   : > { %17561 = vst [vmem:[#allocation78_spill] sm:$0xff] %v14494_v54  ;;  %v5057_v7 = vpop.f32.mrb[79].mxu0  ;;  %17566 = vst [vmem:[#allocation20_spill] sm:$0xff] %v14507_v62  ;;  %v14535_v62 = vld [vmem:[#allocation2 + $0x128] sm:$0xff]  ;;  %v17615_v59 = vld [vmem:[#allocation30_spill] sm:$0xff]  ;;  %v14733_v54 = vpack.c.bf16 %v7639_v12, %v7637_v45 }
 0x698   : > { %17579 = vst [vmem:[#allocation94_spill] sm:$0xff] %v14535_v62  ;;  %v7652_v12 = vld [vmem:[#allocation2 + $0x1b0] sm:$0xff]  ;;  %v7659_v45 = vld [vmem:[#allocation2 + $0x1e8] sm:$0xff] }
 0x699   : > { %17649 = vst [vmem:[#allocation128_spill] sm:$0xff] %v14733_v54 }
 0x69b   : > { %5773 = vmatmul.mubr.bf16.gmra.mrb[104].mxu1 %v5392_v49  ;;  %v14519_v49 = vld [vmem:[#allocation2 + $0xa8] sm:$0xff] }
 0x69c   : > { %5780 = vmatprep.mubr.bf16.mxu1 %v5419_v39  ;;  %v14509_v20 = vpop.f32.mrb[0].mxu1  ;;  %17571 = vst [vmem:[#allocation86_spill] sm:$0xff] %v14519_v49  ;;  %v14527_v39 = vld [vmem:[#allocation2 + $0xe8] sm:$0xff]  ;;  %v17607_v49 = vld [vmem:[#allocation26_spill] sm:$0xff] }
 0x69d   : > { %17567 = vst [vmem:[#allocation82_spill] sm:$0xff] %v14509_v20  ;;  %v5062_v7 = vpop.f32.mrb[1].mxu1  ;;  %17575 = vst [vmem:[#allocation90_spill] sm:$0xff] %v14527_v39  ;;  %v7650_v20 = vld [vmem:[#allocation2 + $0x1a0] sm:$0xff] }
 0x69e   : > { %v14513_v1 = vpop.f32.mrb[2].mxu1  ;;  %v14531_v7 = vld [vmem:[#allocation2 + $0xf8] sm:$0xff] }
 0x69f   : > { %17568 = vst [vmem:[#allocation83_spill] sm:$0xff] %v14513_v1  ;;  %v5065_v42 = vpop.f32.mrb[3].mxu1  ;;  %17577 = vst [vmem:[#allocation92_spill] sm:$0xff] %v14531_v7  ;;  %v7651_v1 = vld [vmem:[#allocation2 + $0x1a8] sm:$0xff] }
 0x6a0   : > { %v14557_v42 = vld [vmem:[#allocation2 + $0x1c8] sm:$0xff] }
 0x6a1   : > { %17589 = vst [vmem:[#allocation102_spill] sm:$0xff] %v14557_v42 }
 0x6a3   : > { %5781 = vmatmul.mubr.bf16.gmra.mrb[108].mxu1 %v5410_v44  ;;  %v14568_v44 = vld [vmem:[#allocation2 + $0x208] sm:$0xff] }
 0x6a4   : > { %5788 = vmatprep.mubr.bf16.mxu1 %v17590_v43  ;;  %v14564_v31 = vpop.f32.mrb[4].mxu1  ;;  %17593 = vst [vmem:[#allocation104_spill] sm:$0xff] %v14568_v44  ;;  %v14580_v43 = vld [vmem:[#allocation2 + $0x248] sm:$0xff]  ;;  %v4652_v44 = vld [vmem:[#allocation2 + $0x240] sm:$0x1f] }
 0x6a5   : > { %17591 = vst [vmem:[#allocation23_spill] sm:$0xff] %v14564_v31  ;;  %v5070_v16 = vpop.f32.mrb[5].mxu1  ;;  %17597 = vst [vmem:[#allocation108_spill] sm:$0xff] %v14580_v43  ;;  %v17612_v43 = vld [vmem:[#allocation29_spill] sm:$0xff]  ;;  %v7642_v31 = vld [vmem:[#allocation2 + $0x160] sm:$0xff] }
 0x6a6   : > { %v14588_v33 = vpop.f32.mrb[6].mxu1  ;;  %v14592_v16 = vld [vmem:[#allocation2 + $0x1f8] sm:$0xff] }
 0x6a7   : > { %17598 = vst [vmem:[#allocation109_spill] sm:$0xff] %v14588_v33  ;;  %17600 = vst [vmem:[#allocation111_spill] sm:$0xff] %v14592_v16  ;;  %v5073_v53 = vpop.f32.mrb[7].mxu1  ;;  %v7638_v33 = vld [vmem:[#allocation2 + $0x140] sm:$0xff] }
 0x6ab   : > { %5789 = vmatmul.mubr.bf16.gmra.mrb[112].mxu1 %v17603_v28  ;;  %v17611_v28 = vld [vmem:[#allocation28_spill] sm:$0xff] }
 0x6ac   : > { %5796 = vmatprep.mubr.bf16.mxu1 %v17604_v21  ;;  %v14614_v58 = vpop.f32.mrb[8].mxu1  ;;  %v4691_v21 = vpack.c.bf16 %v4653_v19, %v4653_v19 }
 0x6ad   : > { %17605 = vst [vmem:[#allocation24_spill] sm:$0xff] %v14614_v58  ;;  %v5078_v53 = vpop.f32.mrb[9].mxu1 }
 0x6ae   : > { %v14616_v18 = vpop.f32.mrb[10].mxu1  ;;  %v5520_v16 = vshrl.u32 %v4691_v21, 16 }
 0x6af   : > { %17606 = vst [vmem:[#allocation25_spill] sm:$0xff] %v14616_v18  ;;  %v5081_v42 = vpop.f32.mrb[11].mxu1 }
 0x6b3   : > { %5797 = vmatmul.mubr.bf16.gmra.mrb[116].mxu1 %v17607_v49 }
 0x6b4   : > { %5804 = vmatprep.mubr.bf16.mxu1 %v17608_v30  ;;  %v14620_v14 = vpop.f32.mrb[12].mxu1  ;;  %v5523_v30 = vshll.u32 %v4691_v21, 16 }
 0x6b5   : > { %17609 = vst [vmem:[#allocation26_spill] sm:$0xff] %v14620_v14  ;;  %v5086_v60 = vpop.f32.mrb[13].mxu1  ;;  %v7635_v14 = vld [vmem:[#allocation2 + $0x128] sm:$0xff] }
 0x6b6   : > { %v14622_v34 = vpop.f32.mrb[14].mxu1  ;;  %v4690_v60 = vpack.c.bf16 %v4652_v44, %v4652_v44  ;;  %v5525_v8 = vrot.slane %v5523_v30, 3 }
 0x6b7   : > { %17610 = vst [vmem:[#allocation27_spill] sm:$0xff] %v14622_v34  ;;  %v5089_v7 = vpop.f32.mrb[15].mxu1  ;;  %v7628_v34 = vld [vmem:[#allocation2 + $0xf0] sm:$0xff] }
 0x6b8   : > { %v5522_v7 = vrot.slane %v5520_v16, 2  ;;  %v5511_v17 = vshrl.u32 %v4690_v60, 16 }
 0x6ba   : > { %v5526_v62 = vor.u32 %v5525_v8, %v5522_v7  ;;  %v5513_v16 = vrot.slane %v5511_v17, 2 }
 0x6bb   : > { %5805 = vmatmul.mubr.bf16.gmra.mrb[120].mxu1 %v17611_v28  ;;  %v5842_v28 = vpack.c.bf16 %v14047_v61, %v5838_v11 }
 0x6bc   : > { %5812 = vmatprep.mubr.bf16.mxu1 %v17612_v43  ;;  %v14626_v53 = vpop.f32.mrb[16].mxu1 }
 0x6bd   : > { %17613 = vst [vmem:[#allocation28_spill] sm:$0xff] %v14626_v53  ;;  %v5094_v36 = vpop.f32.mrb[17].mxu1  ;;  %v5892_v15 = vshrl.u32 %v5842_v28, 16  ;;  %v5895_v44 = vshll.u32 %v5842_v28, 16 }
 0x6be   : > { %v14628_v42 = vpop.f32.mrb[18].mxu1 }
 0x6bf   : > { %17614 = vst [vmem:[#allocation29_spill] sm:$0xff] %v14628_v42  ;;  %v5097_v49 = vpop.f32.mrb[19].mxu1  ;;  %v5894_v11 = vrot.slane %v5892_v15, 3  ;;  %v17621_v15 = vshll.u32 %v13670_v13, 16  ;;  %v17633_v42 = vld [vmem:[#allocation17_spill] sm:$0xff] }
 0x6c0   : > { %v5514_v49 = vshll.u32 %v4690_v60, 16 }
 0x6c2   : > { %v5516_v30 = vrot.slane %v5514_v49, 3  ;;  %v5920_v49 = vrot.slane %v17621_v15, 4 }
 0x6c3   : > { %5813 = vmatmul.mubr.bf16.gmra.mrb[124].mxu1 %v17615_v59  ;;  %v5841_v59 = vpack.c.bf16 %v14047_v61, %v5837_v55 }
 0x6c4   : > { %5820 = vmatprep.mubr.bf16.mxu1 %v14119_v38  ;;  %v14633_v19 = vpop.f32.mrb[20].mxu1  ;;  %v5527_v38 = vsel %vm5187_vm1, %v14113_v25, %v5526_v62  ;;  %v5517_v8 = vor.u32 %v5516_v30, %v5513_v16  ;;  %v17620_v25 = vshrl.u32 %v13670_v13, 16  ;;  %v17623_v16 = vshrl.u32 %v13722_v56, 16 }
 0x6c5   : > { %17616 = vst [vmem:[#allocation30_spill] sm:$0xff] %v14633_v19  ;;  %v5102_v43 = vpop.f32.mrb[21].mxu1  ;;  %v5883_v7 = vshll.u32 %v5841_v59, 16  ;;  %v17624_v30 = vshll.u32 %v13722_v56, 16  ;;  %v17628_v56 = vshll.u32 %v13715_v3, 16  ;;  %v7620_v19 = vld [vmem:[#allocation2 + $0xb0] sm:$0xff] }
 0x6c6   : > { %v14635_v36 = vpop.f32.mrb[22].mxu1  ;;  %v5897_v43 = vrot.slane %v5895_v44, 4  ;;  %v5919_v62 = vrot.slane %v17620_v25, 3  ;;  %v17622_v44 = vld [vmem:[#allocation6_spill] sm:$0xff]  ;;  %v17627_v25 = vshrl.u32 %v13715_v3, 16  ;;  %v7623_v3 = vld [vmem:[#allocation2 + $0xc8] sm:$0xff] }
 0x6c7   : > { %17617 = vst [vmem:[#allocation114_spill] sm:$0xff] %v14635_v36  ;;  %v5105_v21 = vpop.f32.mrb[23].mxu1  ;;  %v5880_v36 = vshrl.u32 %v5841_v59, 16  ;;  %v5885_v55 = vrot.slane %v5883_v7, 4  ;;  %v5931_v59 = vrot.slane %v17623_v16, 3  ;;  %v7612_v7 = vld [vmem:[#allocation2 + $0x70] sm:$0xff] }
 0x6c8   : > { %v5898_v61 = vor.u32 %v5897_v43, %v5894_v11  ;;  %v14661_v13 = vor.u32 %v5920_v49, %v5919_v62  ;;  %v5927_v15 = vrot.slane %v17627_v25, 3  ;;  %v17631_v49 = vshll.u32 %v13755_v51, 16  ;;  %v7617_v25 = vld [vmem:[#allocation2 + $0x98] sm:$0xff] }
 0x6c9   : > { %v5882_v17 = vrot.slane %v5880_v36, 3  ;;  %v5932_v36 = vrot.slane %v17624_v30, 4  ;;  %v7619_v30 = vld [vmem:[#allocation2 + $0xa8] sm:$0xff] }
 0x6ca   : > { %v14688_v53 = vsel %vm5878_vm2, %v17633_v42, %v14661_v13 }
 0x6cb   : > { %5821 = vmatmul.mubr.bf16.gmra.mrb[128].mxu1 %v14125_v35  ;;  %v5518_v35 = vsel %vm5187_vm1, %v14121_v48, %v5517_v8  ;;  %v7614_v48 = vld [vmem:[#allocation2 + $0x80] sm:$0xff]  ;;  %v5886_v8 = vor.u32 %v5885_v55, %v5882_v17  ;;  %v17630_v55 = vshrl.u32 %v13755_v51, 16 }
 0x6cc   : > { %5828 = vmatprep.mubr.bf16.mxu1 %v5527_v38  ;;  %v14641_v39 = vpop.f32.mrb[24].mxu1  ;;  %v5902_v38 = vsel %vm5878_vm2, %v5898_v61, %v17622_v44  ;;  %v14663_v61 = vor.u32 %v5932_v36, %v5931_v59  ;;  %v5928_v44 = vrot.slane %v17628_v56, 4  ;;  %v14669_v16 = vpack.c.bf16 %v7614_v48, %v7612_v7  ;;  %v11982_v17 = vld [vmem:[%s17178_s3 + $0x180] sm:$0xff]   ;;  %v17632_v7 = vld [vmem:[#allocation7_spill] sm:$0xff] }
 0x6cd   : > { %17618 = vst [vmem:[#allocation115_spill] sm:$0xff] %v14641_v39  ;;  %v5110_v60 = vpop.f32.mrb[25].mxu1  ;;  %v5939_v62 = vrot.slane %v17630_v55, 3  ;;  %v5940_v59 = vrot.slane %v17631_v49, 4  ;;  %v7618_v36 = vld [vmem:[#allocation2 + $0xa0] sm:$0xff]  ;;  %v7621_v39 = vld [vmem:[#allocation2 + $0xb8] sm:$0xff] }
 0x6ce   : > { %v14643_v21 = vpop.f32.mrb[26].mxu1  ;;  %17629 = vst [vmem:[#allocation118_spill] sm:$0xff] %v14669_v16  ;;  %v7622_v56 = vld [vmem:[#allocation2 + $0xc0] sm:$0xff]  ;;  %v7627_v55 = vld [vmem:[#allocation2 + $0xe8] sm:$0xff] }
 0x6cf   : > { %17619 = vst [vmem:[#allocation116_spill] sm:$0xff] %v14643_v21  ;;  %v5113_v28 = vpop.f32.mrb[27].mxu1  ;;  %v7616_v21 = vld [vmem:[#allocation2 + $0x90] sm:$0xff]  ;;  %v7630_v51 = vld [vmem:[#allocation2 + $0x100] sm:$0xff]  ;;  %v11983_v49 = vld [vmem:[%s17178_s3 + $0x188] sm:$0xff]   ;;  %v14701_v18 = vor.u32 %v5940_v59, %v5939_v62  ;;  %v14713_v62 = vpack.c.bf16 %v7622_v56, %v7620_v19  ;;  %v14725_v19 = vpack.c.bf16 %v7631_v10, %v7629_v4  ;;  %v17650_v4 = vshrl.u32 %v14669_v16, 16 }
 0x6d0   : > { %v7671_v28 = vld [vmem:[#allocation2 + $0x248] sm:$0xff]  ;;  %v7641_v59 = vld [vmem:[#allocation2 + $0x158] sm:$0xff]  ;;  %v7646_v56 = vld [vmem:[#allocation2 + $0x180] sm:$0xff] }
 0x6d1   : > { %17641 = vst [vmem:[#allocation120_spill] sm:$0xff] %v14713_v62  ;;  %17645 = vst [vmem:[#allocation124_spill] sm:$0xff] %v14725_v19  ;;  %v9726_v10 = vrot.slane %v17650_v4, 1  ;;  %v7663_v4 = vld [vmem:[#allocation2 + $0x208] sm:$0xff] }
 0x6d3   : > { %5829 = vmatmul.mubr.bf16.gmra.mrb[132].mxu1 %v5518_v35 }
 0x6d4   : > { %6213 = vmatprep.mubr.bf16.mxu1 %v5902_v38  ;;  %v14657_v11 = vpop.f32.mrb[28].mxu1  ;;  %v7615_v38 = vld [vmem:[#allocation2 + $0x88] sm:$0xff] }
 0x6d5   : > { %17625 = vst [vmem:[#allocation6_spill] sm:$0xff] %v14657_v11  ;;  %v5118_v43 = vpop.f32.mrb[29].mxu1  ;;  %v5890_v11 = vsel %vm5878_vm2, %v5886_v8, %v17632_v7  ;;  %v7632_v7 = vld [vmem:[#allocation2 + $0x110] sm:$0xff] }
 0x6d6   : > { %v14659_v60 = vpop.f32.mrb[30].mxu1  ;;  %v7669_v43 = vld [vmem:[#allocation2 + $0x238] sm:$0xff] }
 0x6d7   : > { %17626 = vst [vmem:[#allocation117_spill] sm:$0xff] %v14659_v60  ;;  %v5121_v35 = vpop.f32.mrb[31].mxu1  ;;  %v7626_v60 = vld [vmem:[#allocation2 + $0xe0] sm:$0xff]  ;;  %v14678_v48 = vpack.c.bf16 %v7671_v28, %v7669_v43  ;;  %v17634_v28 = vld [vmem:[#allocation19_spill] sm:$0xff]  ;;  %v14695_v43 = vor.u32 %v5928_v44, %v5927_v15  ;;  %v14706_v44 = vpack.c.bf16 %v7619_v30, %v7617_v25  ;;  %v7640_v30 = vld [vmem:[#allocation2 + $0x150] sm:$0xff] }
 0x6d8   : > { %v7613_v35 = vld [vmem:[#allocation2 + $0x78] sm:$0xff]  ;;  %v14693_v8 = vsel %vm5878_vm2, %v17634_v28, %v14663_v61  ;;  %v7647_v15 = vld [vmem:[#allocation2 + $0x188] sm:$0xff] }
 0x6d9   : > { %v14703_v58 = vpack.c.bf16 %v7615_v38, %v7613_v35  ;;  %17638 = vst [vmem:[#allocation19_spill] sm:$0xff] %v14706_v44  ;;  %v7633_v28 = vld [vmem:[#allocation2 + $0x118] sm:$0xff]  ;;  %v7636_v38 = vld [vmem:[#allocation2 + $0x130] sm:$0xff]  ;;  %v7643_v35 = vld [vmem:[#allocation2 + $0x168] sm:$0xff]  ;;  %v17316_v2 = vshrl.u32 %v14678_v48, 16 }
 0x6da   : > { %v7645_v25 = vld [vmem:[#allocation2 + $0x178] sm:$0xff]  ;;  %v14739_v57 = vpack.c.bf16 %v7643_v35, %v7641_v59 }
 0x6db   : > { %6214 = vmatmul.mubr.bf16.vlgmr.msra.gmra.mrb[136].mxu1 %v5890_v11  ;;  %v7624_v11 = vld [vmem:[#allocation2 + $0xd0] sm:$0xff]  ;;  %17637 = vst [vmem:[#allocation17_spill] sm:$0xff] %v14703_v58  ;;  %v9178_v35 = vld [vmem:[#allocation2 + $0x58] sm:$0xfc] }
 0x6dc   : > { %6221 = vmatprep.mubr.bf16.mxu1 %v17635_v24  ;;  %7012 = vmatpush1.bf16.msra.mxu1 %v11982_v17  ;;  %v14699_v42 = vpop.f32.mrb[32].mxu1  ;;  %v14709_v24 = vpack.c.bf16 %v7618_v36, %v7616_v21  ;;  %v14711_v17 = vpack.c.bf16 %v7623_v3, %v7621_v39  ;;  %v14721_v21 = vpack.c.bf16 %v7627_v55, %v7625_v6  ;;  %v7644_v3 = vld [vmem:[#allocation2 + $0x170] sm:$0xff]  ;;  %v7655_v55 = vld [vmem:[#allocation2 + $0x1c8] sm:$0xff] }
 0x6dd   : > { %17636 = vst [vmem:[#allocation7_spill] sm:$0xff] %v14699_v42  ;;  %v5126_v29 = vpop.f32.mrb[33].mxu1  ;;  %7013 = vmatprep.subr.bf16.mxu1 %v17488_v52  ;;  %v14723_v39 = vpack.c.bf16 %v7626_v60, %v7624_v11  ;;  %v14727_v36 = vpack.c.bf16 %v7630_v51, %v7628_v34  ;;  %v14729_v42 = vpack.c.bf16 %v7635_v14, %v7633_v28  ;;  %v7648_v6 = vld [vmem:[#allocation2 + $0x190] sm:$0xff]  ;;  %v7654_v60 = vld [vmem:[#allocation2 + $0x1c0] sm:$0xff]  ;;  %v8394_v11 = vld [vmem:[#allocation2 + $0x68] sm:$0xff] }
 0x6de   : > { %17639 = vst [vmem:[#allocation8_spill] sm:$0xff] %v14709_v24  ;;  %17640 = vst [vmem:[#allocation119_spill] sm:$0xff] %v14711_v17  ;;  %v14716_v0 = vpop.f32.mrb[34].mxu1  ;;  %v11984_v29 = vld [vmem:[%s17178_s3 + $0x190] sm:$0xff]   ;;  %v8458_v34 = vld [vmem:[#allocation2 + $0x268] sm:$0xff]  ;;  %v14737_v51 = vpack.c.bf16 %v7638_v33, %v7636_v38 }
 0x6df   : > { %17642 = vst [vmem:[#allocation121_spill] sm:$0xff] %v14716_v0  ;;  %17643 = vst [vmem:[#allocation122_spill] sm:$0xff] %v14721_v21  ;;  %v5129_v5 = vpop.f32.mrb[35].mxu1  ;;  %v14731_v0 = vpack.c.bf16 %v7634_v26, %v7632_v7  ;;  %v14743_v26 = vpack.c.bf16 %v7647_v15, %v7645_v25  ;;  %v7673_v14 = vld [vmem:[#allocation2 + $0x258] sm:$0xff]  ;;  %v14746_v7 = vpack.c.bf16 %v7646_v56, %v7644_v3  ;;  %v14752_v38 = vld [vmem:[#allocation2 + $0x60] sm:$0xff] }
 0x6e0   : > { %17644 = vst [vmem:[#allocation123_spill] sm:$0xff] %v14723_v39  ;;  %17646 = vst [vmem:[#allocation125_spill] sm:$0xff] %v14727_v36  ;;  %7014 = vmatpush1.bf16.msra.mxu1 %v11983_v49  ;;  %v14741_v5 = vpack.c.bf16 %v7642_v31, %v7640_v30  ;;  %v7653_v28 = vld [vmem:[#allocation2 + $0x1b8] sm:$0xff]  ;;  %v17656_v49 = vshll.u32 %v14678_v48, 16  ;;  %v17658_v31 = vshll.u32 %v14669_v16, 16  ;;  %v14756_v59 = vpack.c.bf16 %v8458_v34, %v7673_v14  ;;  %v7662_v14 = vld [vmem:[#allocation2 + $0x200] sm:$0xff] }
 0x6e1   : > { %17647 = vst [vmem:[#allocation126_spill] sm:$0xff] %v14729_v42  ;;  %17648 = vst [vmem:[#allocation127_spill] sm:$0xff] %v14731_v0  ;;  %7015 = vmatprep.subr.bf16.mxu1 %v17488_v52  ;;  %v11985_v30 = vld [vmem:[%s17178_s3 + $0x198] sm:$0xff]   ;;  %v14761_v25 = vpack.c.bf16 %v7651_v1, %v7649_v27  ;;  %v14763_v3 = vpack.c.bf16 %v7650_v20, %v7648_v6  ;;  %v14765_v56 = vpack.c.bf16 %v7655_v55, %v7653_v28  ;;  %v9177_v27 = vld [vmem:[#allocation2 + $0x50] sm:$0xfc] }
 0x6e2   : > { %17651 = vst [vmem:[#allocation129_spill] sm:$0xff] %v14737_v51  ;;  %17652 = vst [vmem:[#allocation130_spill] sm:$0xff] %v14739_v57  ;;  %v14750_v33 = vrot.slane %v17656_v49, 1  ;;  %v9727_v15 = vrot.slane %v17658_v31, 2  ;;  %v14767_v49 = vpack.c.bf16 %v7654_v60, %v7652_v12  ;;  %v14770_v31 = vpack.c.bf16 %v7659_v45, %v7657_v37  ;;  %v7661_v34 = vld [vmem:[#allocation2 + $0x1f8] sm:$0xff]  ;;  %v17667_v20 = vld [vmem:[#allocation13_spill] sm:$0xff] }
 0x6e3   : > { %17653 = vst [vmem:[#allocation131_spill] sm:$0xff] %v14741_v5  ;;  %17654 = vst [vmem:[#allocation132_spill] sm:$0xff] %v14743_v26  ;;  %6222 = vmatmul.mubr.bf16.gmra.mrb[140].mxu1 %v17664_v50  ;;  %v17319_v1 = vshll.u32 %v14756_v59, 16  ;;  %v14779_v55 = vpack.c.bf16 %v7658_v41, %v7656_v9  ;;  %v14781_v50 = vpack.c.bf16 %v7663_v4, %v7661_v34  ;;  %v7660_v37 = vld [vmem:[#allocation2 + $0x1f0] sm:$0xff]  ;;  %v7666_v60 = vld [vmem:[#allocation2 + $0x220] sm:$0xff]  ;;  %v9261_v41 = vrot.slane %v14703_v58, 1 }
 0x6e4   : > { %17655 = vst [vmem:[#allocation133_spill] sm:$0xff] %v14746_v7  ;;  %17657 = vst [vmem:[#allocation134_spill] sm:$0xff] %v14750_v33  ;;  %v14773_v22 = vor.u32 %v9727_v15, %v9726_v10  ;;  %6229 = vmatprep.mubr.bf16.mxu1 %v17667_v20  ;;  %v14777_v6 = vpop.f32.mrb[36].mxu1  ;;  %7016 = vmatpush1.bf16.msra.mxu1 %v11984_v29  ;;  %v7670_v12 = vld [vmem:[#allocation2 + $0x240] sm:$0xff]  ;;  %v9182_v45 = vpack.c.bf16 %v8394_v11, %v9178_v35  ;;  %v7665_v10 = vld [vmem:[#allocation2 + $0x218] sm:$0xff] }
 0x6e5   : > { %17659 = vst [vmem:[#allocation135_spill] sm:$0xff] %v14756_v59  ;;  %17660 = vst [vmem:[#allocation136_spill] sm:$0xff] %v14761_v25  ;;  %v5134_v28 = vpop.f32.mrb[37].mxu1  ;;  %7017 = vmatprep.subr.bf16.mxu1 %v17488_v52  ;;  %v14787_v15 = vor.u32 %v17316_v2, %v14750_v33  ;;  %v7674_v20 = vld [vmem:[#allocation2 + $0x260] sm:$0xff]  ;;  %v14791_v9 = vrot.slane %v17319_v1, 1  ;;  %v14796_v11 = vpack.c.bf16 %v7662_v14, %v7660_v37  ;;  %v7664_v35 = vld [vmem:[#allocation2 + $0x210] sm:$0xff] }
 0x6e6   : > { %17661 = vst [vmem:[#allocation137_spill] sm:$0xff] %v14763_v3  ;;  %17662 = vst [vmem:[#allocation138_spill] sm:$0xff] %v14765_v56  ;;  %v14794_v29 = vpop.f32.mrb[38].mxu1  ;;  %v14798_v4 = vpack.c.bf16 %v7667_v23, %v7665_v10  ;;  %v7668_v34 = vld [vmem:[#allocation2 + $0x230] sm:$0xff]  ;;  %v9260_v28 = vrot.slane %v9182_v45, 1  ;;  %v9181_v2 = vpack.c.bf16 %v14752_v38, %v9177_v27  ;;  %v9258_v14 = vrot.slane %v14669_v16, 1 }
 0x6e7   : > { %17663 = vst [vmem:[#allocation139_spill] sm:$0xff] %v14767_v49  ;;  %17665 = vst [vmem:[#allocation10_spill] sm:$0xff] %v14770_v31  ;;  %v5137_v33 = vpop.f32.mrb[39].mxu1  ;;  %v7672_v1 = vld [vmem:[#allocation2 + $0x250] sm:$0xff]  ;;  %v14808_v58 = vsel %vm7749_vm3, %v14787_v15, %v14791_v9  ;;  %v11986_v23 = vld [vmem:[%s17178_s3 + $0x1a0] sm:$0xff]   ;;  %v9263_v10 = vrot.slane %v14709_v24, 1 }
 0x6e8   : > { %17666 = vst [vmem:[#allocation140_spill] sm:$0xff] %v14773_v22  ;;  %17668 = vst [vmem:[#allocation13_spill] sm:$0xff] %v14777_v6  ;;  %v14801_v6 = vpack.c.bf16 %v7666_v60, %v7664_v35  ;;  %v14803_v22 = vpack.c.bf16 %v7670_v12, %v7668_v34  ;;  %7018 = vmatpush1.bf16.msra.mxu1 %v11985_v30  ;;  %v14814_v37 = vpack.c.bf16 %v7674_v20, %v7672_v1  ;;  %v12079_v12 = vld [vmem:[#allocation2 + $0x8] sm:$0xff] }
 0x6e9   : > { %17669 = vst [vmem:[#allocation141_spill] sm:$0xff] %v14779_v55  ;;  %17670 = vst [vmem:[#allocation142_spill] sm:$0xff] %v14781_v50  ;;  %v14817_v33 = vsel %vm9256_vm4, %v9260_v28, %v9261_v41  ;;  %v9257_v27 = vrot.slane %v9181_v2, 1  ;;  %v9265_v60 = vrot.slane %v14706_v44, 1  ;;  %7019 = vmatprep.subr.bf16.mxu1 %v17488_v52  ;;  %v14821_v45 = vpack.c.bf16 %v12079_v12, %v12079_v12  ;;  %v17683_v28 = vld [vmem:[#allocation18_spill] sm:$0xff] }
 0x6ea   : > { %17671 = vst [vmem:[#allocation143_spill] sm:$0xff] %v14787_v15  ;;  %17672 = vst [vmem:[#allocation144_spill] sm:$0xff] %v14791_v9  ;;  %v9269_v30 = vrot.slane %v14711_v17, 1  ;;  %v9267_v35 = vrot.slane %v14713_v62, 1  ;;  %v9273_v2 = vrot.slane %v14721_v21, 1  ;;  %v9271_v34 = vrot.slane %v14723_v39, 1 }
 0x6eb   : > { %17673 = vst [vmem:[#allocation145_spill] sm:$0xff] %v14796_v11  ;;  %17674 = vst [vmem:[#allocation146_spill] sm:$0xff] %v14798_v4  ;;  %v14827_v1 = vsel %vm9256_vm4, %v9257_v27, %v9258_v14  ;;  %v14830_v20 = vsel %vm9256_vm4, %v9261_v41, %v9265_v60  ;;  %6230 = vmatmul.mubr.bf16.gmra.mrb[144].mxu1 %v17683_v28  ;;  %v14836_v12 = vsel %vm9256_vm4, %v9258_v14, %v9263_v10  ;;  %v11987_v28 = vld [vmem:[%s17178_s3 + $0x1a8] sm:$0xff]   ;;  %v17820_v21 = vld [vmem:[#allocation115_spill] sm:$0xff] }
 0x6ec   : > { %17675 = vst [vmem:[#allocation147_spill] sm:$0xff] %v14801_v6  ;;  %17676 = vst [vmem:[#allocation148_spill] sm:$0xff] %v14803_v22  ;;  %v14842_v9 = vsel %vm9256_vm4, %v9263_v10, %v9267_v35  ;;  %v9277_v27 = vrot.slane %v14725_v19, 1  ;;  %v14846_v41 = vpop.f32.mrb[40].mxu1  ;;  %7020 = vmatpush1.bf16.msra.mxu1 %v11986_v23  ;;  %v14852_v14 = vsel %vm9256_vm4, %v9269_v30, %v9273_v2  ;;  %v9275_v10 = vrot.slane %v14727_v36, 1  ;;  %v12081_v36 = vld [vmem:[#allocation2 + $0x50] sm:$0xff] }
 0x6ed   : > { %17677 = vst [vmem:[#allocation149_spill] sm:$0xff] %v14808_v58  ;;  %17678 = vst [vmem:[#allocation150_spill] sm:$0xff] %v14814_v37  ;;  %7021 = vmatprep.subr.bf16.mxu1 %v17488_v52  ;;  %v9279_v23 = vrot.slane %v14731_v0, 1  ;;  %v15336_v19 = vld [vmem:[#allocation2 + $0x68] sm:$0xff] }
 0x6ee   : > { %17679 = vst [vmem:[#allocation151_spill] sm:$0xff] %v14817_v33  ;;  %17680 = vst [vmem:[#allocation152_spill] sm:$0xff] %v14821_v45  ;;  %v14839_v33 = vsel %vm9256_vm4, %v9265_v60, %v9269_v30  ;;  %v14855_v60 = vsel %vm9256_vm4, %v9267_v35, %v9271_v34  ;;  %v9283_v30 = vrot.slane %v14737_v51, 1  ;;  %v14869_v35 = vsel %vm9256_vm4, %v9271_v34, %v9275_v10  ;;  %v11992_v51 = vld [vmem:[%s17178_s3 + $0x1d0] sm:$0xff]  }
 0x6ef   : > { %17681 = vst [vmem:[#allocation153_spill] sm:$0xff] %v14827_v1  ;;  %17682 = vst [vmem:[#allocation154_spill] sm:$0xff] %v14830_v20  ;;  %v17687_v1 = vld [vmem:[#allocation21_spill] sm:$0xff]  ;;  %v9287_v20 = vrot.slane %v14741_v5, 1  ;;  %v9293_v34 = vrot.slane %v14743_v26, 1 }
 0x6f0   : > { %17684 = vst [vmem:[#allocation18_spill] sm:$0xff] %v14836_v12  ;;  %17685 = vst [vmem:[#allocation155_spill] sm:$0xff] %v14839_v33  ;;  %6237 = vmatprep.mubr.bf16.mxu1 %v17687_v1  ;;  %v5142_v33 = vpop.f32.mrb[41].mxu1  ;;  %v14861_v1 = vsel %vm9256_vm4, %v9273_v2, %v9277_v27  ;;  %v9285_v12 = vrot.slane %v14733_v54, 1  ;;  %v14883_v15 = vsel %vm9256_vm4, %v9279_v23, %v9283_v30  ;;  %7022 = vmatpush1.bf16.msra.mxu1 %v11987_v28  ;;  %v17730_v5 = vld [vmem:[#allocation9_spill] sm:$0xff] }
 0x6f1   : > { %17686 = vst [vmem:[#allocation156_spill] sm:$0xff] %v14842_v9  ;;  %17688 = vst [vmem:[#allocation21_spill] sm:$0xff] %v14852_v14  ;;  %v9281_v9 = vrot.slane %v14729_v42, 1  ;;  %v14866_v14 = vpop.f32.mrb[42].mxu1  ;;  %v9289_v33 = vrot.slane %v14739_v57, 1  ;;  %7023 = vmatprep.subr.bf16.mxu1 %v17488_v52  ;;  %v9295_v28 = vrot.slane %v14763_v3, 1 }
 0x6f2   : > { %17689 = vst [vmem:[#allocation157_spill] sm:$0xff] %v14855_v60  ;;  %17690 = vst [vmem:[#allocation158_spill] sm:$0xff] %v14861_v1  ;;  %v5145_v2 = vpop.f32.mrb[43].mxu1  ;;  %v14877_v1 = vsel %vm9256_vm4, %v9275_v10, %v9279_v23  ;;  %v9291_v10 = vrot.slane %v14746_v7, 1  ;;  %v17731_v57 = vshrl.u32 %v17730_v5, 16  ;;  %v12080_v42 = vld [vmem:[#allocation2 + $0x40] sm:$0xff] }
 0x6f3   : > { %17691 = vst [vmem:[#allocation159_spill] sm:$0xff] %v14869_v35  ;;  %v14872_v60 = vsel %vm9256_vm4, %v9277_v27, %v9281_v9  ;;  %17693 = vst [vmem:[#allocation161_spill] sm:$0xff] %v14877_v1  ;;  %v14880_v58 = vsel %vm9256_vm4, %v9281_v9, %v9285_v12  ;;  %v11988_v27 = vld [vmem:[%s17178_s3 + $0x1b0] sm:$0xff]   ;;  %v14893_v2 = vsel %vm9256_vm4, %v9283_v30, %v9287_v20  ;;  %v9297_v9 = vrot.slane %v14761_v25, 1 }
 0x6f4   : > { %17692 = vst [vmem:[#allocation160_spill] sm:$0xff] %v14872_v60  ;;  %17694 = vst [vmem:[#allocation162_spill] sm:$0xff] %v14880_v58  ;;  %v14890_v60 = vsel %vm9256_vm4, %v9285_v12, %v9289_v33  ;;  %v14899_v23 = vsel %vm9256_vm4, %v9289_v33, %v9293_v34  ;;  %v9299_v58 = vrot.slane %v14767_v49, 1  ;;  %v14905_v12 = vsel %vm9256_vm4, %v9287_v20, %v9291_v10 }
 0x6f5   : > { %17695 = vst [vmem:[#allocation163_spill] sm:$0xff] %v14883_v15  ;;  %17696 = vst [vmem:[#allocation164_spill] sm:$0xff] %v14890_v60  ;;  %v9301_v15 = vrot.slane %v14765_v56, 1  ;;  %v14908_v30 = vsel %vm9256_vm4, %v9293_v34, %v9297_v9  ;;  %v9303_v60 = vrot.slane %v14779_v55, 1  ;;  %6238 = vmatmul.mubr.bf16.gmra.mrb[148].mxu1 %v14688_v53  ;;  %v14914_v33 = vsel %vm9256_vm4, %v9291_v10, %v9295_v28  ;;  %v14924_v34 = vpop.f32.mrb[44].mxu1  ;;  %v11989_v53 = vld [vmem:[%s17178_s3 + $0x1b8] sm:$0xff]  }
 0x6f6   : > { %17697 = vst [vmem:[#allocation165_spill] sm:$0xff] %v14893_v2  ;;  %17698 = vst [vmem:[#allocation166_spill] sm:$0xff] %v14899_v23  ;;  %v9305_v2 = vrot.slane %v14770_v31, 1  ;;  %v14920_v1 = vsel %vm9256_vm4, %v9295_v28, %v9299_v58  ;;  %v9309_v20 = vrot.slane %v14781_v50, 1  ;;  %6245 = vmatprep.mubr.bf16.mxu1 %v14693_v8  ;;  %7024 = vmatpush1.bf16.msra.mxu1 %v11988_v27  ;;  %v9307_v28 = vrot.slane %v14796_v11, 1 }
 0x6f7   : > { %17699 = vst [vmem:[#allocation167_spill] sm:$0xff] %v14905_v12  ;;  %17700 = vst [vmem:[#allocation168_spill] sm:$0xff] %v14908_v30  ;;  %v14917_v23 = vsel %vm9256_vm4, %v9297_v9, %v9301_v15  ;;  %v14933_v9 = vsel %vm9256_vm4, %v9299_v58, %v9303_v60  ;;  %7025 = vmatprep.subr.bf16.mxu1 %v17488_v52  ;;  %v9311_v27 = vrot.slane %v14801_v6, 1  ;;  %v9319_v30 = vrot.slane %v14814_v37, 1 }
 0x6f8   : > { %17701 = vst [vmem:[#allocation169_spill] sm:$0xff] %v14914_v33  ;;  %17702 = vst [vmem:[#allocation170_spill] sm:$0xff] %v14917_v23  ;;  %v14930_v10 = vsel %vm9256_vm4, %v9301_v15, %v9305_v2  ;;  %v5150_v23 = vpop.f32.mrb[45].mxu1  ;;  %v14939_v8 = vsel %vm9256_vm4, %v9305_v2, %v9309_v20  ;;  %v9317_v33 = vrot.slane %v14678_v48, 1  ;;  %v9315_v15 = vrot.slane %v14803_v22, 1 }
 0x6f9   : > { %17703 = vst [vmem:[#allocation171_spill] sm:$0xff] %v14920_v1  ;;  %17704 = vst [vmem:[#allocation172_spill] sm:$0xff] %v14930_v10  ;;  %v9313_v1 = vrot.slane %v14798_v4, 1  ;;  %v14944_v10 = vpop.f32.mrb[46].mxu1  ;;  %v14947_v58 = vsel %vm9256_vm4, %v9303_v60, %v9307_v28  ;;  %v9321_v23 = vrot.slane %v14756_v59, 1  ;;  %v14964_v60 = vrot.slane %v14821_v45, 1 }
 0x6fa   : > { %17705 = vst [vmem:[#allocation173_spill] sm:$0xff] %v14933_v9  ;;  %17706 = vst [vmem:[#allocation174_spill] sm:$0xff] %v14939_v8  ;;  %v5153_v2 = vpop.f32.mrb[47].mxu1  ;;  %v14955_v8 = vsel %vm9256_vm4, %v9307_v28, %v9311_v27  ;;  %v14961_v35 = vsel %vm9256_vm4, %v9311_v27, %v9315_v15  ;;  %7026 = vmatpush1.bf16.msra.mxu1 %v11989_v53  ;;  %v11990_v28 = vld [vmem:[%s17178_s3 + $0x1c0] sm:$0xff]   ;;  %v14977_v27 = vsel %vm9256_vm4, %v9315_v15, %v9319_v30  ;;  %v9676_v53 = vld [vmem:[#allocation2 + $0x50] sm:$0xf8] }
 0x6fb   : > { %17707 = vst [vmem:[#allocation175_spill] sm:$0xff] %v14947_v58  ;;  %v14950_v9 = vsel %vm9256_vm4, %v9309_v20, %v9313_v1  ;;  %17709 = vst [vmem:[#allocation177_spill] sm:$0xff] %v14955_v8  ;;  %v14958_v12 = vsel %vm9256_vm4, %v9313_v1, %v9317_v33  ;;  %v17713_v20 = vshrl.u32 %v13745_v40, 16  ;;  %v17714_v58 = vshll.u32 %v13745_v40, 16  ;;  %7027 = vmatprep.subr.bf16.mxu1 %v17488_v52 }
 0x6fc   : > { %17708 = vst [vmem:[#allocation176_spill] sm:$0xff] %v14950_v9  ;;  %17710 = vst [vmem:[#allocation178_spill] sm:$0xff] %v14958_v12  ;;  %v14974_v1 = vsel %vm9256_vm4, %v9317_v33, %v9321_v23  ;;  %v14982_v2 = vsel %vm9256_vm4, %v9321_v23, %v14964_v60  ;;  %v14986_v40 = vsel %vm9256_vm4, %v9319_v30, %v14964_v60  ;;  %v17721_v30 = vshrl.u32 %v13772_v63, 16 }
 0x6fd   : > { %17711 = vst [vmem:[#allocation179_spill] sm:$0xff] %v14961_v35  ;;  %17712 = vst [vmem:[#allocation180_spill] sm:$0xff] %v14964_v60  ;;  %v5935_v9 = vrot.slane %v17713_v20, 3  ;;  %v5936_v7 = vrot.slane %v17714_v58, 4  ;;  %v5930_v58 = vsel %vm5878_vm2, %v14661_v13, %v14695_v43  ;;  %v9680_v33 = vpack.c.bf16 %v14752_v38, %v9676_v53  ;;  %v15001_v60 = vpop.f32.mrb[48].mxu1 }
 0x6fe   : > { %17715 = vst [vmem:[#allocation181_spill] sm:$0xff] %v14974_v1  ;;  %17716 = vst [vmem:[#allocation182_spill] sm:$0xff] %v14977_v27  ;;  %6246 = vmatmul.mubr.bf16.gmra.mrb[152].mxu1 %v5930_v58  ;;  %v5942_v15 = vsel %vm5878_vm2, %v14663_v61, %v14701_v18  ;;  %v17719_v20 = vshrl.u32 %v13777_v46, 16  ;;  %v17722_v38 = vshll.u32 %v13772_v63, 16  ;;  %v11991_v61 = vld [vmem:[%s17178_s3 + $0x1c8] sm:$0xff]   ;;  %v5158_v1 = vpop.f32.mrb[49].mxu1 }
 0x6ff   : > { %17717 = vst [vmem:[#allocation183_spill] sm:$0xff] %v14982_v2  ;;  %17718 = vst [vmem:[#allocation184_spill] sm:$0xff] %v14986_v40  ;;  %v17720_v2 = vshll.u32 %v13777_v46, 16  ;;  %v5943_v40 = vrot.slane %v17721_v30, 3  ;;  %6253 = vmatprep.mubr.bf16.mxu1 %v5942_v15  ;;  %v5937_v13 = vor.u32 %v5936_v7, %v5935_v9  ;;  %7028 = vmatpush1.bf16.msra.mxu1 %v11990_v28  ;;  %v9719_v58 = vshrl.u32 %v9680_v33, 16  ;;  %v15017_v28 = vpop.f32.mrb[50].mxu1 }
 0x700   : > { %v5947_v23 = vrot.slane %v17719_v20, 3  ;;  %v5944_v53 = vrot.slane %v17722_v38, 4  ;;  %v9722_v20 = vshll.u32 %v9680_v33, 16  ;;  %v17723_v46 = vshrl.u32 %v13805_v32, 16  ;;  %7029 = vmatprep.subr.bf16.mxu1 %v17488_v52  ;;  %v17727_v38 = vld [vmem:[#allocation11_spill] sm:$0xff] }
 0x701   : > { %v5948_v27 = vrot.slane %v17720_v2, 4  ;;  %v17724_v30 = vshll.u32 %v13805_v32, 16  ;;  %v17725_v35 = vshrl.u32 %v13798_v47, 16  ;;  %v17726_v63 = vshll.u32 %v13798_v47, 16  ;;  %v5161_v32 = vpop.f32.mrb[51].mxu1 }
 0x702   : > { %v5955_v2 = vrot.slane %v17723_v46, 3  ;;  %v17728_v12 = vshrl.u32 %v17727_v38, 16  ;;  %v17729_v1 = vshll.u32 %v17727_v38, 16  ;;  %v9721_v46 = vrot.slane %v9719_v58, 1 }
 0x703   : > { %v5956_v15 = vrot.slane %v17724_v30, 4  ;;  %v5951_v7 = vrot.slane %v17725_v35, 3  ;;  %v5952_v9 = vrot.slane %v17726_v63, 4  ;;  %v9724_v26 = vrot.slane %v9722_v20, 2  ;;  %7030 = vmatpush1.bf16.msra.mxu1 %v11991_v61 }
 0x704   : > { %v5963_v33 = vrot.slane %v17728_v12, 3  ;;  %v5964_v8 = vrot.slane %v17729_v1, 4  ;;  %v5949_v30 = vor.u32 %v5948_v27, %v5947_v23  ;;  %v5959_v35 = vrot.slane %v17731_v57, 3  ;;  %7031 = vmatprep.subr.bf16.mxu1 %v17488_v52  ;;  %v17733_v57 = vld [vmem:[#allocation14_spill] sm:$0xff] }
 0x705   : > { %v17732_v47 = vshll.u32 %v17730_v5, 16  ;;  %v9725_v12 = vor.u32 %v9724_v26, %v9721_v46  ;;  %v5938_v38 = vsel %vm5878_vm2, %v14695_v43, %v5937_v13  ;;  %v5945_v58 = vor.u32 %v5944_v53, %v5943_v40  ;;  %v15047_v40 = vpop.f32.mrb[52].mxu1 }
 0x706   : > { %v5957_v20 = vor.u32 %v5956_v15, %v5955_v2  ;;  %v5953_v1 = vor.u32 %v5952_v9, %v5951_v7  ;;  %v15033_v27 = vor.u32 %v5964_v8, %v5963_v33  ;;  %v17734_v5 = vshrl.u32 %v17733_v57, 16  ;;  %6254 = vmatmul.mubr.bf16.gmra.mrb[156].mxu1 %v5938_v38  ;;  %v11993_v8 = vld [vmem:[%s17178_s3 + $0x1d8] sm:$0xff]   ;;  %v5166_v53 = vpop.f32.mrb[53].mxu1  ;;  %v17738_v9 = vld [vmem:[#allocation12_spill] sm:$0xff] }
 0x707   : > { %v5960_v63 = vrot.slane %v17732_v47, 4  ;;  %v17735_v61 = vshll.u32 %v17733_v57, 16  ;;  %v17736_v47 = vld [vmem:[#allocation140_spill] sm:$0xff]  ;;  %v5950_v43 = vsel %vm5878_vm2, %v14701_v18, %v5949_v30  ;;  %7032 = vmatpush1.bf16.msra.mxu1 %v11992_v51  ;;  %v5946_v2 = vsel %vm5878_vm2, %v5937_v13, %v5945_v58  ;;  %v15062_v46 = vpop.f32.mrb[54].mxu1 }
 0x708   : > { %v5971_v23 = vrot.slane %v17734_v5, 3  ;;  %v15041_v54 = vsel %vm9717_vm5, %v9725_v12, %v17736_v47  ;;  %6261 = vmatprep.mubr.bf16.mxu1 %v5950_v43  ;;  %v5958_v15 = vsel %vm5878_vm2, %v5949_v30, %v5957_v20  ;;  %v15055_v7 = vsel %vm5878_vm2, %v5945_v58, %v5953_v1  ;;  %7033 = vmatprep.subr.bf16.mxu1 %v17488_v52  ;;  %v5169_v58 = vpop.f32.mrb[55].mxu1 }
 0x709   : > { %v5972_v32 = vrot.slane %v17735_v61, 4  ;;  %17737 = vst [vmem:[#allocation11_spill] sm:$0xff] %v15041_v54  ;;  %v15045_v26 = vor.u32 %v5960_v63, %v5959_v35  ;;  %v17739_v18 = vshrl.u32 %v17738_v9, 16  ;;  %v15066_v51 = vsel %vm5878_vm2, %v5957_v20, %v15033_v27  ;;  %v17741_v63 = vld [vmem:[#allocation16_spill] sm:$0xff] }
 0x70a   : > { %v17740_v13 = vshll.u32 %v17738_v9, 16  ;;  %v17742_v12 = vshrl.u32 %v17741_v63, 16  ;;  %v17339_v5 = vshll.u32 %v14761_v25, 16  ;;  %v11994_v61 = vld [vmem:[%s17178_s3 + $0x1e0] sm:$0xff]   ;;  %v17340_v43 = vshrl.u32 %v14763_v3, 16 }
 0x70b   : > { %v15059_v33 = vrot.slane %v17739_v18, 3  ;;  %v15068_v35 = vor.u32 %v5972_v32, %v5971_v23  ;;  %v15080_v57 = vsel %vm5878_vm2, %v5953_v1, %v15045_v26  ;;  %v17338_v23 = vshrl.u32 %v14761_v25, 16  ;;  %7034 = vmatpush1.bf16.msra.mxu1 %v11993_v8 }
 0x70c   : > { %v15072_v30 = vrot.slane %v17740_v13, 4  ;;  %v15076_v38 = vrot.slane %v17742_v12, 3  ;;  %7035 = vmatprep.subr.bf16.mxu1 %v17488_v52  ;;  %v15105_v8 = vpop.f32.mrb[56].mxu1  ;;  %v11995_v12 = vld [vmem:[%s17178_s3 + $0x1e8] sm:$0xff]   ;;  %v9811_v9 = vrot.slane %v17339_v5, 2  ;;  %v9806_v18 = vrot.slane %v17340_v43, 1 }
 0x70d   : > { %v9810_v1 = vrot.slane %v17338_v23, 1  ;;  %v5174_v20 = vpop.f32.mrb[57].mxu1  ;;  %v17743_v32 = vshll.u32 %v14763_v3, 16  ;;  %v17745_v13 = vshll.u32 %v14765_v56, 16  ;;  %v17746_v54 = vshrl.u32 %v14767_v49, 16  ;;  %v11996_v23 = vld [vmem:[%s17178_s3 + $0x1f0] sm:$0xff]  }
 0x70e   : > { %6262 = vmatmul.mubr.bf16.gmra.mrb[160].mxu1 %v5946_v2  ;;  %v15123_v2 = vpop.f32.mrb[58].mxu1  ;;  %v17744_v20 = vshrl.u32 %v14765_v56, 16  ;;  %v17747_v3 = vshll.u32 %v14767_v49, 16  ;;  %v17753_v56 = vshll.u32 %v14779_v55, 16 }
 0x70f   : > { %6269 = vmatprep.mubr.bf16.mxu1 %v5958_v15  ;;  %7036 = vmatpush1.bf16.msra.mxu1 %v11994_v61  ;;  %v9807_v53 = vrot.slane %v17743_v32, 2  ;;  %v9819_v15 = vrot.slane %v17745_v13, 2  ;;  %v5177_v47 = vpop.f32.mrb[59].mxu1  ;;  %v9814_v32 = vrot.slane %v17746_v54, 1  ;;  %v17750_v61 = vshll.u32 %v14770_v31, 16 }
 0x710   : > { %7037 = vmatprep.subr.bf16.mxu1 %v17488_v52  ;;  %v9818_v5 = vrot.slane %v17744_v20, 1  ;;  %v9815_v25 = vrot.slane %v17747_v3, 2  ;;  %v15140_v20 = vor.u32 %v9811_v9, %v9810_v1  ;;  %v17749_v47 = vshrl.u32 %v14770_v31, 16 }
 0x711   : > { %v9827_v43 = vrot.slane %v17750_v61, 2  ;;  %v15147_v54 = vor.u32 %v9807_v53, %v9806_v18  ;;  %v17752_v3 = vshrl.u32 %v14779_v55, 16  ;;  %v9823_v0 = vrot.slane %v17753_v56, 2 }
 0x712   : > { %17748 = vst [vmem:[#allocation9_spill] sm:$0xff] %v15140_v20  ;;  %v9820_v58 = vor.u32 %v9819_v15, %v9818_v5  ;;  %v9826_v13 = vrot.slane %v17749_v47, 1  ;;  %v9816_v49 = vor.u32 %v9815_v25, %v9814_v32  ;;  %v17755_v9 = vshrl.u32 %v14781_v50, 16 }
 0x713   : > { %7038 = vmatpush1.bf16.msra.mxu1 %v11995_v12  ;;  %17751 = vst [vmem:[#allocation14_spill] sm:$0xff] %v15147_v54  ;;  %v9822_v12 = vrot.slane %v17752_v3, 1  ;;  %v17756_v61 = vshll.u32 %v14781_v50, 16  ;;  %v17758_v56 = vshrl.u32 %v14796_v11, 16  ;;  %v17759_v32 = vshll.u32 %v14796_v11, 16 }
 0x714   : > { %7039 = vmatprep.subr.bf16.mxu1 %v17488_v52  ;;  %v15155_v5 = vsel %vm9717_vm5, %v15140_v20, %v9820_v58  ;;  %v9828_v1 = vor.u32 %v9827_v43, %v9826_v13  ;;  %v9834_v15 = vrot.slane %v17755_v9, 1  ;;  %v15164_v25 = vsel %vm9717_vm5, %v15147_v54, %v9816_v49  ;;  %v11997_v43 = vld [vmem:[%s17178_s3 + $0x1f8] sm:$0xff]  }
 0x715   : > { %17754 = vst [vmem:[#allocation12_spill] sm:$0xff] %v15155_v5  ;;  %v9835_v47 = vrot.slane %v17756_v61, 2  ;;  %17757 = vst [vmem:[#allocation16_spill] sm:$0xff] %v15164_v25  ;;  %v9824_v53 = vor.u32 %v9823_v0, %v9822_v12  ;;  %v9830_v18 = vrot.slane %v17758_v56, 1  ;;  %v9831_v3 = vrot.slane %v17759_v32, 2 }
 0x716   : > { %6270 = vmatmul.mubr.bf16.gmra.mrb[164].mxu1 %v15055_v7  ;;  %v15175_v7 = vsel %vm9717_vm5, %v9820_v58, %v9828_v1  ;;  %v17761_v9 = vshrl.u32 %v14798_v4, 16  ;;  %v17762_v12 = vshll.u32 %v14798_v4, 16  ;;  %v17765_v25 = vshll.u32 %v14801_v6, 16 }
 0x717   : > { %6277 = vmatprep.mubr.bf16.mxu1 %v15066_v51  ;;  %7040 = vmatpush1.bf16.msra.mxu1 %v11996_v23  ;;  %17760 = vst [vmem:[#allocation185_spill] sm:$0xff] %v15175_v7  ;;  %v9836_v13 = vor.u32 %v9835_v47, %v9834_v15  ;;  %v15183_v56 = vsel %vm9717_vm5, %v9816_v49, %v9824_v53  ;;  %v17764_v23 = vshrl.u32 %v14801_v6, 16  ;;  %v15189_v7 = vpop.f32.mrb[60].mxu1  ;;  %v17768_v5 = vshll.u32 %v14678_v48, 16 }
 0x718   : > { %v9842_v0 = vrot.slane %v17761_v9, 1  ;;  %v9843_v61 = vrot.slane %v17762_v12, 2  ;;  %7041 = vmatprep.subr.bf16.mxu1 %v17488_v52  ;;  %17763 = vst [vmem:[#allocation186_spill] sm:$0xff] %v15183_v56  ;;  %v9832_v51 = vor.u32 %v9831_v3, %v9830_v18  ;;  %v9839_v58 = vrot.slane %v17765_v25, 2  ;;  %v5182_v56 = vpop.f32.mrb[61].mxu1 }
 0x719   : > { %v9838_v32 = vrot.slane %v17764_v23, 1  ;;  %v15192_v15 = vsel %vm9717_vm5, %v9828_v1, %v9836_v13  ;;  %v17767_v9 = vshrl.u32 %v14678_v48, 16  ;;  %v9851_v49 = vrot.slane %v17768_v5, 2  ;;  %v15205_v1 = vpop.f32.mrb[62].mxu1 }
 0x71a   : > { %17766 = vst [vmem:[#allocation187_spill] sm:$0xff] %v15192_v15  ;;  %v9844_v47 = vor.u32 %v9843_v61, %v9842_v0  ;;  %v15199_v18 = vsel %vm9717_vm5, %v9824_v53, %v9832_v51  ;;  %v17770_v23 = vshrl.u32 %v14803_v22, 16  ;;  %v17771_v54 = vshll.u32 %v14803_v22, 16  ;;  %v17814_v15 = vld [vmem:[#allocation41_spill] sm:$0xff] }
 0x71b   : > { %v9850_v12 = vrot.slane %v17767_v9, 1  ;;  %17769 = vst [vmem:[#allocation188_spill] sm:$0xff] %v15199_v18  ;;  %v9840_v3 = vor.u32 %v9839_v58, %v9838_v32  ;;  %7042 = vmatpush1.bf16.msra.mxu1 %v11997_v43  ;;  %v17773_v48 = vshrl.u32 %v14756_v59, 16  ;;  %v17774_v53 = vshll.u32 %v14756_v59, 16  ;;  %v5185_v32 = vpop.f32.mrb[63].mxu1  ;;  %v17813_v18 = vld [vmem:[#allocation29_spill] sm:$0xff] }
 0x71c   : > { %v9846_v25 = vrot.slane %v17770_v23, 1  ;;  %v9847_v20 = vrot.slane %v17771_v54, 2  ;;  %v15208_v0 = vsel %vm9717_vm5, %v9836_v13, %v9844_v47  ;;  %7391 = vmatprep.subr.bf16.mxu1 %v17488_v52  ;;  %v17776_v9 = vshrl.u32 %v14814_v37, 16 }
 0x71d   : > { %17772 = vst [vmem:[#allocation189_spill] sm:$0xff] %v15208_v0  ;;  %v9852_v61 = vor.u32 %v9851_v49, %v9850_v12  ;;  %v9858_v5 = vrot.slane %v17773_v48, 1  ;;  %v9859_v56 = vrot.slane %v17774_v53, 2  ;;  %v15216_v58 = vsel %vm9717_vm5, %v9832_v51, %v9840_v3 }
 0x71e   : > { %17775 = vst [vmem:[#allocation190_spill] sm:$0xff] %v15216_v58  ;;  %v9848_v54 = vor.u32 %v9847_v20, %v9846_v25  ;;  %v9854_v43 = vrot.slane %v17776_v9, 1  ;;  %v17777_v13 = vshll.u32 %v14814_v37, 16  ;;  %v17779_v48 = vshrl.u32 %v14821_v45, 16  ;;  %6278 = vmatmul.mubr.bf16.gmra.mrb[168].mxu1 %v15080_v57  ;;  %v5694_v57 = vpop.f32.mrb[64].mxu1  ;;  %v15316_v58 = vld [vmem:[#allocation2 + $0x58] sm:$0xff] }
 0x71f   : > { %v15223_v12 = vsel %vm9717_vm5, %v9844_v47, %v9852_v61  ;;  %v9860_v49 = vor.u32 %v9859_v56, %v9858_v5  ;;  %v17780_v32 = vshll.u32 %v14821_v45, 16  ;;  %v5974_v20 = vsel %vm5878_vm2, %v15033_v27, %v15068_v35 }
 0x720   : > { %v9855_v23 = vrot.slane %v17777_v13, 2  ;;  %17778 = vst [vmem:[#allocation191_spill] sm:$0xff] %v15223_v12  ;;  %v9866_v53 = vrot.slane %v17779_v48, 1  ;;  %v17781_v51 = vshll.u32 %v17741_v63, 16  ;;  %v15236_v9 = vsel %vm9717_vm5, %v9840_v3, %v9848_v54  ;;  %6285 = vmatprep.mubr.bf16.mxu1 %v5974_v20  ;;  %v17789_v48 = vld [vmem:[#allocation76_spill] sm:$0xff] }
 0x721   : > { %v9867_v0 = vrot.slane %v17780_v32, 2  ;;  %17782 = vst [vmem:[#allocation192_spill] sm:$0xff] %v15236_v9  ;;  %v15239_v5 = vsel %vm9717_vm5, %v9852_v61, %v9860_v49  ;;  %v5969_v27 = vor.u32 %v15072_v30, %v15059_v33  ;;  %v17790_v30 = vld [vmem:[#allocation15_spill] sm:$0xff] }
 0x722   : > { %v5980_v25 = vrot.slane %v17781_v51, 4  ;;  %v9856_v47 = vor.u32 %v9855_v23, %v9854_v43  ;;  %17783 = vst [vmem:[#allocation193_spill] sm:$0xff] %v15239_v5  ;;  %v17788_v43 = vld [vmem:[#allocation72_spill] sm:$0xff]  ;;  %v17792_v51 = vshll.u32 %v17790_v30, 16  ;;  %v17809_v5 = vld [vmem:[#allocation27_spill] sm:$0xff] }
 0x723   : > { %v15241_v56 = vor.u32 %v9867_v0, %v9866_v53  ;;  %v15257_v61 = vadd.f32 %v5694_v57, %v17788_v43  ;;  %v5696_v0 = vpop.f32.mrb[65].mxu1  ;;  %v5970_v33 = vsel %vm5878_vm2, %v15045_v26, %v5969_v27  ;;  %v17793_v43 = vld [vmem:[#allocation77_spill] sm:$0xff] }
 0x724   : > { %v15244_v13 = vsel %vm9717_vm5, %v9848_v54, %v9856_v47  ;;  %v5981_v23 = vor.u32 %v5980_v25, %v15076_v38  ;;  %v5697_v54 = vpop.f32.mrb[66].mxu1 }
 0x725   : > { %17784 = vst [vmem:[#allocation194_spill] sm:$0xff] %v15241_v56  ;;  %17785 = vst [vmem:[#allocation195_spill] sm:$0xff] %v15244_v13  ;;  %v15250_v63 = vsel %vm9717_vm5, %v9860_v49, %v15241_v56  ;;  %v15254_v3 = vsel %vm9717_vm5, %v9856_v47, %v15241_v56  ;;  %v15261_v53 = vadd.f32 %v5697_v54, %v17789_v48  ;;  %v5699_v32 = vpop.f32.mrb[67].mxu1  ;;  %v17791_v49 = vshrl.u32 %v17790_v30, 16  ;;  %v17795_v30 = vld [vmem:[#allocation31_spill] sm:$0xff]  ;;  %v17802_v56 = vld [vmem:[#allocation34_spill] sm:$0xff] }
 0x726   : > { %17786 = vst [vmem:[#allocation196_spill] sm:$0xff] %v15250_v63  ;;  %17787 = vst [vmem:[#allocation197_spill] sm:$0xff] %v15254_v3  ;;  %v5976_v47 = vrot.slane %v17792_v51, 4  ;;  %6286 = vmatmul.mubr.bf16.gmra.mrb[172].mxu1 %v5970_v33  ;;  %v5982_v57 = vsel %vm5878_vm2, %v15068_v35, %v5981_v23  ;;  %v5702_v38 = vpop.f32.mrb[68].mxu1  ;;  %v17794_v32 = vld [vmem:[#allocation78_spill] sm:$0xff]  ;;  %v5990_v33 = vsel %vm5878_vm2, %v5981_v23, %v17795_v30 }
 0x727   : > { %v5975_v20 = vrot.slane %v17791_v49, 3  ;;  %6293 = vmatprep.mubr.bf16.mxu1 %v5982_v57  ;;  %v15272_v0 = vadd.f32 %v5702_v38, %v17793_v43  ;;  %v5704_v54 = vpop.f32.mrb[69].mxu1  ;;  %v17796_v51 = vld [vmem:[#allocation82_spill] sm:$0xff]  ;;  %v17797_v38 = vld [vmem:[#allocation83_spill] sm:$0xff]  ;;  %v5840_v13 = vld [vmem:[#allocation2 + $0x248] sm:$0x7f] }
 0x728   : > { %v5705_v48 = vpop.f32.mrb[70].mxu1 }
 0x729   : > { %v5977_v25 = vor.u32 %v5976_v47, %v5975_v20  ;;  %v15275_v26 = vadd.f32 %v5705_v48, %v17794_v32  ;;  %v5707_v3 = vpop.f32.mrb[71].mxu1  ;;  %v17798_v48 = vld [vmem:[#allocation32_spill] sm:$0xff] }
 0x72b   : > { %v5978_v49 = vsel %vm5878_vm2, %v5969_v27, %v5977_v25  ;;  %v5986_v3 = vsel %vm5878_vm2, %v5977_v25, %v17798_v48  ;;  %v17799_v27 = vld [vmem:[#allocation33_spill] sm:$0xff] }
 0x72e   : > { %6294 = vmatmul.mubr.bf16.gmra.mrb[176].mxu1 %v5978_v49  ;;  %v5710_v35 = vpop.f32.mrb[72].mxu1  ;;  %v17800_v49 = vld [vmem:[#allocation23_spill] sm:$0xff] }
 0x72f   : > { %6301 = vmatprep.mubr.bf16.mxu1 %v5990_v33  ;;  %v15281_v57 = vadd.f32 %v5710_v35, %v17796_v51  ;;  %v5712_v20 = vpop.f32.mrb[73].mxu1  ;;  %v17801_v35 = vld [vmem:[#allocation109_spill] sm:$0xff] }
 0x730   : > { %v5713_v47 = vpop.f32.mrb[74].mxu1 }
 0x731   : > { %v15284_v43 = vadd.f32 %v5713_v47, %v17797_v38  ;;  %v5715_v54 = vpop.f32.mrb[75].mxu1  ;;  %v17803_v47 = vld [vmem:[#allocation35_spill] sm:$0xff] }
 0x732   : > { %v17804_v54 = vld [vmem:[#allocation24_spill] sm:$0xff] }
 0x736   : > { %6302 = vmatmul.mubr.bf16.gmra.mrb[180].mxu1 %v5986_v3  ;;  %v5718_v32 = vpop.f32.mrb[76].mxu1 }
 0x737   : > { %6309 = vmatprep.mubr.bf16.mxu1 %v17799_v27  ;;  %v15290_v23 = vadd.f32 %v5718_v32, %v17800_v49  ;;  %v5720_v30 = vpop.f32.mrb[77].mxu1  ;;  %v17805_v27 = vld [vmem:[#allocation25_spill] sm:$0xff]  ;;  %v17806_v49 = vld [vmem:[#allocation36_spill] sm:$0xff] }
 0x738   : > { %v5721_v33 = vpop.f32.mrb[78].mxu1  ;;  %v17807_v30 = vld [vmem:[#allocation37_spill] sm:$0xff] }
 0x739   : > { %v15293_v51 = vadd.f32 %v5721_v33, %v17801_v35  ;;  %v5723_v20 = vpop.f32.mrb[79].mxu1  ;;  %v17808_v35 = vld [vmem:[#allocation26_spill] sm:$0xff] }
 0x73e   : > { %6310 = vmatmul.mubr.bf16.gmra.mrb[184].mxu1 %v17802_v56  ;;  %v5726_v38 = vpop.f32.mrb[80].mxu1 }
 0x73f   : > { %6317 = vmatprep.mubr.bf16.mxu1 %v17803_v47  ;;  %v15298_v25 = vadd.f32 %v5726_v38, %v17804_v54  ;;  %v5728_v48 = vpop.f32.mrb[81].mxu1 }
 0x740   : > { %v5729_v3 = vpop.f32.mrb[82].mxu1  ;;  %v17810_v48 = vld [vmem:[#allocation38_spill] sm:$0xff] }
 0x741   : > { %v15301_v63 = vadd.f32 %v5729_v3, %v17805_v27  ;;  %v5731_v32 = vpop.f32.mrb[83].mxu1  ;;  %v5844_v3 = vpack.c.bf16 %v5840_v13, %v5840_v13  ;;  %v17811_v27 = vld [vmem:[#allocation39_spill] sm:$0xff] }
 0x742   : > { %v15321_v13 = vld [vmem:[#allocation2 + $0x38] sm:$0xff] }
 0x743   : > { %v6041_v12 = vshrl.u32 %v5844_v3, 16 }
 0x746   : > { %6318 = vmatmul.mubr.bf16.gmra.mrb[188].mxu1 %v17806_v49  ;;  %v5734_v33 = vpop.f32.mrb[84].mxu1  ;;  %v17812_v49 = vld [vmem:[#allocation28_spill] sm:$0xff] }
 0x747   : > { %6325 = vmatprep.mubr.bf16.mxu1 %v17807_v30  ;;  %v15306_v20 = vadd.f32 %v5734_v33, %v17808_v35  ;;  %v5736_v56 = vpop.f32.mrb[85].mxu1  ;;  %v6044_v33 = vshll.u32 %v5844_v3, 16  ;;  %v5839_v35 = vld [vmem:[#allocation2 + $0x240] sm:$0x7f] }
 0x748   : > { %v5737_v47 = vpop.f32.mrb[86].mxu1 }
 0x749   : > { %v15309_v38 = vadd.f32 %v5737_v47, %v17809_v5  ;;  %v5739_v54 = vpop.f32.mrb[87].mxu1 }
 0x74a   : > { %v5843_v54 = vpack.c.bf16 %v5839_v35, %v5839_v35  ;;  %v17816_v35 = vld [vmem:[#allocation30_spill] sm:$0xff] }
 0x74e   : > { %6326 = vmatmul.mubr.bf16.gmra.mrb[192].mxu1 %v17810_v48  ;;  %v5742_v32 = vpop.f32.mrb[88].mxu1  ;;  %v6395_v48 = vld [vmem:[#allocation2 + $0x28] sm:$0x80] }
 0x74f   : > { %6333 = vmatprep.mubr.bf16.mxu1 %v17811_v27  ;;  %v15314_v9 = vadd.f32 %v5742_v32, %v17812_v49  ;;  %v5744_v30 = vpop.f32.mrb[89].mxu1  ;;  %v15323_v27 = vld [vmem:[#allocation2 + $0x48] sm:$0xff]  ;;  %v6043_v32 = vrot.slane %v6041_v12, 3  ;;  %v6046_v49 = vrot.slane %v6044_v33, 4  ;;  %v6469_v45 = vpack.c.bf16 %v15321_v13, %v6395_v48  ;;  %v17817_v12 = vld [vmem:[#allocation114_spill] sm:$0xff] }
 0x750   : > { %v5745_v56 = vpop.f32.mrb[90].mxu1  ;;  %v6471_v3 = vpack.c.bf16 %v15316_v58, %v15323_v27  ;;  %v17815_v30 = vld [vmem:[#allocation43_spill] sm:$0xff] }
 0x751   : > { %v15319_v5 = vadd.f32 %v5745_v56, %v17813_v18  ;;  %v5747_v47 = vpop.f32.mrb[91].mxu1  ;;  %v6032_v56 = vshrl.u32 %v5843_v54, 16  ;;  %v6047_v22 = vor.u32 %v6046_v49, %v6043_v32  ;;  %v6557_v50 = vshrl.u32 %v6469_v45, 16 }
 0x752   : > { %v6035_v47 = vshll.u32 %v5843_v54, 16  ;;  %v6565_v6 = vshrl.u32 %v6471_v3, 16  ;;  %v6568_v4 = vshll.u32 %v6471_v3, 16  ;;  %v6560_v55 = vshll.u32 %v6469_v45, 16  ;;  %v12083_v45 = vld [vmem:[#allocation2 + $0x30] sm:$0xff] }
 0x753   : > { %v6034_v31 = vrot.slane %v6032_v56, 3  ;;  %v6470_v54 = vpack.c.bf16 %v12081_v36, %v12080_v42  ;;  %v6559_v56 = vrot.slane %v6557_v50, 3 }
 0x754   : > { %v6037_v48 = vrot.slane %v6035_v47, 4  ;;  %v6567_v49 = vrot.slane %v6565_v6, 3  ;;  %v6570_v3 = vrot.slane %v6568_v4, 4  ;;  %v6562_v47 = vrot.slane %v6560_v55, 4  ;;  %v17822_v55 = vld [vmem:[#allocation42_spill] sm:$0xff] }
 0x755   : > { %v6548_v42 = vshrl.u32 %v6470_v54, 16  ;;  %v6551_v36 = vshll.u32 %v6470_v54, 16 }
 0x756   : > { %6334 = vmatmul.mubr.bf16.gmra.mrb[196].mxu1 %v17814_v15  ;;  %v5750_v18 = vpop.f32.mrb[92].mxu1  ;;  %v6038_v39 = vor.u32 %v6037_v48, %v6034_v31  ;;  %v6571_v17 = vor.u32 %v6570_v3, %v6567_v49  ;;  %v6563_v50 = vor.u32 %v6562_v47, %v6559_v56 }
 0x757   : > { %6341 = vmatprep.mubr.bf16.mxu1 %v17815_v30  ;;  %v15331_v59 = vadd.f32 %v5750_v18, %v17816_v35  ;;  %v5752_v37 = vpop.f32.mrb[93].mxu1  ;;  %v6394_v30 = vld [vmem:[#allocation2 + $0x20] sm:$0x80]  ;;  %v12082_v35 = vld [vmem:[#allocation2 + $0x78] sm:$0xff]  ;;  %v6550_v48 = vrot.slane %v6548_v42, 3  ;;  %v6553_v54 = vrot.slane %v6551_v36, 4 }
 0x758   : > { %v5753_v15 = vpop.f32.mrb[94].mxu1  ;;  %v17818_v18 = vld [vmem:[#allocation44_spill] sm:$0xff]  ;;  %v6039_v31 = vsel %vm5878_vm2, %v17822_v55, %v6038_v39  ;;  %v6572_v49 = vsel %vm5878_vm2, %v6563_v50, %v6571_v17  ;;  %v17823_v42 = vld [vmem:[#allocation6_spill] sm:$0xff] }
 0x759   : > { %v15334_v33 = vadd.f32 %v5753_v15, %v17817_v12  ;;  %v5755_v11 = vpop.f32.mrb[95].mxu1  ;;  %v17819_v37 = vld [vmem:[#allocation40_spill] sm:$0xff]  ;;  %v6468_v15 = vpack.c.bf16 %v12083_v45, %v6394_v30  ;;  %v6554_v47 = vor.u32 %v6553_v54, %v6550_v48 }
 0x75a   : > { %v6048_v32 = vsel %vm5878_vm2, %v17819_v37, %v6047_v22  ;;  %v6473_v11 = vpack.c.bf16 %v12082_v35, %v15336_v19  ;;  %v17821_v35 = vld [vmem:[#allocation116_spill] sm:$0xff] }
 0x75b   : > { %v6540_v37 = vshrl.u32 %v6468_v15, 16  ;;  %v6543_v24 = vshll.u32 %v6468_v15, 16  ;;  %v12084_v45 = vld [vmem:[#allocation2 + $0x60] sm:$0xff]  ;;  %v12087_v15 = vld [vmem:[#allocation2 + $0x98] sm:$0xff] }
 0x75c   : > { %v6583_v22 = vshrl.u32 %v6473_v11, 16  ;;  %v6586_v6 = vshll.u32 %v6473_v11, 16 }
 0x75e   : > { %6342 = vmatmul.mubr.bf16.gmra.mrb[200].mxu1 %v17818_v18  ;;  %v5758_v12 = vpop.f32.mrb[96].mxu1  ;;  %v6585_v3 = vrot.slane %v6583_v22, 3  ;;  %v6588_v11 = vrot.slane %v6586_v6, 4  ;;  %v11998_v6 = vld [vmem:[%s17178_s3 + $0x200] sm:$0xff]  }
 0x75f   : > { %6349 = vmatprep.mubr.bf16.mxu1 %v6048_v32  ;;  %v15343_v62 = vadd.f32 %v5758_v12, %v17820_v21  ;;  %v5760_v18 = vpop.f32.mrb[97].mxu1  ;;  %v12085_v21 = vld [vmem:[#allocation2 + $0x70] sm:$0xff] }
 0x760   : > { %v5761_v4 = vpop.f32.mrb[98].mxu1  ;;  %v6472_v12 = vpack.c.bf16 %v12085_v21, %v12084_v45  ;;  %v12086_v18 = vld [vmem:[#allocation2 + $0x88] sm:$0xff]  ;;  %v6589_v45 = vor.u32 %v6588_v11, %v6585_v3 }
 0x761   : > { %v15346_v32 = vadd.f32 %v5761_v4, %v17821_v35  ;;  %v5763_v30 = vpop.f32.mrb[99].mxu1  ;;  %v6475_v16 = vpack.c.bf16 %v12087_v15, %v12086_v18  ;;  %v6542_v4 = vrot.slane %v6540_v37, 3  ;;  %v6545_v35 = vrot.slane %v6543_v24, 4  ;;  %v12088_v18 = vld [vmem:[#allocation2 + $0x80] sm:$0xff]  ;;  %v12089_v15 = vld [vmem:[#allocation2 + $0x90] sm:$0xff] }
 0x762   : > { %v6574_v30 = vshrl.u32 %v6472_v12, 16  ;;  %v6577_v39 = vshll.u32 %v6472_v12, 16 }
 0x763   : > { %v6604_v21 = vshll.u32 %v6475_v16, 16  ;;  %v6546_v22 = vor.u32 %v6545_v35, %v6542_v4  ;;  %v12090_v4 = vld [vmem:[#allocation2 + $0xa8] sm:$0xff]  ;;  %v12091_v35 = vld [vmem:[#allocation2 + $0xb8] sm:$0xff] }
 0x764   : > { %v6576_v54 = vrot.slane %v6574_v30, 3  ;;  %v6579_v12 = vrot.slane %v6577_v39, 4 }
 0x765   : > { %v6555_v48 = vsel %vm5878_vm2, %v6546_v22, %v6554_v47  ;;  %v6606_v11 = vrot.slane %v6604_v21, 4 }
 0x766   : > { %6350 = vmatmul.mubr.bf16.gmra.mrb[204].mxu1 %v6039_v31  ;;  %v5766_v56 = vpop.f32.mrb[100].mxu1  ;;  %v6601_v31 = vshrl.u32 %v6475_v16, 16  ;;  %v6590_v16 = vsel %vm5878_vm2, %v6571_v17, %v6589_v45  ;;  %v6580_v39 = vor.u32 %v6579_v12, %v6576_v54 }
 0x767   : > { %7043 = vmatprep.mubr.bf16.mxu1 %v6572_v49  ;;  %v15352_v36 = vadd.f32 %v5766_v56, %v17823_v42  ;;  %v5768_v55 = vpop.f32.mrb[101].mxu1  ;;  %v17824_v49 = vld [vmem:[#allocation117_spill] sm:$0xff]  ;;  %v6474_v56 = vpack.c.bf16 %v12089_v15, %v12088_v18  ;;  %v6477_v42 = vpack.c.bf16 %v12091_v35, %v12090_v4  ;;  %v12092_v35 = vld [vmem:[#allocation2 + $0xa0] sm:$0xff] }
 0x768   : > { %v5769_v50 = vpop.f32.mrb[102].mxu1  ;;  %v6603_v3 = vrot.slane %v6601_v31, 3  ;;  %v11999_v55 = vld [vmem:[%s17178_s3 + $0x208] sm:$0xff]   ;;  %v6581_v54 = vsel %vm5878_vm2, %v6554_v47, %v6580_v39 }
 0x769   : > { %v15358_v37 = vadd.f32 %v5769_v50, %v17824_v49  ;;  %v5771_v24 = vpop.f32.mrb[103].mxu1  ;;  %v6592_v50 = vshrl.u32 %v6474_v56, 16  ;;  %v6595_v22 = vshll.u32 %v6474_v56, 16  ;;  %v17825_v49 = vld [vmem:[#allocation7_spill] sm:$0xff]  ;;  %v6619_v21 = vshrl.u32 %v6477_v42, 16  ;;  %v17826_v15 = vld [vmem:[#allocation121_spill] sm:$0xff] }
 0x76a   : > { %v6607_v31 = vor.u32 %v6606_v11, %v6603_v3  ;;  %v12093_v3 = vld [vmem:[#allocation2 + $0xb0] sm:$0xff] }
 0x76b   : > { %v6594_v12 = vrot.slane %v6592_v50, 3  ;;  %v6597_v56 = vrot.slane %v6595_v22, 4  ;;  %v6476_v11 = vpack.c.bf16 %v12093_v3, %v12092_v35 }
 0x76d   : > { %v6598_v50 = vor.u32 %v6597_v56, %v6594_v12  ;;  %v6610_v22 = vshrl.u32 %v6476_v11, 16 }
 0x76e   : > { %7044 = vmatmul.mubr.bf16.vlgmr.msra.gmra.mrb[208].mxu1 %v6555_v48  ;;  %v5774_v30 = vpop.f32.mrb[104].mxu1  ;;  %v6622_v48 = vshll.u32 %v6477_v42, 16  ;;  %v6608_v42 = vsel %vm5878_vm2, %v6589_v45, %v6607_v31 }
 0x76f   : > { %7051 = vmatprep.mubr.bf16.mxu1 %v6590_v16  ;;  %7392 = vmatpush1.bf16.msra.mxu1 %v11998_v6  ;;  %v15367_v24 = vadd.f32 %v5774_v30, %v17825_v49  ;;  %v5776_v17 = vpop.f32.mrb[105].mxu1  ;;  %v12000_v6 = vld [vmem:[%s17178_s3 + $0x210] sm:$0xff]   ;;  %v12094_v49 = vld [vmem:[#allocation2 + $0xc8] sm:$0xff]  ;;  %v6599_v12 = vsel %vm5878_vm2, %v6580_v39, %v6598_v50  ;;  %v6612_v56 = vrot.slane %v6610_v22, 3 }
 0x770   : > { %7393 = vmatprep.subr.bf16.mxu1 %v17488_v52  ;;  %v5777_v18 = vpop.f32.mrb[106].mxu1  ;;  %v6624_v30 = vrot.slane %v6622_v48, 4  ;;  %v12095_v17 = vld [vmem:[#allocation2 + $0xd8] sm:$0xff] }
 0x771   : > { %v15373_v16 = vadd.f32 %v5777_v18, %v17826_v15  ;;  %v5779_v4 = vpop.f32.mrb[107].mxu1  ;;  %v6479_v44 = vpack.c.bf16 %v12095_v17, %v12094_v49  ;;  %v12001_v18 = vld [vmem:[%s17178_s3 + $0x218] sm:$0xff]   ;;  %v6613_v15 = vshll.u32 %v6476_v11, 16  ;;  %v12096_v17 = vld [vmem:[#allocation2 + $0xc0] sm:$0xff] }
 0x772   : > { %v17827_v4 = vld [vmem:[#allocation13_spill] sm:$0xff] }
 0x773   : > { %7394 = vmatpush1.bf16.msra.mxu1 %v11999_v55  ;;  %v6621_v55 = vrot.slane %v6619_v21, 3  ;;  %v6637_v48 = vshrl.u32 %v6479_v44, 16  ;;  %v6640_v35 = vshll.u32 %v6479_v44, 16  ;;  %v6615_v11 = vrot.slane %v6613_v15, 4 }
 0x774   : > { %7395 = vmatprep.subr.bf16.mxu1 %v17488_v52 }
 0x775   : > { %v6625_v21 = vor.u32 %v6624_v30, %v6621_v55  ;;  %v12097_v55 = vld [vmem:[#allocation2 + $0xd0] sm:$0xff]  ;;  %v6616_v22 = vor.u32 %v6615_v11, %v6612_v56 }
 0x776   : > { %7052 = vmatmul.mubr.bf16.gmra.mrb[212].mxu1 %v6581_v54  ;;  %v5782_v47 = vpop.f32.mrb[108].mxu1  ;;  %v6478_v30 = vpack.c.bf16 %v12097_v55, %v12096_v17 }
 0x777   : > { %7059 = vmatprep.mubr.bf16.mxu1 %v6608_v42  ;;  %7396 = vmatpush1.bf16.msra.mxu1 %v12000_v6  ;;  %v15383_v54 = vadd.f32 %v5782_v47, %v17827_v4  ;;  %v5784_v45 = vpop.f32.mrb[109].mxu1  ;;  %v12002_v6 = vld [vmem:[%s17178_s3 + $0x220] sm:$0xff]   ;;  %v6626_v44 = vsel %vm5878_vm2, %v6607_v31, %v6625_v21  ;;  %v6642_v47 = vrot.slane %v6640_v35, 4  ;;  %v12098_v4 = vld [vmem:[#allocation2 + $0xe8] sm:$0xff]  ;;  %v6617_v56 = vsel %vm5878_vm2, %v6598_v50, %v6616_v22 }
 0x778   : > { %7397 = vmatprep.subr.bf16.mxu1 %v17488_v52  ;;  %v5785_v3 = vpop.f32.mrb[110].mxu1  ;;  %v12099_v45 = vld [vmem:[#allocation2 + $0xf8] sm:$0xff]  ;;  %v6628_v15 = vshrl.u32 %v6478_v30, 16 }
 0x779   : > { %17828 = vst [vmem:[#allocation72_spill] sm:$0xff] %v15383_v54  ;;  %v15389_v42 = vadd.f32 %v5785_v3, %v14794_v29  ;;  %v5787_v49 = vpop.f32.mrb[111].mxu1  ;;  %v6481_v54 = vpack.c.bf16 %v12099_v45, %v12098_v4  ;;  %v12003_v29 = vld [vmem:[%s17178_s3 + $0x228] sm:$0xff]   ;;  %v6631_v3 = vshll.u32 %v6478_v30, 16  ;;  %v12100_v30 = vld [vmem:[#allocation2 + $0xe0] sm:$0xff] }
 0x77b   : > { %7398 = vmatpush1.bf16.msra.mxu1 %v12001_v18  ;;  %v6639_v18 = vrot.slane %v6637_v48, 3  ;;  %v6655_v35 = vshrl.u32 %v6481_v54, 16  ;;  %v6633_v11 = vrot.slane %v6631_v3, 4 }
 0x77c   : > { %7399 = vmatprep.subr.bf16.mxu1 %v17488_v52 }
 0x77d   : > { %v6643_v48 = vor.u32 %v6642_v47, %v6639_v18  ;;  %v12101_v18 = vld [vmem:[#allocation2 + $0xf0] sm:$0xff]  ;;  %v6657_v4 = vrot.slane %v6655_v35, 3 }
 0x77e   : > { %7060 = vmatmul.mubr.bf16.gmra.mrb[216].mxu1 %v6599_v12  ;;  %v5790_v39 = vpop.f32.mrb[112].mxu1  ;;  %v6658_v12 = vshll.u32 %v6481_v54, 16  ;;  %v6480_v47 = vpack.c.bf16 %v12101_v18, %v12100_v30 }
 0x77f   : > { %7067 = vmatprep.mubr.bf16.mxu1 %v6626_v44  ;;  %7400 = vmatpush1.bf16.msra.mxu1 %v12002_v6  ;;  %v15399_v49 = vadd.f32 %v5790_v39, %v14846_v41  ;;  %v5792_v31 = vpop.f32.mrb[113].mxu1  ;;  %v12004_v6 = vld [vmem:[%s17178_s3 + $0x230] sm:$0xff]   ;;  %v6630_v41 = vrot.slane %v6628_v15, 3  ;;  %v6644_v54 = vsel %vm5878_vm2, %v6625_v21, %v6643_v48  ;;  %v12103_v39 = vld [vmem:[#allocation2 + $0x118] sm:$0xff] }
 0x780   : > { %7401 = vmatprep.subr.bf16.mxu1 %v17488_v52  ;;  %v5793_v17 = vpop.f32.mrb[114].mxu1  ;;  %v6660_v45 = vrot.slane %v6658_v12, 4  ;;  %v6646_v3 = vshrl.u32 %v6480_v47, 16 }
 0x781   : > { %v15405_v55 = vadd.f32 %v5793_v17, %v14866_v14  ;;  %v5795_v44 = vpop.f32.mrb[115].mxu1  ;;  %v12005_v14 = vld [vmem:[%s17178_s3 + $0x238] sm:$0xff]   ;;  %v6634_v15 = vor.u32 %v6633_v11, %v6630_v41  ;;  %v6649_v17 = vshll.u32 %v6480_v47, 16  ;;  %v12104_v47 = vld [vmem:[#allocation2 + $0x100] sm:$0xff] }
 0x782   : > { %v6661_v35 = vor.u32 %v6660_v45, %v6657_v4  ;;  %v12105_v4 = vld [vmem:[#allocation2 + $0x110] sm:$0xff] }
 0x783   : > { %7402 = vmatpush1.bf16.msra.mxu1 %v12003_v29  ;;  %v12102_v29 = vld [vmem:[#allocation2 + $0x108] sm:$0xff]  ;;  %v6635_v41 = vsel %vm5878_vm2, %v6616_v22, %v6634_v15  ;;  %v6651_v11 = vrot.slane %v6649_v17, 4  ;;  %v6482_v45 = vpack.c.bf16 %v12105_v4, %v12104_v47 }
 0x784   : > { %7403 = vmatprep.subr.bf16.mxu1 %v17488_v52  ;;  %v6483_v31 = vpack.c.bf16 %v12103_v39, %v12102_v29  ;;  %v6662_v29 = vsel %vm5878_vm2, %v6643_v48, %v6661_v35 }
 0x785   : > { %v6664_v17 = vshrl.u32 %v6482_v45, 16 }
 0x786   : > { %7068 = vmatmul.mubr.bf16.gmra.mrb[220].mxu1 %v6617_v56  ;;  %v5798_v50 = vpop.f32.mrb[116].mxu1  ;;  %v6673_v12 = vshrl.u32 %v6483_v31, 16  ;;  %v6676_v56 = vshll.u32 %v6483_v31, 16 }
 0x787   : > { %7075 = vmatprep.mubr.bf16.mxu1 %v6644_v54  ;;  %7404 = vmatpush1.bf16.msra.mxu1 %v12004_v6  ;;  %v15415_v44 = vadd.f32 %v5798_v50, %v14924_v34  ;;  %v5800_v21 = vpop.f32.mrb[117].mxu1  ;;  %v12006_v6 = vld [vmem:[%s17178_s3 + $0x240] sm:$0xff]   ;;  %v6648_v34 = vrot.slane %v6646_v3, 3  ;;  %v12107_v50 = vld [vmem:[#allocation2 + $0x138] sm:$0xff] }
 0x788   : > { %7405 = vmatprep.subr.bf16.mxu1 %v17488_v52  ;;  %v5801_v30 = vpop.f32.mrb[118].mxu1  ;;  %v6675_v39 = vrot.slane %v6673_v12, 3  ;;  %v6678_v31 = vrot.slane %v6676_v56, 4 }
 0x789   : > { %v15421_v18 = vadd.f32 %v5801_v30, %v14944_v10  ;;  %v5803_v54 = vpop.f32.mrb[119].mxu1  ;;  %v12007_v10 = vld [vmem:[%s17178_s3 + $0x248] sm:$0xff]   ;;  %v6652_v3 = vor.u32 %v6651_v11, %v6648_v34  ;;  %v6667_v30 = vshll.u32 %v6482_v45, 16  ;;  %v12108_v45 = vld [vmem:[#allocation2 + $0x120] sm:$0xff] }
 0x78a   : > { %v6679_v12 = vor.u32 %v6678_v31, %v6675_v39  ;;  %v12109_v39 = vld [vmem:[#allocation2 + $0x130] sm:$0xff] }
 0x78b   : > { %7406 = vmatpush1.bf16.msra.mxu1 %v12005_v14  ;;  %v12106_v14 = vld [vmem:[#allocation2 + $0x128] sm:$0xff]  ;;  %v6653_v34 = vsel %vm5878_vm2, %v6634_v15, %v6652_v3  ;;  %v6669_v11 = vrot.slane %v6667_v30, 4  ;;  %v6484_v31 = vpack.c.bf16 %v12109_v39, %v12108_v45 }
 0x78c   : > { %7407 = vmatprep.subr.bf16.mxu1 %v17488_v52  ;;  %v6485_v21 = vpack.c.bf16 %v12107_v50, %v12106_v14  ;;  %v6680_v14 = vsel %vm5878_vm2, %v6661_v35, %v6679_v12 }
 0x78d   : > { %v6682_v30 = vshrl.u32 %v6484_v31, 16 }
 0x78e   : > { %7076 = vmatmul.mubr.bf16.gmra.mrb[224].mxu1 %v6635_v41  ;;  %v5806_v22 = vpop.f32.mrb[120].mxu1  ;;  %v6691_v56 = vshrl.u32 %v6485_v21, 16  ;;  %v6694_v41 = vshll.u32 %v6485_v21, 16 }
 0x78f   : > { %7083 = vmatprep.mubr.bf16.mxu1 %v6662_v29  ;;  %7408 = vmatpush1.bf16.msra.mxu1 %v12006_v6  ;;  %v15431_v54 = vadd.f32 %v5806_v22, %v15001_v60  ;;  %v5808_v48 = vpop.f32.mrb[121].mxu1  ;;  %v12008_v6 = vld [vmem:[%s17178_s3 + $0x250] sm:$0xff]   ;;  %v6666_v60 = vrot.slane %v6664_v17, 3  ;;  %v12111_v22 = vld [vmem:[#allocation2 + $0x158] sm:$0xff] }
 0x790   : > { %7409 = vmatprep.subr.bf16.mxu1 %v17488_v52  ;;  %v5809_v47 = vpop.f32.mrb[122].mxu1  ;;  %v6693_v50 = vrot.slane %v6691_v56, 3  ;;  %v6696_v21 = vrot.slane %v6694_v41, 4 }
 0x791   : > { %v15437_v4 = vadd.f32 %v5809_v47, %v15017_v28  ;;  %v5811_v29 = vpop.f32.mrb[123].mxu1  ;;  %v12009_v28 = vld [vmem:[%s17178_s3 + $0x258] sm:$0xff]   ;;  %v6670_v17 = vor.u32 %v6669_v11, %v6666_v60  ;;  %v6685_v47 = vshll.u32 %v6484_v31, 16  ;;  %v12112_v31 = vld [vmem:[#allocation2 + $0x140] sm:$0xff] }
 0x792   : > { %v6697_v56 = vor.u32 %v6696_v21, %v6693_v50  ;;  %v12113_v50 = vld [vmem:[#allocation2 + $0x150] sm:$0xff] }
 0x793   : > { %7410 = vmatpush1.bf16.msra.mxu1 %v12007_v10  ;;  %v12110_v10 = vld [vmem:[#allocation2 + $0x148] sm:$0xff]  ;;  %v6671_v60 = vsel %vm5878_vm2, %v6652_v3, %v6670_v17  ;;  %v6687_v11 = vrot.slane %v6685_v47, 4  ;;  %v6486_v21 = vpack.c.bf16 %v12113_v50, %v12112_v31 }
 0x794   : > { %7411 = vmatprep.subr.bf16.mxu1 %v17488_v52  ;;  %v6487_v48 = vpack.c.bf16 %v12111_v22, %v12110_v10  ;;  %v6698_v10 = vsel %vm5878_vm2, %v6679_v12, %v6697_v56 }
 0x795   : > { %v6700_v47 = vshrl.u32 %v6486_v21, 16 }
 0x796   : > { %7084 = vmatmul.mubr.bf16.gmra.mrb[228].mxu1 %v6653_v34  ;;  %v5814_v15 = vpop.f32.mrb[124].mxu1  ;;  %v6709_v41 = vshrl.u32 %v6487_v48, 16  ;;  %v6712_v34 = vshll.u32 %v6487_v48, 16 }
 0x797   : > { %7091 = vmatprep.mubr.bf16.mxu1 %v6680_v14  ;;  %7412 = vmatpush1.bf16.msra.mxu1 %v12008_v6  ;;  %v15447_v29 = vadd.f32 %v5814_v15, %v15047_v40  ;;  %v5816_v35 = vpop.f32.mrb[125].mxu1  ;;  %v12010_v6 = vld [vmem:[%s17178_s3 + $0x260] sm:$0xff]   ;;  %v6684_v40 = vrot.slane %v6682_v30, 3  ;;  %v12115_v15 = vld [vmem:[#allocation2 + $0x178] sm:$0xff] }
 0x798   : > { %7413 = vmatprep.subr.bf16.mxu1 %v17488_v52  ;;  %v5817_v45 = vpop.f32.mrb[126].mxu1  ;;  %v6711_v22 = vrot.slane %v6709_v41, 3  ;;  %v6714_v48 = vrot.slane %v6712_v34, 4 }
 0x799   : > { %v15453_v39 = vadd.f32 %v5817_v45, %v15062_v46  ;;  %v5819_v14 = vpop.f32.mrb[127].mxu1  ;;  %v12011_v46 = vld [vmem:[%s17178_s3 + $0x268] sm:$0xff]   ;;  %v6688_v30 = vor.u32 %v6687_v11, %v6684_v40  ;;  %v6703_v45 = vshll.u32 %v6486_v21, 16  ;;  %v12116_v21 = vld [vmem:[#allocation2 + $0x160] sm:$0xff] }
 0x79a   : > { %v6715_v41 = vor.u32 %v6714_v48, %v6711_v22  ;;  %v12117_v22 = vld [vmem:[#allocation2 + $0x170] sm:$0xff] }
 0x79b   : > { %7414 = vmatpush1.bf16.msra.mxu1 %v12009_v28  ;;  %v12114_v28 = vld [vmem:[#allocation2 + $0x168] sm:$0xff]  ;;  %v6689_v40 = vsel %vm5878_vm2, %v6670_v17, %v6688_v30  ;;  %v6705_v11 = vrot.slane %v6703_v45, 4  ;;  %v6488_v48 = vpack.c.bf16 %v12117_v22, %v12116_v21 }
 0x79c   : > { %7415 = vmatprep.subr.bf16.mxu1 %v17488_v52  ;;  %v6489_v35 = vpack.c.bf16 %v12115_v15, %v12114_v28  ;;  %v6716_v28 = vsel %vm5878_vm2, %v6697_v56, %v6715_v41 }
 0x79d   : > { %v6718_v45 = vshrl.u32 %v6488_v48, 16 }
 0x79e   : > { %7092 = vmatmul.mubr.bf16.gmra.mrb[232].mxu1 %v6671_v60  ;;  %v5822_v3 = vpop.f32.mrb[128].mxu1  ;;  %v6727_v34 = vshrl.u32 %v6489_v35, 16  ;;  %v6730_v60 = vshll.u32 %v6489_v35, 16 }
 0x79f   : > { %7099 = vmatprep.mubr.bf16.mxu1 %v6698_v10  ;;  %7416 = vmatpush1.bf16.msra.mxu1 %v12010_v6  ;;  %v15463_v14 = vadd.f32 %v5822_v3, %v15105_v8  ;;  %v5824_v12 = vpop.f32.mrb[129].mxu1  ;;  %v12012_v6 = vld [vmem:[%s17178_s3 + $0x270] sm:$0xff]   ;;  %v6702_v8 = vrot.slane %v6700_v47, 3  ;;  %v12119_v3 = vld [vmem:[#allocation2 + $0x198] sm:$0xff] }
 0x7a0   : > { %7417 = vmatprep.subr.bf16.mxu1 %v17488_v52  ;;  %v5825_v31 = vpop.f32.mrb[130].mxu1  ;;  %v6729_v15 = vrot.slane %v6727_v34, 3  ;;  %v6732_v35 = vrot.slane %v6730_v60, 4 }
 0x7a1   : > { %v15469_v50 = vadd.f32 %v5825_v31, %v15123_v2  ;;  %v5827_v10 = vpop.f32.mrb[131].mxu1  ;;  %v12013_v2 = vld [vmem:[%s17178_s3 + $0x278] sm:$0xff]   ;;  %v6706_v47 = vor.u32 %v6705_v11, %v6702_v8  ;;  %v6721_v31 = vshll.u32 %v6488_v48, 16  ;;  %v6720_v8 = vrot.slane %v6718_v45, 3  ;;  %v12120_v48 = vld [vmem:[#allocation2 + $0x180] sm:$0xff] }
 0x7a2   : > { %v6733_v34 = vor.u32 %v6732_v35, %v6729_v15 }
 0x7a3   : > { %7418 = vmatpush1.bf16.msra.mxu1 %v12011_v46  ;;  %v12118_v46 = vld [vmem:[#allocation2 + $0x188] sm:$0xff]  ;;  %v6723_v11 = vrot.slane %v6721_v31, 4 }
 0x7a4   : > { %7419 = vmatprep.subr.bf16.mxu1 %v17488_v52  ;;  %v6491_v12 = vpack.c.bf16 %v12119_v3, %v12118_v46  ;;  %v12121_v46 = vld [vmem:[#allocation2 + $0x190] sm:$0xff]  ;;  %v6734_v15 = vsel %vm5878_vm2, %v6715_v41, %v6733_v34 }
 0x7a6   : > { %7100 = vmatmul.mubr.bf16.gmra.mrb[236].mxu1 %v6689_v40  ;;  %v5830_v17 = vpop.f32.mrb[132].mxu1  ;;  %v6745_v60 = vshrl.u32 %v6491_v12, 16  ;;  %v6748_v40 = vshll.u32 %v6491_v12, 16  ;;  %v12122_v12 = vld [vmem:[#allocation2 + $0x1a8] sm:$0xff] }
 0x7a7   : > { %7107 = vmatprep.mubr.bf16.mxu1 %v6716_v28  ;;  %7420 = vmatpush1.bf16.msra.mxu1 %v12012_v6  ;;  %v15479_v10 = vadd.f32 %v5830_v17, %v15189_v7  ;;  %v5832_v56 = vpop.f32.mrb[133].mxu1  ;;  %v6707_v28 = vsel %vm5878_vm2, %v6688_v30, %v6706_v47  ;;  %v6490_v7 = vpack.c.bf16 %v12121_v46, %v12120_v48 }
 0x7a8   : > { %7421 = vmatprep.subr.bf16.mxu1 %v17488_v52  ;;  %v5833_v21 = vpop.f32.mrb[134].mxu1  ;;  %v6747_v35 = vrot.slane %v6745_v60, 3  ;;  %v6750_v3 = vrot.slane %v6748_v40, 4  ;;  %v6724_v56 = vor.u32 %v6723_v11, %v6720_v8  ;;  %v12125_v8 = vld [vmem:[#allocation2 + $0x1b0] sm:$0xff] }
 0x7a9   : > { %v15482_v6 = vadd.f32 %v5833_v21, %v15205_v1  ;;  %v5835_v22 = vpop.f32.mrb[135].mxu1  ;;  %v6736_v21 = vshrl.u32 %v6490_v7, 16 }
 0x7aa   : > { %v6739_v22 = vshll.u32 %v6490_v7, 16  ;;  %v6751_v31 = vor.u32 %v6750_v3, %v6747_v35  ;;  %v6725_v40 = vsel %vm5878_vm2, %v6706_v47, %v6724_v56  ;;  %v12126_v35 = vld [vmem:[#allocation2 + $0x1c8] sm:$0xff]  ;;  %v12127_v3 = vld [vmem:[#allocation2 + $0x1d8] sm:$0xff] }
 0x7ab   : > { %7422 = vmatpush1.bf16.msra.mxu1 %v12013_v2  ;;  %17829 = vst [vmem:[#allocation76_spill] sm:$0xff] %v15482_v6  ;;  %v12123_v2 = vld [vmem:[#allocation2 + $0x1b8] sm:$0xff]  ;;  %v6738_v46 = vrot.slane %v6736_v21, 3 }
 0x7ac   : > { %8178 = vmatprep.subr.bf16.mxu1 %v17488_v52  ;;  %v6493_v17 = vpack.c.bf16 %v12123_v2, %v12122_v12  ;;  %v12124_v12 = vld [vmem:[#allocation2 + $0x1a0] sm:$0xff] }
 0x7ad   : > { %v6492_v11 = vpack.c.bf16 %v12125_v8, %v12124_v12  ;;  %v12128_v8 = vld [vmem:[#allocation2 + $0x1c0] sm:$0xff] }
 0x7ae   : > { %7108 = vmatmul.mubr.bf16.gmra.mrb[240].mxu1 %v6707_v28  ;;  %v6215_v1 = vpop.f32.mrb[136].mxu1  ;;  %v6763_v6 = vshrl.u32 %v6493_v17, 16  ;;  %v6766_v48 = vshll.u32 %v6493_v17, 16  ;;  %v6495_v17 = vpack.c.bf16 %v12127_v3, %v12126_v35 }
 0x7af   : > { %7115 = vmatprep.mubr.bf16.mxu1 %v6734_v15  ;;  %v15488_v30 = vadd.f32 %v6215_v1, %v15257_v61  ;;  %v6217_v45 = vpop.f32.mrb[137].mxu1  ;;  %v6741_v15 = vrot.slane %v6739_v22, 4  ;;  %v6752_v61 = vsel %vm5878_vm2, %v6733_v34, %v6751_v31 }
 0x7b0   : > { %v6218_v28 = vpop.f32.mrb[138].mxu1  ;;  %v6765_v7 = vrot.slane %v6763_v6, 3  ;;  %v6768_v2 = vrot.slane %v6766_v48, 4  ;;  %v6754_v45 = vshrl.u32 %v6492_v11, 16  ;;  %v6784_v12 = vshll.u32 %v6495_v17, 16 }
 0x7b1   : > { %v15491_v41 = vadd.f32 %v6218_v28, %v15261_v53  ;;  %v6220_v60 = vpop.f32.mrb[139].mxu1  ;;  %v6742_v53 = vor.u32 %v6741_v15, %v6738_v46  ;;  %v6757_v28 = vshll.u32 %v6492_v11, 16 }
 0x7b2   : > { %v6769_v22 = vor.u32 %v6768_v2, %v6765_v7  ;;  %v6781_v60 = vshrl.u32 %v6495_v17, 16  ;;  %v6756_v46 = vrot.slane %v6754_v45, 3  ;;  %v6786_v3 = vrot.slane %v6784_v12, 4  ;;  %v12130_v7 = vld [vmem:[#allocation2 + $0x1e8] sm:$0xff]  ;;  %v12131_v2 = vld [vmem:[#allocation2 + $0x1f8] sm:$0xff]  ;;  %v12132_v12 = vld [vmem:[#allocation2 + $0x1e0] sm:$0xff] }
 0x7b3   : > { %v6743_v48 = vsel %vm5878_vm2, %v6724_v56, %v6742_v53  ;;  %v6759_v15 = vrot.slane %v6757_v28, 4  ;;  %v6497_v17 = vpack.c.bf16 %v12131_v2, %v12130_v7 }
 0x7b4   : > { %v6783_v11 = vrot.slane %v6781_v60, 3 }
 0x7b5   : > { %v6799_v45 = vshrl.u32 %v6497_v17, 16  ;;  %v6802_v28 = vshll.u32 %v6497_v17, 16 }
 0x7b6   : > { %7116 = vmatmul.mubr.bf16.gmra.mrb[244].mxu1 %v6725_v40  ;;  %v6223_v1 = vpop.f32.mrb[140].mxu1 }
 0x7b7   : > { %7123 = vmatprep.mubr.bf16.mxu1 %v6752_v61  ;;  %v15496_v47 = vadd.f32 %v6223_v1, %v15272_v0  ;;  %v6225_v21 = vpop.f32.mrb[141].mxu1  ;;  %v12129_v61 = vld [vmem:[#allocation2 + $0x1d0] sm:$0xff]  ;;  %v6770_v0 = vsel %vm5878_vm2, %v6751_v31, %v6769_v22  ;;  %v6804_v2 = vrot.slane %v6802_v28, 4 }
 0x7b8   : > { %v6226_v40 = vpop.f32.mrb[142].mxu1  ;;  %v6494_v35 = vpack.c.bf16 %v12129_v61, %v12128_v8  ;;  %v6787_v8 = vor.u32 %v6786_v3, %v6783_v11  ;;  %v12133_v61 = vld [vmem:[#allocation2 + $0x1f0] sm:$0xff]  ;;  %v12134_v11 = vld [vmem:[#allocation2 + $0x208] sm:$0xff]  ;;  %v12135_v3 = vld [vmem:[#allocation2 + $0x218] sm:$0xff] }
 0x7b9   : > { %v15499_v34 = vadd.f32 %v6226_v40, %v15275_v26  ;;  %v6228_v6 = vpop.f32.mrb[143].mxu1  ;;  %v6760_v26 = vor.u32 %v6759_v15, %v6756_v46  ;;  %v6496_v7 = vpack.c.bf16 %v12133_v61, %v12132_v12  ;;  %v6499_v17 = vpack.c.bf16 %v12135_v3, %v12134_v11 }
 0x7ba   : > { %v6772_v21 = vshrl.u32 %v6494_v35, 16  ;;  %v6775_v40 = vshll.u32 %v6494_v35, 16  ;;  %v6801_v35 = vrot.slane %v6799_v45, 3 }
 0x7bc   : > { %v6774_v46 = vrot.slane %v6772_v21, 3  ;;  %v6777_v15 = vrot.slane %v6775_v40, 4  ;;  %v6817_v21 = vshrl.u32 %v6499_v17, 16  ;;  %v6820_v40 = vshll.u32 %v6499_v17, 16 }
 0x7be   : > { %7124 = vmatmul.mubr.bf16.gmra.mrb[248].mxu1 %v6743_v48  ;;  %v6231_v1 = vpop.f32.mrb[144].mxu1  ;;  %v6822_v3 = vrot.slane %v6820_v40, 4 }
 0x7bf   : > { %7131 = vmatprep.mubr.bf16.mxu1 %v6770_v0  ;;  %v15504_v56 = vadd.f32 %v6231_v1, %v15281_v57  ;;  %v6233_v6 = vpop.f32.mrb[145].mxu1  ;;  %v6761_v0 = vsel %vm5878_vm2, %v6742_v53, %v6760_v26  ;;  %v6788_v57 = vsel %vm5878_vm2, %v6769_v22, %v6787_v8  ;;  %v6778_v1 = vor.u32 %v6777_v15, %v6774_v46  ;;  %v12136_v46 = vld [vmem:[#allocation2 + $0x200] sm:$0xff]  ;;  %v12137_v15 = vld [vmem:[#allocation2 + $0x210] sm:$0xff] }
 0x7c0   : > { %v6234_v48 = vpop.f32.mrb[146].mxu1  ;;  %v6790_v6 = vshrl.u32 %v6496_v7, 16  ;;  %v6805_v53 = vor.u32 %v6804_v2, %v6801_v35  ;;  %v6498_v11 = vpack.c.bf16 %v12137_v15, %v12136_v46  ;;  %v12138_v35 = vld [vmem:[#allocation2 + $0x228] sm:$0xff]  ;;  %v12139_v2 = vld [vmem:[#allocation2 + $0x238] sm:$0xff] }
 0x7c1   : > { %v15507_v31 = vadd.f32 %v6234_v48, %v15284_v43  ;;  %v6236_v60 = vpop.f32.mrb[147].mxu1  ;;  %v6793_v48 = vshll.u32 %v6496_v7, 16  ;;  %v6779_v28 = vsel %vm5878_vm2, %v6760_v26, %v6778_v1  ;;  %v6819_v7 = vrot.slane %v6817_v21, 3  ;;  %v15522_v15 = vld [vmem:[#allocation2 + $0x258] sm:$0xff] }
 0x7c2   : > { %v6501_v17 = vpack.c.bf16 %v12139_v2, %v12138_v35  ;;  %17830 = vst [vmem:[#allocation15_spill] sm:$0xff] %v15522_v15  ;;  %v12142_v2 = vld [vmem:[#allocation2 + $0x248] sm:$0xff] }
 0x7c4   : > { %v6838_v46 = vshll.u32 %v6501_v17, 16 }
 0x7c6   : > { %7132 = vmatmul.mubr.bf16.gmra.mrb[252].mxu1 %v6761_v0  ;;  %v6792_v0 = vrot.slane %v6790_v6, 3 }
 0x7c7   : > { %7139 = vmatprep.mubr.bf16.mxu1 %v6788_v57  ;;  %v6795_v57 = vrot.slane %v6793_v48, 4  ;;  %v6823_v48 = vor.u32 %v6822_v3, %v6819_v7  ;;  %v6840_v3 = vrot.slane %v6838_v46, 4 }
 0x7c8   : > { %v6239_v43 = vpop.f32.mrb[148].mxu1 }
 0x7c9   : > { %v15512_v60 = vadd.f32 %v6239_v43, %v15290_v23  ;;  %v6241_v12 = vpop.f32.mrb[149].mxu1  ;;  %v6806_v23 = vsel %vm5878_vm2, %v6787_v8, %v6805_v53 }
 0x7ca   : > { %v6242_v61 = vpop.f32.mrb[150].mxu1  ;;  %v6808_v12 = vshrl.u32 %v6498_v11, 16 }
 0x7cb   : > { %v15515_v22 = vadd.f32 %v6242_v61, %v15293_v51  ;;  %v6244_v45 = vpop.f32.mrb[151].mxu1  ;;  %v6796_v51 = vor.u32 %v6795_v57, %v6792_v0  ;;  %v6811_v61 = vshll.u32 %v6498_v11, 16  ;;  %v12140_v57 = vld [vmem:[#allocation2 + $0x220] sm:$0xff]  ;;  %v12141_v11 = vld [vmem:[#allocation2 + $0x230] sm:$0xff] }
 0x7cc   : > { %v6835_v45 = vshrl.u32 %v6501_v17, 16  ;;  %v6500_v35 = vpack.c.bf16 %v12141_v11, %v12140_v57  ;;  %v6503_v17 = vpack.c.bf16 %v15522_v15, %v12142_v2 }
 0x7cd   : > { %v6797_v40 = vsel %vm5878_vm2, %v6778_v1, %v6796_v51  ;;  %v6813_v0 = vrot.slane %v6811_v61, 4 }
 0x7ce   : > { %7140 = vmatmul.mubr.bf16.gmra.mrb[0].mxu1 %v6779_v28  ;;  %v6837_v7 = vrot.slane %v6835_v45, 3  ;;  %v6856_v57 = vshll.u32 %v6503_v17, 16  ;;  %v6467_v45 = vld [vmem:[#allocation2 + $0x268] sm:$0x7f] }
 0x7cf   : > { %7147 = vmatprep.mubr.bf16.mxu1 %v6806_v23  ;;  %v6810_v23 = vrot.slane %v6808_v12, 3 }
 0x7d0   : > { %v6841_v61 = vor.u32 %v6840_v3, %v6837_v7  ;;  %v6858_v2 = vrot.slane %v6856_v57, 4 }
 0x7d1   : > { %v6247_v43 = vpop.f32.mrb[152].mxu1 }
 0x7d2   : > { %v15520_v26 = vadd.f32 %v6247_v43, %v15298_v25  ;;  %v6249_v6 = vpop.f32.mrb[153].mxu1  ;;  %v6824_v25 = vsel %vm5878_vm2, %v6805_v53, %v6823_v48  ;;  %v6842_v7 = vsel %vm5878_vm2, %v6823_v48, %v6841_v61 }
 0x7d3   : > { %v6250_v28 = vpop.f32.mrb[154].mxu1  ;;  %v6826_v6 = vshrl.u32 %v6500_v35, 16 }
 0x7d4   : > { %v15525_v8 = vadd.f32 %v6250_v28, %v15301_v63  ;;  %v6252_v21 = vpop.f32.mrb[155].mxu1  ;;  %v6814_v63 = vor.u32 %v6813_v0, %v6810_v23  ;;  %v6829_v28 = vshll.u32 %v6500_v35, 16  ;;  %v12143_v35 = vld [vmem:[#allocation2 + $0x240] sm:$0xff] }
 0x7d5   : > { %v6853_v21 = vshrl.u32 %v6503_v17, 16  ;;  %v6828_v23 = vrot.slane %v6826_v6, 3  ;;  %v6505_v17 = vpack.c.bf16 %v6467_v45, %v6467_v45 }
 0x7d6   : > { %7148 = vmatmul.mubr.bf16.gmra.mrb[4].mxu1 %v6797_v40  ;;  %v15533_v40 = vld [vmem:[#allocation2 + $0x250] sm:$0xff]  ;;  %v6831_v0 = vrot.slane %v6829_v28, 4 }
 0x7d7   : > { %7155 = vmatprep.mubr.bf16.mxu1 %v6824_v25  ;;  %v6815_v25 = vsel %vm5878_vm2, %v6796_v51, %v6814_v63  ;;  %v6855_v3 = vrot.slane %v6853_v21, 3  ;;  %v6871_v28 = vshrl.u32 %v6505_v17, 16 }
 0x7d9   : > { %v6255_v43 = vpop.f32.mrb[156].mxu1  ;;  %v6859_v6 = vor.u32 %v6858_v2, %v6855_v3 }
 0x7da   : > { %v15531_v1 = vadd.f32 %v6255_v43, %v15306_v20  ;;  %v6257_v12 = vpop.f32.mrb[157].mxu1  ;;  %v6502_v20 = vpack.c.bf16 %v15533_v40, %v12143_v35 }
 0x7db   : > { %v6258_v53 = vpop.f32.mrb[158].mxu1  ;;  %v6832_v12 = vor.u32 %v6831_v0, %v6828_v23  ;;  %v6860_v0 = vsel %vm5878_vm2, %v6841_v61, %v6859_v6 }
 0x7dc   : > { %v15536_v46 = vadd.f32 %v6258_v53, %v15309_v38  ;;  %v6260_v11 = vpop.f32.mrb[159].mxu1  ;;  %v6844_v15 = vshrl.u32 %v6502_v20, 16  ;;  %v6847_v38 = vshll.u32 %v6502_v20, 16 }
 0x7dd   : > { %v6874_v11 = vshll.u32 %v6505_v17, 16  ;;  %v6833_v21 = vsel %vm5878_vm2, %v6814_v63, %v6832_v12 }
 0x7de   : > { %17831 = vst [vmem:[#allocation77_spill] sm:$0xff] %v15536_v46  ;;  %7156 = vmatmul.mubr.bf16.gmra.mrb[8].mxu1 %v6815_v25  ;;  %v6466_v46 = vld [vmem:[#allocation2 + $0x260] sm:$0x7f]  ;;  %v6846_v57 = vrot.slane %v6844_v15, 3  ;;  %v6849_v45 = vrot.slane %v6847_v38, 4 }
 0x7df   : > { %7163 = vmatprep.mubr.bf16.mxu1 %v6842_v7  ;;  %v6504_v23 = vpack.c.bf16 %v6466_v46, %v6466_v46  ;;  %v6876_v20 = vrot.slane %v6874_v11, 4 }
 0x7e0   : > { %v6850_v3 = vor.u32 %v6849_v45, %v6846_v57 }
 0x7e1   : > { %v6263_v43 = vpop.f32.mrb[160].mxu1  ;;  %v6862_v2 = vshrl.u32 %v6504_v23, 16  ;;  %v6865_v17 = vshll.u32 %v6504_v23, 16 }
 0x7e2   : > { %v15542_v53 = vadd.f32 %v6263_v43, %v15314_v9  ;;  %v6265_v51 = vpop.f32.mrb[161].mxu1  ;;  %v6873_v9 = vrot.slane %v6871_v28, 3  ;;  %v6851_v46 = vsel %vm5878_vm2, %v6832_v12, %v6850_v3  ;;  %v7227_v12 = vpack.c.bf16 %v15323_v27, %v15321_v13  ;;  %v17832_v13 = vld [vmem:[#allocation45_spill] sm:$0xff]  ;;  %v17833_v27 = vld [vmem:[#allocation46_spill] sm:$0xff] }
 0x7e3   : > { %v6266_v35 = vpop.f32.mrb[162].mxu1  ;;  %v6864_v61 = vrot.slane %v6862_v2, 3  ;;  %v6867_v38 = vrot.slane %v6865_v17, 4  ;;  %v17834_v2 = vpack.c.bf16 %v17832_v13, %v17833_v27  ;;  %v12019_v27 = vld [vmem:[%s17178_s3 + $0x2a8] sm:$0xff]  }
 0x7e4   : > { %v15545_v25 = vadd.f32 %v6266_v35, %v15319_v5  ;;  %v6268_v48 = vpop.f32.mrb[163].mxu1  ;;  %v6877_v51 = vor.u32 %v6876_v20, %v6873_v9  ;;  %v12014_v20 = vld [vmem:[%s17178_s3 + $0x280] sm:$0xff]  }
 0x7e5   : > { %v6868_v48 = vor.u32 %v6867_v38, %v6864_v61  ;;  %v17838_v38 = vld [vmem:[#allocation84_spill] sm:$0xff] }
 0x7e6   : > { %7164 = vmatmul.mubr.bf16.gmra.mrb[12].mxu1 %v6833_v21  ;;  %v6878_v28 = vsel %vm5878_vm2, %v6859_v6, %v6877_v51 }
 0x7e7   : > { %7171 = vmatprep.mubr.bf16.mxu1 %v6860_v0  ;;  %v6869_v23 = vsel %vm5878_vm2, %v6850_v3, %v6868_v48  ;;  %v7229_v3 = vpack.c.bf16 %v15336_v19, %v15316_v58  ;;  %v12016_v19 = vld [vmem:[%s17178_s3 + $0x290] sm:$0xff]   ;;  %v17841_v48 = vld [vmem:[#allocation72_spill] sm:$0xff] }
 0x7e9   : > { %v6271_v7 = vpop.f32.mrb[164].mxu1 }
 0x7ea   : > { %v15550_v43 = vadd.f32 %v6271_v7, %v15331_v59  ;;  %v6273_v5 = vpop.f32.mrb[165].mxu1 }
 0x7eb   : > { %v6274_v35 = vpop.f32.mrb[166].mxu1 }
 0x7ec   : > { %v15553_v15 = vadd.f32 %v6274_v35, %v15334_v33  ;;  %v6276_v63 = vpop.f32.mrb[167].mxu1 }
 0x7ed   : > { %v17835_v63 = vld [vmem:[#allocation47_spill] sm:$0xff] }
 0x7ee   : > { %7172 = vmatmul.mubr.bf16.gmra.mrb[16].mxu1 %v6851_v46  ;;  %v17836_v46 = vld [vmem:[#allocation48_spill] sm:$0xff] }
 0x7ef   : > { %7179 = vmatprep.mubr.bf16.mxu1 %v6878_v28  ;;  %v17837_v61 = vpack.c.bf16 %v17835_v63, %v17836_v46  ;;  %v17849_v63 = vld [vmem:[#allocation52_spill] sm:$0xff] }
 0x7f1   : > { %v6279_v11 = vpop.f32.mrb[168].mxu1 }
 0x7f2   : > { %v15558_v59 = vadd.f32 %v6279_v11, %v15343_v62  ;;  %v6281_v21 = vpop.f32.mrb[169].mxu1  ;;  %v12017_v11 = vld [vmem:[%s17178_s3 + $0x298] sm:$0xff]  }
 0x7f3   : > { %v6282_v57 = vpop.f32.mrb[170].mxu1 }
 0x7f4   : > { %v15561_v45 = vadd.f32 %v6282_v57, %v15346_v32  ;;  %v6284_v33 = vpop.f32.mrb[171].mxu1 }
 0x7f6   : > { %7180 = vmatmul.mubr.bf16.gmra.mrb[20].mxu1 %v6869_v23  ;;  %v12018_v23 = vld [vmem:[%s17178_s3 + $0x2a0] sm:$0xff]  }
 0x7f7   : > { %7423 = vmatprep.mubr.bf16.mxu1 %v7227_v12 }
 0x7f9   : > { %v6287_v6 = vpop.f32.mrb[172].mxu1 }
 0x7fa   : > { %v15567_v0 = vadd.f32 %v6287_v6, %v15352_v36  ;;  %v6289_v9 = vpop.f32.mrb[173].mxu1  ;;  %v12015_v36 = vld [vmem:[%s17178_s3 + $0x288] sm:$0xff]  }
 0x7fb   : > { %v6290_v62 = vpop.f32.mrb[174].mxu1  ;;  %v17842_v9 = vld [vmem:[#allocation49_spill] sm:$0xff] }
 0x7fc   : > { %v15573_v32 = vadd.f32 %v6290_v62, %v15358_v37  ;;  %v6292_v7 = vpop.f32.mrb[175].mxu1  ;;  %v17843_v62 = vld [vmem:[#allocation50_spill] sm:$0xff] }
 0x7fd   : > { %v17845_v7 = vld [vmem:[#allocation86_spill] sm:$0xff] }
 0x7fe   : > { %7424 = vmatmul.mubr.bf16.vlgmr.msra.gmra.mrb[24].mxu1 %v17834_v2 }
 0x7ff   : > { %7431 = vmatprep.mubr.bf16.mxu1 %v7229_v3  ;;  %8179 = vmatpush1.bf16.msra.mxu1 %v12014_v20  ;;  %v17844_v20 = vpack.c.bf16 %v17842_v9, %v17843_v62  ;;  %v17846_v3 = vld [vmem:[#allocation87_spill] sm:$0xff]  ;;  %v17857_v62 = vld [vmem:[#allocation90_spill] sm:$0xff] }
 0x800   : > { %8180 = vmatprep.subr.bf16.mxu1 %v17488_v52  ;;  %v17847_v13 = vpack.c.bf16 %v17845_v7, %v17846_v3  ;;  %v12023_v7 = vld [vmem:[%s17178_s3 + $0x2c8] sm:$0xff]  }
 0x801   : > { %v6295_v17 = vpop.f32.mrb[176].mxu1 }
 0x802   : > { %v15585_v37 = vadd.f32 %v6295_v17, %v15367_v24  ;;  %v6297_v5 = vpop.f32.mrb[177].mxu1  ;;  %v17839_v24 = vld [vmem:[#allocation85_spill] sm:$0xff] }
 0x803   : > { %v6298_v51 = vpop.f32.mrb[178].mxu1  ;;  %8181 = vmatpush1.bf16.msra.mxu1 %v12015_v36  ;;  %v17840_v28 = vpack.c.bf16 %v17838_v38, %v17839_v24  ;;  %v12020_v5 = vld [vmem:[%s17178_s3 + $0x2b0] sm:$0xff]   ;;  %v12021_v24 = vld [vmem:[%s17178_s3 + $0x2b8] sm:$0xff]  }
 0x804   : > { %v15591_v58 = vadd.f32 %v6298_v51, %v15373_v16  ;;  %v6300_v35 = vpop.f32.mrb[179].mxu1  ;;  %8182 = vmatprep.subr.bf16.mxu1 %v17488_v52 }
 0x805   : > { %v17848_v35 = vld [vmem:[#allocation51_spill] sm:$0xff] }
 0x806   : > { %7432 = vmatmul.mubr.bf16.gmra.mrb[28].mxu1 %v17837_v61  ;;  %v17850_v46 = vpack.c.bf16 %v17848_v35, %v17849_v63  ;;  %v17851_v61 = vld [vmem:[#allocation89_spill] sm:$0xff] }
 0x807   : > { %7439 = vmatprep.mubr.bf16.mxu1 %v17840_v28  ;;  %8183 = vmatpush1.bf16.msra.mxu1 %v12016_v19  ;;  %v17863_v63 = vld [vmem:[#allocation93_spill] sm:$0xff] }
 0x808   : > { %8184 = vmatprep.subr.bf16.mxu1 %v17488_v52 }
 0x809   : > { %v6303_v16 = vpop.f32.mrb[180].mxu1 }
 0x80a   : > { %v15605_v21 = vadd.f32 %v6303_v16, %v17841_v48  ;;  %v6305_v57 = vpop.f32.mrb[181].mxu1  ;;  %v12022_v48 = vld [vmem:[%s17178_s3 + $0x2c0] sm:$0xff]  }
 0x80b   : > { %v6306_v33 = vpop.f32.mrb[182].mxu1  ;;  %8185 = vmatpush1.bf16.msra.mxu1 %v12017_v11 }
 0x80c   : > { %v15611_v12 = vadd.f32 %v6306_v33, %v15389_v42  ;;  %v6308_v6 = vpop.f32.mrb[183].mxu1  ;;  %8186 = vmatprep.subr.bf16.mxu1 %v17488_v52 }
 0x80d   : > { %v17855_v6 = vld [vmem:[#allocation54_spill] sm:$0xff] }
 0x80e   : > { %7440 = vmatmul.mubr.bf16.gmra.mrb[32].mxu1 %v17844_v20 }
 0x80f   : > { %7447 = vmatprep.mubr.bf16.mxu1 %v17847_v13  ;;  %8187 = vmatpush1.bf16.msra.mxu1 %v12018_v23  ;;  %v17854_v23 = vld [vmem:[#allocation53_spill] sm:$0xff] }
 0x810   : > { %8188 = vmatprep.subr.bf16.mxu1 %v17488_v52  ;;  %v17856_v9 = vpack.c.bf16 %v17854_v23, %v17855_v6  ;;  %v17869_v6 = vld [vmem:[#allocation94_spill] sm:$0xff] }
 0x811   : > { %v6311_v42 = vpop.f32.mrb[184].mxu1 }
 0x812   : > { %v15625_v2 = vadd.f32 %v6311_v42, %v15399_v49  ;;  %v6313_v36 = vpop.f32.mrb[185].mxu1  ;;  %v17852_v49 = vld [vmem:[#allocation88_spill] sm:$0xff]  ;;  %v12024_v42 = vld [vmem:[%s17178_s3 + $0x2d0] sm:$0xff]  }
 0x813   : > { %v6314_v17 = vpop.f32.mrb[186].mxu1  ;;  %8189 = vmatpush1.bf16.msra.mxu1 %v12019_v27  ;;  %v17853_v38 = vpack.c.bf16 %v17851_v61, %v17852_v49  ;;  %v12025_v61 = vld [vmem:[%s17178_s3 + $0x2d8] sm:$0xff]  }
 0x814   : > { %v15631_v51 = vadd.f32 %v6314_v17, %v15405_v55  ;;  %v6316_v19 = vpop.f32.mrb[187].mxu1  ;;  %8190 = vmatprep.subr.bf16.mxu1 %v17488_v52 }
 0x815   : > { %v17861_v19 = vld [vmem:[#allocation56_spill] sm:$0xff] }
 0x816   : > { %7448 = vmatmul.mubr.bf16.gmra.mrb[36].mxu1 %v17850_v46 }
 0x817   : > { %7455 = vmatprep.mubr.bf16.mxu1 %v17853_v38  ;;  %8191 = vmatpush1.bf16.msra.mxu1 %v12020_v5  ;;  %v17860_v5 = vld [vmem:[#allocation55_spill] sm:$0xff] }
 0x818   : > { %8192 = vmatprep.subr.bf16.mxu1 %v17488_v52  ;;  %v17862_v35 = vpack.c.bf16 %v17860_v5, %v17861_v19  ;;  %v17875_v19 = vld [vmem:[#allocation96_spill] sm:$0xff] }
 0x819   : > { %v6319_v55 = vpop.f32.mrb[188].mxu1 }
 0x81a   : > { %v15645_v28 = vadd.f32 %v6319_v55, %v15415_v44  ;;  %v6321_v11 = vpop.f32.mrb[189].mxu1  ;;  %v17858_v44 = vld [vmem:[#allocation91_spill] sm:$0xff]  ;;  %v12026_v55 = vld [vmem:[%s17178_s3 + $0x2e0] sm:$0xff]  }
 0x81b   : > { %v6322_v16 = vpop.f32.mrb[190].mxu1  ;;  %8193 = vmatpush1.bf16.msra.mxu1 %v12021_v24  ;;  %v17859_v20 = vpack.c.bf16 %v17857_v62, %v17858_v44  ;;  %v12027_v62 = vld [vmem:[%s17178_s3 + $0x2e8] sm:$0xff]  }
 0x81c   : > { %v15651_v57 = vadd.f32 %v6322_v16, %v15421_v18  ;;  %v6324_v33 = vpop.f32.mrb[191].mxu1  ;;  %8194 = vmatprep.subr.bf16.mxu1 %v17488_v52 }
 0x81d   : > { %v17867_v33 = vld [vmem:[#allocation58_spill] sm:$0xff] }
 0x81e   : > { %7456 = vmatmul.mubr.bf16.gmra.mrb[40].mxu1 %v17856_v9 }
 0x81f   : > { %7463 = vmatprep.mubr.bf16.mxu1 %v17859_v20  ;;  %8195 = vmatpush1.bf16.msra.mxu1 %v12022_v48  ;;  %v17866_v48 = vld [vmem:[#allocation57_spill] sm:$0xff] }
 0x820   : > { %8196 = vmatprep.subr.bf16.mxu1 %v17488_v52  ;;  %v17868_v23 = vpack.c.bf16 %v17866_v48, %v17867_v33  ;;  %v17882_v33 = vld [vmem:[#allocation98_spill] sm:$0xff] }
 0x821   : > { %v6327_v18 = vpop.f32.mrb[192].mxu1 }
 0x822   : > { %v15665_v3 = vadd.f32 %v6327_v18, %v15431_v54  ;;  %v6329_v13 = vpop.f32.mrb[193].mxu1  ;;  %v17864_v54 = vld [vmem:[#allocation92_spill] sm:$0xff]  ;;  %v12028_v18 = vld [vmem:[%s17178_s3 + $0x2f0] sm:$0xff]  }
 0x823   : > { %v6330_v27 = vpop.f32.mrb[194].mxu1  ;;  %8197 = vmatpush1.bf16.msra.mxu1 %v12023_v7  ;;  %v17865_v46 = vpack.c.bf16 %v17863_v63, %v17864_v54  ;;  %v12029_v63 = vld [vmem:[%s17178_s3 + $0x2f8] sm:$0xff]  }
 0x824   : > { %v15671_v36 = vadd.f32 %v6330_v27, %v15437_v4  ;;  %v6332_v17 = vpop.f32.mrb[195].mxu1  ;;  %8198 = vmatprep.subr.bf16.mxu1 %v17488_v52 }
 0x825   : > { %v17873_v17 = vld [vmem:[#allocation60_spill] sm:$0xff] }
 0x826   : > { %7464 = vmatmul.mubr.bf16.gmra.mrb[44].mxu1 %v17862_v35 }
 0x827   : > { %7471 = vmatprep.mubr.bf16.mxu1 %v17865_v46  ;;  %8199 = vmatpush1.bf16.msra.mxu1 %v12024_v42  ;;  %v17872_v42 = vld [vmem:[#allocation59_spill] sm:$0xff] }
 0x828   : > { %8200 = vmatprep.subr.bf16.mxu1 %v17488_v52  ;;  %v17874_v5 = vpack.c.bf16 %v17872_v42, %v17873_v17  ;;  %v17888_v42 = vld [vmem:[#allocation100_spill] sm:$0xff]  ;;  %v17889_v17 = vld [vmem:[#allocation99_spill] sm:$0xff] }
 0x829   : > { %v6335_v4 = vpop.f32.mrb[196].mxu1 }
 0x82a   : > { %v15685_v49 = vadd.f32 %v6335_v4, %v15447_v29  ;;  %v6337_v38 = vpop.f32.mrb[197].mxu1  ;;  %v17870_v29 = vld [vmem:[#allocation22_spill] sm:$0xff]  ;;  %v17878_v4 = vld [vmem:[#allocation76_spill] sm:$0xff] }
 0x82b   : > { %v6338_v24 = vpop.f32.mrb[198].mxu1  ;;  %8201 = vmatpush1.bf16.msra.mxu1 %v12025_v61  ;;  %v17871_v9 = vpack.c.bf16 %v17869_v6, %v17870_v29 }
 0x82c   : > { %v15691_v11 = vadd.f32 %v6338_v24, %v15453_v39  ;;  %v6340_v16 = vpop.f32.mrb[199].mxu1  ;;  %8202 = vmatprep.subr.bf16.mxu1 %v17488_v52 }
 0x82d   : > { %v17880_v16 = vld [vmem:[#allocation62_spill] sm:$0xff] }
 0x82e   : > { %7472 = vmatmul.mubr.bf16.gmra.mrb[48].mxu1 %v17868_v23  ;;  %v17883_v23 = vld [vmem:[#allocation97_spill] sm:$0xff] }
 0x82f   : > { %7479 = vmatprep.mubr.bf16.mxu1 %v17871_v9  ;;  %8203 = vmatpush1.bf16.msra.mxu1 %v12026_v55  ;;  %v17879_v55 = vld [vmem:[#allocation61_spill] sm:$0xff]  ;;  %v17884_v6 = vpack.c.bf16 %v17882_v33, %v17883_v23 }
 0x830   : > { %8204 = vmatprep.subr.bf16.mxu1 %v17488_v52  ;;  %v17881_v48 = vpack.c.bf16 %v17879_v55, %v17880_v16 }
 0x831   : > { %v6343_v39 = vpop.f32.mrb[200].mxu1 }
 0x832   : > { %v15705_v44 = vadd.f32 %v6343_v39, %v15463_v14  ;;  %v6345_v20 = vpop.f32.mrb[201].mxu1  ;;  %v17876_v14 = vld [vmem:[#allocation95_spill] sm:$0xff] }
 0x833   : > { %v6346_v7 = vpop.f32.mrb[202].mxu1  ;;  %8205 = vmatpush1.bf16.msra.mxu1 %v12027_v62  ;;  %v17877_v35 = vpack.c.bf16 %v17875_v19, %v17876_v14 }
 0x834   : > { %v15711_v13 = vadd.f32 %v6346_v7, %v15469_v50  ;;  %v6348_v27 = vpop.f32.mrb[203].mxu1  ;;  %8206 = vmatprep.subr.bf16.mxu1 %v17488_v52  ;;  %v17885_v7 = vld [vmem:[#allocation63_spill] sm:$0xff] }
 0x836   : > { %7480 = vmatmul.mubr.bf16.gmra.mrb[52].mxu1 %v17874_v5  ;;  %v17890_v5 = vpack.c.bf16 %v17888_v42, %v17889_v17 }
 0x837   : > { %7487 = vmatprep.mubr.bf16.mxu1 %v17877_v35  ;;  %8207 = vmatpush1.bf16.msra.mxu1 %v12028_v18  ;;  %v17886_v18 = vld [vmem:[#allocation64_spill] sm:$0xff] }
 0x838   : > { %8208 = vmatprep.subr.bf16.mxu1 %v17488_v52  ;;  %v17887_v27 = vpack.c.bf16 %v17885_v7, %v17886_v18 }
 0x839   : > { %v6351_v50 = vpop.f32.mrb[204].mxu1 }
 0x83a   : > { %v15725_v54 = vadd.f32 %v6351_v50, %v15479_v10  ;;  %v6353_v46 = vpop.f32.mrb[205].mxu1  ;;  %v17891_v50 = vld [vmem:[#allocation65_spill] sm:$0xff] }
 0x83b   : > { %v6354_v61 = vpop.f32.mrb[206].mxu1  ;;  %8209 = vmatpush1.bf16.msra.mxu1 %v12029_v63  ;;  %v17892_v46 = vld [vmem:[#allocation66_spill] sm:$0xff] }
 0x83c   : > { %v15728_v38 = vadd.f32 %v6354_v61, %v17878_v4  ;;  %v6356_v24 = vpop.f32.mrb[207].mxu1  ;;  %8964 = vmatprep.subr.bf16.mxu1 %v17488_v52  ;;  %v17893_v61 = vpack.c.bf16 %v17891_v50, %v17892_v46  ;;  %v17894_v4 = vld [vmem:[#allocation101_spill] sm:$0xff] }
 0x83d   : > { %v17895_v24 = vld [vmem:[#allocation106_spill] sm:$0xff] }
 0x83e   : > { %7488 = vmatmul.mubr.bf16.gmra.mrb[56].mxu1 %v17881_v48  ;;  %v17896_v55 = vpack.c.bf16 %v17894_v4, %v17895_v24 }
 0x83f   : > { %7495 = vmatprep.mubr.bf16.mxu1 %v17884_v6  ;;  %v17897_v6 = vld [vmem:[#allocation67_spill] sm:$0xff] }
 0x841   : > { %v7045_v29 = vpop.f32.mrb[208].mxu1 }
 0x842   : > { %v15738_v10 = vadd.f32 %v7045_v29, %v15488_v30  ;;  %v7047_v9 = vpop.f32.mrb[209].mxu1  ;;  %v17898_v29 = vld [vmem:[#allocation69_spill] sm:$0xff] }
 0x843   : > { %v7048_v62 = vpop.f32.mrb[210].mxu1  ;;  %v17899_v9 = vpack.c.bf16 %v17897_v6, %v17898_v29 }
 0x844   : > { %v15741_v39 = vadd.f32 %v7048_v62, %v15491_v41  ;;  %v7050_v20 = vpop.f32.mrb[211].mxu1  ;;  %v17900_v62 = vld [vmem:[#allocation102_spill] sm:$0xff] }
 0x845   : > { %v17901_v20 = vld [vmem:[#allocation107_spill] sm:$0xff] }
 0x846   : > { %7496 = vmatmul.mubr.bf16.gmra.mrb[60].mxu1 %v17887_v27  ;;  %v17902_v7 = vpack.c.bf16 %v17900_v62, %v17901_v20  ;;  %v17915_v20 = vld [vmem:[#allocation77_spill] sm:$0xff] }
 0x847   : > { %7503 = vmatprep.mubr.bf16.mxu1 %v17890_v5  ;;  %v17903_v5 = vld [vmem:[#allocation68_spill] sm:$0xff] }
 0x849   : > { %v7053_v19 = vpop.f32.mrb[212].mxu1 }
 0x84a   : > { %v15750_v14 = vadd.f32 %v7053_v19, %v15496_v47  ;;  %v7055_v30 = vpop.f32.mrb[213].mxu1  ;;  %v17904_v19 = vld [vmem:[#allocation73_spill] sm:$0xff] }
 0x84b   : > { %v7056_v35 = vpop.f32.mrb[214].mxu1  ;;  %v17905_v30 = vpack.c.bf16 %v17903_v5, %v17904_v19  ;;  %v17920_v5 = vld [vmem:[#allocation112_spill] sm:$0xff] }
 0x84c   : > { %v15753_v63 = vadd.f32 %v7056_v35, %v15499_v34  ;;  %v7058_v41 = vpop.f32.mrb[215].mxu1  ;;  %v17906_v35 = vld [vmem:[#allocation103_spill] sm:$0xff] }
 0x84d   : > { %v17907_v41 = vld [vmem:[#allocation110_spill] sm:$0xff] }
 0x84e   : > { %7504 = vmatmul.mubr.bf16.gmra.mrb[64].mxu1 %v17893_v61  ;;  %v17908_v50 = vpack.c.bf16 %v17906_v35, %v17907_v41 }
 0x84f   : > { %7511 = vmatprep.mubr.bf16.mxu1 %v17896_v55  ;;  %v17909_v55 = vld [vmem:[#allocation70_spill] sm:$0xff] }
 0x851   : > { %v7061_v16 = vpop.f32.mrb[216].mxu1 }
 0x852   : > { %v15762_v48 = vadd.f32 %v7061_v16, %v15504_v56  ;;  %v7063_v47 = vpop.f32.mrb[217].mxu1  ;;  %v17910_v16 = vld [vmem:[#allocation74_spill] sm:$0xff] }
 0x853   : > { %v7064_v33 = vpop.f32.mrb[218].mxu1  ;;  %v17911_v47 = vpack.c.bf16 %v17909_v55, %v17910_v16  ;;  %v17925_v16 = vld [vmem:[#allocation108_spill] sm:$0xff] }
 0x854   : > { %v15765_v23 = vadd.f32 %v7064_v33, %v15507_v31  ;;  %v7066_v34 = vpop.f32.mrb[219].mxu1  ;;  %v17912_v33 = vld [vmem:[#allocation104_spill] sm:$0xff] }
 0x855   : > { %v17913_v34 = vld [vmem:[#allocation111_spill] sm:$0xff] }
 0x856   : > { %7512 = vmatmul.mubr.bf16.gmra.mrb[68].mxu1 %v17899_v9  ;;  %v17914_v6 = vpack.c.bf16 %v17912_v33, %v17913_v34  ;;  %v7605_v34 = vld [vmem:[#allocation2 + $0x38] sm:$0xfe] }
 0x857   : > { %7519 = vmatprep.mubr.bf16.mxu1 %v17902_v7 }
 0x859   : > { %v7069_v18 = vpop.f32.mrb[220].mxu1 }
 0x85a   : > { %v15774_v27 = vadd.f32 %v7069_v18, %v15512_v60  ;;  %v7071_v56 = vpop.f32.mrb[221].mxu1  ;;  %v17916_v18 = vld [vmem:[#allocation71_spill] sm:$0xff] }
 0x85b   : > { %v7072_v42 = vpop.f32.mrb[222].mxu1  ;;  %v17917_v56 = vld [vmem:[#allocation75_spill] sm:$0xff] }
 0x85c   : > { %v15777_v17 = vadd.f32 %v7072_v42, %v15515_v22  ;;  %v7074_v31 = vpop.f32.mrb[223].mxu1  ;;  %v17918_v42 = vpack.c.bf16 %v17916_v18, %v17917_v56 }
 0x85d   : > { %v17919_v31 = vld [vmem:[#allocation105_spill] sm:$0xff] }
 0x85e   : > { %7520 = vmatmul.mubr.bf16.gmra.mrb[72].mxu1 %v17905_v30  ;;  %v17921_v19 = vpack.c.bf16 %v17919_v31, %v17920_v5  ;;  %v7606_v5 = vld [vmem:[#allocation2 + $0x40] sm:$0xff] }
 0x85f   : > { %7527 = vmatprep.mubr.bf16.mxu1 %v17908_v50 }
 0x861   : > { %v7077_v46 = vpop.f32.mrb[224].mxu1 }
 0x862   : > { %v15786_v61 = vadd.f32 %v7077_v46, %v15520_v26  ;;  %v7079_v60 = vpop.f32.mrb[225].mxu1 }
 0x863   : > { %v7080_v4 = vpop.f32.mrb[226].mxu1  ;;  %v7607_v60 = vld [vmem:[#allocation2 + $0x48] sm:$0xff] }
 0x864   : > { %v15789_v24 = vadd.f32 %v7080_v4, %v15525_v8  ;;  %v7082_v22 = vpop.f32.mrb[227].mxu1  ;;  %v17922_v4 = vld [vmem:[#allocation79_spill] sm:$0xff] }
 0x865   : > { %v17923_v22 = vld [vmem:[#allocation80_spill] sm:$0xff] }
 0x866   : > { %7528 = vmatmul.mubr.bf16.gmra.mrb[76].mxu1 %v17911_v47  ;;  %v17924_v55 = vpack.c.bf16 %v17922_v4, %v17923_v22  ;;  %v17926_v47 = vld [vmem:[#allocation113_spill] sm:$0xff]  ;;  %v7610_v4 = vld [vmem:[#allocation2 + $0x60] sm:$0xff] }
 0x867   : > { %7535 = vmatprep.mubr.bf16.mxu1 %v17914_v6  ;;  %v17927_v33 = vpack.c.bf16 %v17925_v16, %v17926_v47  ;;  %v7611_v6 = vld [vmem:[#allocation2 + $0x68] sm:$0xff]  ;;  %v7608_v16 = vld [vmem:[#allocation2 + $0x50] sm:$0xff]  ;;  %v7224_v47 = vld [vmem:[#allocation2 + $0x260] sm:$0xff] }
 0x869   : > { %v7085_v29 = vpop.f32.mrb[228].mxu1 }
 0x86a   : > { %v15798_v9 = vadd.f32 %v7085_v29, %v15531_v1  ;;  %v7087_v26 = vpop.f32.mrb[229].mxu1  ;;  %v7679_v29 = vpack.c.bf16 %v7607_v60, %v7605_v34  ;;  %v7604_v60 = vld [vmem:[#allocation2 + $0x30] sm:$0xfe] }
 0x86b   : > { %v7088_v62 = vpop.f32.mrb[230].mxu1  ;;  %v7609_v26 = vld [vmem:[#allocation2 + $0x58] sm:$0xff]  ;;  %v7678_v22 = vpack.c.bf16 %v7606_v5, %v7604_v60 }
 0x86c   : > { %v15801_v7 = vadd.f32 %v7088_v62, %v17915_v20  ;;  %v7090_v8 = vpop.f32.mrb[231].mxu1  ;;  %v15824_v20 = vld [vmem:[#allocation2 + $0x268] sm:$0xff]  ;;  %v7765_v31 = vshll.u32 %v7679_v29, 16 }
 0x86d   : > { %v7681_v8 = vpack.c.bf16 %v7611_v6, %v7609_v26 }
 0x86e   : > { %7536 = vmatmul.mubr.bf16.gmra.mrb[80].mxu1 %v17918_v42 }
 0x86f   : > { %7543 = vmatprep.mubr.bf16.mxu1 %v17921_v19  ;;  %v17928_v19 = vld [vmem:[#allocation15_spill] sm:$0xff] }
 0x871   : > { %v7093_v30 = vpop.f32.mrb[232].mxu1 }
 0x872   : > { %v15810_v35 = vadd.f32 %v7093_v30, %v15542_v53  ;;  %v7095_v1 = vpop.f32.mrb[233].mxu1  ;;  %v7261_v30 = vpack.c.bf16 %v15824_v20, %v17928_v19 }
 0x873   : > { %v7096_v41 = vpop.f32.mrb[234].mxu1  ;;  %v17929_v1 = vld [vmem:[#allocation81_spill] sm:$0xff] }
 0x874   : > { %v15813_v50 = vadd.f32 %v7096_v41, %v15545_v25  ;;  %v7098_v46 = vpop.f32.mrb[235].mxu1  ;;  %v17930_v41 = vld [vmem:[#allocation20_spill] sm:$0xff] }
 0x875   : > { %v17931_v46 = vpack.c.bf16 %v17929_v1, %v17930_v41  ;;  %v17932_v41 = vld [vmem:[#allocation17_spill] sm:$0xff] }
 0x876   : > { %7544 = vmatmul.mubr.bf16.gmra.mrb[84].mxu1 %v17924_v55  ;;  %v7767_v55 = vrot.slane %v7765_v31, 1 }
 0x877   : > { %7551 = vmatprep.mubr.bf16.mxu1 %v17927_v33  ;;  %v7680_v33 = vpack.c.bf16 %v7610_v4, %v7608_v16  ;;  %v7782_v16 = vshrl.u32 %v7681_v8, 16 }
 0x879   : > { %v7101_v53 = vpop.f32.mrb[236].mxu1  ;;  %v7758_v31 = vshll.u32 %v7680_v33, 16 }
 0x87a   : > { %v15822_v62 = vadd.f32 %v7101_v53, %v15550_v43  ;;  %v7103_v25 = vpop.f32.mrb[237].mxu1  ;;  %v7770_v43 = vshll.u32 %v7681_v8, 16  ;;  %v7763_v53 = vshrl.u32 %v7679_v29, 16  ;;  %v7751_v29 = vshrl.u32 %v7678_v22, 16 }
 0x87b   : > { %v7104_v18 = vpop.f32.mrb[238].mxu1 }
 0x87c   : > { %v15827_v56 = vadd.f32 %v7104_v18, %v15553_v15  ;;  %v7106_v42 = vpop.f32.mrb[239].mxu1  ;;  %v7772_v26 = vrot.slane %v7770_v43, 1  ;;  %v7753_v18 = vshll.u32 %v7678_v22, 16  ;;  %v7768_v5 = vor.u32 %v7767_v55, %v7763_v53 }
 0x87d   : > { %v7260_v42 = vpack.c.bf16 %v7224_v47, %v15533_v40  ;;  %v7760_v43 = vrot.slane %v7758_v31, 1 }
 0x87e   : > { %7552 = vmatmul.mubr.bf16.gmra.mrb[88].mxu1 %v17931_v46  ;;  %v7773_v1 = vsel %vm7749_vm3, %v7768_v5, %v7772_v26  ;;  %v17399_v46 = vshll.u32 %v17932_v41, 16  ;;  %v7784_v53 = vor.u32 %v7782_v16, %v7772_v26  ;;  %v17934_v5 = vld [vmem:[#allocation118_spill] sm:$0xff] }
 0x87f   : > { %7559 = vmatprep.mubr.bf16.mxu1 %v7261_v30  ;;  %v17935_v26 = vshll.u32 %v17934_v5, 16 }
 0x881   : > { %v7109_v15 = vpop.f32.mrb[240].mxu1  ;;  %v15866_v31 = vrot.slane %v17935_v26, 1 }
 0x882   : > { %v15835_v34 = vadd.f32 %v7109_v15, %v15558_v59  ;;  %v7111_v6 = vpop.f32.mrb[241].mxu1  ;;  %v7755_v59 = vrot.slane %v7753_v18, 1  ;;  %v12030_v15 = vld [vmem:[%s17178_s3 + $0x300] sm:$0xff]  }
 0x883   : > { %v7112_v25 = vpop.f32.mrb[242].mxu1 }
 0x884   : > { %v15839_v19 = vadd.f32 %v7112_v25, %v15561_v45  ;;  %v7114_v30 = vpop.f32.mrb[243].mxu1  ;;  %v15848_v45 = vrot.slane %v17399_v46, 1  ;;  %v7756_v47 = vor.u32 %v7755_v59, %v7751_v29  ;;  %v17933_v25 = vld [vmem:[#allocation19_spill] sm:$0xff] }
 0x885   : > { %v17397_v18 = vshll.u32 %v17933_v25, 16  ;;  %v7774_v30 = vshrl.u32 %v7680_v33, 16  ;;  %v12032_v33 = vld [vmem:[%s17178_s3 + $0x310] sm:$0xff]  }
 0x886   : > { %7560 = vmatmul.mubr.bf16.gmra.mrb[92].mxu1 %v7260_v42  ;;  %v7789_v8 = vsel %vm7749_vm3, %v7784_v53, %v15848_v45  ;;  %v12031_v42 = vld [vmem:[%s17178_s3 + $0x308] sm:$0xff]  }
 0x887   : > { %8210 = vmatprep.mubr.bf16.mxu1 %v7773_v1  ;;  %v7804_v29 = vrot.slane %v17397_v18, 1  ;;  %v7776_v16 = vor.u32 %v7774_v30, %v7760_v43 }
 0x889   : > { %v7117_v60 = vpop.f32.mrb[244].mxu1 }
 0x88a   : > { %v15844_v4 = vadd.f32 %v7117_v60, %v15567_v0  ;;  %v7119_v40 = vpop.f32.mrb[245].mxu1  ;;  %v7761_v0 = vsel %vm7749_vm3, %v7756_v47, %v7760_v43  ;;  %v17400_v60 = vshrl.u32 %v17932_v41, 16  ;;  %v12038_v41 = vld [vmem:[%s17178_s3 + $0x340] sm:$0xff]  }
 0x88b   : > { %v7120_v55 = vpop.f32.mrb[246].mxu1 }
 0x88c   : > { %v15854_v6 = vadd.f32 %v7120_v55, %v15573_v32  ;;  %v7122_v22 = vpop.f32.mrb[247].mxu1 }
 0x88d   : > { %v17936_v22 = vld [vmem:[#allocation8_spill] sm:$0xff] }
 0x88e   : > { %8211 = vmatmul.mubr.bf16.vlgmr.msra.gmra.mrb[96].mxu1 %v7761_v0  ;;  %v17396_v43 = vshll.u32 %v17936_v22, 16  ;;  %v17937_v0 = vld [vmem:[#allocation119_spill] sm:$0xff] }
 0x88f   : > { %8218 = vmatprep.mubr.bf16.mxu1 %v7789_v8  ;;  %8965 = vmatpush1.bf16.msra.mxu1 %v12030_v15  ;;  %v7781_v15 = vsel %vm7749_vm3, %v7776_v16, %v15866_v31  ;;  %v17395_v8 = vshll.u32 %v17937_v0, 16  ;;  %v17405_v18 = vshrl.u32 %v17937_v0, 16 }
 0x890   : > { %8966 = vmatprep.subr.bf16.mxu1 %v17488_v52 }
 0x891   : > { %v7125_v32 = vpop.f32.mrb[248].mxu1 }
 0x892   : > { %v15869_v1 = vadd.f32 %v7125_v32, %v15585_v37  ;;  %v7127_v59 = vpop.f32.mrb[249].mxu1  ;;  %v7800_v37 = vor.u32 %v17400_v60, %v15848_v45  ;;  %v7796_v32 = vrot.slane %v17396_v43, 1  ;;  %v12036_v60 = vld [vmem:[%s17178_s3 + $0x330] sm:$0xff]  }
 0x893   : > { %v7128_v40 = vpop.f32.mrb[250].mxu1  ;;  %8967 = vmatpush1.bf16.msra.mxu1 %v12031_v42  ;;  %v17398_v59 = vshrl.u32 %v17933_v25, 16 }
 0x894   : > { %v15878_v55 = vadd.f32 %v7128_v40, %v15591_v58  ;;  %v7130_v47 = vpop.f32.mrb[251].mxu1  ;;  %8968 = vmatprep.subr.bf16.mxu1 %v17488_v52  ;;  %v15888_v53 = vsel %vm7749_vm3, %v7800_v37, %v7804_v29  ;;  %v12033_v58 = vld [vmem:[%s17178_s3 + $0x318] sm:$0xff]   ;;  %v7820_v40 = vrot.slane %v17395_v8, 1  ;;  %v12034_v37 = vld [vmem:[%s17178_s3 + $0x320] sm:$0xff]  }
 0x895   : > { %v17939_v8 = vld [vmem:[#allocation120_spill] sm:$0xff] }
 0x896   : > { %8219 = vmatmul.mubr.bf16.gmra.mrb[100].mxu1 %v7781_v15 }
 0x897   : > { %8226 = vmatprep.mubr.bf16.mxu1 %v15888_v53  ;;  %8969 = vmatpush1.bf16.msra.mxu1 %v12032_v33  ;;  %v17938_v33 = vshrl.u32 %v17934_v5, 16  ;;  %v17401_v5 = vshll.u32 %v17939_v8, 16 }
 0x898   : > { %8970 = vmatprep.subr.bf16.mxu1 %v17488_v52 }
 0x899   : > { %v7133_v42 = vpop.f32.mrb[252].mxu1  ;;  %v7792_v47 = vor.u32 %v17938_v33, %v15866_v31  ;;  %v17940_v33 = vld [vmem:[#allocation122_spill] sm:$0xff] }
 0x89a   : > { %v15899_v30 = vadd.f32 %v7133_v42, %v15605_v21  ;;  %v7135_v26 = vpop.f32.mrb[253].mxu1  ;;  %v7816_v42 = vor.u32 %v17398_v59, %v7804_v29  ;;  %v17402_v43 = vshll.u32 %v17940_v33, 16 }
 0x89b   : > { %v7136_v16 = vpop.f32.mrb[254].mxu1  ;;  %8971 = vmatpush1.bf16.msra.mxu1 %v12033_v58  ;;  %v15917_v26 = vsel %vm7749_vm3, %v7792_v47, %v7796_v32  ;;  %v7812_v47 = vrot.slane %v17401_v5, 1 }
 0x89c   : > { %v15911_v15 = vadd.f32 %v7136_v16, %v15611_v12  ;;  %v7138_v21 = vpop.f32.mrb[255].mxu1  ;;  %8972 = vmatprep.subr.bf16.mxu1 %v17488_v52  ;;  %v15922_v58 = vsel %vm7749_vm3, %v7816_v42, %v7820_v40  ;;  %v12035_v12 = vld [vmem:[%s17178_s3 + $0x328] sm:$0xff]   ;;  %v17404_v16 = vshrl.u32 %v17936_v22, 16 }
 0x89e   : > { %8227 = vmatmul.mubr.bf16.gmra.mrb[104].mxu1 %v15917_v26  ;;  %v7808_v46 = vor.u32 %v17404_v16, %v7796_v32 }
 0x89f   : > { %8234 = vmatprep.mubr.bf16.mxu1 %v15922_v58  ;;  %8973 = vmatpush1.bf16.msra.mxu1 %v12034_v37  ;;  %v7836_v37 = vrot.slane %v17402_v43, 1  ;;  %v17941_v43 = vld [vmem:[#allocation123_spill] sm:$0xff] }
 0x8a0   : > { %8974 = vmatprep.subr.bf16.mxu1 %v17488_v52  ;;  %v17409_v22 = vshll.u32 %v17941_v43, 16 }
 0x8a1   : > { %v7141_v29 = vpop.f32.mrb[0].mxu1 }
 0x8a2   : > { %v15934_v21 = vadd.f32 %v7141_v29, %v15625_v2  ;;  %v7143_v42 = vpop.f32.mrb[1].mxu1  ;;  %v7832_v29 = vor.u32 %v17405_v18, %v7820_v40  ;;  %v7828_v40 = vrot.slane %v17409_v22, 1  ;;  %v17413_v18 = vshrl.u32 %v17940_v33, 16 }
 0x8a3   : > { %v7144_v59 = vpop.f32.mrb[2].mxu1  ;;  %8975 = vmatpush1.bf16.msra.mxu1 %v12035_v12  ;;  %v15951_v42 = vsel %vm7749_vm3, %v7808_v46, %v7812_v47  ;;  %v17942_v12 = vld [vmem:[#allocation124_spill] sm:$0xff] }
 0x8a4   : > { %v15945_v5 = vadd.f32 %v7144_v59, %v15631_v51  ;;  %v7146_v2 = vpop.f32.mrb[3].mxu1  ;;  %8976 = vmatprep.subr.bf16.mxu1 %v17488_v52  ;;  %v15956_v32 = vsel %vm7749_vm3, %v7832_v29, %v7836_v37  ;;  %v17410_v16 = vshll.u32 %v17942_v12, 16  ;;  %v12037_v51 = vld [vmem:[%s17178_s3 + $0x338] sm:$0xff]   ;;  %v17412_v59 = vshrl.u32 %v17939_v8, 16 }
 0x8a6   : > { %8235 = vmatmul.mubr.bf16.gmra.mrb[108].mxu1 %v15951_v42  ;;  %v7824_v25 = vor.u32 %v17412_v59, %v7812_v47 }
 0x8a7   : > { %8242 = vmatprep.mubr.bf16.mxu1 %v15956_v32  ;;  %8977 = vmatpush1.bf16.msra.mxu1 %v12036_v60  ;;  %v7852_v60 = vrot.slane %v17410_v16, 1  ;;  %v17945_v16 = vld [vmem:[#allocation125_spill] sm:$0xff] }
 0x8a8   : > { %8978 = vmatprep.subr.bf16.mxu1 %v17488_v52  ;;  %v17415_v8 = vshll.u32 %v17945_v16, 16 }
 0x8a9   : > { %v7149_v46 = vpop.f32.mrb[4].mxu1 }
 0x8aa   : > { %v15968_v2 = vadd.f32 %v7149_v46, %v15645_v28  ;;  %v7151_v29 = vpop.f32.mrb[5].mxu1  ;;  %v7848_v46 = vor.u32 %v17413_v18, %v7836_v37  ;;  %v7844_v37 = vrot.slane %v17415_v8, 1  ;;  %v17419_v18 = vshrl.u32 %v17942_v12, 16 }
 0x8ab   : > { %v7152_v0 = vpop.f32.mrb[6].mxu1  ;;  %8979 = vmatpush1.bf16.msra.mxu1 %v12037_v51  ;;  %v15985_v29 = vsel %vm7749_vm3, %v7824_v25, %v7828_v40  ;;  %v17946_v51 = vld [vmem:[#allocation126_spill] sm:$0xff] }
 0x8ac   : > { %17943 = vst [vmem:[#allocation78_spill] sm:$0xff] %v15968_v2  ;;  %v15979_v22 = vadd.f32 %v7152_v0, %v15651_v57  ;;  %v7154_v28 = vpop.f32.mrb[7].mxu1  ;;  %8980 = vmatprep.subr.bf16.mxu1 %v17488_v52  ;;  %v15990_v47 = vsel %vm7749_vm3, %v7848_v46, %v7852_v60  ;;  %v17416_v59 = vshll.u32 %v17946_v51, 16  ;;  %v12039_v57 = vld [vmem:[%s17178_s3 + $0x348] sm:$0xff]   ;;  %v17418_v0 = vshrl.u32 %v17941_v43, 16  ;;  %v12040_v2 = vld [vmem:[%s17178_s3 + $0x350] sm:$0xff]  }
 0x8ae   : > { %17944 = vst [vmem:[#allocation31_spill] sm:$0xff] %v15979_v22  ;;  %8243 = vmatmul.mubr.bf16.gmra.mrb[112].mxu1 %v15985_v29  ;;  %v7840_v22 = vor.u32 %v17418_v0, %v7828_v40 }
 0x8af   : > { %8250 = vmatprep.mubr.bf16.mxu1 %v15990_v47  ;;  %8981 = vmatpush1.bf16.msra.mxu1 %v12038_v41  ;;  %v7868_v41 = vrot.slane %v17416_v59, 1  ;;  %v17949_v59 = vld [vmem:[#allocation127_spill] sm:$0xff] }
 0x8b0   : > { %8982 = vmatprep.subr.bf16.mxu1 %v17488_v52  ;;  %v17421_v43 = vshll.u32 %v17949_v59, 16 }
 0x8b1   : > { %v7157_v25 = vpop.f32.mrb[8].mxu1 }
 0x8b2   : > { %v16002_v28 = vadd.f32 %v7157_v25, %v15665_v3  ;;  %v7159_v46 = vpop.f32.mrb[9].mxu1  ;;  %v7864_v25 = vor.u32 %v17419_v18, %v7852_v60  ;;  %v7860_v60 = vrot.slane %v17421_v43, 1  ;;  %v17425_v18 = vshrl.u32 %v17946_v51, 16 }
 0x8b3   : > { %v7160_v33 = vpop.f32.mrb[10].mxu1  ;;  %8983 = vmatpush1.bf16.msra.mxu1 %v12039_v57  ;;  %v16019_v46 = vsel %vm7749_vm3, %v7840_v22, %v7844_v37  ;;  %v17950_v57 = vld [vmem:[#allocation128_spill] sm:$0xff] }
 0x8b4   : > { %17947 = vst [vmem:[#allocation82_spill] sm:$0xff] %v16002_v28  ;;  %v16013_v8 = vadd.f32 %v7160_v33, %v15671_v36  ;;  %v7162_v3 = vpop.f32.mrb[11].mxu1  ;;  %8984 = vmatprep.subr.bf16.mxu1 %v17488_v52  ;;  %v16024_v40 = vsel %vm7749_vm3, %v7864_v25, %v7868_v41  ;;  %v17422_v0 = vshll.u32 %v17950_v57, 16  ;;  %v12041_v36 = vld [vmem:[%s17178_s3 + $0x358] sm:$0xff]   ;;  %v17424_v33 = vshrl.u32 %v17945_v16, 16  ;;  %v12042_v28 = vld [vmem:[%s17178_s3 + $0x360] sm:$0xff]  }
 0x8b6   : > { %17948 = vst [vmem:[#allocation83_spill] sm:$0xff] %v16013_v8  ;;  %8251 = vmatmul.mubr.bf16.gmra.mrb[116].mxu1 %v16019_v46  ;;  %v7856_v8 = vor.u32 %v17424_v33, %v7844_v37 }
 0x8b7   : > { %8258 = vmatprep.mubr.bf16.mxu1 %v16024_v40  ;;  %8985 = vmatpush1.bf16.msra.mxu1 %v12040_v2  ;;  %v7884_v2 = vrot.slane %v17422_v0, 1  ;;  %v17953_v0 = vld [vmem:[#allocation129_spill] sm:$0xff] }
 0x8b8   : > { %8986 = vmatprep.subr.bf16.mxu1 %v17488_v52  ;;  %v17427_v16 = vshll.u32 %v17953_v0, 16 }
 0x8b9   : > { %v7165_v22 = vpop.f32.mrb[12].mxu1 }
 0x8ba   : > { %v16036_v3 = vadd.f32 %v7165_v22, %v15685_v49  ;;  %v7167_v25 = vpop.f32.mrb[13].mxu1  ;;  %v7880_v22 = vor.u32 %v17425_v18, %v7868_v41  ;;  %v7876_v41 = vrot.slane %v17427_v16, 1  ;;  %v17431_v18 = vshrl.u32 %v17950_v57, 16 }
 0x8bb   : > { %v7168_v12 = vpop.f32.mrb[14].mxu1  ;;  %8987 = vmatpush1.bf16.msra.mxu1 %v12041_v36  ;;  %v16053_v25 = vsel %vm7749_vm3, %v7856_v8, %v7860_v60  ;;  %v17954_v36 = vld [vmem:[#allocation130_spill] sm:$0xff] }
 0x8bc   : > { %17951 = vst [vmem:[#allocation32_spill] sm:$0xff] %v16036_v3  ;;  %v16047_v43 = vadd.f32 %v7168_v12, %v15691_v11  ;;  %v7170_v49 = vpop.f32.mrb[15].mxu1  ;;  %8988 = vmatprep.subr.bf16.mxu1 %v17488_v52  ;;  %v16058_v37 = vsel %vm7749_vm3, %v7880_v22, %v7884_v2  ;;  %v17428_v33 = vshll.u32 %v17954_v36, 16  ;;  %v12043_v11 = vld [vmem:[%s17178_s3 + $0x368] sm:$0xff]   ;;  %v17430_v12 = vshrl.u32 %v17949_v59, 16  ;;  %v12044_v3 = vld [vmem:[%s17178_s3 + $0x370] sm:$0xff]  }
 0x8be   : > { %17952 = vst [vmem:[#allocation33_spill] sm:$0xff] %v16047_v43  ;;  %8259 = vmatmul.mubr.bf16.gmra.mrb[120].mxu1 %v16053_v25  ;;  %v7872_v43 = vor.u32 %v17430_v12, %v7860_v60 }
 0x8bf   : > { %8266 = vmatprep.mubr.bf16.mxu1 %v16058_v37  ;;  %8989 = vmatpush1.bf16.msra.mxu1 %v12042_v28  ;;  %v7900_v28 = vrot.slane %v17428_v33, 1  ;;  %v17957_v33 = vld [vmem:[#allocation131_spill] sm:$0xff] }
 0x8c0   : > { %8990 = vmatprep.subr.bf16.mxu1 %v17488_v52  ;;  %v17434_v59 = vshll.u32 %v17957_v33, 16 }
 0x8c1   : > { %v7173_v8 = vpop.f32.mrb[16].mxu1 }
 0x8c2   : > { %v16070_v49 = vadd.f32 %v7173_v8, %v15705_v44  ;;  %v7175_v22 = vpop.f32.mrb[17].mxu1  ;;  %v7896_v8 = vor.u32 %v17431_v18, %v7884_v2  ;;  %v7892_v2 = vrot.slane %v17434_v59, 1  ;;  %v17436_v18 = vshrl.u32 %v17954_v36, 16 }
 0x8c3   : > { %v7176_v51 = vpop.f32.mrb[18].mxu1  ;;  %8991 = vmatpush1.bf16.msra.mxu1 %v12043_v11  ;;  %v16087_v22 = vsel %vm7749_vm3, %v7872_v43, %v7876_v41  ;;  %v17959_v11 = vld [vmem:[#allocation132_spill] sm:$0xff] }
 0x8c4   : > { %17955 = vst [vmem:[#allocation23_spill] sm:$0xff] %v16070_v49  ;;  %v16081_v16 = vadd.f32 %v7176_v51, %v15711_v13  ;;  %v7178_v44 = vpop.f32.mrb[19].mxu1  ;;  %8992 = vmatprep.subr.bf16.mxu1 %v17488_v52  ;;  %v16092_v60 = vsel %vm7749_vm3, %v7896_v8, %v7900_v28  ;;  %v17435_v12 = vshll.u32 %v17959_v11, 16  ;;  %v12045_v13 = vld [vmem:[%s17178_s3 + $0x378] sm:$0xff]   ;;  %v17437_v51 = vshrl.u32 %v17953_v0, 16 }
 0x8c5   : > { %17958 = vst [vmem:[#allocation34_spill] sm:$0xff] %v16092_v60  ;;  %v7912_v59 = vor.u32 %v17436_v18, %v7900_v28 }
 0x8c6   : > { %17956 = vst [vmem:[#allocation109_spill] sm:$0xff] %v16081_v16  ;;  %8267 = vmatmul.mubr.bf16.gmra.mrb[124].mxu1 %v16087_v22  ;;  %v7888_v16 = vor.u32 %v17437_v51, %v7876_v41 }
 0x8c7   : > { %8274 = vmatprep.mubr.bf16.mxu1 %v16092_v60  ;;  %8993 = vmatpush1.bf16.msra.mxu1 %v12044_v3  ;;  %v7916_v3 = vrot.slane %v17435_v12, 1 }
 0x8c8   : > { %8994 = vmatprep.subr.bf16.mxu1 %v17488_v52 }
 0x8c9   : > { %v7181_v43 = vpop.f32.mrb[20].mxu1  ;;  %v16123_v12 = vsel %vm7749_vm3, %v7912_v59, %v7916_v3 }
 0x8ca   : > { %v16104_v44 = vadd.f32 %v7181_v43, %v15725_v54  ;;  %v7183_v8 = vpop.f32.mrb[21].mxu1  ;;  %v16118_v54 = vsel %vm7749_vm3, %v7888_v16, %v7892_v2  ;;  %v17962_v43 = vld [vmem:[#allocation133_spill] sm:$0xff] }
 0x8cb   : > { %v7184_v57 = vpop.f32.mrb[22].mxu1  ;;  %8995 = vmatpush1.bf16.msra.mxu1 %v12045_v13  ;;  %v17440_v8 = vshll.u32 %v17962_v43, 16  ;;  %v17964_v13 = vld [vmem:[#allocation136_spill] sm:$0xff] }
 0x8cc   : > { %17960 = vst [vmem:[#allocation35_spill] sm:$0xff] %v16104_v44  ;;  %v16112_v49 = vadd.f32 %v7184_v57, %v15728_v38  ;;  %v7186_v60 = vpop.f32.mrb[23].mxu1  ;;  %9463 = vmatprep.subr.bf16.mxu1 %v17488_v52  ;;  %v17442_v57 = vshrl.u32 %v17957_v33, 16  ;;  %v17965_v18 = vshll.u32 %v17964_v13, 16 }
 0x8cd   : > { %v7908_v41 = vrot.slane %v17440_v8, 1  ;;  %v17441_v60 = vshrl.u32 %v17959_v11, 16 }
 0x8ce   : > { %17961 = vst [vmem:[#allocation24_spill] sm:$0xff] %v16112_v49  ;;  %8275 = vmatmul.mubr.bf16.gmra.mrb[128].mxu1 %v16118_v54  ;;  %v7932_v51 = vrot.slane %v17965_v18, 1  ;;  %v7904_v59 = vor.u32 %v17442_v57, %v7892_v2  ;;  %v17445_v2 = vshrl.u32 %v17962_v43, 16 }
 0x8cf   : > { %8282 = vmatprep.mubr.bf16.mxu1 %v16123_v12  ;;  %v7928_v8 = vor.u32 %v17441_v60, %v7916_v3  ;;  %v17970_v60 = vld [vmem:[#allocation138_spill] sm:$0xff] }
 0x8d1   : > { %v7425_v38 = vpop.f32.mrb[24].mxu1 }
 0x8d2   : > { %v16130_v28 = vadd.f32 %v7425_v38, %v15738_v10  ;;  %v7427_v16 = vpop.f32.mrb[25].mxu1  ;;  %v16143_v10 = vsel %vm7749_vm3, %v7904_v59, %v7908_v41  ;;  %v16147_v38 = vsel %vm7749_vm3, %v7928_v8, %v7932_v51  ;;  %v17971_v59 = vshll.u32 %v17970_v60, 16 }
 0x8d3   : > { %v7428_v36 = vpop.f32.mrb[26].mxu1  ;;  %v17967_v16 = vld [vmem:[#allocation137_spill] sm:$0xff]  ;;  %v7920_v8 = vor.u32 %v17445_v2, %v7908_v41 }
 0x8d4   : > { %17963 = vst [vmem:[#allocation25_spill] sm:$0xff] %v16130_v28  ;;  %v16138_v0 = vadd.f32 %v7428_v36, %v15741_v39  ;;  %v7430_v49 = vpop.f32.mrb[27].mxu1  ;;  %v17968_v39 = vshll.u32 %v17967_v16, 16  ;;  %v7948_v57 = vrot.slane %v17971_v59, 1  ;;  %v17973_v28 = vshrl.u32 %v17964_v13, 16 }
 0x8d6   : > { %17966 = vst [vmem:[#allocation36_spill] sm:$0xff] %v16138_v0  ;;  %8283 = vmatmul.mubr.bf16.gmra.mrb[132].mxu1 %v16143_v10  ;;  %v7924_v36 = vrot.slane %v17968_v39, 1  ;;  %v7944_v44 = vor.u32 %v17973_v28, %v7932_v51 }
 0x8d7   : > { %8290 = vmatprep.mubr.bf16.mxu1 %v16147_v38 }
 0x8d8   : > { %v16166_v39 = vsel %vm7749_vm3, %v7920_v8, %v7924_v36  ;;  %v17979_v8 = vshrl.u32 %v17967_v16, 16  ;;  %v17982_v16 = vld [vmem:[#allocation141_spill] sm:$0xff] }
 0x8d9   : > { %v7433_v18 = vpop.f32.mrb[28].mxu1 }
 0x8da   : > { %v16154_v49 = vadd.f32 %v7433_v18, %v15750_v14  ;;  %v7435_v3 = vpop.f32.mrb[29].mxu1  ;;  %v16170_v14 = vsel %vm7749_vm3, %v7944_v44, %v7948_v57  ;;  %v7936_v2 = vor.u32 %v17979_v8, %v7924_v36  ;;  %v17983_v36 = vshll.u32 %v17982_v16, 16 }
 0x8db   : > { %v7436_v11 = vpop.f32.mrb[30].mxu1  ;;  %v17974_v3 = vld [vmem:[#allocation139_spill] sm:$0xff] }
 0x8dc   : > { %17969 = vst [vmem:[#allocation37_spill] sm:$0xff] %v16154_v49  ;;  %v16161_v33 = vadd.f32 %v7436_v11, %v15753_v63  ;;  %v7438_v0 = vpop.f32.mrb[31].mxu1  ;;  %v17975_v41 = vshll.u32 %v17974_v3, 16  ;;  %v17977_v11 = vld [vmem:[#allocation10_spill] sm:$0xff] }
 0x8dd   : > { %v17978_v51 = vshll.u32 %v17977_v11, 16 }
 0x8de   : > { %17972 = vst [vmem:[#allocation26_spill] sm:$0xff] %v16161_v33  ;;  %8291 = vmatmul.mubr.bf16.gmra.mrb[136].mxu1 %v16166_v39  ;;  %v7940_v59 = vrot.slane %v17975_v41, 1  ;;  %v17981_v33 = vshrl.u32 %v17970_v60, 16  ;;  %v17985_v60 = vld [vmem:[#allocation142_spill] sm:$0xff] }
 0x8df   : > { %8298 = vmatprep.mubr.bf16.mxu1 %v16170_v14  ;;  %v7964_v28 = vrot.slane %v17978_v51, 1  ;;  %v17987_v51 = vshrl.u32 %v17974_v3, 16  ;;  %v17990_v3 = vld [vmem:[#allocation145_spill] sm:$0xff] }
 0x8e0   : > { %v7960_v49 = vor.u32 %v17981_v33, %v7948_v57  ;;  %v16188_v41 = vsel %vm7749_vm3, %v7936_v2, %v7940_v59  ;;  %v17986_v33 = vshll.u32 %v17985_v60, 16 }
 0x8e1   : > { %v7441_v18 = vpop.f32.mrb[32].mxu1 }
 0x8e2   : > { %v16176_v63 = vadd.f32 %v7441_v18, %v15762_v48  ;;  %v7443_v0 = vpop.f32.mrb[33].mxu1  ;;  %v16192_v48 = vsel %vm7749_vm3, %v7960_v49, %v7964_v28  ;;  %v7980_v57 = vrot.slane %v17986_v33, 1 }
 0x8e3   : > { %v7444_v13 = vpop.f32.mrb[34].mxu1  ;;  %v7956_v0 = vrot.slane %v17983_v36, 1 }
 0x8e4   : > { %17976 = vst [vmem:[#allocation27_spill] sm:$0xff] %v16176_v63  ;;  %v16183_v44 = vadd.f32 %v7444_v13, %v15765_v23  ;;  %v7446_v43 = vpop.f32.mrb[35].mxu1  ;;  %v7952_v13 = vor.u32 %v17987_v51, %v7940_v59  ;;  %v17991_v59 = vshll.u32 %v17990_v3, 16  ;;  %v17995_v51 = vshrl.u32 %v17982_v16, 16  ;;  %v17998_v16 = vld [vmem:[#allocation147_spill] sm:$0xff] }
 0x8e6   : > { %17980 = vst [vmem:[#allocation38_spill] sm:$0xff] %v16183_v44  ;;  %8299 = vmatmul.mubr.bf16.gmra.mrb[140].mxu1 %v16188_v41  ;;  %v17989_v44 = vshrl.u32 %v17977_v11, 16  ;;  %v16210_v36 = vsel %vm7749_vm3, %v7952_v13, %v7956_v0  ;;  %v17993_v11 = vld [vmem:[#allocation146_spill] sm:$0xff]  ;;  %v7968_v13 = vor.u32 %v17995_v51, %v7956_v0  ;;  %v17999_v0 = vshll.u32 %v17998_v16, 16 }
 0x8e7   : > { %8306 = vmatprep.mubr.bf16.mxu1 %v16192_v48 }
 0x8e8   : > { %v7976_v63 = vor.u32 %v17989_v44, %v7964_v28  ;;  %v17994_v28 = vshll.u32 %v17993_v11, 16 }
 0x8e9   : > { %v7449_v18 = vpop.f32.mrb[36].mxu1 }
 0x8ea   : > { %v16198_v23 = vadd.f32 %v7449_v18, %v15774_v27  ;;  %v7451_v43 = vpop.f32.mrb[37].mxu1  ;;  %v16214_v27 = vsel %vm7749_vm3, %v7976_v63, %v7980_v57  ;;  %v7996_v44 = vrot.slane %v17994_v28, 1 }
 0x8eb   : > { %v7452_v2 = vpop.f32.mrb[38].mxu1  ;;  %v7972_v43 = vrot.slane %v17991_v59, 1 }
 0x8ec   : > { %17984 = vst [vmem:[#allocation39_spill] sm:$0xff] %v16198_v23  ;;  %v16205_v49 = vadd.f32 %v7452_v2, %v15777_v17  ;;  %v7454_v8 = vpop.f32.mrb[39].mxu1 }
 0x8ed   : > { %v16232_v59 = vsel %vm7749_vm3, %v7968_v13, %v7972_v43 }
 0x8ee   : > { %17988 = vst [vmem:[#allocation28_spill] sm:$0xff] %v16205_v49  ;;  %8307 = vmatmul.mubr.bf16.gmra.mrb[144].mxu1 %v16210_v36  ;;  %v17997_v49 = vshrl.u32 %v17985_v60, 16  ;;  %v12144_v60 = vld [vmem:[#allocation2 + $0x258] sm:$0xff] }
 0x8ef   : > { %8314 = vmatprep.mubr.bf16.mxu1 %v16214_v27 }
 0x8f0   : > { %v7992_v23 = vor.u32 %v17997_v49, %v7980_v57  ;;  %v7713_v57 = vpack.c.bf16 %v15824_v20, %v12144_v60 }
 0x8f1   : > { %v7457_v18 = vpop.f32.mrb[40].mxu1 }
 0x8f2   : > { %v16220_v17 = vadd.f32 %v7457_v18, %v15786_v61  ;;  %v7459_v33 = vpop.f32.mrb[41].mxu1  ;;  %v16236_v61 = vsel %vm7749_vm3, %v7992_v23, %v7996_v44  ;;  %v8026_v20 = vshll.u32 %v7713_v57, 16 }
 0x8f3   : > { %v7460_v2 = vpop.f32.mrb[42].mxu1  ;;  %v7988_v33 = vrot.slane %v17999_v0, 1 }
 0x8f4   : > { %17992 = vst [vmem:[#allocation29_spill] sm:$0xff] %v16220_v17  ;;  %v16227_v63 = vadd.f32 %v7460_v2, %v15789_v24  ;;  %v7462_v8 = vpop.f32.mrb[43].mxu1  ;;  %v18001_v2 = vshrl.u32 %v17990_v3, 16  ;;  %v7677_v3 = vld [vmem:[#allocation2 + $0x278] sm:$0x1] }
 0x8f5   : > { %v18003_v8 = vshrl.u32 %v17993_v11, 16 }
 0x8f6   : > { %17996 = vst [vmem:[#allocation41_spill] sm:$0xff] %v16227_v63  ;;  %8315 = vmatmul.mubr.bf16.gmra.mrb[148].mxu1 %v16232_v59  ;;  %v7984_v51 = vor.u32 %v18001_v2, %v7972_v43  ;;  %v7715_v2 = vpack.c.bf16 %v7677_v3, %v7677_v3  ;;  %v8038_v3 = vshrl.u32 %v7713_v57, 16 }
 0x8f7   : > { %8322 = vmatprep.mubr.bf16.mxu1 %v16236_v61  ;;  %v8008_v63 = vor.u32 %v18003_v8, %v7996_v44 }
 0x8f8   : > { %v16253_v0 = vsel %vm7749_vm3, %v7984_v51, %v7988_v33 }
 0x8f9   : > { %v7465_v18 = vpop.f32.mrb[44].mxu1 }
 0x8fa   : > { %v16242_v24 = vadd.f32 %v7465_v18, %v15798_v9  ;;  %v7467_v28 = vpop.f32.mrb[45].mxu1  ;;  %v18004_v9 = vld [vmem:[#allocation134_spill] sm:$0xff] }
 0x8fb   : > { %v7468_v49 = vpop.f32.mrb[46].mxu1  ;;  %v16258_v18 = vsel %vm7749_vm3, %v8008_v63, %v18004_v9 }
 0x8fc   : > { %18000 = vst [vmem:[#allocation43_spill] sm:$0xff] %v16242_v24  ;;  %v16248_v23 = vadd.f32 %v7468_v49, %v15801_v7  ;;  %v7470_v13 = vpop.f32.mrb[47].mxu1  ;;  %v18005_v7 = vld [vmem:[#allocation148_spill] sm:$0xff]  ;;  %v8028_v49 = vrot.slane %v8026_v20, 1  ;;  %v8392_v20 = vld [vmem:[#allocation2 + $0x58] sm:$0xfe] }
 0x8fd   : > { %v18006_v28 = vshll.u32 %v18005_v7, 16  ;;  %v18008_v13 = vshrl.u32 %v17998_v16, 16 }
 0x8fe   : > { %18002 = vst [vmem:[#allocation30_spill] sm:$0xff] %v16248_v23  ;;  %8323 = vmatmul.mubr.bf16.gmra.mrb[152].mxu1 %v16253_v0  ;;  %v8040_v24 = vor.u32 %v8038_v3, %v8028_v49 }
 0x8ff   : > { %8330 = vmatprep.mubr.bf16.mxu1 %v16258_v18  ;;  %v8004_v60 = vrot.slane %v18006_v28, 1  ;;  %v8000_v8 = vor.u32 %v18008_v13, %v7988_v33  ;;  %v18011_v28 = vld [vmem:[#allocation143_spill] sm:$0xff]  ;;  %v18013_v33 = vld [vmem:[#allocation150_spill] sm:$0xff] }
 0x901   : > { %v7473_v43 = vpop.f32.mrb[48].mxu1  ;;  %v16272_v23 = vsel %vm7749_vm3, %v8000_v8, %v8004_v60 }
 0x902   : > { %v16264_v11 = vadd.f32 %v7473_v43, %v15810_v35  ;;  %v7475_v44 = vpop.f32.mrb[49].mxu1  ;;  %18010 = vst [vmem:[#allocation40_spill] sm:$0xff] %v16272_v23  ;;  %v8029_v35 = vsel %vm7749_vm3, %v18011_v28, %v8028_v49  ;;  %v8042_v43 = vshll.u32 %v7715_v2, 16  ;;  %v12146_v49 = vld [vmem:[#allocation2 + $0x60] sm:$0xff] }
 0x903   : > { %v7476_v51 = vpop.f32.mrb[50].mxu1  ;;  %v7676_v44 = vld [vmem:[#allocation2 + $0x270] sm:$0x1] }
 0x904   : > { %18007 = vst [vmem:[#allocation114_spill] sm:$0xff] %v16264_v11  ;;  %v16269_v63 = vadd.f32 %v7476_v51, %v15813_v50  ;;  %v7478_v9 = vpop.f32.mrb[51].mxu1  ;;  %v16277_v11 = vld [vmem:[#allocation2 + $0x68] sm:$0xff]  ;;  %v18014_v51 = vshll.u32 %v18013_v33, 16  ;;  %v7714_v8 = vpack.c.bf16 %v7676_v44, %v7676_v44  ;;  %v8044_v28 = vrot.slane %v8042_v43, 1 }
 0x905   : > { %18012 = vst [vmem:[#allocation115_spill] sm:$0xff] %v16277_v11  ;;  %v8466_v16 = vpack.c.bf16 %v16277_v11, %v8392_v20 }
 0x906   : > { %18009 = vst [vmem:[#allocation44_spill] sm:$0xff] %v16269_v63  ;;  %8331 = vmatmul.mubr.bf16.gmra.mrb[156].mxu1 %v16272_v23  ;;  %v8020_v13 = vrot.slane %v18014_v51, 1  ;;  %v8034_v51 = vshll.u32 %v7714_v8, 16 }
 0x907   : > { %8338 = vmatprep.mubr.bf16.mxu1 %v8029_v35  ;;  %v18015_v35 = vshrl.u32 %v18005_v7, 16  ;;  %v8551_v20 = vshll.u32 %v8466_v16, 16 }
 0x909   : > { %v7481_v50 = vpop.f32.mrb[52].mxu1  ;;  %v8016_v17 = vor.u32 %v18015_v35, %v8004_v60  ;;  %v8553_v44 = vrot.slane %v8551_v20, 1  ;;  %v18016_v60 = vshrl.u32 %v18013_v33, 16 }
 0x90a   : > { %v16283_v9 = vadd.f32 %v7481_v50, %v15822_v62  ;;  %v7483_v63 = vpop.f32.mrb[53].mxu1  ;;  %v8045_v62 = vsel %vm7749_vm3, %v8040_v24, %v8044_v28  ;;  %v8549_v50 = vshrl.u32 %v8466_v16, 16  ;;  %v12046_v16 = vld [vmem:[%s17178_s3 + $0x380] sm:$0xff]  }
 0x90b   : > { %v7484_v2 = vpop.f32.mrb[54].mxu1  ;;  %v16291_v11 = vsel %vm7749_vm3, %v8016_v17, %v8020_v13  ;;  %v8391_v63 = vld [vmem:[#allocation2 + $0x50] sm:$0xfe] }
 0x90c   : > { %v16288_v57 = vadd.f32 %v7484_v2, %v15827_v56  ;;  %v7486_v23 = vpop.f32.mrb[55].mxu1  ;;  %v8465_v43 = vpack.c.bf16 %v12146_v49, %v8391_v63  ;;  %v16297_v56 = vor.u32 %v18016_v60, %v8020_v13  ;;  %v8554_v35 = vor.u32 %v8553_v44, %v8549_v50 }
 0x90d   : > { %v8036_v23 = vrot.slane %v8034_v51, 1 }
 0x90e   : > { %8339 = vmatmul.mubr.bf16.gmra.mrb[160].mxu1 %v16291_v11  ;;  %v8539_v2 = vshll.u32 %v8465_v43, 16  ;;  %v8559_v28 = vsel %vm7749_vm3, %v8554_v35, %v15848_v45  ;;  %v8537_v33 = vshrl.u32 %v8465_v43, 16  ;;  %v12047_v45 = vld [vmem:[%s17178_s3 + $0x388] sm:$0xff]  }
 0x90f   : > { %8346 = vmatprep.mubr.bf16.mxu1 %v8045_v62  ;;  %v8037_v24 = vsel %vm7749_vm3, %v16297_v56, %v8036_v23 }
 0x910   : > { %v8541_v20 = vrot.slane %v8539_v2, 1 }
 0x911   : > { %v7489_v7 = vpop.f32.mrb[56].mxu1 }
 0x912   : > { %v7491_v3 = vpop.f32.mrb[57].mxu1  ;;  %v8542_v51 = vor.u32 %v8541_v20, %v8537_v33  ;;  %v16309_v60 = vadd.f32 %v7489_v7, %v15835_v34  ;;  %v12048_v34 = vld [vmem:[%s17178_s3 + $0x390] sm:$0xff]  }
 0x913   : > { %v7492_v17 = vpop.f32.mrb[58].mxu1 }
 0x914   : > { %v7494_v8 = vpop.f32.mrb[59].mxu1  ;;  %v8547_v44 = vsel %vm7749_vm3, %v8542_v51, %v15866_v31  ;;  %v16317_v3 = vadd.f32 %v7492_v17, %v15839_v19 }
 0x916   : > { %8347 = vmatmul.mubr.bf16.gmra.mrb[164].mxu1 %v8037_v24 }
 0x917   : > { %8996 = vmatprep.mubr.bf16.mxu1 %v8559_v28 }
 0x919   : > { %v7497_v62 = vpop.f32.mrb[60].mxu1 }
 0x91a   : > { %v7499_v13 = vpop.f32.mrb[61].mxu1  ;;  %v16329_v19 = vadd.f32 %v7497_v62, %v15844_v4  ;;  %v12051_v4 = vld [vmem:[%s17178_s3 + $0x3a8] sm:$0xff]  }
 0x91b   : > { %v7500_v63 = vpop.f32.mrb[62].mxu1 }
 0x91c   : > { %v7502_v49 = vpop.f32.mrb[63].mxu1  ;;  %v16333_v2 = vadd.f32 %v7500_v63, %v15854_v6 }
 0x91e   : > { %8997 = vmatmul.mubr.bf16.vlgmr.msra.gmra.mrb[168].mxu1 %v8547_v44 }
 0x91f   : > { %9004 = vmatprep.mubr.bf16.mxu1 %v15888_v53  ;;  %9464 = vmatpush1.bf16.msra.mxu1 %v12046_v16  ;;  %v12049_v53 = vld [vmem:[%s17178_s3 + $0x398] sm:$0xff]  }
 0x920   : > { %9465 = vmatprep.subr.bf16.mxu1 %v17488_v52 }
 0x921   : > { %v7505_v43 = vpop.f32.mrb[64].mxu1 }
 0x922   : > { %v7507_v23 = vpop.f32.mrb[65].mxu1  ;;  %v16345_v6 = vadd.f32 %v7505_v43, %v15869_v1  ;;  %v12053_v1 = vld [vmem:[%s17178_s3 + $0x3b8] sm:$0xff]  }
 0x923   : > { %v7508_v50 = vpop.f32.mrb[66].mxu1  ;;  %9466 = vmatpush1.bf16.msra.mxu1 %v12047_v45 }
 0x924   : > { %v7510_v31 = vpop.f32.mrb[67].mxu1  ;;  %9467 = vmatprep.subr.bf16.mxu1 %v17488_v52  ;;  %v16349_v28 = vadd.f32 %v7508_v50, %v15878_v55  ;;  %v18018_v50 = vld [vmem:[#allocation31_spill] sm:$0xff] }
 0x926   : > { %9005 = vmatmul.mubr.bf16.gmra.mrb[172].mxu1 %v15917_v26  ;;  %v12050_v26 = vld [vmem:[%s17178_s3 + $0x3a0] sm:$0xff]  }
 0x927   : > { %9012 = vmatprep.mubr.bf16.mxu1 %v15922_v58  ;;  %9468 = vmatpush1.bf16.msra.mxu1 %v12048_v34 }
 0x928   : > { %9469 = vmatprep.subr.bf16.mxu1 %v17488_v52 }
 0x929   : > { %v7513_v7 = vpop.f32.mrb[68].mxu1 }
 0x92a   : > { %v7515_v17 = vpop.f32.mrb[69].mxu1  ;;  %v16361_v55 = vadd.f32 %v7513_v7, %v15899_v30  ;;  %v12055_v30 = vld [vmem:[%s17178_s3 + $0x3c8] sm:$0xff]  }
 0x92b   : > { %v7516_v8 = vpop.f32.mrb[70].mxu1  ;;  %9470 = vmatpush1.bf16.msra.mxu1 %v12049_v53  ;;  %v18019_v53 = vld [vmem:[#allocation34_spill] sm:$0xff]  ;;  %v12059_v7 = vld [vmem:[%s17178_s3 + $0x3e8] sm:$0xff]  }
 0x92c   : > { %v7518_v58 = vpop.f32.mrb[71].mxu1  ;;  %9471 = vmatprep.subr.bf16.mxu1 %v17488_v52  ;;  %v16365_v13 = vadd.f32 %v7516_v8, %v15911_v15  ;;  %v18020_v17 = vld [vmem:[#allocation82_spill] sm:$0xff] }
 0x92e   : > { %9013 = vmatmul.mubr.bf16.gmra.mrb[176].mxu1 %v15951_v42  ;;  %v12052_v42 = vld [vmem:[%s17178_s3 + $0x3b0] sm:$0xff]  }
 0x92f   : > { %9020 = vmatprep.mubr.bf16.mxu1 %v15956_v32  ;;  %9472 = vmatpush1.bf16.msra.mxu1 %v12050_v26 }
 0x930   : > { %9473 = vmatprep.subr.bf16.mxu1 %v17488_v52 }
 0x931   : > { %v7521_v35 = vpop.f32.mrb[72].mxu1 }
 0x932   : > { %v7523_v24 = vpop.f32.mrb[73].mxu1  ;;  %v16377_v15 = vadd.f32 %v7521_v35, %v15934_v21  ;;  %v12057_v21 = vld [vmem:[%s17178_s3 + $0x3d8] sm:$0xff]  }
 0x933   : > { %v7524_v20 = vpop.f32.mrb[74].mxu1  ;;  %9474 = vmatpush1.bf16.msra.mxu1 %v12051_v4  ;;  %v18021_v4 = vld [vmem:[#allocation83_spill] sm:$0xff] }
 0x934   : > { %v7526_v32 = vpop.f32.mrb[75].mxu1  ;;  %9475 = vmatprep.subr.bf16.mxu1 %v17488_v52  ;;  %v16381_v49 = vadd.f32 %v7524_v20, %v15945_v5  ;;  %v18017_v5 = vld [vmem:[#allocation78_spill] sm:$0xff] }
 0x935   : > { %v18022_v32 = vld [vmem:[#allocation32_spill] sm:$0xff] }
 0x936   : > { %9021 = vmatmul.mubr.bf16.gmra.mrb[180].mxu1 %v15985_v29  ;;  %v12054_v29 = vld [vmem:[%s17178_s3 + $0x3c0] sm:$0xff]  }
 0x937   : > { %9028 = vmatprep.mubr.bf16.mxu1 %v15990_v47  ;;  %9476 = vmatpush1.bf16.msra.mxu1 %v12052_v42  ;;  %v12061_v42 = vld [vmem:[%s17178_s3 + $0x3f8] sm:$0xff]  }
 0x938   : > { %9477 = vmatprep.subr.bf16.mxu1 %v17488_v52 }
 0x939   : > { %v7529_v62 = vpop.f32.mrb[76].mxu1 }
 0x93a   : > { %v7531_v33 = vpop.f32.mrb[77].mxu1  ;;  %v16393_v45 = vadd.f32 %v7529_v62, %v18017_v5  ;;  %v18026_v5 = vld [vmem:[#allocation35_spill] sm:$0xff] }
 0x93b   : > { %v7532_v63 = vpop.f32.mrb[78].mxu1  ;;  %9478 = vmatpush1.bf16.msra.mxu1 %v12053_v1 }
 0x93c   : > { %v7534_v47 = vpop.f32.mrb[79].mxu1  ;;  %9479 = vmatprep.subr.bf16.mxu1 %v17488_v52  ;;  %v16397_v34 = vadd.f32 %v7532_v63, %v18018_v50  ;;  %v18023_v63 = vld [vmem:[#allocation33_spill] sm:$0xff] }
 0x93e   : > { %9029 = vmatmul.mubr.bf16.gmra.mrb[184].mxu1 %v16019_v46  ;;  %v12056_v46 = vld [vmem:[%s17178_s3 + $0x3d0] sm:$0xff]  }
 0x93f   : > { %9036 = vmatprep.mubr.bf16.mxu1 %v16024_v40  ;;  %9480 = vmatpush1.bf16.msra.mxu1 %v12054_v29 }
 0x940   : > { %9481 = vmatprep.subr.bf16.mxu1 %v17488_v52 }
 0x941   : > { %v7537_v51 = vpop.f32.mrb[80].mxu1 }
 0x942   : > { %v7539_v16 = vpop.f32.mrb[81].mxu1  ;;  %v16409_v8 = vadd.f32 %v7537_v51, %v18020_v17 }
 0x943   : > { %v7540_v44 = vpop.f32.mrb[82].mxu1  ;;  %9482 = vmatpush1.bf16.msra.mxu1 %v12055_v30 }
 0x944   : > { %v7542_v40 = vpop.f32.mrb[83].mxu1  ;;  %9483 = vmatprep.subr.bf16.mxu1 %v17488_v52  ;;  %v16413_v35 = vadd.f32 %v7540_v44, %v18021_v4  ;;  %v18025_v44 = vld [vmem:[#allocation109_spill] sm:$0xff] }
 0x945   : > { %v18030_v4 = vld [vmem:[#allocation37_spill] sm:$0xff] }
 0x946   : > { %9037 = vmatmul.mubr.bf16.gmra.mrb[188].mxu1 %v16053_v25  ;;  %v12058_v25 = vld [vmem:[%s17178_s3 + $0x3e0] sm:$0xff]  }
 0x947   : > { %9044 = vmatprep.mubr.bf16.mxu1 %v16058_v37  ;;  %9484 = vmatpush1.bf16.msra.mxu1 %v12056_v46 }
 0x948   : > { %9485 = vmatprep.subr.bf16.mxu1 %v17488_v52 }
 0x949   : > { %v7545_v43 = vpop.f32.mrb[84].mxu1 }
 0x94a   : > { %v7547_v23 = vpop.f32.mrb[85].mxu1  ;;  %v16425_v1 = vadd.f32 %v7545_v43, %v18022_v32 }
 0x94b   : > { %v7548_v31 = vpop.f32.mrb[86].mxu1  ;;  %9486 = vmatpush1.bf16.msra.mxu1 %v12057_v21 }
 0x94c   : > { %v7550_v37 = vpop.f32.mrb[87].mxu1  ;;  %9487 = vmatprep.subr.bf16.mxu1 %v17488_v52  ;;  %v16429_v29 = vadd.f32 %v7548_v31, %v18023_v63 }
 0x94d   : > { %v18028_v37 = vld [vmem:[#allocation25_spill] sm:$0xff] }
 0x94e   : > { %9045 = vmatmul.mubr.bf16.gmra.mrb[192].mxu1 %v16087_v22  ;;  %v12060_v22 = vld [vmem:[%s17178_s3 + $0x3f0] sm:$0xff]  }
 0x94f   : > { %9052 = vmatprep.mubr.bf16.mxu1 %v18019_v53  ;;  %9488 = vmatpush1.bf16.msra.mxu1 %v12058_v25 }
 0x950   : > { %9489 = vmatprep.subr.bf16.mxu1 %v17488_v52 }
 0x951   : > { %v7553_v26 = vpop.f32.mrb[88].mxu1 }
 0x952   : > { %v7555_v58 = vpop.f32.mrb[89].mxu1 }
 0x953   : > { %v7556_v24 = vpop.f32.mrb[90].mxu1  ;;  %9490 = vmatpush1.bf16.msra.mxu1 %v12059_v7 }
 0x954   : > { %v7558_v20 = vpop.f32.mrb[91].mxu1  ;;  %9491 = vmatprep.subr.bf16.mxu1 %v17488_v52  ;;  %v16438_v46 = vadd.f32 %v7556_v24, %v18025_v44 }
 0x956   : > { %9053 = vmatmul.mubr.bf16.gmra.mrb[196].mxu1 %v16118_v54 }
 0x957   : > { %9060 = vmatprep.mubr.bf16.mxu1 %v16123_v12  ;;  %9492 = vmatpush1.bf16.msra.mxu1 %v12060_v22  ;;  %v18024_v12 = vld [vmem:[#allocation23_spill] sm:$0xff] }
 0x958   : > { %9493 = vmatprep.subr.bf16.mxu1 %v17488_v52  ;;  %v16435_v30 = vadd.f32 %v7553_v26, %v18024_v12 }
 0x959   : > { %v7561_v62 = vpop.f32.mrb[92].mxu1 }
 0x95a   : > { %v7563_v33 = vpop.f32.mrb[93].mxu1  ;;  %v16443_v43 = vadd.f32 %v7561_v62, %v18026_v5  ;;  %v18032_v62 = vld [vmem:[#allocation27_spill] sm:$0xff] }
 0x95b   : > { %v7564_v47 = vpop.f32.mrb[94].mxu1  ;;  %9494 = vmatpush1.bf16.msra.mxu1 %v12061_v42 }
 0x95c   : > { %v7566_v54 = vpop.f32.mrb[95].mxu1  ;;  %10020 = vmatprep.subr.bf16.mxu1 %v17488_v52 }
 0x95e   : > { %9061 = vmatmul.mubr.bf16.gmra.mrb[200].mxu1 %v16143_v10 }
 0x95f   : > { %9068 = vmatprep.mubr.bf16.mxu1 %v16147_v38  ;;  %v18027_v38 = vld [vmem:[#allocation24_spill] sm:$0xff] }
 0x960   : > { %v16446_v50 = vadd.f32 %v7564_v47, %v18027_v38  ;;  %v18037_v38 = vld [vmem:[#allocation149_spill] sm:$0xff] }
 0x961   : > { %v8212_v51 = vpop.f32.mrb[96].mxu1 }
 0x962   : > { %v8214_v16 = vpop.f32.mrb[97].mxu1  ;;  %v16451_v53 = vadd.f32 %v8212_v51, %v18028_v37  ;;  %v18034_v51 = vld [vmem:[#allocation39_spill] sm:$0xff] }
 0x963   : > { %v8215_v40 = vpop.f32.mrb[98].mxu1 }
 0x964   : > { %v8217_v21 = vpop.f32.mrb[99].mxu1 }
 0x966   : > { %9069 = vmatmul.mubr.bf16.gmra.mrb[204].mxu1 %v16166_v39 }
 0x967   : > { %9076 = vmatprep.mubr.bf16.mxu1 %v16170_v14  ;;  %v18029_v14 = vld [vmem:[#allocation36_spill] sm:$0xff] }
 0x968   : > { %v16454_v17 = vadd.f32 %v8215_v40, %v18029_v14 }
 0x969   : > { %v8220_v10 = vpop.f32.mrb[100].mxu1 }
 0x96a   : > { %v8222_v23 = vpop.f32.mrb[101].mxu1  ;;  %v16459_v24 = vadd.f32 %v8220_v10, %v18030_v4  ;;  %v8464_v10 = vld [vmem:[#allocation2 + $0x298] sm:$0x1] }
 0x96b   : > { %v8223_v31 = vpop.f32.mrb[102].mxu1  ;;  %v18036_v23 = vld [vmem:[#allocation40_spill] sm:$0xff] }
 0x96c   : > { %v8225_v25 = vpop.f32.mrb[103].mxu1 }
 0x96e   : > { %9077 = vmatmul.mubr.bf16.gmra.mrb[208].mxu1 %v16188_v41 }
 0x96f   : > { %9084 = vmatprep.mubr.bf16.mxu1 %v16192_v48  ;;  %v18031_v48 = vld [vmem:[#allocation26_spill] sm:$0xff] }
 0x970   : > { %v16462_v20 = vadd.f32 %v8223_v31, %v18031_v48  ;;  %v18038_v31 = vld [vmem:[#allocation29_spill] sm:$0xff] }
 0x971   : > { %v8228_v39 = vpop.f32.mrb[104].mxu1 }
 0x972   : > { %v8230_v7 = vpop.f32.mrb[105].mxu1  ;;  %v16467_v33 = vadd.f32 %v8228_v39, %v18032_v62  ;;  %v18039_v39 = vld [vmem:[#allocation144_spill] sm:$0xff] }
 0x973   : > { %v8231_v26 = vpop.f32.mrb[106].mxu1  ;;  %v18040_v7 = vld [vmem:[#allocation135_spill] sm:$0xff] }
 0x974   : > { %v8233_v58 = vpop.f32.mrb[107].mxu1  ;;  %v18041_v14 = vshrl.u32 %v18040_v7, 16  ;;  %v18048_v7 = vld [vmem:[#allocation114_spill] sm:$0xff] }
 0x975   : > { %v18042_v58 = vld [vmem:[#allocation152_spill] sm:$0xff] }
 0x976   : > { %9085 = vmatmul.mubr.bf16.gmra.mrb[212].mxu1 %v16210_v36  ;;  %v18043_v4 = vshll.u32 %v18042_v58, 16 }
 0x977   : > { %9092 = vmatprep.mubr.bf16.mxu1 %v16214_v27  ;;  %v18033_v27 = vld [vmem:[#allocation38_spill] sm:$0xff] }
 0x978   : > { %v16470_v47 = vadd.f32 %v8231_v26, %v18033_v27  ;;  %v8810_v26 = vor.u32 %v18041_v14, %v18039_v39 }
 0x979   : > { %v8236_v41 = vpop.f32.mrb[108].mxu1 }
 0x97a   : > { %v8238_v22 = vpop.f32.mrb[109].mxu1  ;;  %v16475_v16 = vadd.f32 %v8236_v41, %v18034_v51  ;;  %v8814_v41 = vrot.slane %v18043_v4, 1  ;;  %v18049_v4 = vld [vmem:[#allocation44_spill] sm:$0xff] }
 0x97b   : > { %v8239_v42 = vpop.f32.mrb[110].mxu1  ;;  %v18044_v22 = vld [vmem:[#allocation41_spill] sm:$0xff] }
 0x97c   : > { %v8241_v32 = vpop.f32.mrb[111].mxu1  ;;  %v8807_v39 = vsel %vm7749_vm3, %v16297_v56, %v8814_v41 }
 0x97e   : > { %9093 = vmatmul.mubr.bf16.gmra.mrb[216].mxu1 %v16232_v59 }
 0x97f   : > { %9100 = vmatprep.mubr.bf16.mxu1 %v16236_v61  ;;  %v18035_v61 = vld [vmem:[#allocation28_spill] sm:$0xff] }
 0x980   : > { %v16478_v40 = vadd.f32 %v8239_v42, %v18035_v61 }
 0x981   : > { %v8244_v36 = vpop.f32.mrb[112].mxu1 }
 0x982   : > { %v8246_v63 = vpop.f32.mrb[113].mxu1  ;;  %v16483_v25 = vadd.f32 %v8244_v36, %v18038_v31  ;;  %v8815_v36 = vsel %vm7749_vm3, %v8810_v26, %v8814_v41 }
 0x983   : > { %v8247_v54 = vpop.f32.mrb[114].mxu1  ;;  %v8463_v63 = vld [vmem:[#allocation2 + $0x290] sm:$0x1] }
 0x984   : > { %v8249_v12 = vpop.f32.mrb[115].mxu1  ;;  %v16491_v48 = vadd.f32 %v8247_v54, %v18044_v22  ;;  %v8501_v27 = vpack.c.bf16 %v8463_v63, %v8463_v63 }
 0x985   : > { %v18045_v12 = vld [vmem:[#allocation43_spill] sm:$0xff] }
 0x986   : > { %9101 = vmatmul.mubr.bf16.gmra.mrb[220].mxu1 %v16253_v0  ;;  %v8502_v0 = vpack.c.bf16 %v8464_v10, %v8464_v10 }
 0x987   : > { %9108 = vmatprep.mubr.bf16.mxu1 %v16258_v18 }
 0x988   : > { %v8828_v62 = vshll.u32 %v8502_v0, 16  ;;  %v8820_v0 = vshll.u32 %v8501_v27, 16 }
 0x989   : > { %v8252_v59 = vpop.f32.mrb[116].mxu1 }
 0x98a   : > { %v8254_v44 = vpop.f32.mrb[117].mxu1  ;;  %v16496_v51 = vadd.f32 %v8252_v59, %v18045_v12  ;;  %v8822_v59 = vrot.slane %v8820_v0, 1 }
 0x98b   : > { %v8255_v21 = vpop.f32.mrb[118].mxu1  ;;  %v18046_v44 = vshrl.u32 %v18042_v58, 16 }
 0x98c   : > { %v8257_v5 = vpop.f32.mrb[119].mxu1 }
 0x98d   : > { %v8826_v61 = vor.u32 %v18046_v44, %v8814_v41  ;;  %v8830_v5 = vrot.slane %v8828_v62, 1  ;;  %v18050_v41 = vld [vmem:[#allocation151_spill] sm:$0xff] }
 0x98e   : > { %9109 = vmatmul.mubr.bf16.gmra.mrb[224].mxu1 %v18036_v23  ;;  %v18047_v23 = vld [vmem:[#allocation30_spill] sm:$0xff] }
 0x98f   : > { %9116 = vmatprep.mubr.bf16.mxu1 %v18037_v38  ;;  %v16501_v38 = vadd.f32 %v8255_v21, %v18047_v23  ;;  %v8823_v62 = vsel %vm7749_vm3, %v8826_v61, %v8822_v59 }
 0x991   : > { %v8260_v18 = vpop.f32.mrb[120].mxu1 }
 0x992   : > { %v8262_v37 = vpop.f32.mrb[121].mxu1  ;;  %v16507_v14 = vadd.f32 %v8260_v18, %v18048_v7 }
 0x993   : > { %v8263_v42 = vpop.f32.mrb[122].mxu1 }
 0x994   : > { %v8265_v32 = vpop.f32.mrb[123].mxu1  ;;  %v16513_v22 = vadd.f32 %v8263_v42, %v18049_v4 }
 0x996   : > { %9117 = vmatmul.mubr.bf16.gmra.mrb[228].mxu1 %v16291_v11  ;;  %v8831_v11 = vsel %vm7749_vm3, %v8826_v61, %v8830_v5  ;;  %v18051_v5 = vld [vmem:[#allocation153_spill] sm:$0xff] }
 0x997   : > { %9124 = vmatprep.mubr.bf16.mxu1 %v8815_v36 }
 0x999   : > { %v8268_v10 = vpop.f32.mrb[124].mxu1 }
 0x99a   : > { %v8270_v54 = vpop.f32.mrb[125].mxu1  ;;  %v16521_v18 = vadd.f32 %v8268_v10, %v16283_v9  ;;  %v18052_v9 = vld [vmem:[#allocation154_spill] sm:$0xff] }
 0x99b   : > { %v8271_v31 = vpop.f32.mrb[126].mxu1 }
 0x99c   : > { %v8273_v37 = vpop.f32.mrb[127].mxu1  ;;  %v16527_v42 = vadd.f32 %v8271_v31, %v16288_v57 }
 0x99d   : > { %v18053_v37 = vld [vmem:[#allocation18_spill] sm:$0xff] }
 0x99e   : > { %9125 = vmatmul.mubr.bf16.gmra.mrb[232].mxu1 %v8807_v39 }
 0x99f   : > { %9132 = vmatprep.mubr.bf16.mxu1 %v8831_v11  ;;  %v18054_v11 = vld [vmem:[#allocation155_spill] sm:$0xff] }
 0x9a1   : > { %v8276_v26 = vpop.f32.mrb[128].mxu1 }
 0x9a2   : > { %v16510_v58 = vadd.f32 %v8276_v26, %v16309_v60  ;;  %v8278_v21 = vpop.f32.mrb[129].mxu1  ;;  %v12066_v26 = vld [vmem:[%s17178_s3 + $0x420] sm:$0xff]  }
 0x9a3   : > { %v8279_v32 = vpop.f32.mrb[130].mxu1 }
 0x9a4   : > { %v16517_v63 = vadd.f32 %v8279_v32, %v16317_v3  ;;  %v8281_v56 = vpop.f32.mrb[131].mxu1  ;;  %v12062_v3 = vld [vmem:[%s17178_s3 + $0x400] sm:$0xff]  }
 0x9a5   : > { %v18055_v32 = vld [vmem:[#allocation156_spill] sm:$0xff] }
 0x9a6   : > { %9133 = vmatmul.mubr.bf16.gmra.mrb[236].mxu1 %v8823_v62  ;;  %v18056_v62 = vld [vmem:[#allocation21_spill] sm:$0xff] }
 0x9a7   : > { %9495 = vmatprep.mubr.bf16.mxu1 %v18050_v41 }
 0x9a9   : > { %v8284_v36 = vpop.f32.mrb[132].mxu1 }
 0x9aa   : > { %v16524_v60 = vadd.f32 %v8284_v36, %v16329_v19  ;;  %v8286_v27 = vpop.f32.mrb[133].mxu1  ;;  %v12063_v19 = vld [vmem:[%s17178_s3 + $0x408] sm:$0xff]  }
 0x9ab   : > { %v8287_v12 = vpop.f32.mrb[134].mxu1  ;;  %v12068_v27 = vld [vmem:[%s17178_s3 + $0x430] sm:$0xff]  }
 0x9ac   : > { %v16533_v44 = vadd.f32 %v8287_v12, %v16333_v2  ;;  %v8289_v61 = vpop.f32.mrb[135].mxu1  ;;  %v12064_v2 = vld [vmem:[%s17178_s3 + $0x410] sm:$0xff]  }
 0x9ad   : > { %v18057_v61 = vld [vmem:[#allocation157_spill] sm:$0xff] }
 0x9ae   : > { %9496 = vmatmul.mubr.bf16.vlgmr.msra.gmra.mrb[240].mxu1 %v18051_v5  ;;  %v18058_v5 = vld [vmem:[#allocation158_spill] sm:$0xff] }
 0x9af   : > { %9503 = vmatprep.mubr.bf16.mxu1 %v18052_v9  ;;  %10021 = vmatpush1.bf16.msra.mxu1 %v12062_v3 }
 0x9b0   : > { %10022 = vmatprep.subr.bf16.mxu1 %v17488_v52 }
 0x9b1   : > { %v8292_v57 = vpop.f32.mrb[136].mxu1 }
 0x9b2   : > { %v16542_v10 = vadd.f32 %v8292_v57, %v16345_v6  ;;  %v8294_v54 = vpop.f32.mrb[137].mxu1  ;;  %v12065_v6 = vld [vmem:[%s17178_s3 + $0x418] sm:$0xff]  }
 0x9b3   : > { %v8295_v23 = vpop.f32.mrb[138].mxu1  ;;  %10023 = vmatpush1.bf16.msra.mxu1 %v12063_v19  ;;  %v12070_v54 = vld [vmem:[%s17178_s3 + $0x440] sm:$0xff]  }
 0x9b4   : > { %v16548_v31 = vadd.f32 %v8295_v23, %v16349_v28  ;;  %v8297_v0 = vpop.f32.mrb[139].mxu1  ;;  %10024 = vmatprep.subr.bf16.mxu1 %v17488_v52 }
 0x9b5   : > { %v18059_v0 = vld [vmem:[#allocation159_spill] sm:$0xff] }
 0x9b6   : > { %9504 = vmatmul.mubr.bf16.gmra.mrb[244].mxu1 %v18053_v37  ;;  %v18060_v37 = vld [vmem:[#allocation160_spill] sm:$0xff] }
 0x9b7   : > { %9511 = vmatprep.mubr.bf16.mxu1 %v18054_v11  ;;  %10025 = vmatpush1.bf16.msra.mxu1 %v12064_v2 }
 0x9b8   : > { %10026 = vmatprep.subr.bf16.mxu1 %v17488_v52 }
 0x9b9   : > { %v8300_v39 = vpop.f32.mrb[140].mxu1 }
 0x9ba   : > { %v16558_v59 = vadd.f32 %v8300_v39, %v16361_v55  ;;  %v8302_v28 = vpop.f32.mrb[141].mxu1  ;;  %v12067_v55 = vld [vmem:[%s17178_s3 + $0x428] sm:$0xff]  }
 0x9bb   : > { %v8303_v7 = vpop.f32.mrb[142].mxu1  ;;  %10027 = vmatpush1.bf16.msra.mxu1 %v12065_v6  ;;  %v12072_v28 = vld [vmem:[%s17178_s3 + $0x450] sm:$0xff]  }
 0x9bc   : > { %v16564_v21 = vadd.f32 %v8303_v7, %v16365_v13  ;;  %v8305_v4 = vpop.f32.mrb[143].mxu1  ;;  %10028 = vmatprep.subr.bf16.mxu1 %v17488_v52 }
 0x9bd   : > { %v18061_v4 = vld [vmem:[#allocation161_spill] sm:$0xff] }
 0x9be   : > { %9512 = vmatmul.mubr.bf16.gmra.mrb[248].mxu1 %v18055_v32  ;;  %v18062_v32 = vld [vmem:[#allocation162_spill] sm:$0xff] }
 0x9bf   : > { %9519 = vmatprep.mubr.bf16.mxu1 %v18056_v62  ;;  %10029 = vmatpush1.bf16.msra.mxu1 %v12066_v26 }
 0x9c0   : > { %10030 = vmatprep.subr.bf16.mxu1 %v17488_v52 }
 0x9c1   : > { %v8308_v56 = vpop.f32.mrb[144].mxu1 }
 0x9c2   : > { %v16574_v41 = vadd.f32 %v8308_v56, %v16377_v15  ;;  %v8310_v13 = vpop.f32.mrb[145].mxu1  ;;  %v12069_v15 = vld [vmem:[%s17178_s3 + $0x438] sm:$0xff]  }
 0x9c3   : > { %v8311_v36 = vpop.f32.mrb[146].mxu1  ;;  %10031 = vmatpush1.bf16.msra.mxu1 %v12067_v55  ;;  %v12074_v13 = vld [vmem:[%s17178_s3 + $0x460] sm:$0xff]  }
 0x9c4   : > { %v16580_v12 = vadd.f32 %v8311_v36, %v16381_v49  ;;  %v8313_v3 = vpop.f32.mrb[147].mxu1  ;;  %10032 = vmatprep.subr.bf16.mxu1 %v17488_v52 }
 0x9c5   : > { %v18063_v3 = vld [vmem:[#allocation163_spill] sm:$0xff] }
 0x9c6   : > { %9520 = vmatmul.mubr.bf16.gmra.mrb[252].mxu1 %v18057_v61  ;;  %v18064_v61 = vld [vmem:[#allocation164_spill] sm:$0xff] }
 0x9c7   : > { %9527 = vmatprep.mubr.bf16.mxu1 %v18058_v5  ;;  %10033 = vmatpush1.bf16.msra.mxu1 %v12068_v27 }
 0x9c8   : > { %10034 = vmatprep.subr.bf16.mxu1 %v17488_v52 }
 0x9c9   : > { %v8316_v9 = vpop.f32.mrb[148].mxu1 }
 0x9ca   : > { %v16590_v19 = vadd.f32 %v8316_v9, %v16393_v45  ;;  %v8318_v49 = vpop.f32.mrb[149].mxu1  ;;  %v12071_v45 = vld [vmem:[%s17178_s3 + $0x448] sm:$0xff]  }
 0x9cb   : > { %v8319_v57 = vpop.f32.mrb[150].mxu1  ;;  %10035 = vmatpush1.bf16.msra.mxu1 %v12069_v15  ;;  %v12076_v49 = vld [vmem:[%s17178_s3 + $0x470] sm:$0xff]  }
 0x9cc   : > { %v16596_v23 = vadd.f32 %v8319_v57, %v16397_v34  ;;  %v8321_v2 = vpop.f32.mrb[151].mxu1  ;;  %10036 = vmatprep.subr.bf16.mxu1 %v17488_v52 }
 0x9cd   : > { %v18065_v2 = vld [vmem:[#allocation165_spill] sm:$0xff] }
 0x9ce   : > { %9528 = vmatmul.mubr.bf16.gmra.mrb[0].mxu1 %v18059_v0  ;;  %v18066_v0 = vld [vmem:[#allocation166_spill] sm:$0xff] }
 0x9cf   : > { %9535 = vmatprep.mubr.bf16.mxu1 %v18060_v37  ;;  %10037 = vmatpush1.bf16.msra.mxu1 %v12070_v54 }
 0x9d0   : > { %10038 = vmatprep.subr.bf16.mxu1 %v17488_v52 }
 0x9d1   : > { %v8324_v11 = vpop.f32.mrb[152].mxu1 }
 0x9d2   : > { %v16606_v6 = vadd.f32 %v8324_v11, %v16409_v8  ;;  %v8326_v34 = vpop.f32.mrb[153].mxu1  ;;  %v12073_v8 = vld [vmem:[%s17178_s3 + $0x458] sm:$0xff]  }
 0x9d3   : > { %v8327_v39 = vpop.f32.mrb[154].mxu1  ;;  %10039 = vmatpush1.bf16.msra.mxu1 %v12071_v45 }
 0x9d4   : > { %v16612_v7 = vadd.f32 %v8327_v39, %v16413_v35  ;;  %v8329_v26 = vpop.f32.mrb[155].mxu1  ;;  %10040 = vmatprep.subr.bf16.mxu1 %v17488_v52 }
 0x9d5   : > { %v18068_v26 = vld [vmem:[#allocation168_spill] sm:$0xff] }
 0x9d6   : > { %9536 = vmatmul.mubr.bf16.gmra.mrb[4].mxu1 %v18061_v4 }
 0x9d7   : > { %9543 = vmatprep.mubr.bf16.mxu1 %v18062_v32  ;;  %10041 = vmatpush1.bf16.msra.mxu1 %v12072_v28  ;;  %v18067_v28 = vld [vmem:[#allocation167_spill] sm:$0xff] }
 0x9d8   : > { %10042 = vmatprep.subr.bf16.mxu1 %v17488_v52 }
 0x9d9   : > { %v8332_v62 = vpop.f32.mrb[156].mxu1 }
 0x9da   : > { %v16622_v55 = vadd.f32 %v8332_v62, %v16425_v1  ;;  %v8334_v35 = vpop.f32.mrb[157].mxu1  ;;  %v12075_v1 = vld [vmem:[%s17178_s3 + $0x468] sm:$0xff]  }
 0x9db   : > { %v8335_v56 = vpop.f32.mrb[158].mxu1  ;;  %10043 = vmatpush1.bf16.msra.mxu1 %v12073_v8  ;;  %v18069_v35 = vld [vmem:[#allocation169_spill] sm:$0xff] }
 0x9dc   : > { %v16628_v36 = vadd.f32 %v8335_v56, %v16429_v29  ;;  %v8337_v27 = vpop.f32.mrb[159].mxu1  ;;  %10044 = vmatprep.subr.bf16.mxu1 %v17488_v52  ;;  %v18070_v56 = vld [vmem:[#allocation170_spill] sm:$0xff] }
 0x9de   : > { %9544 = vmatmul.mubr.bf16.gmra.mrb[8].mxu1 %v18063_v3 }
 0x9df   : > { %9551 = vmatprep.mubr.bf16.mxu1 %v18064_v61  ;;  %10045 = vmatpush1.bf16.msra.mxu1 %v12074_v13 }
 0x9e0   : > { %10046 = vmatprep.subr.bf16.mxu1 %v17488_v52 }
 0x9e1   : > { %v8340_v5 = vpop.f32.mrb[160].mxu1 }
 0x9e2   : > { %v16638_v15 = vadd.f32 %v8340_v5, %v16435_v30  ;;  %v8342_v29 = vpop.f32.mrb[161].mxu1  ;;  %v12077_v30 = vld [vmem:[%s17178_s3 + $0x478] sm:$0xff]   ;;  %v18072_v5 = vld [vmem:[#allocation172_spill] sm:$0xff] }
 0x9e3   : > { %v8343_v9 = vpop.f32.mrb[162].mxu1  ;;  %10047 = vmatpush1.bf16.msra.mxu1 %v12075_v1  ;;  %v18071_v1 = vld [vmem:[#allocation171_spill] sm:$0xff] }
 0x9e4   : > { %v16644_v57 = vadd.f32 %v8343_v9, %v16438_v46  ;;  %v8345_v54 = vpop.f32.mrb[163].mxu1  ;;  %10048 = vmatprep.subr.bf16.mxu1 %v17488_v52 }
 0x9e6   : > { %9552 = vmatmul.mubr.bf16.gmra.mrb[12].mxu1 %v18065_v2  ;;  %v18073_v2 = vld [vmem:[#allocation173_spill] sm:$0xff] }
 0x9e7   : > { %9559 = vmatprep.mubr.bf16.mxu1 %v18066_v0  ;;  %10049 = vmatpush1.bf16.msra.mxu1 %v12076_v49  ;;  %v18074_v0 = vld [vmem:[#allocation174_spill] sm:$0xff] }
 0x9e8   : > { %10050 = vmatprep.subr.bf16.mxu1 %v17488_v52 }
 0x9e9   : > { %v8348_v37 = vpop.f32.mrb[164].mxu1 }
 0x9ea   : > { %v16654_v45 = vadd.f32 %v8348_v37, %v16443_v43  ;;  %v8350_v46 = vpop.f32.mrb[165].mxu1 }
 0x9eb   : > { %v8351_v11 = vpop.f32.mrb[166].mxu1  ;;  %10051 = vmatpush1.bf16.msra.mxu1 %v12077_v30 }
 0x9ec   : > { %v16657_v34 = vadd.f32 %v8351_v11, %v16446_v50  ;;  %v8353_v39 = vpop.f32.mrb[167].mxu1 }
 0x9ed   : > { %v18075_v39 = vld [vmem:[#allocation175_spill] sm:$0xff] }
 0x9ee   : > { %9560 = vmatmul.mubr.bf16.gmra.mrb[16].mxu1 %v18067_v28  ;;  %v18076_v28 = vld [vmem:[#allocation176_spill] sm:$0xff] }
 0x9ef   : > { %9567 = vmatprep.mubr.bf16.mxu1 %v18068_v26 }
 0x9f1   : > { %v8998_v4 = vpop.f32.mrb[168].mxu1 }
 0x9f2   : > { %v16662_v32 = vadd.f32 %v8998_v4, %v16451_v53  ;;  %v9000_v52 = vpop.f32.mrb[169].mxu1 }
 0x9f3   : > { %v9001_v8 = vpop.f32.mrb[170].mxu1 }
 0x9f4   : > { %v16665_v43 = vadd.f32 %v9001_v8, %v16454_v17  ;;  %v9003_v62 = vpop.f32.mrb[171].mxu1 }
 0x9f5   : > { %v18077_v62 = vld [vmem:[#allocation177_spill] sm:$0xff] }
 0x9f6   : > { %9568 = vmatmul.mubr.bf16.gmra.mrb[20].mxu1 %v18069_v35  ;;  %v18078_v35 = vld [vmem:[#allocation178_spill] sm:$0xff] }
 0x9f7   : > { %9575 = vmatprep.mubr.bf16.mxu1 %v18070_v56 }
 0x9f9   : > { %v9006_v50 = vpop.f32.mrb[172].mxu1 }
 0x9fa   : > { %v16670_v13 = vadd.f32 %v9006_v50, %v16459_v24  ;;  %v9008_v27 = vpop.f32.mrb[173].mxu1 }
 0x9fb   : > { %v9009_v3 = vpop.f32.mrb[174].mxu1 }
 0x9fc   : > { %v16673_v61 = vadd.f32 %v9009_v3, %v16462_v20  ;;  %v9011_v53 = vpop.f32.mrb[175].mxu1 }
 0x9fd   : > { %v18079_v53 = vld [vmem:[#allocation179_spill] sm:$0xff] }
 0x9fe   : > { %9576 = vmatmul.mubr.bf16.gmra.mrb[24].mxu1 %v18071_v1  ;;  %v18080_v1 = vld [vmem:[#allocation181_spill] sm:$0xff] }
 0x9ff   : > { %9583 = vmatprep.mubr.bf16.mxu1 %v18072_v5  ;;  %v9180_v5 = vld [vmem:[#allocation2 + $0x298] sm:$0x3] }
 0xa01   : > { %v9014_v17 = vpop.f32.mrb[176].mxu1 }
 0xa02   : > { %v16678_v29 = vadd.f32 %v9014_v17, %v16467_v33  ;;  %v9016_v9 = vpop.f32.mrb[177].mxu1 }
 0xa03   : > { %v9017_v49 = vpop.f32.mrb[178].mxu1 }
 0xa04   : > { %v16681_v54 = vadd.f32 %v9017_v49, %v16470_v47  ;;  %v9019_v24 = vpop.f32.mrb[179].mxu1 }
 0xa06   : > { %9584 = vmatmul.mubr.bf16.gmra.mrb[28].mxu1 %v18073_v2  ;;  %v9184_v2 = vpack.c.bf16 %v9180_v5, %v9180_v5 }
 0xa07   : > { %9591 = vmatprep.mubr.bf16.mxu1 %v18074_v0  ;;  %v18081_v0 = vld [vmem:[#allocation182_spill] sm:$0xff] }
 0xa09   : > { %v9022_v20 = vpop.f32.mrb[180].mxu1 }
 0xa0a   : > { %v16686_v30 = vadd.f32 %v9022_v20, %v16475_v16  ;;  %v9024_v37 = vpop.f32.mrb[181].mxu1  ;;  %v9677_v20 = vld [vmem:[#allocation2 + $0x58] sm:$0xf8] }
 0xa0b   : > { %v9025_v46 = vpop.f32.mrb[182].mxu1  ;;  %v9329_v37 = vrot.slane %v9184_v2, 1 }
 0xa0c   : > { %v16689_v11 = vadd.f32 %v9025_v46, %v16478_v40  ;;  %v9027_v33 = vpop.f32.mrb[183].mxu1  ;;  %v9179_v46 = vld [vmem:[#allocation2 + $0x290] sm:$0x3] }
 0xa0d   : > { %v18083_v33 = vld [vmem:[#allocation115_spill] sm:$0xff] }
 0xa0e   : > { %9592 = vmatmul.mubr.bf16.gmra.mrb[32].mxu1 %v18075_v39  ;;  %v9681_v39 = vpack.c.bf16 %v18083_v33, %v9677_v20 }
 0xa0f   : > { %9599 = vmatprep.mubr.bf16.mxu1 %v18076_v28 }
 0xa11   : > { %v9030_v47 = vpop.f32.mrb[184].mxu1 }
 0xa12   : > { %v16694_v26 = vadd.f32 %v9030_v47, %v16483_v25  ;;  %v9032_v4 = vpop.f32.mrb[185].mxu1 }
 0xa13   : > { %v9033_v52 = vpop.f32.mrb[186].mxu1 }
 0xa14   : > { %v16697_v8 = vadd.f32 %v9033_v52, %v16491_v48  ;;  %v9035_v16 = vpop.f32.mrb[187].mxu1  ;;  %v9183_v52 = vpack.c.bf16 %v9179_v46, %v9179_v46 }
 0xa16   : > { %9600 = vmatmul.mubr.bf16.gmra.mrb[36].mxu1 %v18077_v62  ;;  %v18084_v62 = vld [vmem:[#allocation180_spill] sm:$0xff]  ;;  %v9327_v5 = vrot.slane %v9183_v52, 1 }
 0xa17   : > { %9607 = vmatprep.mubr.bf16.mxu1 %v18078_v35  ;;  %v9330_v35 = vsel %vm9256_vm4, %v18084_v62, %v9329_v37 }
 0xa18   : > { %v9328_v20 = vsel %vm9256_vm4, %v18084_v62, %v9327_v5  ;;  %v18095_v5 = vld [vmem:[#allocation11_spill] sm:$0xff] }
 0xa19   : > { %v9038_v40 = vpop.f32.mrb[188].mxu1 }
 0xa1a   : > { %v16702_v56 = vadd.f32 %v9038_v40, %v16496_v51  ;;  %v9040_v50 = vpop.f32.mrb[189].mxu1  ;;  %v9731_v40 = vshrl.u32 %v9681_v39, 16 }
 0xa1b   : > { %v9041_v27 = vpop.f32.mrb[190].mxu1  ;;  %v9734_v50 = vshll.u32 %v9681_v39, 16 }
 0xa1c   : > { %v16705_v3 = vadd.f32 %v9041_v27, %v16501_v38  ;;  %v9043_v25 = vpop.f32.mrb[191].mxu1  ;;  %v18082_v38 = vld [vmem:[#allocation183_spill] sm:$0xff]  ;;  %v18085_v27 = vld [vmem:[#allocation184_spill] sm:$0xff] }
 0xa1d   : > { %v18086_v25 = vld [vmem:[#allocation17_spill] sm:$0xff] }
 0xa1e   : > { %9608 = vmatmul.mubr.bf16.gmra.mrb[40].mxu1 %v18079_v53  ;;  %v18087_v53 = vshrl.u32 %v18086_v25, 16 }
 0xa1f   : > { %9615 = vmatprep.mubr.bf16.mxu1 %v18080_v1 }
 0xa20   : > { %v9738_v1 = vrot.slane %v18087_v53, 1 }
 0xa21   : > { %v9046_v48 = vpop.f32.mrb[192].mxu1 }
 0xa22   : > { %v16710_v17 = vadd.f32 %v9046_v48, %v16507_v14  ;;  %v9048_v9 = vpop.f32.mrb[193].mxu1 }
 0xa23   : > { %v9049_v49 = vpop.f32.mrb[194].mxu1  ;;  %v9733_v9 = vrot.slane %v9731_v40, 1 }
 0xa24   : > { %v16713_v51 = vadd.f32 %v9049_v49, %v16513_v22  ;;  %v9051_v24 = vpop.f32.mrb[195].mxu1  ;;  %v9736_v49 = vrot.slane %v9734_v50, 2 }
 0xa26   : > { %9616 = vmatmul.mubr.bf16.gmra.mrb[44].mxu1 %v18081_v0  ;;  %v9737_v33 = vor.u32 %v9736_v49, %v9733_v9  ;;  %v18096_v49 = vld [vmem:[#allocation119_spill] sm:$0xff] }
 0xa27   : > { %9623 = vmatprep.mubr.bf16.mxu1 %v18082_v38 }
 0xa29   : > { %v9054_v28 = vpop.f32.mrb[196].mxu1 }
 0xa2a   : > { %v16719_v14 = vadd.f32 %v9054_v28, %v16521_v18  ;;  %v9056_v47 = vpop.f32.mrb[197].mxu1  ;;  %v18088_v18 = vshll.u32 %v18086_v25, 16  ;;  %v18089_v28 = vld [vmem:[#allocation19_spill] sm:$0xff]  ;;  %v18092_v25 = vld [vmem:[#allocation8_spill] sm:$0xff] }
 0xa2b   : > { %v9057_v4 = vpop.f32.mrb[198].mxu1  ;;  %v18090_v47 = vshrl.u32 %v18089_v28, 16  ;;  %v18093_v53 = vshrl.u32 %v18092_v25, 16 }
 0xa2c   : > { %v16722_v22 = vadd.f32 %v9057_v4, %v16527_v42  ;;  %v9059_v16 = vpop.f32.mrb[199].mxu1  ;;  %v9739_v48 = vrot.slane %v18088_v18, 2  ;;  %v18094_v18 = vshll.u32 %v18092_v25, 16  ;;  %v18103_v25 = vld [vmem:[#allocation122_spill] sm:$0xff] }
 0xa2d   : > { %v9746_v4 = vrot.slane %v18090_v47, 1 }
 0xa2e   : > { %9624 = vmatmul.mubr.bf16.gmra.mrb[48].mxu1 %v18085_v27  ;;  %v9740_v0 = vor.u32 %v9739_v48, %v9738_v1  ;;  %v9742_v1 = vrot.slane %v18093_v53, 1  ;;  %v9743_v48 = vrot.slane %v18094_v18, 2  ;;  %v18104_v53 = vshrl.u32 %v18103_v25, 16 }
 0xa2f   : > { %9631 = vmatprep.mubr.bf16.mxu1 %v9330_v35  ;;  %v18105_v18 = vshll.u32 %v18103_v25, 16 }
 0xa30   : > { %v9741_v39 = vsel %vm9717_vm5, %v9737_v33, %v9740_v0 }
 0xa31   : > { %v9062_v42 = vpop.f32.mrb[200].mxu1 }
 0xa32   : > { %v16732_v24 = vadd.f32 %v9062_v42, %v16510_v58  ;;  %v9064_v2 = vpop.f32.mrb[201].mxu1  ;;  %v18091_v58 = vshll.u32 %v18089_v28, 16 }
 0xa33   : > { %v9065_v38 = vpop.f32.mrb[202].mxu1  ;;  %v18098_v2 = vshll.u32 %v18096_v49, 16 }
 0xa34   : > { %v16737_v37 = vadd.f32 %v9065_v38, %v16517_v63  ;;  %v9067_v46 = vpop.f32.mrb[203].mxu1  ;;  %v9747_v52 = vrot.slane %v18091_v58, 2 }
 0xa35   : > { %v9755_v38 = vrot.slane %v18098_v2, 2 }
 0xa36   : > { %9632 = vmatmul.mubr.bf16.gmra.mrb[52].mxu1 %v9328_v20  ;;  %v9748_v40 = vor.u32 %v9747_v52, %v9746_v4  ;;  %v9744_v20 = vor.u32 %v9743_v48, %v9742_v1  ;;  %v18100_v52 = vld [vmem:[#allocation120_spill] sm:$0xff]  ;;  %v9762_v1 = vrot.slane %v18104_v53, 1 }
 0xa37   : > { %10052 = vmatprep.mubr.bf16.mxu1 %v9741_v39 }
 0xa38   : > { %v9749_v9 = vsel %vm9717_vm5, %v9740_v0, %v9748_v40  ;;  %v18099_v0 = vld [vmem:[#allocation140_spill] sm:$0xff] }
 0xa39   : > { %v9070_v16 = vpop.f32.mrb[204].mxu1  ;;  %v9745_v58 = vsel %vm9717_vm5, %v18099_v0, %v9744_v20 }
 0xa3a   : > { %v16745_v35 = vadd.f32 %v9070_v16, %v16524_v60  ;;  %v9072_v62 = vpop.f32.mrb[205].mxu1  ;;  %v18097_v60 = vshrl.u32 %v18096_v49, 16  ;;  %v18101_v16 = vshrl.u32 %v18100_v52, 16 }
 0xa3b   : > { %v9073_v63 = vpop.f32.mrb[206].mxu1 }
 0xa3c   : > { %v16748_v50 = vadd.f32 %v9073_v63, %v16533_v44  ;;  %v9075_v27 = vpop.f32.mrb[207].mxu1  ;;  %v9754_v42 = vrot.slane %v18097_v60, 1  ;;  %v9750_v62 = vrot.slane %v18101_v16, 1  ;;  %v18102_v63 = vshll.u32 %v18100_v52, 16 }
 0xa3e   : > { %10053 = vmatmul.mubr.bf16.vlgmr.msra.gmra.mrb[56].mxu1 %v18095_v5  ;;  %v9756_v39 = vor.u32 %v9755_v38, %v9754_v42  ;;  %v9751_v27 = vrot.slane %v18102_v63, 2 }
 0xa3f   : > { %10060 = vmatprep.mubr.bf16.mxu1 %v9749_v9 }
 0xa40   : > { %v9752_v5 = vor.u32 %v9751_v27, %v9750_v62 }
 0xa41   : > { %v9078_v44 = vpop.f32.mrb[208].mxu1 }
 0xa42   : > { %v16761_v46 = vadd.f32 %v9078_v44, %v16542_v10  ;;  %v9080_v33 = vpop.f32.mrb[209].mxu1  ;;  %v9757_v10 = vsel %vm9717_vm5, %v9748_v40, %v9756_v39  ;;  %v9753_v40 = vsel %vm9717_vm5, %v9744_v20, %v9752_v5  ;;  %v18106_v44 = vld [vmem:[#allocation123_spill] sm:$0xff] }
 0xa43   : > { %v9081_v28 = vpop.f32.mrb[210].mxu1  ;;  %v18107_v33 = vshrl.u32 %v18106_v44, 16 }
 0xa44   : > { %v16764_v47 = vadd.f32 %v9081_v28, %v16548_v31  ;;  %v9083_v4 = vpop.f32.mrb[211].mxu1  ;;  %v9763_v31 = vrot.slane %v18105_v18, 2 }
 0xa45   : > { %v9758_v28 = vrot.slane %v18107_v33, 1  ;;  %v18108_v4 = vshll.u32 %v18106_v44, 16 }
 0xa46   : > { %10061 = vmatmul.mubr.bf16.gmra.mrb[60].mxu1 %v9745_v58  ;;  %v9764_v60 = vor.u32 %v9763_v31, %v9762_v1  ;;  %v18112_v31 = vld [vmem:[#allocation125_spill] sm:$0xff] }
 0xa47   : > { %10068 = vmatprep.mubr.bf16.mxu1 %v9757_v10  ;;  %v9759_v0 = vrot.slane %v18108_v4, 2 }
 0xa48   : > { %v9765_v58 = vsel %vm9717_vm5, %v9756_v39, %v9764_v60 }
 0xa49   : > { %v9086_v48 = vpop.f32.mrb[212].mxu1  ;;  %v9760_v27 = vor.u32 %v9759_v0, %v9758_v28 }
 0xa4a   : > { %v16778_v9 = vadd.f32 %v9086_v48, %v16558_v59  ;;  %v9088_v49 = vpop.f32.mrb[213].mxu1  ;;  %v18109_v59 = vld [vmem:[#allocation124_spill] sm:$0xff]  ;;  %v18113_v48 = vshrl.u32 %v18112_v31, 16 }
 0xa4b   : > { %v9089_v42 = vpop.f32.mrb[214].mxu1  ;;  %v18110_v52 = vshrl.u32 %v18109_v59, 16  ;;  %v18111_v62 = vshll.u32 %v18109_v59, 16  ;;  %v9761_v39 = vsel %vm9717_vm5, %v9752_v5, %v9760_v27 }
 0xa4c   : > { %v16781_v2 = vadd.f32 %v9089_v42, %v16564_v21  ;;  %v9091_v38 = vpop.f32.mrb[215].mxu1  ;;  %v9766_v49 = vrot.slane %v18113_v48, 1  ;;  %v18114_v42 = vshll.u32 %v18112_v31, 16 }
 0xa4d   : > { %v9770_v16 = vrot.slane %v18110_v52, 1  ;;  %v9771_v63 = vrot.slane %v18111_v62, 2 }
 0xa4e   : > { %10069 = vmatmul.mubr.bf16.gmra.mrb[64].mxu1 %v9753_v40  ;;  %v9767_v38 = vrot.slane %v18114_v42, 2 }
 0xa4f   : > { %10076 = vmatprep.mubr.bf16.mxu1 %v9765_v58  ;;  %v9772_v25 = vor.u32 %v9771_v63, %v9770_v16  ;;  %v18118_v63 = vld [vmem:[#allocation127_spill] sm:$0xff] }
 0xa50   : > { %v9768_v0 = vor.u32 %v9767_v38, %v9766_v49 }
 0xa51   : > { %v9094_v21 = vpop.f32.mrb[216].mxu1  ;;  %v9773_v40 = vsel %vm9717_vm5, %v9764_v60, %v9772_v25 }
 0xa52   : > { %v16794_v20 = vadd.f32 %v9094_v21, %v16574_v41  ;;  %v9096_v10 = vpop.f32.mrb[217].mxu1  ;;  %v18115_v41 = vld [vmem:[#allocation126_spill] sm:$0xff]  ;;  %v9769_v60 = vsel %vm9717_vm5, %v9760_v27, %v9768_v0  ;;  %v18119_v21 = vshrl.u32 %v18118_v63, 16 }
 0xa53   : > { %v9097_v53 = vpop.f32.mrb[218].mxu1  ;;  %v18116_v44 = vshrl.u32 %v18115_v41, 16  ;;  %v18117_v28 = vshll.u32 %v18115_v41, 16 }
 0xa54   : > { %v16797_v1 = vadd.f32 %v9097_v53, %v16580_v12  ;;  %v9099_v18 = vpop.f32.mrb[219].mxu1  ;;  %v9774_v10 = vrot.slane %v18119_v21, 1  ;;  %v18120_v53 = vshll.u32 %v18118_v63, 16 }
 0xa55   : > { %v9778_v33 = vrot.slane %v18116_v44, 1  ;;  %v9779_v4 = vrot.slane %v18117_v28, 2 }
 0xa56   : > { %10077 = vmatmul.mubr.bf16.gmra.mrb[68].mxu1 %v9761_v39  ;;  %v9775_v18 = vrot.slane %v18120_v53, 2 }
 0xa57   : > { %10084 = vmatprep.mubr.bf16.mxu1 %v9773_v40  ;;  %v9780_v59 = vor.u32 %v9779_v4, %v9778_v33  ;;  %v18124_v4 = vld [vmem:[#allocation129_spill] sm:$0xff] }
 0xa58   : > { %v9776_v38 = vor.u32 %v9775_v18, %v9774_v10 }
 0xa59   : > { %v9102_v12 = vpop.f32.mrb[220].mxu1  ;;  %v9781_v39 = vsel %vm9717_vm5, %v9772_v25, %v9780_v59 }
 0xa5a   : > { %v16810_v5 = vadd.f32 %v9102_v12, %v16590_v19  ;;  %v9104_v58 = vpop.f32.mrb[221].mxu1  ;;  %v18121_v19 = vld [vmem:[#allocation128_spill] sm:$0xff]  ;;  %v9777_v25 = vsel %vm9717_vm5, %v9768_v0, %v9776_v38  ;;  %v18125_v12 = vshrl.u32 %v18124_v4, 16 }
 0xa5b   : > { %v9105_v52 = vpop.f32.mrb[222].mxu1  ;;  %v18122_v31 = vshrl.u32 %v18121_v19, 16  ;;  %v18123_v49 = vshll.u32 %v18121_v19, 16 }
 0xa5c   : > { %v16813_v16 = vadd.f32 %v9105_v52, %v16596_v23  ;;  %v9107_v62 = vpop.f32.mrb[223].mxu1  ;;  %v9782_v58 = vrot.slane %v18125_v12, 1  ;;  %v18126_v52 = vshll.u32 %v18124_v4, 16 }
 0xa5d   : > { %v9786_v48 = vrot.slane %v18122_v31, 1  ;;  %v9787_v42 = vrot.slane %v18123_v49, 2 }
 0xa5e   : > { %10085 = vmatmul.mubr.bf16.gmra.mrb[72].mxu1 %v9769_v60  ;;  %v9783_v62 = vrot.slane %v18126_v52, 2 }
 0xa5f   : > { %10092 = vmatprep.mubr.bf16.mxu1 %v9781_v39  ;;  %v9788_v41 = vor.u32 %v9787_v42, %v9786_v48  ;;  %v18130_v42 = vld [vmem:[#allocation131_spill] sm:$0xff] }
 0xa60   : > { %v9784_v18 = vor.u32 %v9783_v62, %v9782_v58 }
 0xa61   : > { %v9110_v23 = vpop.f32.mrb[224].mxu1  ;;  %v9789_v60 = vsel %vm9717_vm5, %v9780_v59, %v9788_v41 }
 0xa62   : > { %v16826_v27 = vadd.f32 %v9110_v23, %v16606_v6  ;;  %v9112_v40 = vpop.f32.mrb[225].mxu1  ;;  %v18127_v6 = vld [vmem:[#allocation130_spill] sm:$0xff]  ;;  %v9785_v59 = vsel %vm9717_vm5, %v9776_v38, %v9784_v18  ;;  %v18131_v23 = vshrl.u32 %v18130_v42, 16 }
 0xa63   : > { %v9113_v44 = vpop.f32.mrb[226].mxu1  ;;  %v18128_v63 = vshrl.u32 %v18127_v6, 16  ;;  %v18129_v10 = vshll.u32 %v18127_v6, 16 }
 0xa64   : > { %v16829_v33 = vadd.f32 %v9113_v44, %v16612_v7  ;;  %v9115_v28 = vpop.f32.mrb[227].mxu1  ;;  %v9790_v40 = vrot.slane %v18131_v23, 1  ;;  %v18132_v44 = vshll.u32 %v18130_v42, 16 }
 0xa65   : > { %v9794_v21 = vrot.slane %v18128_v63, 1  ;;  %v9795_v53 = vrot.slane %v18129_v10, 2 }
 0xa66   : > { %10093 = vmatmul.mubr.bf16.gmra.mrb[76].mxu1 %v9777_v25  ;;  %v9791_v28 = vrot.slane %v18132_v44, 2 }
 0xa67   : > { %10100 = vmatprep.mubr.bf16.mxu1 %v9789_v60  ;;  %v9796_v19 = vor.u32 %v9795_v53, %v9794_v21  ;;  %v18136_v53 = vld [vmem:[#allocation133_spill] sm:$0xff] }
 0xa68   : > { %v9792_v62 = vor.u32 %v9791_v28, %v9790_v40 }
 0xa69   : > { %v9118_v7 = vpop.f32.mrb[228].mxu1  ;;  %v9797_v25 = vsel %vm9717_vm5, %v9788_v41, %v9796_v19 }
 0xa6a   : > { %v16842_v0 = vadd.f32 %v9118_v7, %v16622_v55  ;;  %v9120_v39 = vpop.f32.mrb[229].mxu1  ;;  %v18133_v55 = vld [vmem:[#allocation132_spill] sm:$0xff]  ;;  %v9793_v41 = vsel %vm9717_vm5, %v9784_v18, %v9792_v62  ;;  %v18137_v7 = vshrl.u32 %v18136_v53, 16 }
 0xa6b   : > { %v9121_v31 = vpop.f32.mrb[230].mxu1  ;;  %v18134_v4 = vshrl.u32 %v18133_v55, 16  ;;  %v18135_v58 = vshll.u32 %v18133_v55, 16 }
 0xa6c   : > { %v16845_v48 = vadd.f32 %v9121_v31, %v16628_v36  ;;  %v9123_v49 = vpop.f32.mrb[231].mxu1  ;;  %v9798_v39 = vrot.slane %v18137_v7, 1  ;;  %v18138_v31 = vshll.u32 %v18136_v53, 16  ;;  %v18142_v53 = vld [vmem:[#allocation16_spill] sm:$0xff] }
 0xa6d   : > { %v9802_v12 = vrot.slane %v18134_v4, 1  ;;  %v9803_v52 = vrot.slane %v18135_v58, 2 }
 0xa6e   : > { %10101 = vmatmul.mubr.bf16.gmra.mrb[80].mxu1 %v9785_v59  ;;  %v9799_v49 = vrot.slane %v18138_v31, 2 }
 0xa6f   : > { %10108 = vmatprep.mubr.bf16.mxu1 %v9797_v25  ;;  %v9804_v6 = vor.u32 %v9803_v52, %v9802_v12  ;;  %v18139_v25 = vld [vmem:[#allocation9_spill] sm:$0xff] }
 0xa70   : > { %v9800_v42 = vor.u32 %v9799_v49, %v9798_v39 }
 0xa71   : > { %v9126_v36 = vpop.f32.mrb[232].mxu1  ;;  %v9805_v59 = vsel %vm9717_vm5, %v9796_v19, %v9804_v6  ;;  %v9813_v55 = vsel %vm9717_vm5, %v9804_v6, %v18139_v25  ;;  %v18146_v25 = vld [vmem:[#allocation188_spill] sm:$0xff] }
 0xa72   : > { %v16858_v38 = vadd.f32 %v9126_v36, %v16638_v15  ;;  %v9128_v60 = vpop.f32.mrb[233].mxu1  ;;  %v9801_v28 = vsel %vm9717_vm5, %v9792_v62, %v9800_v42  ;;  %v18141_v62 = vld [vmem:[#allocation12_spill] sm:$0xff] }
 0xa73   : > { %v9129_v63 = vpop.f32.mrb[234].mxu1 }
 0xa74   : > { %v16861_v21 = vadd.f32 %v9129_v63, %v16644_v57  ;;  %v9131_v10 = vpop.f32.mrb[235].mxu1 }
 0xa76   : > { %10109 = vmatmul.mubr.bf16.gmra.mrb[84].mxu1 %v9793_v41 }
 0xa77   : > { %10116 = vmatprep.mubr.bf16.mxu1 %v9805_v59 }
 0xa79   : > { %v9134_v15 = vpop.f32.mrb[236].mxu1 }
 0xa7a   : > { %v16870_v23 = vadd.f32 %v9134_v15, %v16654_v45  ;;  %v9136_v57 = vpop.f32.mrb[237].mxu1  ;;  %v18144_v15 = vld [vmem:[#allocation186_spill] sm:$0xff] }
 0xa7b   : > { %v9137_v40 = vpop.f32.mrb[238].mxu1 }
 0xa7c   : > { %v16873_v44 = vadd.f32 %v9137_v40, %v16657_v34  ;;  %v9139_v18 = vpop.f32.mrb[239].mxu1  ;;  %v18140_v34 = vld [vmem:[#allocation14_spill] sm:$0xff] }
 0xa7d   : > { %v9809_v36 = vsel %vm9717_vm5, %v9800_v42, %v18140_v34  ;;  %v18145_v42 = vld [vmem:[#allocation187_spill] sm:$0xff]  ;;  %v18148_v34 = vld [vmem:[#allocation190_spill] sm:$0xff] }
 0xa7e   : > { %10117 = vmatmul.mubr.bf16.gmra.mrb[88].mxu1 %v9801_v28 }
 0xa7f   : > { %10124 = vmatprep.mubr.bf16.mxu1 %v9813_v55  ;;  %v18147_v55 = vld [vmem:[#allocation189_spill] sm:$0xff] }
 0xa81   : > { %v9497_v19 = vpop.f32.mrb[240].mxu1 }
 0xa82   : > { %v16879_v4 = vadd.f32 %v9497_v19, %v16662_v32  ;;  %v9499_v12 = vpop.f32.mrb[241].mxu1 }
 0xa83   : > { %v9500_v45 = vpop.f32.mrb[242].mxu1 }
 0xa84   : > { %v16882_v58 = vadd.f32 %v9500_v45, %v16665_v43  ;;  %v9502_v52 = vpop.f32.mrb[243].mxu1  ;;  %v18143_v43 = vld [vmem:[#allocation185_spill] sm:$0xff] }
 0xa86   : > { %10125 = vmatmul.mubr.bf16.gmra.mrb[92].mxu1 %v9809_v36  ;;  %v18149_v36 = vld [vmem:[#allocation191_spill] sm:$0xff] }
 0xa87   : > { %10132 = vmatprep.mubr.bf16.mxu1 %v18141_v62  ;;  %v9679_v62 = vld [vmem:[#allocation2 + $0x298] sm:$0x7] }
 0xa89   : > { %v9505_v60 = vpop.f32.mrb[244].mxu1 }
 0xa8a   : > { %v16888_v6 = vadd.f32 %v9505_v60, %v16670_v13  ;;  %v9507_v63 = vpop.f32.mrb[245].mxu1 }
 0xa8b   : > { %v9508_v10 = vpop.f32.mrb[246].mxu1 }
 0xa8c   : > { %v16891_v32 = vadd.f32 %v9508_v10, %v16673_v61  ;;  %v9510_v41 = vpop.f32.mrb[247].mxu1 }
 0xa8e   : > { %10133 = vmatmul.mubr.bf16.gmra.mrb[96].mxu1 %v18142_v53  ;;  %v9683_v53 = vpack.c.bf16 %v9679_v62, %v9679_v62 }
 0xa8f   : > { %10140 = vmatprep.mubr.bf16.mxu1 %v18143_v43  ;;  %v18150_v43 = vld [vmem:[#allocation192_spill] sm:$0xff] }
 0xa91   : > { %v9513_v7 = vpop.f32.mrb[248].mxu1 }
 0xa92   : > { %v16896_v39 = vadd.f32 %v9513_v7, %v16678_v29  ;;  %v9515_v31 = vpop.f32.mrb[249].mxu1  ;;  %v9880_v7 = vshrl.u32 %v9683_v53, 16 }
 0xa93   : > { %v9516_v49 = vpop.f32.mrb[250].mxu1  ;;  %v9883_v31 = vshll.u32 %v9683_v53, 16  ;;  %v18155_v53 = vld [vmem:[#allocation197_spill] sm:$0xff] }
 0xa94   : > { %v16899_v59 = vadd.f32 %v9516_v49, %v16681_v54  ;;  %v9518_v13 = vpop.f32.mrb[251].mxu1  ;;  %v9678_v49 = vld [vmem:[#allocation2 + $0x290] sm:$0x7] }
 0xa96   : > { %10141 = vmatmul.mubr.bf16.gmra.mrb[100].mxu1 %v18144_v15 }
 0xa97   : > { %10148 = vmatprep.mubr.bf16.mxu1 %v18145_v42 }
 0xa99   : > { %v9521_v61 = vpop.f32.mrb[252].mxu1 }
 0xa9a   : > { %v16904_v57 = vadd.f32 %v9521_v61, %v16686_v30  ;;  %v9523_v40 = vpop.f32.mrb[253].mxu1  ;;  %v9682_v61 = vpack.c.bf16 %v9678_v49, %v9678_v49 }
 0xa9b   : > { %v9524_v18 = vpop.f32.mrb[254].mxu1 }
 0xa9c   : > { %v16907_v28 = vadd.f32 %v9524_v18, %v16689_v11  ;;  %v9526_v29 = vpop.f32.mrb[255].mxu1  ;;  %v9882_v18 = vrot.slane %v9880_v7, 1 }
 0xa9d   : > { %v9885_v29 = vrot.slane %v9883_v31, 2 }
 0xa9e   : > { %10149 = vmatmul.mubr.bf16.gmra.mrb[104].mxu1 %v18146_v25  ;;  %v18152_v25 = vld [vmem:[#allocation195_spill] sm:$0xff] }
 0xa9f   : > { %10156 = vmatprep.mubr.bf16.mxu1 %v18147_v55  ;;  %v18153_v55 = vld [vmem:[#allocation196_spill] sm:$0xff] }
 0xaa1   : > { %v9529_v54 = vpop.f32.mrb[0].mxu1 }
 0xaa2   : > { %v16912_v19 = vadd.f32 %v9529_v54, %v16694_v26  ;;  %v9531_v12 = vpop.f32.mrb[1].mxu1  ;;  %v9871_v54 = vshrl.u32 %v9682_v61, 16 }
 0xaa3   : > { %v9532_v45 = vpop.f32.mrb[2].mxu1  ;;  %v9874_v12 = vshll.u32 %v9682_v61, 16 }
 0xaa4   : > { %v16915_v52 = vadd.f32 %v9532_v45, %v16697_v8  ;;  %v9534_v30 = vpop.f32.mrb[3].mxu1  ;;  %v18151_v8 = vld [vmem:[#allocation193_spill] sm:$0xff]  ;;  %v9886_v45 = vor.u32 %v9885_v29, %v9882_v18 }
 0xaa5   : > { %v9876_v62 = vrot.slane %v9874_v12, 2 }
 0xaa6   : > { %10157 = vmatmul.mubr.bf16.gmra.mrb[108].mxu1 %v18148_v34 }
 0xaa7   : > { %10164 = vmatprep.mubr.bf16.mxu1 %v18149_v36 }
 0xaa9   : > { %v9537_v11 = vpop.f32.mrb[4].mxu1 }
 0xaaa   : > { %v16920_v60 = vadd.f32 %v9537_v11, %v16702_v56  ;;  %v9539_v63 = vpop.f32.mrb[5].mxu1  ;;  %v9873_v11 = vrot.slane %v9871_v54, 1 }
 0xaab   : > { %v9540_v10 = vpop.f32.mrb[6].mxu1 }
 0xaac   : > { %v16923_v26 = vadd.f32 %v9540_v10, %v16705_v3  ;;  %v9542_v41 = vpop.f32.mrb[7].mxu1  ;;  %v18154_v10 = vld [vmem:[#allocation194_spill] sm:$0xff] }
 0xaad   : > { %v9887_v41 = vsel %vm9717_vm5, %v18154_v10, %v9886_v45 }
 0xaae   : > { %10165 = vmatmul.mubr.bf16.gmra.mrb[112].mxu1 %v18150_v43  ;;  %v9877_v43 = vor.u32 %v9876_v62, %v9873_v11 }
 0xaaf   : > { %10172 = vmatprep.mubr.bf16.mxu1 %v18151_v8 }
 0xab0   : > { %v9878_v49 = vsel %vm9717_vm5, %v18154_v10, %v9877_v43 }
 0xab1   : > { %v9545_v13 = vpop.f32.mrb[8].mxu1 }
 0xab2   : > { %v16928_v15 = vadd.f32 %v9545_v13, %v16710_v17  ;;  %v9547_v56 = vpop.f32.mrb[9].mxu1 }
 0xab3   : > { %v9548_v42 = vpop.f32.mrb[10].mxu1 }
 0xab4   : > { %v16931_v40 = vadd.f32 %v9548_v42, %v16713_v51  ;;  %v9550_v3 = vpop.f32.mrb[11].mxu1 }
 0xab6   : > { %10173 = vmatmul.mubr.bf16.gmra.mrb[116].mxu1 %v18152_v25 }
 0xab7   : > { %10180 = vmatprep.mubr.bf16.mxu1 %v18153_v55 }
 0xab9   : > { %v9553_v30 = vpop.f32.mrb[12].mxu1 }
 0xaba   : > { %v16936_v17 = vadd.f32 %v9553_v30, %v16719_v14  ;;  %v9555_v34 = vpop.f32.mrb[13].mxu1 }
 0xabb   : > { %v9556_v36 = vpop.f32.mrb[14].mxu1 }
 0xabc   : > { %v16939_v51 = vadd.f32 %v9556_v36, %v16722_v22  ;;  %v9558_v63 = vpop.f32.mrb[15].mxu1 }
 0xabe   : > { %10181 = vmatmul.mubr.bf16.gmra.mrb[120].mxu1 %v18155_v53 }
 0xabf   : > { %10188 = vmatprep.mubr.bf16.mxu1 %v9887_v41 }
 0xac1   : > { %v9561_v8 = vpop.f32.mrb[16].mxu1 }
 0xac2   : > { %v16945_v7 = vadd.f32 %v9561_v8, %v16732_v24  ;;  %v9563_v14 = vpop.f32.mrb[17].mxu1 }
 0xac3   : > { %v9564_v31 = vpop.f32.mrb[18].mxu1 }
 0xac4   : > { %v16950_v22 = vadd.f32 %v9564_v31, %v16737_v37  ;;  %v9566_v13 = vpop.f32.mrb[19].mxu1 }
 0xac6   : > { %10189 = vmatmul.mubr.bf16.gmra.mrb[124].mxu1 %v9878_v49 }
 0xac9   : > { %v9569_v56 = vpop.f32.mrb[20].mxu1 }
 0xaca   : > { %v16953_v42 = vadd.f32 %v9569_v56, %v16745_v35  ;;  %v9571_v61 = vpop.f32.mrb[21].mxu1 }
 0xacb   : > { %v9572_v3 = vpop.f32.mrb[22].mxu1 }
 0xacc   : > { %v16956_v18 = vadd.f32 %v9572_v3, %v16748_v50  ;;  %v9574_v24 = vpop.f32.mrb[23].mxu1 }
 0xad1   : > { %v9577_v29 = vpop.f32.mrb[24].mxu1 }
 0xad2   : > { %v16959_v25 = vadd.f32 %v9577_v29, %v16761_v46  ;;  %v9579_v55 = vpop.f32.mrb[25].mxu1 }
 0xad3   : > { %v9580_v54 = vpop.f32.mrb[26].mxu1 }
 0xad4   : > { %v16962_v37 = vadd.f32 %v9580_v54, %v16764_v47  ;;  %v9582_v12 = vpop.f32.mrb[27].mxu1 }
 0xad9   : > { %v9585_v45 = vpop.f32.mrb[28].mxu1 }
 0xada   : > { %v16965_v35 = vadd.f32 %v9585_v45, %v16778_v9  ;;  %v9587_v30 = vpop.f32.mrb[29].mxu1 }
 0xadb   : > { %v9588_v34 = vpop.f32.mrb[30].mxu1 }
 0xadc   : > { %v16968_v50 = vadd.f32 %v9588_v34, %v16781_v2  ;;  %v9590_v36 = vpop.f32.mrb[31].mxu1 }
 0xae1   : > { %v9593_v11 = vpop.f32.mrb[32].mxu1 }
 0xae2   : > { %v16971_v46 = vadd.f32 %v9593_v11, %v16794_v20  ;;  %v9595_v62 = vpop.f32.mrb[33].mxu1 }
 0xae3   : > { %v9596_v63 = vpop.f32.mrb[34].mxu1 }
 0xae4   : > { %v16974_v47 = vadd.f32 %v9596_v63, %v16797_v1  ;;  %v9598_v10 = vpop.f32.mrb[35].mxu1 }
 0xae9   : > { %v9601_v41 = vpop.f32.mrb[36].mxu1 }
 0xaea   : > { %v16977_v9 = vadd.f32 %v9601_v41, %v16810_v5  ;;  %v9603_v53 = vpop.f32.mrb[37].mxu1 }
 0xaeb   : > { %v9604_v43 = vpop.f32.mrb[38].mxu1 }
 0xaec   : > { %v16980_v2 = vadd.f32 %v9604_v43, %v16813_v16  ;;  %v9606_v8 = vpop.f32.mrb[39].mxu1 }
 0xaf1   : > { %v9609_v14 = vpop.f32.mrb[40].mxu1 }
 0xaf2   : > { %v16983_v20 = vadd.f32 %v9609_v14, %v16826_v27  ;;  %v9611_v31 = vpop.f32.mrb[41].mxu1 }
 0xaf3   : > { %v9612_v49 = vpop.f32.mrb[42].mxu1 }
 0xaf4   : > { %v16986_v1 = vadd.f32 %v9612_v49, %v16829_v33  ;;  %v9614_v13 = vpop.f32.mrb[43].mxu1 }
 0xaf9   : > { %v9617_v56 = vpop.f32.mrb[44].mxu1 }
 0xafa   : > { %v16989_v5 = vadd.f32 %v9617_v56, %v16842_v0  ;;  %v9619_v61 = vpop.f32.mrb[45].mxu1 }
 0xafb   : > { %v9620_v16 = vpop.f32.mrb[46].mxu1 }
 0xafc   : > { %v16992_v3 = vadd.f32 %v9620_v16, %v16845_v48  ;;  %v9622_v24 = vpop.f32.mrb[47].mxu1 }
 0xb01   : > { %v9625_v27 = vpop.f32.mrb[48].mxu1 }
 0xb02   : > { %v16995_v29 = vadd.f32 %v9625_v27, %v16858_v38  ;;  %v9627_v55 = vpop.f32.mrb[49].mxu1 }
 0xb03   : > { %v9628_v54 = vpop.f32.mrb[50].mxu1 }
 0xb04   : > { %v16998_v33 = vadd.f32 %v9628_v54, %v16861_v21  ;;  %v9630_v12 = vpop.f32.mrb[51].mxu1  ;;  %v17011_v21 = vld [vmem:[%s17179_s4] ss:$0 sm:$0xff] }
 0xb09   : > { %v9633_v0 = vpop.f32.mrb[52].mxu1 }
 0xb0a   : > { %v17002_v45 = vadd.f32 %v9633_v0, %v16870_v23  ;;  %v9635_v30 = vpop.f32.mrb[53].mxu1 }
 0xb0b   : > { %v9636_v34 = vpop.f32.mrb[54].mxu1 }
 0xb0c   : > { %v17006_v48 = vadd.f32 %v9636_v34, %v16873_v44  ;;  %v9638_v36 = vpop.f32.mrb[55].mxu1 }
 0xb11   : > { %v10054_v38 = vpop.f32.mrb[56].mxu1 }
 0xb12   : > { %v10197_v11 = vadd.f32 %v10054_v38, %v16879_v4  ;;  %v10056_v62 = vpop.f32.mrb[57].mxu1 }
 0xb13   : > { %v10057_v23 = vpop.f32.mrb[58].mxu1 }
 0xb14   : > { %v10240_v44 = vadd.f32 %v17011_v21, %v10197_v11  ;;  %v10198_v63 = vadd.f32 %v10057_v23, %v16882_v58  ;;  %v10059_v10 = vpop.f32.mrb[59].mxu1 }
 0xb16   : > { %10277 = vst.msk [vmem:[%s17017_s8] sm:$0xff] %vm10276_vm6, %v10240_v44  ;;  %v10241_v4 = vadd.f32 %v17011_v21, %v10198_v63 }
 0xb18   : > { %10278 = vst.msk [vmem:[%s17017_s8 + $0x8] sm:$0xff] %vm10276_vm6, %v10241_v4 }
 0xb19   : > { %v10062_v41 = vpop.f32.mrb[60].mxu1 }
 0xb1a   : > { %v10199_v53 = vadd.f32 %v10062_v41, %v16888_v6  ;;  %v10064_v43 = vpop.f32.mrb[61].mxu1 }
 0xb1b   : > { %v10065_v8 = vpop.f32.mrb[62].mxu1 }
 0xb1c   : > { %v10242_v14 = vadd.f32 %v17011_v21, %v10199_v53  ;;  %v10200_v31 = vadd.f32 %v10065_v8, %v16891_v32  ;;  %v10067_v49 = vpop.f32.mrb[63].mxu1 }
 0xb1e   : > { %10279 = vst.msk [vmem:[%s17017_s8 + $0x10] sm:$0xff] %vm10276_vm6, %v10242_v14  ;;  %v10243_v58 = vadd.f32 %v17011_v21, %v10200_v31 }
 0xb20   : > { %10280 = vst.msk [vmem:[%s17017_s8 + $0x18] sm:$0xff] %vm10276_vm6, %v10243_v58 }
 0xb21   : > { %v10070_v13 = vpop.f32.mrb[64].mxu1 }
 0xb22   : > { %v10201_v56 = vadd.f32 %v10070_v13, %v16896_v39  ;;  %v10072_v6 = vpop.f32.mrb[65].mxu1 }
 0xb23   : > { %v10073_v61 = vpop.f32.mrb[66].mxu1 }
 0xb24   : > { %v10244_v16 = vadd.f32 %v17011_v21, %v10201_v56  ;;  %v10202_v24 = vadd.f32 %v10073_v61, %v16899_v59  ;;  %v10075_v27 = vpop.f32.mrb[67].mxu1 }
 0xb26   : > { %10281 = vst.msk [vmem:[%s17017_s8 + $0x20] sm:$0xff] %vm10276_vm6, %v10244_v16  ;;  %v10245_v32 = vadd.f32 %v17011_v21, %v10202_v24 }
 0xb28   : > { %10282 = vst.msk [vmem:[%s17017_s8 + $0x28] sm:$0xff] %vm10276_vm6, %v10245_v32 }
 0xb29   : > { %v10078_v55 = vpop.f32.mrb[68].mxu1 }
 0xb2a   : > { %v10203_v54 = vadd.f32 %v10078_v55, %v16904_v57  ;;  %v10080_v39 = vpop.f32.mrb[69].mxu1 }
 0xb2b   : > { %v10081_v12 = vpop.f32.mrb[70].mxu1 }
 0xb2c   : > { %v10246_v0 = vadd.f32 %v17011_v21, %v10203_v54  ;;  %v10204_v30 = vadd.f32 %v10081_v12, %v16907_v28  ;;  %v10083_v34 = vpop.f32.mrb[71].mxu1 }
 0xb2e   : > { %10283 = vst.msk [vmem:[%s17017_s8 + $0x30] sm:$0xff] %vm10276_vm6, %v10246_v0  ;;  %v10247_v59 = vadd.f32 %v17011_v21, %v10204_v30 }
 0xb30   : > { %10284 = vst.msk [vmem:[%s17017_s8 + $0x38] sm:$0xff] %vm10276_vm6, %v10247_v59 }
 0xb31   : > { %v10086_v36 = vpop.f32.mrb[72].mxu1 }
 0xb32   : > { %v10205_v38 = vadd.f32 %v10086_v36, %v16912_v19  ;;  %v10088_v57 = vpop.f32.mrb[73].mxu1 }
 0xb33   : > { %v10089_v11 = vpop.f32.mrb[74].mxu1 }
 0xb34   : > { %v10248_v62 = vadd.f32 %v17011_v21, %v10205_v38  ;;  %v10206_v23 = vadd.f32 %v10089_v11, %v16915_v52  ;;  %v10091_v44 = vpop.f32.mrb[75].mxu1 }
 0xb36   : > { %10285 = vst.msk [vmem:[%s17017_s8 + $0x40] sm:$0xff] %vm10276_vm6, %v10248_v62  ;;  %v10249_v28 = vadd.f32 %v17011_v21, %v10206_v23 }
 0xb38   : > { %10286 = vst.msk [vmem:[%s17017_s8 + $0x48] sm:$0xff] %vm10276_vm6, %v10249_v28 }
 0xb39   : > { %v10094_v63 = vpop.f32.mrb[76].mxu1 }
 0xb3a   : > { %v10207_v10 = vadd.f32 %v10094_v63, %v16920_v60  ;;  %v10096_v19 = vpop.f32.mrb[77].mxu1 }
 0xb3b   : > { %v10097_v4 = vpop.f32.mrb[78].mxu1 }
 0xb3c   : > { %v10250_v41 = vadd.f32 %v17011_v21, %v10207_v10  ;;  %v10208_v53 = vadd.f32 %v10097_v4, %v16923_v26  ;;  %v10099_v43 = vpop.f32.mrb[79].mxu1 }
 0xb3e   : > { %10287 = vst.msk [vmem:[%s17017_s8 + $0x50] sm:$0xff] %vm10276_vm6, %v10250_v41  ;;  %v10251_v52 = vadd.f32 %v17011_v21, %v10208_v53 }
 0xb40   : > { %10288 = vst.msk [vmem:[%s17017_s8 + $0x58] sm:$0xff] %vm10276_vm6, %v10251_v52 }
 0xb41   : > { %v10102_v8 = vpop.f32.mrb[80].mxu1 }
 0xb42   : > { %v10209_v14 = vadd.f32 %v10102_v8, %v16928_v15  ;;  %v10104_v60 = vpop.f32.mrb[81].mxu1 }
 0xb43   : > { %v10105_v31 = vpop.f32.mrb[82].mxu1 }
 0xb44   : > { %v10252_v49 = vadd.f32 %v17011_v21, %v10209_v14  ;;  %v10210_v58 = vadd.f32 %v10105_v31, %v16931_v40  ;;  %v10107_v13 = vpop.f32.mrb[83].mxu1 }
 0xb46   : > { %10289 = vst.msk [vmem:[%s17017_s8 + $0x60] sm:$0xff] %vm10276_vm6, %v10252_v49  ;;  %v10253_v26 = vadd.f32 %v17011_v21, %v10210_v58 }
 0xb48   : > { %10290 = vst.msk [vmem:[%s17017_s8 + $0x68] sm:$0xff] %vm10276_vm6, %v10253_v26 }
 0xb49   : > { %v10110_v56 = vpop.f32.mrb[84].mxu1 }
 0xb4a   : > { %v10211_v6 = vadd.f32 %v10110_v56, %v16936_v17  ;;  %v10112_v15 = vpop.f32.mrb[85].mxu1 }
 0xb4b   : > { %v10113_v61 = vpop.f32.mrb[86].mxu1 }
 0xb4c   : > { %v10254_v16 = vadd.f32 %v17011_v21, %v10211_v6  ;;  %v10212_v24 = vadd.f32 %v10113_v61, %v16939_v51  ;;  %v10115_v27 = vpop.f32.mrb[87].mxu1 }
 0xb4e   : > { %10291 = vst.msk [vmem:[%s17017_s8 + $0x70] sm:$0xff] %vm10276_vm6, %v10254_v16  ;;  %v10255_v40 = vadd.f32 %v17011_v21, %v10212_v24 }
 0xb50   : > { %10292 = vst.msk [vmem:[%s17017_s8 + $0x78] sm:$0xff] %vm10276_vm6, %v10255_v40 }
 0xb51   : > { %v10118_v32 = vpop.f32.mrb[88].mxu1 }
 0xb52   : > { %v10213_v55 = vadd.f32 %v10118_v32, %v16945_v7  ;;  %v10120_v17 = vpop.f32.mrb[89].mxu1 }
 0xb53   : > { %v10121_v54 = vpop.f32.mrb[90].mxu1 }
 0xb54   : > { %v10256_v39 = vadd.f32 %v17011_v21, %v10213_v55  ;;  %v10214_v12 = vadd.f32 %v10121_v54, %v16950_v22  ;;  %v10123_v0 = vpop.f32.mrb[91].mxu1 }
 0xb56   : > { %10293 = vst.msk [vmem:[%s17017_s8 + $0x80] sm:$0xff] %vm10276_vm6, %v10256_v39  ;;  %v10257_v51 = vadd.f32 %v17011_v21, %v10214_v12 }
 0xb58   : > { %10294 = vst.msk [vmem:[%s17017_s8 + $0x88] sm:$0xff] %vm10276_vm6, %v10257_v51 }
 0xb59   : > { %v10126_v30 = vpop.f32.mrb[92].mxu1 }
 0xb5a   : > { %v10215_v34 = vadd.f32 %v10126_v30, %v16953_v42  ;;  %v10128_v7 = vpop.f32.mrb[93].mxu1 }
 0xb5b   : > { %v10129_v59 = vpop.f32.mrb[94].mxu1 }
 0xb5c   : > { %v10258_v36 = vadd.f32 %v17011_v21, %v10215_v34  ;;  %v10216_v38 = vadd.f32 %v10129_v59, %v16956_v18  ;;  %v10131_v57 = vpop.f32.mrb[95].mxu1 }
 0xb5e   : > { %10295 = vst.msk [vmem:[%s17017_s8 + $0x90] sm:$0xff] %vm10276_vm6, %v10258_v36  ;;  %v10259_v22 = vadd.f32 %v17011_v21, %v10216_v38 }
 0xb60   : > { %10296 = vst.msk [vmem:[%s17017_s8 + $0x98] sm:$0xff] %vm10276_vm6, %v10259_v22 }
 0xb61   : > { %v10134_v11 = vpop.f32.mrb[96].mxu1 }
 0xb62   : > { %v10217_v62 = vadd.f32 %v10134_v11, %v16959_v25  ;;  %v10136_v42 = vpop.f32.mrb[97].mxu1 }
 0xb63   : > { %v10137_v23 = vpop.f32.mrb[98].mxu1 }
 0xb64   : > { %v10260_v44 = vadd.f32 %v17011_v21, %v10217_v62  ;;  %v10218_v28 = vadd.f32 %v10137_v23, %v16962_v37  ;;  %v10139_v63 = vpop.f32.mrb[99].mxu1 }
 0xb66   : > { %10297 = vst.msk [vmem:[%s17017_s8 + $0xa0] sm:$0xff] %vm10276_vm6, %v10260_v44  ;;  %v10261_v18 = vadd.f32 %v17011_v21, %v10218_v28 }
 0xb68   : > { %10298 = vst.msk [vmem:[%s17017_s8 + $0xa8] sm:$0xff] %vm10276_vm6, %v10261_v18 }
 0xb69   : > { %v10142_v10 = vpop.f32.mrb[100].mxu1 }
 0xb6a   : > { %v10219_v19 = vadd.f32 %v10142_v10, %v16965_v35  ;;  %v10144_v25 = vpop.f32.mrb[101].mxu1 }
 0xb6b   : > { %v10145_v4 = vpop.f32.mrb[102].mxu1 }
 0xb6c   : > { %v10262_v41 = vadd.f32 %v17011_v21, %v10219_v19  ;;  %v10220_v53 = vadd.f32 %v10145_v4, %v16968_v50  ;;  %v10147_v43 = vpop.f32.mrb[103].mxu1 }
 0xb6e   : > { %10299 = vst.msk [vmem:[%s17017_s8 + $0xb0] sm:$0xff] %vm10276_vm6, %v10262_v41  ;;  %v10263_v37 = vadd.f32 %v17011_v21, %v10220_v53 }
 0xb70   : > { %10300 = vst.msk [vmem:[%s17017_s8 + $0xb8] sm:$0xff] %vm10276_vm6, %v10263_v37 }
 0xb71   : > { %v10150_v52 = vpop.f32.mrb[104].mxu1 }
 0xb72   : > { %v10221_v8 = vadd.f32 %v10150_v52, %v16971_v46  ;;  %v10152_v35 = vpop.f32.mrb[105].mxu1 }
 0xb73   : > { %v10153_v14 = vpop.f32.mrb[106].mxu1 }
 0xb74   : > { %v10264_v60 = vadd.f32 %v17011_v21, %v10221_v8  ;;  %v10222_v31 = vadd.f32 %v10153_v14, %v16974_v47  ;;  %v10155_v49 = vpop.f32.mrb[107].mxu1 }
 0xb76   : > { %10301 = vst.msk [vmem:[%s17017_s8 + $0xc0] sm:$0xff] %vm10276_vm6, %v10264_v60  ;;  %v10265_v50 = vadd.f32 %v17011_v21, %v10222_v31 }
 0xb78   : > { %10302 = vst.msk [vmem:[%s17017_s8 + $0xc8] sm:$0xff] %vm10276_vm6, %v10265_v50 }
 0xb79   : > { %v10158_v58 = vpop.f32.mrb[108].mxu1 }
 0xb7a   : > { %v10223_v13 = vadd.f32 %v10158_v58, %v16977_v9  ;;  %v10160_v46 = vpop.f32.mrb[109].mxu1 }
 0xb7b   : > { %v10161_v26 = vpop.f32.mrb[110].mxu1 }
 0xb7c   : > { %v10266_v56 = vadd.f32 %v17011_v21, %v10223_v13  ;;  %v10224_v6 = vadd.f32 %v10161_v26, %v16980_v2  ;;  %v10163_v15 = vpop.f32.mrb[111].mxu1 }
 0xb7e   : > { %10303 = vst.msk [vmem:[%s17017_s8 + $0xd0] sm:$0xff] %vm10276_vm6, %v10266_v56  ;;  %v10267_v47 = vadd.f32 %v17011_v21, %v10224_v6 }
 0xb80   : > { %10304 = vst.msk [vmem:[%s17017_s8 + $0xd8] sm:$0xff] %vm10276_vm6, %v10267_v47 }
 0xb81   : > { %v10166_v61 = vpop.f32.mrb[112].mxu1 }
 0xb82   : > { %v10225_v16 = vadd.f32 %v10166_v61, %v16983_v20  ;;  %v10168_v9 = vpop.f32.mrb[113].mxu1 }
 0xb83   : > { %v10169_v24 = vpop.f32.mrb[114].mxu1 }
 0xb84   : > { %v10268_v27 = vadd.f32 %v17011_v21, %v10225_v16  ;;  %v10226_v40 = vadd.f32 %v10169_v24, %v16986_v1  ;;  %v10171_v32 = vpop.f32.mrb[115].mxu1 }
 0xb86   : > { %10305 = vst.msk [vmem:[%s17017_s8 + $0xe0] sm:$0xff] %vm10276_vm6, %v10268_v27  ;;  %v10269_v2 = vadd.f32 %v17011_v21, %v10226_v40 }
 0xb88   : > { %10306 = vst.msk [vmem:[%s17017_s8 + $0xe8] sm:$0xff] %vm10276_vm6, %v10269_v2 }
 0xb89   : > { %v10174_v55 = vpop.f32.mrb[116].mxu1 }
 0xb8a   : > { %v10227_v17 = vadd.f32 %v10174_v55, %v16989_v5  ;;  %v10176_v20 = vpop.f32.mrb[117].mxu1 }
 0xb8b   : > { %v10177_v54 = vpop.f32.mrb[118].mxu1 }
 0xb8c   : > { %v10270_v39 = vadd.f32 %v17011_v21, %v10227_v17  ;;  %v10228_v12 = vadd.f32 %v10177_v54, %v16992_v3  ;;  %v10179_v0 = vpop.f32.mrb[119].mxu1 }
 0xb8e   : > { %10307 = vst.msk [vmem:[%s17017_s8 + $0xf0] sm:$0xff] %vm10276_vm6, %v10270_v39  ;;  %v10271_v1 = vadd.f32 %v17011_v21, %v10228_v12 }
 0xb90   : > { %10308 = vst.msk [vmem:[%s17017_s8 + $0xf8] sm:$0xff] %vm10276_vm6, %v10271_v1 }
 0xb91   : > { %v10182_v51 = vpop.f32.mrb[120].mxu1 }
 0xb92   : > { %v10229_v30 = vadd.f32 %v10182_v51, %v16995_v29  ;;  %v10184_v5 = vpop.f32.mrb[121].mxu1 }
 0xb93   : > { %v10185_v34 = vpop.f32.mrb[122].mxu1 }
 0xb94   : > { %v10272_v7 = vadd.f32 %v17011_v21, %v10229_v30  ;;  %v10230_v59 = vadd.f32 %v10185_v34, %v16998_v33  ;;  %v10187_v36 = vpop.f32.mrb[123].mxu1 }
 0xb96   : > { %10309 = vst.msk [vmem:[%s17017_s8 + $0x100] sm:$0xff] %vm10276_vm6, %v10272_v7  ;;  %v10273_v3 = vadd.f32 %v17011_v21, %v10230_v59 }
 0xb98   : > { %10310 = vst.msk [vmem:[%s17017_s8 + $0x108] sm:$0xff] %vm10276_vm6, %v10273_v3 }
 0xb99   : > { %v10190_v38 = vpop.f32.mrb[124].mxu1 }
 0xb9a   : > { %v10231_v57 = vadd.f32 %v10190_v38, %v17002_v45  ;;  %v10192_v22 = vpop.f32.mrb[125].mxu1 }
 0xb9b   : > { %v10193_v29 = vpop.f32.mrb[126].mxu1 }
 0xb9c   : > { %v10274_v11 = vadd.f32 %v17011_v21, %v10231_v57  ;;  %v10232_v62 = vadd.f32 %v10193_v29, %v17006_v48  ;;  %v10195_v42 = vpop.f32.mrb[127].mxu1 }
 0xb9e   : > { %10311 = vst.msk [vmem:[%s17017_s8 + $0x110] sm:$0xff] %vm10276_vm6, %v10274_v11  ;;  %v10275_v33 = vadd.f32 %v17011_v21, %v10232_v62 }
 0xba0   : > { %10312 = vst.msk [vmem:[%s17017_s8 + $0x118] sm:$0xff] %vm10276_vm6, %v10275_v33 }
 0xba1 PF: > { %p16_p8 = scmp.ge.s32.totalorder %s12275_s26, 4   ;;  %s18156_s21 = smov %s12203_s22 }
 0xba2   : > { %s18157_s22 = smov %s12207_s23  ;;  %s18158_s23 = smov %s12285_s29 }
 0xba3   : > { %s18159_s24 = smov %s12275_s26  ;;  %18 = sbr.rel (!%p16_p8) target bundleno = 3 (0x3), region = 100 }
 0xbaa   :  { %10334 = vsyncpa [#allocation4], 1 }
 0xbab   :  { %10336 = vsyncpa [#allocation4 + $0x1], 1 }

</bundles_post_ra>
